<compile_context>
chip_gen: v6e
topology: v6e:2x2x1
jax: 0.10.0
libtpu: 0.0.40
codegen_flags: <defaults>
</compile_context>

<pallas_src>
import functools

import jax
import jax.numpy as jnp
from jax.experimental import pallas as pl
from jax.experimental.pallas import tpu as pltpu

LANE = 128
LRELU_SLOPE = 0.1
BN_EPS = 1e-5


def _round_up(x, m):
    return (x + m - 1) // m * m


def _vmem_limit_bytes():
    # v7x has only 64 MiB of VMEM per TensorCore (v5e/v6e: 128 MiB); stay well below.
    try:
        cap = pltpu.get_tpu_info().vmem_capacity_bytes
    except Exception:
        cap = 64 * 1024 * 1024
    return int(min(3 * cap // 4, 48 * 1024 * 1024))


_VMEM_LIMIT = _vmem_limit_bytes()


# ----------------------------------------------------------------------------
# Fused layer kernel: act / BN+LeakyReLU (A @ B + bias), single block.
# ----------------------------------------------------------------------------
def _fused_layer_kernel(*refs, bn, act, phases, m_real, slope):
    """Whole-layer GEMM epilogue fusion.

    y = A @ B + bias                                   (f32 accumulation on the MXU)
    if bn:   per-channel batch mean/var are computed from y itself (channels of a
             transposed-conv layer are replicated `phases` times along N; stats are
             reduced across rows AND phase groups), then y := LeakyReLU(scale*y+shift).
    else:    y := act(y)   (tanh / sigmoid / none)
    """
    if bn:
        a_ref, b_ref, bias_ref, gamma_ref, beta_ref, o_ref = refs
    else:
        a_ref, b_ref, bias_ref, o_ref = refs

    y = jnp.dot(a_ref[...], b_ref[...], preferred_element_type=jnp.float32)
    y = y + bias_ref[...]

    if not bn:
        if act == "tanh":
            y = jnp.tanh(y)
        elif act == "sigmoid":
            y = jax.nn.sigmoid(y)
        o_ref[...] = y.astype(o_ref.dtype)
        return

    mp, n_tot = y.shape
    cpad = n_tot // phases

    # Mask rows that are only M-padding so they never pollute the batch statistics
    # (static Python branch: dead code when Mp == M, which is the case here).
    if m_real != mp:
        row = jax.lax.broadcasted_iota(jnp.int32, (mp, n_tot), 0)
        yv = y * (row < m_real).astype(jnp.float32)
    else:
        yv = y

    s = jnp.zeros((1, cpad), jnp.float32)
    s2 = jnp.zeros((1, cpad), jnp.float32)
    for p in range(phases):                      # static, <= 4 iterations
        yp = yv[:, p * cpad:(p + 1) * cpad]
        s = s + jnp.sum(yp, axis=0, keepdims=True)
        s2 = s2 + jnp.sum(yp * yp, axis=0, keepdims=True)

    inv_count = 1.0 / float(m_real * phases)
    mean = s * inv_count
    var = jnp.maximum(s2 * inv_count - mean * mean, 0.0)     # biased batch variance
    scale = gamma_ref[...] * jax.lax.rsqrt(var + BN_EPS)
    shift = beta_ref[...] - mean * scale

    for p in range(phases):
        yp = y[:, p * cpad:(p + 1) * cpad] * scale + shift
        o_ref[:, p * cpad:(p + 1) * cpad] = jnp.where(
            yp > 0, yp, slope * yp).astype(o_ref.dtype)


def fused_layer(a, w, bias, gamma=None, beta=None, *, act="none", phases=1,
                out_dtype=jnp.bfloat16):
    """One conv / conv-transpose layer as a single-block fused Pallas GEMM.

    a:     (M, K)        im2col slab (any float dtype; cast to bf16 for the MXU)
    w:     (Kp, Np)      pre-padded bf16 weight matrix (Np = phases * cpad)
    bias:  (1, Np)       f32
    gamma/beta: (1, cpad) f32 -> BatchNorm + LeakyReLU fused into the epilogue.
    """
    M, K = a.shape
    Kp, Np = w.shape
    Mp = _round_up(M, 8)

    a_p = a.astype(jnp.bfloat16)
    if Mp != M or Kp != K:
        a_p = jnp.pad(a_p, ((0, Mp - M), (0, Kp - K)))

    bn = gamma is not None

    # Everything (operands + f32 intermediate + output) must sit in VMEM at once.
    vmem_est = (Mp * Kp + Kp * Np) * 2 + Mp * Np * (4 + jnp.dtype(out_dtype).itemsize)
    assert vmem_est < _VMEM_LIMIT, "layer too large for the single-block fused path"
    # TODO(synk): add a tiled (grid over M / K, stats-then-apply) fallback for image
    # sizes where a whole layer no longer fits in VMEM.

    kernel = functools.partial(_fused_layer_kernel, bn=bn, act=act, phases=phases,
                               m_real=M, slope=LRELU_SLOPE)
    inputs = (a_p, w, bias) + ((gamma, beta) if bn else ())

    out = pl.pallas_call(
        kernel,
        out_shape=jax.ShapeDtypeStruct((Mp, Np), out_dtype),
        compiler_params=pltpu.CompilerParams(vmem_limit_bytes=_VMEM_LIMIT),
    )(*inputs)

    return out[:M] if Mp != M else out


# ----------------------------------------------------------------------------
# im2col glue (thin XLA pad / slice / concat around the Pallas GEMM)
# ----------------------------------------------------------------------------
def _im2col(x, kh_sz, kw_sz, stride, pads, cin):
    """x: (N, H, W, C>=cin) NHWC (channels may be lane-padded).  Returns the
    (N*Ho*Wo, kh*kw*cin) patch slab and the output spatial dims."""
    # TODO(synk): the patch slab is still materialized in HBM by XLA glue instead of
    # being streamed per-(kh, kw) tap inside the Pallas kernel.
    N, H, W, _ = x.shape
    t, b, l, r = pads
    xp = jnp.pad(x[..., :cin], ((0, 0), (t, b), (l, r), (0, 0)))
    Ho = (H + t + b - kh_sz) // stride + 1
    Wo = (W + l + r - kw_sz) // stride + 1
    cols = []
    for kh in range(kh_sz):
        for kw in range(kw_sz):
            cols.append(xp[:, kh:kh + stride * (Ho - 1) + 1:stride,
                           kw:kw + stride * (Wo - 1) + 1:stride, :])
    slab = jnp.concatenate(cols, axis=-1)                     # (N, Ho, Wo, kh*kw*cin)
    return slab.reshape(N * Ho * Wo, kh_sz * kw_sz * cin), Ho, Wo


def conv2d_layer(x, prep, name, *, cin, ksize, stride, pad, act="none", bn=False,
                 out_dtype=jnp.bfloat16):
    N = x.shape[0]
    slab, Ho, Wo = _im2col(x, ksize, ksize, stride, (pad, pad, pad, pad), cin)
    gamma = prep[name + "_g"] if bn else None
    beta = prep[name + "_be"] if bn else None
    out = fused_layer(slab, prep[name + "_w"], prep[name + "_b"], gamma, beta,
                      act=act, phases=1, out_dtype=out_dtype)
    return out.reshape(N, Ho, Wo, out.shape[-1])


def conv_transpose_layer(x, prep, name, *, cin, out_dtype=jnp.bfloat16):
    """ConvTranspose2d(kernel=4, stride=2, padding=1) via sub-pixel decomposition with
    the four output-parity phases packed along N of a single fused GEMM: one shared 3x3
    im2col of the pad-1 input; each phase's exact 2x2 taps are embedded in the weight
    matrix.  BatchNorm (stats over all phases) + LeakyReLU run in the same epilogue."""
    N, H, W, _ = x.shape
    slab, _, _ = _im2col(x, 3, 3, 1, (1, 1, 1, 1), cin)       # (N*H*W, 9*cin)
    out = fused_layer(slab, prep[name + "_w"], prep[name + "_b"],
                      prep[name + "_g"], prep[name + "_be"],
                      phases=4, out_dtype=out_dtype)          # (N*H*W, 4*cpad)
    cpad = out.shape[-1] // 4
    # TODO(synk): the phase->spatial interleave is still an XLA transpose (one extra
    # HBM pass); the following layer's im2col could consume the phase layout directly.
    out = out.reshape(N, H, W, 2, 2, cpad)                    # (n, h, w, pr, pc, c)
    return out.transpose(0, 1, 3, 2, 4, 5).reshape(N, 2 * H, 2 * W, cpad)


# ----------------------------------------------------------------------------
# Parameters
# ----------------------------------------------------------------------------
def init_params(key, latent_channels=4):
    ks = jax.random.split(key, 7)
    s = 0.05

    def w(k, shape):
        return s * jax.random.normal(k, shape, jnp.float32)

    p = {}
    # Encoder: Conv(3->64,k4,s2,p1), BN, Conv(64->128,k4,s2,p1), BN, Conv(128->L,k3,s1,p1)
    p["e1_w"], p["e1_b"] = w(ks[0], (4, 4, 3, 64)), jnp.zeros((64,), jnp.float32)
    p["e1_g"], p["e1_be"] = jnp.ones((64,), jnp.float32), jnp.zeros((64,), jnp.float32)
    p["e2_w"], p["e2_b"] = w(ks[1], (4, 4, 64, 128)), jnp.zeros((128,), jnp.float32)
    p["e2_g"], p["e2_be"] = jnp.ones((128,), jnp.float32), jnp.zeros((128,), jnp.float32)
    p["e3_w"], p["e3_b"] = w(ks[2], (3, 3, 128, latent_channels)), jnp.zeros((latent_channels,), jnp.float32)
    # Decoder: ConvT(L->128,k4,s2,p1), BN, ConvT(128->64,k4,s2,p1), BN, Conv(64->3,k3,s1,p1)
    # NOTE: ConvTranspose weights use the (KH,KW,Cin,Cout) forward-conv-on-dilated-input
    # layout (self-consistent with this init); porting PyTorch ConvTranspose2d weights
    # would additionally require a spatial flip + (Cin,Cout) axis transpose.
    p["d1_w"], p["d1_b"] = w(ks[3], (4, 4, latent_channels, 128)), jnp.zeros((128,), jnp.float32)
    p["d1_g"], p["d1_be"] = jnp.ones((128,), jnp.float32), jnp.zeros((128,), jnp.float32)
    p["d2_w"], p["d2_b"] = w(ks[4], (4, 4, 128, 64)), jnp.zeros((64,), jnp.float32)
    p["d2_g"], p["d2_be"] = jnp.ones((64,), jnp.float32), jnp.zeros((64,), jnp.float32)
    p["d3_w"], p["d3_b"] = w(ks[5], (3, 3, 64, 3)), jnp.zeros((3,), jnp.float32)
    return p


def _prep_conv_weight(w):
    KH, KW, Cin, Cout = w.shape
    K = KH * KW * Cin
    Kp, Np = _round_up(K, 16), _round_up(Cout, LANE)
    wm = jnp.zeros((Kp, Np), jnp.float32).at[:K, :Cout].set(w.reshape(K, Cout))
    return wm.astype(jnp.bfloat16)                             # (Kp, Np)


def _prep_convt_weight_packed(w):
    """Pack the 4 sub-pixel phases of a k=4/s=2/p=1 transposed conv along N: phase
    (pr,pc) uses taps w[pr::2, pc::2] as a 2x2 forward conv whose window sits at offset
    (pr,pc) inside the shared 3x3 window of the pad-1 input."""
    _, _, Cin, Cout = w.shape
    K = 9 * Cin
    Kp = _round_up(K, 16)
    cpad = _round_up(Cout, LANE)
    bm = jnp.zeros((Kp, 4 * cpad), jnp.float32)
    for p in range(4):
        pr, pc = divmod(p, 2)
        for dh in range(3):
            if not 0 <= dh - pr <= 1:
                continue
            for dw in range(3):
                if not 0 <= dw - pc <= 1:
                    continue
                tap = w[2 * dh - pr, 2 * dw - pc]              # (Cin, Cout)
                row0 = (dh * 3 + dw) * Cin
                bm = bm.at[row0:row0 + Cin, p * cpad:p * cpad + Cout].set(tap)
    return bm.astype(jnp.bfloat16)                             # (Kp, 4*cpad)


def _prep_bias(b):
    Np = _round_up(b.shape[0], LANE)
    return jnp.zeros((1, Np), jnp.float32).at[0, :b.shape[0]].set(b)


def _prep_convt_bias_packed(b):
    cpad = _round_up(b.shape[0], LANE)
    vec = jnp.zeros((cpad,), jnp.float32).at[:b.shape[0]].set(b)
    return jnp.tile(vec, 4).reshape(1, 4 * cpad)


def _prep_vec(v):
    Np = _round_up(v.shape[0], LANE)
    return jnp.zeros((1, Np), jnp.float32).at[0, :v.shape[0]].set(v)


def prepare_params(p):
    """One-time packing of the raw parameters into pre-padded, lane-dense bf16 GEMM
    operands (done once, outside the jitted forward)."""
    q = {}
    for name in ("e1", "e2", "e3", "d3"):
        q[name + "_w"] = _prep_conv_weight(p[name + "_w"])
        q[name + "_b"] = _prep_bias(p[name + "_b"])
    for name in ("d1", "d2"):
        q[name + "_w"] = _prep_convt_weight_packed(p[name + "_w"])
        q[name + "_b"] = _prep_convt_bias_packed(p[name + "_b"])
    for name in ("e1", "e2", "d1", "d2"):
        q[name + "_g"] = _prep_vec(p[name + "_g"])
        q[name + "_be"] = _prep_vec(p[name + "_be"])
    return q


# ----------------------------------------------------------------------------
# Autoencoder forward (Encoder -> Decoder), matching the PyTorch module
# ----------------------------------------------------------------------------
@functools.partial(jax.jit, static_argnums=(2,))
def autoencoder_forward(x_nchw, prep, latent_channels=4):
    x = jnp.transpose(x_nchw, (0, 2, 3, 1)).astype(jnp.bfloat16)   # NCHW -> NHWC
    # ---- Encoder ----
    h = conv2d_layer(x, prep, "e1", cin=3, ksize=4, stride=2, pad=1, bn=True)
    h = conv2d_layer(h, prep, "e2", cin=64, ksize=4, stride=2, pad=1, bn=True)
    z = conv2d_layer(h, prep, "e3", cin=128, ksize=3, stride=1, pad=1, act="tanh")
    # ---- Decoder ----
    h = conv_transpose_layer(z, prep, "d1", cin=latent_channels)
    h = conv_transpose_layer(h, prep, "d2", cin=128)
    y = conv2d_layer(h, prep, "d3", cin=64, ksize=3, stride=1, pad=1, act="sigmoid",
                     out_dtype=jnp.bfloat16)
    y = y[..., :3].astype(jnp.float32)                        # drop lane padding, f32
    return jnp.transpose(y, (0, 3, 1, 2))                     # NHWC -> NCHW


if __name__ == "__main__":
    key = jax.random.PRNGKey(0)
    k_param, k_x = jax.random.split(key)
    latent_channels = 4
    params = init_params(k_param, latent_channels)
    prep = prepare_params(params)
    # Input images: NCHW, 3 channels, 16x16 spatial, batch=2
    x = jax.random.uniform(k_x, (2, 3, 16, 16), jnp.float32)

    out = autoencoder_forward(x, prep, latent_channels)
    out = jax.block_until_ready(out)

    assert out.shape == (2, 3, 16, 16), out.shape
    assert bool(jnp.all(jnp.isfinite(out)))
    assert bool(jnp.all((out >= 0.0) & (out <= 1.0)))  # sigmoid output range
    print("KERNEL_OK")
</pallas_src>

<mosaic_0001>
module attributes {stable_mosaic.version = 11 : i64} {
  func.func @_fused_layer_kernel(%arg0: memref<128x48xbf16, #tpu.memory_space<vmem>>, %arg1: memref<48x128xbf16, #tpu.memory_space<vmem>>, %arg2: memref<1x128xf32, #tpu.memory_space<vmem>>, %arg3: memref<1x128xf32, #tpu.memory_space<vmem>>, %arg4: memref<1x128xf32, #tpu.memory_space<vmem>>, %arg5: memref<128x128xbf16, #tpu.memory_space<vmem>>) attributes {dimension_semantics = [], scalar_prefetch = 0 : i64, scratch_operands = 0 : i64, tpu.core_type = #tpu.core_type<tc>} {
    %c0 = arith.constant 0 : index
    %c0_0 = arith.constant 0 : index
    %0 = vector.load %arg0[%c0, %c0_0] : memref<128x48xbf16, #tpu.memory_space<vmem>>, vector<128x48xbf16>
    %c0_1 = arith.constant 0 : index
    %c0_2 = arith.constant 0 : index
    %1 = vector.load %arg1[%c0_1, %c0_2] : memref<48x128xbf16, #tpu.memory_space<vmem>>, vector<48x128xbf16>
    %cst = arith.constant dense<0.000000e+00> : vector<128x128xf32>
    %2 = tpu.matmul %0, %1, %cst {dimension_numbers = #tpu.dot_dimension_numbers<[1], [0], [0], [1], [0, 0, 1, 1], [], []>} : vector<128x48xbf16>, vector<48x128xbf16>, vector<128x128xf32> -> vector<128x128xf32>
    %c0_3 = arith.constant 0 : index
    %c0_4 = arith.constant 0 : index
    %3 = vector.load %arg2[%c0_3, %c0_4] : memref<1x128xf32, #tpu.memory_space<vmem>>, vector<1x128xf32>
    %4 = vector.broadcast %3 : vector<1x128xf32> to vector<128x128xf32>
    %5 = arith.addf %2, %4 : vector<128x128xf32>
    %cst_5 = arith.constant 0.000000e+00 : f32
    %6 = vector.broadcast %cst_5 : f32 to vector<1x128xf32>
    %cst_6 = arith.constant 0.000000e+00 : f32
    %7 = vector.broadcast %cst_6 : f32 to vector<1x128xf32>
    %cst_7 = arith.constant dense<0.000000e+00> : vector<128xf32>
    %8 = vector.multi_reduction <add>, %5, %cst_7 [0] : vector<128x128xf32> to vector<128xf32>
    %9 = vector.shape_cast %8 : vector<128xf32> to vector<1x128xf32>
    %10 = arith.addf %6, %9 : vector<1x128xf32>
    %11 = arith.mulf %5, %5 : vector<128x128xf32>
    %cst_8 = arith.constant dense<0.000000e+00> : vector<128xf32>
    %12 = vector.multi_reduction <add>, %11, %cst_8 [0] : vector<128x128xf32> to vector<128xf32>
    %13 = vector.shape_cast %12 : vector<128xf32> to vector<1x128xf32>
    %14 = arith.addf %7, %13 : vector<1x128xf32>
    %cst_9 = arith.constant 7.812500e-03 : f32
    %15 = vector.broadcast %cst_9 : f32 to vector<1x128xf32>
    %16 = arith.mulf %10, %15 : vector<1x128xf32>
    %cst_10 = arith.constant 7.812500e-03 : f32
    %17 = vector.broadcast %cst_10 : f32 to vector<1x128xf32>
    %18 = arith.mulf %14, %17 : vector<1x128xf32>
    %19 = arith.mulf %16, %16 : vector<1x128xf32>
    %20 = arith.subf %18, %19 : vector<1x128xf32>
    %cst_11 = arith.constant 0.000000e+00 : f32
    %21 = vector.broadcast %cst_11 : f32 to vector<1x128xf32>
    %22 = arith.maximumf %20, %21 : vector<1x128xf32>
    %c0_12 = arith.constant 0 : index
    %c0_13 = arith.constant 0 : index
    %23 = vector.load %arg3[%c0_12, %c0_13] : memref<1x128xf32, #tpu.memory_space<vmem>>, vector<1x128xf32>
    %cst_14 = arith.constant 9.99999974E-6 : f32
    %24 = vector.broadcast %cst_14 : f32 to vector<1x128xf32>
    %25 = arith.addf %22, %24 : vector<1x128xf32>
    %26 = math.rsqrt %25 : vector<1x128xf32>
    %27 = arith.mulf %23, %26 : vector<1x128xf32>
    %c0_15 = arith.constant 0 : index
    %c0_16 = arith.constant 0 : index
    %28 = vector.load %arg4[%c0_15, %c0_16] : memref<1x128xf32, #tpu.memory_space<vmem>>, vector<1x128xf32>
    %29 = arith.mulf %16, %27 : vector<1x128xf32>
    %30 = arith.subf %28, %29 : vector<1x128xf32>
    %31 = vector.broadcast %27 : vector<1x128xf32> to vector<128x128xf32>
    %32 = arith.mulf %5, %31 : vector<128x128xf32>
    %33 = vector.broadcast %30 : vector<1x128xf32> to vector<128x128xf32>
    %34 = arith.addf %32, %33 : vector<128x128xf32>
    %cst_17 = arith.constant 0.000000e+00 : f32
    %35 = vector.broadcast %cst_17 : f32 to vector<128x128xf32>
    %36 = arith.cmpf ogt, %34, %35 : vector<128x128xf32>
    %cst_18 = arith.constant 1.000000e-01 : f32
    %37 = vector.broadcast %cst_18 : f32 to vector<128x128xf32>
    %38 = arith.mulf %37, %34 : vector<128x128xf32>
    %39 = arith.select %36, %34, %38 : vector<128x128xi1>, vector<128x128xf32>
    %40 = arith.truncf %39 : vector<128x128xf32> to vector<128x128xbf16>
    %c0_19 = arith.constant 0 : index
    %c0_20 = arith.constant 0 : index
    %41 = vector.load %arg5[%c0_19, %c0_20] : memref<128x128xbf16, #tpu.memory_space<vmem>>, vector<128x128xbf16>
    tpu.vector_store %arg5[%c0_19, %c0_20], %40 {strides = array<i32>} : memref<128x128xbf16, #tpu.memory_space<vmem>>, vector<128x128xbf16>,
    return
  }
}

module attributes {stable_mosaic.version = 11 : i64} {
  func.func @_fused_layer_kernel(%arg0: memref<32x1024xbf16, #tpu.memory_space<vmem>>, %arg1: memref<1024x128xbf16, #tpu.memory_space<vmem>>, %arg2: memref<1x128xf32, #tpu.memory_space<vmem>>, %arg3: memref<1x128xf32, #tpu.memory_space<vmem>>, %arg4: memref<1x128xf32, #tpu.memory_space<vmem>>, %arg5: memref<32x128xbf16, #tpu.memory_space<vmem>>) attributes {dimension_semantics = [], scalar_prefetch = 0 : i64, scratch_operands = 0 : i64, tpu.core_type = #tpu.core_type<tc>} {
    %c0 = arith.constant 0 : index
    %c0_0 = arith.constant 0 : index
    %0 = vector.load %arg0[%c0, %c0_0] : memref<32x1024xbf16, #tpu.memory_space<vmem>>, vector<32x1024xbf16>
    %c0_1 = arith.constant 0 : index
    %c0_2 = arith.constant 0 : index
    %1 = vector.load %arg1[%c0_1, %c0_2] : memref<1024x128xbf16, #tpu.memory_space<vmem>>, vector<1024x128xbf16>
    %cst = arith.constant dense<0.000000e+00> : vector<32x128xf32>
    %2 = tpu.matmul %0, %1, %cst {dimension_numbers = #tpu.dot_dimension_numbers<[1], [0], [0], [1], [0, 0, 1, 1], [], []>} : vector<32x1024xbf16>, vector<1024x128xbf16>, vector<32x128xf32> -> vector<32x128xf32>
    %c0_3 = arith.constant 0 : index
    %c0_4 = arith.constant 0 : index
    %3 = vector.load %arg2[%c0_3, %c0_4] : memref<1x128xf32, #tpu.memory_space<vmem>>, vector<1x128xf32>
    %4 = vector.broadcast %3 : vector<1x128xf32> to vector<32x128xf32>
    %5 = arith.addf %2, %4 : vector<32x128xf32>
    %cst_5 = arith.constant 0.000000e+00 : f32
    %6 = vector.broadcast %cst_5 : f32 to vector<1x128xf32>
    %cst_6 = arith.constant 0.000000e+00 : f32
    %7 = vector.broadcast %cst_6 : f32 to vector<1x128xf32>
    %cst_7 = arith.constant dense<0.000000e+00> : vector<128xf32>
    %8 = vector.multi_reduction <add>, %5, %cst_7 [0] : vector<32x128xf32> to vector<128xf32>
    %9 = vector.shape_cast %8 : vector<128xf32> to vector<1x128xf32>
    %10 = arith.addf %6, %9 : vector<1x128xf32>
    %11 = arith.mulf %5, %5 : vector<32x128xf32>
    %cst_8 = arith.constant dense<0.000000e+00> : vector<128xf32>
    %12 = vector.multi_reduction <add>, %11, %cst_8 [0] : vector<32x128xf32> to vector<128xf32>
    %13 = vector.shape_cast %12 : vector<128xf32> to vector<1x128xf32>
    %14 = arith.addf %7, %13 : vector<1x128xf32>
    %cst_9 = arith.constant 3.125000e-02 : f32
    %15 = vector.broadcast %cst_9 : f32 to vector<1x128xf32>
    %16 = arith.mulf %10, %15 : vector<1x128xf32>
    %cst_10 = arith.constant 3.125000e-02 : f32
    %17 = vector.broadcast %cst_10 : f32 to vector<1x128xf32>
    %18 = arith.mulf %14, %17 : vector<1x128xf32>
    %19 = arith.mulf %16, %16 : vector<1x128xf32>
    %20 = arith.subf %18, %19 : vector<1x128xf32>
    %cst_11 = arith.constant 0.000000e+00 : f32
    %21 = vector.broadcast %cst_11 : f32 to vector<1x128xf32>
    %22 = arith.maximumf %20, %21 : vector<1x128xf32>
    %c0_12 = arith.constant 0 : index
    %c0_13 = arith.constant 0 : index
    %23 = vector.load %arg3[%c0_12, %c0_13] : memref<1x128xf32, #tpu.memory_space<vmem>>, vector<1x128xf32>
    %cst_14 = arith.constant 9.99999974E-6 : f32
    %24 = vector.broadcast %cst_14 : f32 to vector<1x128xf32>
    %25 = arith.addf %22, %24 : vector<1x128xf32>
    %26 = math.rsqrt %25 : vector<1x128xf32>
    %27 = arith.mulf %23, %26 : vector<1x128xf32>
    %c0_15 = arith.constant 0 : index
    %c0_16 = arith.constant 0 : index
    %28 = vector.load %arg4[%c0_15, %c0_16] : memref<1x128xf32, #tpu.memory_space<vmem>>, vector<1x128xf32>
    %29 = arith.mulf %16, %27 : vector<1x128xf32>
    %30 = arith.subf %28, %29 : vector<1x128xf32>
    %31 = vector.broadcast %27 : vector<1x128xf32> to vector<32x128xf32>
    %32 = arith.mulf %5, %31 : vector<32x128xf32>
    %33 = vector.broadcast %30 : vector<1x128xf32> to vector<32x128xf32>
    %34 = arith.addf %32, %33 : vector<32x128xf32>
    %cst_17 = arith.constant 0.000000e+00 : f32
    %35 = vector.broadcast %cst_17 : f32 to vector<32x128xf32>
    %36 = arith.cmpf ogt, %34, %35 : vector<32x128xf32>
    %cst_18 = arith.constant 1.000000e-01 : f32
    %37 = vector.broadcast %cst_18 : f32 to vector<32x128xf32>
    %38 = arith.mulf %37, %34 : vector<32x128xf32>
    %39 = arith.select %36, %34, %38 : vector<32x128xi1>, vector<32x128xf32>
    %40 = arith.truncf %39 : vector<32x128xf32> to vector<32x128xbf16>
    %c0_19 = arith.constant 0 : index
    %c0_20 = arith.constant 0 : index
    %41 = vector.load %arg5[%c0_19, %c0_20] : memref<32x128xbf16, #tpu.memory_space<vmem>>, vector<32x128xbf16>
    tpu.vector_store %arg5[%c0_19, %c0_20], %40 {strides = array<i32>} : memref<32x128xbf16, #tpu.memory_space<vmem>>, vector<32x128xbf16>,
    return
  }
}

module attributes {stable_mosaic.version = 11 : i64} {
  func.func @_fused_layer_kernel(%arg0: memref<32x1152xbf16, #tpu.memory_space<vmem>>, %arg1: memref<1152x128xbf16, #tpu.memory_space<vmem>>, %arg2: memref<1x128xf32, #tpu.memory_space<vmem>>, %arg3: memref<32x128xbf16, #tpu.memory_space<vmem>>) attributes {dimension_semantics = [], scalar_prefetch = 0 : i64, scratch_operands = 0 : i64, tpu.core_type = #tpu.core_type<tc>} {
    %c0 = arith.constant 0 : index
    %c0_0 = arith.constant 0 : index
    %0 = vector.load %arg0[%c0, %c0_0] : memref<32x1152xbf16, #tpu.memory_space<vmem>>, vector<32x1152xbf16>
    %c0_1 = arith.constant 0 : index
    %c0_2 = arith.constant 0 : index
    %1 = vector.load %arg1[%c0_1, %c0_2] : memref<1152x128xbf16, #tpu.memory_space<vmem>>, vector<1152x128xbf16>
    %cst = arith.constant dense<0.000000e+00> : vector<32x128xf32>
    %2 = tpu.matmul %0, %1, %cst {dimension_numbers = #tpu.dot_dimension_numbers<[1], [0], [0], [1], [0, 0, 1, 1], [], []>} : vector<32x1152xbf16>, vector<1152x128xbf16>, vector<32x128xf32> -> vector<32x128xf32>
    %c0_3 = arith.constant 0 : index
    %c0_4 = arith.constant 0 : index
    %3 = vector.load %arg2[%c0_3, %c0_4] : memref<1x128xf32, #tpu.memory_space<vmem>>, vector<1x128xf32>
    %4 = vector.broadcast %3 : vector<1x128xf32> to vector<32x128xf32>
    %5 = arith.addf %2, %4 : vector<32x128xf32>
    %6 = math.tanh %5 : vector<32x128xf32>
    %7 = arith.truncf %6 : vector<32x128xf32> to vector<32x128xbf16>
    %c0_5 = arith.constant 0 : index
    %c0_6 = arith.constant 0 : index
    %8 = vector.load %arg3[%c0_5, %c0_6] : memref<32x128xbf16, #tpu.memory_space<vmem>>, vector<32x128xbf16>
    tpu.vector_store %arg3[%c0_5, %c0_6], %7 {strides = array<i32>} : memref<32x128xbf16, #tpu.memory_space<vmem>>, vector<32x128xbf16>,
    return
  }
}

module attributes {stable_mosaic.version = 11 : i64} {
  func.func @_fused_layer_kernel(%arg0: memref<32x48xbf16, #tpu.memory_space<vmem>>, %arg1: memref<48x512xbf16, #tpu.memory_space<vmem>>, %arg2: memref<1x512xf32, #tpu.memory_space<vmem>>, %arg3: memref<1x128xf32, #tpu.memory_space<vmem>>, %arg4: memref<1x128xf32, #tpu.memory_space<vmem>>, %arg5: memref<32x512xbf16, #tpu.memory_space<vmem>>) attributes {dimension_semantics = [], scalar_prefetch = 0 : i64, scratch_operands = 0 : i64, tpu.core_type = #tpu.core_type<tc>} {
    %c0 = arith.constant 0 : index
    %c0_0 = arith.constant 0 : index
    %0 = vector.load %arg0[%c0, %c0_0] : memref<32x48xbf16, #tpu.memory_space<vmem>>, vector<32x48xbf16>
    %c0_1 = arith.constant 0 : index
    %c0_2 = arith.constant 0 : index
    %1 = vector.load %arg1[%c0_1, %c0_2] : memref<48x512xbf16, #tpu.memory_space<vmem>>, vector<48x512xbf16>
    %cst = arith.constant dense<0.000000e+00> : vector<32x512xf32>
    %2 = tpu.matmul %0, %1, %cst {dimension_numbers = #tpu.dot_dimension_numbers<[1], [0], [0], [1], [0, 0, 1, 1], [], []>} : vector<32x48xbf16>, vector<48x512xbf16>, vector<32x512xf32> -> vector<32x512xf32>
    %c0_3 = arith.constant 0 : index
    %c0_4 = arith.constant 0 : index
    %3 = vector.load %arg2[%c0_3, %c0_4] : memref<1x512xf32, #tpu.memory_space<vmem>>, vector<1x512xf32>
    %4 = vector.broadcast %3 : vector<1x512xf32> to vector<32x512xf32>
    %5 = arith.addf %2, %4 : vector<32x512xf32>
    %cst_5 = arith.constant 0.000000e+00 : f32
    %6 = vector.broadcast %cst_5 : f32 to vector<1x128xf32>
    %cst_6 = arith.constant 0.000000e+00 : f32
    %7 = vector.broadcast %cst_6 : f32 to vector<1x128xf32>
    %8 = vector.extract_strided_slice %5 {offsets = [0, 0], sizes = [32, 128], strides = [1, 1]} : vector<32x512xf32> to vector<32x128xf32>
    %cst_7 = arith.constant dense<0.000000e+00> : vector<128xf32>
    %9 = vector.multi_reduction <add>, %8, %cst_7 [0] : vector<32x128xf32> to vector<128xf32>
    %10 = vector.shape_cast %9 : vector<128xf32> to vector<1x128xf32>
    %11 = arith.addf %6, %10 : vector<1x128xf32>
    %12 = arith.mulf %8, %8 : vector<32x128xf32>
    %cst_8 = arith.constant dense<0.000000e+00> : vector<128xf32>
    %13 = vector.multi_reduction <add>, %12, %cst_8 [0] : vector<32x128xf32> to vector<128xf32>
    %14 = vector.shape_cast %13 : vector<128xf32> to vector<1x128xf32>
    %15 = arith.addf %7, %14 : vector<1x128xf32>
    %16 = vector.extract_strided_slice %5 {offsets = [0, 128], sizes = [32, 128], strides = [1, 1]} : vector<32x512xf32> to vector<32x128xf32>
    %cst_9 = arith.constant dense<0.000000e+00> : vector<128xf32>
    %17 = vector.multi_reduction <add>, %16, %cst_9 [0] : vector<32x128xf32> to vector<128xf32>
    %18 = vector.shape_cast %17 : vector<128xf32> to vector<1x128xf32>
    %19 = arith.addf %11, %18 : vector<1x128xf32>
    %20 = arith.mulf %16, %16 : vector<32x128xf32>
    %cst_10 = arith.constant dense<0.000000e+00> : vector<128xf32>
    %21 = vector.multi_reduction <add>, %20, %cst_10 [0] : vector<32x128xf32> to vector<128xf32>
    %22 = vector.shape_cast %21 : vector<128xf32> to vector<1x128xf32>
    %23 = arith.addf %15, %22 : vector<1x128xf32>
    %24 = vector.extract_strided_slice %5 {offsets = [0, 256], sizes = [32, 128], strides = [1, 1]} : vector<32x512xf32> to vector<32x128xf32>
    %cst_11 = arith.constant dense<0.000000e+00> : vector<128xf32>
    %25 = vector.multi_reduction <add>, %24, %cst_11 [0] : vector<32x128xf32> to vector<128xf32>
    %26 = vector.shape_cast %25 : vector<128xf32> to vector<1x128xf32>
    %27 = arith.addf %19, %26 : vector<1x128xf32>
    %28 = arith.mulf %24, %24 : vector<32x128xf32>
    %cst_12 = arith.constant dense<0.000000e+00> : vector<128xf32>
    %29 = vector.multi_reduction <add>, %28, %cst_12 [0] : vector<32x128xf32> to vector<128xf32>
    %30 = vector.shape_cast %29 : vector<128xf32> to vector<1x128xf32>
    %31 = arith.addf %23, %30 : vector<1x128xf32>
    %32 = vector.extract_strided_slice %5 {offsets = [0, 384], sizes = [32, 128], strides = [1, 1]} : vector<32x512xf32> to vector<32x128xf32>
    %cst_13 = arith.constant dense<0.000000e+00> : vector<128xf32>
    %33 = vector.multi_reduction <add>, %32, %cst_13 [0] : vector<32x128xf32> to vector<128xf32>
    %34 = vector.shape_cast %33 : vector<128xf32> to vector<1x128xf32>
    %35 = arith.addf %27, %34 : vector<1x128xf32>
    %36 = arith.mulf %32, %32 : vector<32x128xf32>
    %cst_14 = arith.constant dense<0.000000e+00> : vector<128xf32>
    %37 = vector.multi_reduction <add>, %36, %cst_14 [0] : vector<32x128xf32> to vector<128xf32>
    %38 = vector.shape_cast %37 : vector<128xf32> to vector<1x128xf32>
    %39 = arith.addf %31, %38 : vector<1x128xf32>
    %cst_15 = arith.constant 7.812500e-03 : f32
    %40 = vector.broadcast %cst_15 : f32 to vector<1x128xf32>
    %41 = arith.mulf %35, %40 : vector<1x128xf32>
    %cst_16 = arith.constant 7.812500e-03 : f32
    %42 = vector.broadcast %cst_16 : f32 to vector<1x128xf32>
    %43 = arith.mulf %39, %42 : vector<1x128xf32>
    %44 = arith.mulf %41, %41 : vector<1x128xf32>
    %45 = arith.subf %43, %44 : vector<1x128xf32>
    %cst_17 = arith.constant 0.000000e+00 : f32
    %46 = vector.broadcast %cst_17 : f32 to vector<1x128xf32>
    %47 = arith.maximumf %45, %46 : vector<1x128xf32>
    %c0_18 = arith.constant 0 : index
    %c0_19 = arith.constant 0 : index
    %48 = vector.load %arg3[%c0_18, %c0_19] : memref<1x128xf32, #tpu.memory_space<vmem>>, vector<1x128xf32>
    %cst_20 = arith.constant 9.99999974E-6 : f32
    %49 = vector.broadcast %cst_20 : f32 to vector<1x128xf32>
    %50 = arith.addf %47, %49 : vector<1x128xf32>
    %51 = math.rsqrt %50 : vector<1x128xf32>
    %52 = arith.mulf %48, %51 : vector<1x128xf32>
    %c0_21 = arith.constant 0 : index
    %c0_22 = arith.constant 0 : index
    %53 = vector.load %arg4[%c0_21, %c0_22] : memref<1x128xf32, #tpu.memory_space<vmem>>, vector<1x128xf32>
    %54 = arith.mulf %41, %52 : vector<1x128xf32>
    %55 = arith.subf %53, %54 : vector<1x128xf32>
    %56 = vector.extract_strided_slice %5 {offsets = [0, 0], sizes = [32, 128], strides = [1, 1]} : vector<32x512xf32> to vector<32x128xf32>
    %57 = vector.broadcast %52 : vector<1x128xf32> to vector<32x128xf32>
    %58 = arith.mulf %56, %57 : vector<32x128xf32>
    %59 = vector.broadcast %55 : vector<1x128xf32> to vector<32x128xf32>
    %60 = arith.addf %58, %59 : vector<32x128xf32>
    %cst_23 = arith.constant 0.000000e+00 : f32
    %61 = vector.broadcast %cst_23 : f32 to vector<32x128xf32>
    %62 = arith.cmpf ogt, %60, %61 : vector<32x128xf32>
    %cst_24 = arith.constant 1.000000e-01 : f32
    %63 = vector.broadcast %cst_24 : f32 to vector<32x128xf32>
    %64 = arith.mulf %63, %60 : vector<32x128xf32>
    %65 = arith.select %62, %60, %64 : vector<32x128xi1>, vector<32x128xf32>
    %66 = arith.truncf %65 : vector<32x128xf32> to vector<32x128xbf16>
    %c0_25 = arith.constant 0 : index
    %c0_26 = arith.constant 0 : index
    %67 = vector.load %arg5[%c0_25, %c0_26] : memref<32x512xbf16, #tpu.memory_space<vmem>>, vector<32x128xbf16>
    tpu.vector_store %arg5[%c0_25, %c0_26], %66 {strides = array<i32>} : memref<32x512xbf16, #tpu.memory_space<vmem>>, vector<32x128xbf16>,
    %68 = vector.extract_strided_slice %5 {offsets = [0, 128], sizes = [32, 128], strides = [1, 1]} : vector<32x512xf32> to vector<32x128xf32>
    %69 = vector.broadcast %52 : vector<1x128xf32> to vector<32x128xf32>
    %70 = arith.mulf %68, %69 : vector<32x128xf32>
    %71 = vector.broadcast %55 : vector<1x128xf32> to vector<32x128xf32>
    %72 = arith.addf %70, %71 : vector<32x128xf32>
    %cst_27 = arith.constant 0.000000e+00 : f32
    %73 = vector.broadcast %cst_27 : f32 to vector<32x128xf32>
    %74 = arith.cmpf ogt, %72, %73 : vector<32x128xf32>
    %cst_28 = arith.constant 1.000000e-01 : f32
    %75 = vector.broadcast %cst_28 : f32 to vector<32x128xf32>
    %76 = arith.mulf %75, %72 : vector<32x128xf32>
    %77 = arith.select %74, %72, %76 : vector<32x128xi1>, vector<32x128xf32>
    %78 = arith.truncf %77 : vector<32x128xf32> to vector<32x128xbf16>
    %c0_29 = arith.constant 0 : index
    %c128 = arith.constant 128 : index
    %79 = vector.load %arg5[%c0_29, %c128] : memref<32x512xbf16, #tpu.memory_space<vmem>>, vector<32x128xbf16>
    tpu.vector_store %arg5[%c0_29, %c128], %78 {strides = array<i32>} : memref<32x512xbf16, #tpu.memory_space<vmem>>, vector<32x128xbf16>,
    %80 = vector.extract_strided_slice %5 {offsets = [0, 256], sizes = [32, 128], strides = [1, 1]} : vector<32x512xf32> to vector<32x128xf32>
    %81 = vector.broadcast %52 : vector<1x128xf32> to vector<32x128xf32>
    %82 = arith.mulf %80, %81 : vector<32x128xf32>
    %83 = vector.broadcast %55 : vector<1x128xf32> to vector<32x128xf32>
    %84 = arith.addf %82, %83 : vector<32x128xf32>
    %cst_30 = arith.constant 0.000000e+00 : f32
    %85 = vector.broadcast %cst_30 : f32 to vector<32x128xf32>
    %86 = arith.cmpf ogt, %84, %85 : vector<32x128xf32>
    %cst_31 = arith.constant 1.000000e-01 : f32
    %87 = vector.broadcast %cst_31 : f32 to vector<32x128xf32>
    %88 = arith.mulf %87, %84 : vector<32x128xf32>
    %89 = arith.select %86, %84, %88 : vector<32x128xi1>, vector<32x128xf32>
    %90 = arith.truncf %89 : vector<32x128xf32> to vector<32x128xbf16>
    %c0_32 = arith.constant 0 : index
    %c256 = arith.constant 256 : index
    %91 = vector.load %arg5[%c0_32, %c256] : memref<32x512xbf16, #tpu.memory_space<vmem>>, vector<32x128xbf16>
    tpu.vector_store %arg5[%c0_32, %c256], %90 {strides = array<i32>} : memref<32x512xbf16, #tpu.memory_space<vmem>>, vector<32x128xbf16>,
    %92 = vector.extract_strided_slice %5 {offsets = [0, 384], sizes = [32, 128], strides = [1, 1]} : vector<32x512xf32> to vector<32x128xf32>
    %93 = vector.broadcast %52 : vector<1x128xf32> to vector<32x128xf32>
    %94 = arith.mulf %92, %93 : vector<32x128xf32>
    %95 = vector.broadcast %55 : vector<1x128xf32> to vector<32x128xf32>
    %96 = arith.addf %94, %95 : vector<32x128xf32>
    %cst_33 = arith.constant 0.000000e+00 : f32
    %97 = vector.broadcast %cst_33 : f32 to vector<32x128xf32>
    %98 = arith.cmpf ogt, %96, %97 : vector<32x128xf32>
    %cst_34 = arith.constant 1.000000e-01 : f32
    %99 = vector.broadcast %cst_34 : f32 to vector<32x128xf32>
    %100 = arith.mulf %99, %96 : vector<32x128xf32>
    %101 = arith.select %98, %96, %100 : vector<32x128xi1>, vector<32x128xf32>
    %102 = arith.truncf %101 : vector<32x128xf32> to vector<32x128xbf16>
    %c0_35 = arith.constant 0 : index
    %c384 = arith.constant 384 : index
    %103 = vector.load %arg5[%c0_35, %c384] : memref<32x512xbf16, #tpu.memory_space<vmem>>, vector<32x128xbf16>
    tpu.vector_store %arg5[%c0_35, %c384], %102 {strides = array<i32>} : memref<32x512xbf16, #tpu.memory_space<vmem>>, vector<32x128xbf16>,
    return
  }
}

module attributes {stable_mosaic.version = 11 : i64} {
  func.func @_fused_layer_kernel(%arg0: memref<128x1152xbf16, #tpu.memory_space<vmem>>, %arg1: memref<1152x512xbf16, #tpu.memory_space<vmem>>, %arg2: memref<1x512xf32, #tpu.memory_space<vmem>>, %arg3: memref<1x128xf32, #tpu.memory_space<vmem>>, %arg4: memref<1x128xf32, #tpu.memory_space<vmem>>, %arg5: memref<128x512xbf16, #tpu.memory_space<vmem>>) attributes {dimension_semantics = [], scalar_prefetch = 0 : i64, scratch_operands = 0 : i64, tpu.core_type = #tpu.core_type<tc>} {
    %c0 = arith.constant 0 : index
    %c0_0 = arith.constant 0 : index
    %0 = vector.load %arg0[%c0, %c0_0] : memref<128x1152xbf16, #tpu.memory_space<vmem>>, vector<128x1152xbf16>
    %c0_1 = arith.constant 0 : index
    %c0_2 = arith.constant 0 : index
    %1 = vector.load %arg1[%c0_1, %c0_2] : memref<1152x512xbf16, #tpu.memory_space<vmem>>, vector<1152x512xbf16>
    %cst = arith.constant dense<0.000000e+00> : vector<128x512xf32>
    %2 = tpu.matmul %0, %1, %cst {dimension_numbers = #tpu.dot_dimension_numbers<[1], [0], [0], [1], [0, 0, 1, 1], [], []>} : vector<128x1152xbf16>, vector<1152x512xbf16>, vector<128x512xf32> -> vector<128x512xf32>
    %c0_3 = arith.constant 0 : index
    %c0_4 = arith.constant 0 : index
    %3 = vector.load %arg2[%c0_3, %c0_4] : memref<1x512xf32, #tpu.memory_space<vmem>>, vector<1x512xf32>
    %4 = vector.broadcast %3 : vector<1x512xf32> to vector<128x512xf32>
    %5 = arith.addf %2, %4 : vector<128x512xf32>
    %cst_5 = arith.constant 0.000000e+00 : f32
    %6 = vector.broadcast %cst_5 : f32 to vector<1x128xf32>
    %cst_6 = arith.constant 0.000000e+00 : f32
    %7 = vector.broadcast %cst_6 : f32 to vector<1x128xf32>
    %8 = vector.extract_strided_slice %5 {offsets = [0, 0], sizes = [128, 128], strides = [1, 1]} : vector<128x512xf32> to vector<128x128xf32>
    %cst_7 = arith.constant dense<0.000000e+00> : vector<128xf32>
    %9 = vector.multi_reduction <add>, %8, %cst_7 [0] : vector<128x128xf32> to vector<128xf32>
    %10 = vector.shape_cast %9 : vector<128xf32> to vector<1x128xf32>
    %11 = arith.addf %6, %10 : vector<1x128xf32>
    %12 = arith.mulf %8, %8 : vector<128x128xf32>
    %cst_8 = arith.constant dense<0.000000e+00> : vector<128xf32>
    %13 = vector.multi_reduction <add>, %12, %cst_8 [0] : vector<128x128xf32> to vector<128xf32>
    %14 = vector.shape_cast %13 : vector<128xf32> to vector<1x128xf32>
    %15 = arith.addf %7, %14 : vector<1x128xf32>
    %16 = vector.extract_strided_slice %5 {offsets = [0, 128], sizes = [128, 128], strides = [1, 1]} : vector<128x512xf32> to vector<128x128xf32>
    %cst_9 = arith.constant dense<0.000000e+00> : vector<128xf32>
    %17 = vector.multi_reduction <add>, %16, %cst_9 [0] : vector<128x128xf32> to vector<128xf32>
    %18 = vector.shape_cast %17 : vector<128xf32> to vector<1x128xf32>
    %19 = arith.addf %11, %18 : vector<1x128xf32>
    %20 = arith.mulf %16, %16 : vector<128x128xf32>
    %cst_10 = arith.constant dense<0.000000e+00> : vector<128xf32>
    %21 = vector.multi_reduction <add>, %20, %cst_10 [0] : vector<128x128xf32> to vector<128xf32>
    %22 = vector.shape_cast %21 : vector<128xf32> to vector<1x128xf32>
    %23 = arith.addf %15, %22 : vector<1x128xf32>
    %24 = vector.extract_strided_slice %5 {offsets = [0, 256], sizes = [128, 128], strides = [1, 1]} : vector<128x512xf32> to vector<128x128xf32>
    %cst_11 = arith.constant dense<0.000000e+00> : vector<128xf32>
    %25 = vector.multi_reduction <add>, %24, %cst_11 [0] : vector<128x128xf32> to vector<128xf32>
    %26 = vector.shape_cast %25 : vector<128xf32> to vector<1x128xf32>
    %27 = arith.addf %19, %26 : vector<1x128xf32>
    %28 = arith.mulf %24, %24 : vector<128x128xf32>
    %cst_12 = arith.constant dense<0.000000e+00> : vector<128xf32>
    %29 = vector.multi_reduction <add>, %28, %cst_12 [0] : vector<128x128xf32> to vector<128xf32>
    %30 = vector.shape_cast %29 : vector<128xf32> to vector<1x128xf32>
    %31 = arith.addf %23, %30 : vector<1x128xf32>
    %32 = vector.extract_strided_slice %5 {offsets = [0, 384], sizes = [128, 128], strides = [1, 1]} : vector<128x512xf32> to vector<128x128xf32>
    %cst_13 = arith.constant dense<0.000000e+00> : vector<128xf32>
    %33 = vector.multi_reduction <add>, %32, %cst_13 [0] : vector<128x128xf32> to vector<128xf32>
    %34 = vector.shape_cast %33 : vector<128xf32> to vector<1x128xf32>
    %35 = arith.addf %27, %34 : vector<1x128xf32>
    %36 = arith.mulf %32, %32 : vector<128x128xf32>
    %cst_14 = arith.constant dense<0.000000e+00> : vector<128xf32>
    %37 = vector.multi_reduction <add>, %36, %cst_14 [0] : vector<128x128xf32> to vector<128xf32>
    %38 = vector.shape_cast %37 : vector<128xf32> to vector<1x128xf32>
    %39 = arith.addf %31, %38 : vector<1x128xf32>
    %cst_15 = arith.constant 0.001953125 : f32
    %40 = vector.broadcast %cst_15 : f32 to vector<1x128xf32>
    %41 = arith.mulf %35, %40 : vector<1x128xf32>
    %cst_16 = arith.constant 0.001953125 : f32
    %42 = vector.broadcast %cst_16 : f32 to vector<1x128xf32>
    %43 = arith.mulf %39, %42 : vector<1x128xf32>
    %44 = arith.mulf %41, %41 : vector<1x128xf32>
    %45 = arith.subf %43, %44 : vector<1x128xf32>
    %cst_17 = arith.constant 0.000000e+00 : f32
    %46 = vector.broadcast %cst_17 : f32 to vector<1x128xf32>
    %47 = arith.maximumf %45, %46 : vector<1x128xf32>
    %c0_18 = arith.constant 0 : index
    %c0_19 = arith.constant 0 : index
    %48 = vector.load %arg3[%c0_18, %c0_19] : memref<1x128xf32, #tpu.memory_space<vmem>>, vector<1x128xf32>
    %cst_20 = arith.constant 9.99999974E-6 : f32
    %49 = vector.broadcast %cst_20 : f32 to vector<1x128xf32>
    %50 = arith.addf %47, %49 : vector<1x128xf32>
    %51 = math.rsqrt %50 : vector<1x128xf32>
    %52 = arith.mulf %48, %51 : vector<1x128xf32>
    %c0_21 = arith.constant 0 : index
    %c0_22 = arith.constant 0 : index
    %53 = vector.load %arg4[%c0_21, %c0_22] : memref<1x128xf32, #tpu.memory_space<vmem>>, vector<1x128xf32>
    %54 = arith.mulf %41, %52 : vector<1x128xf32>
    %55 = arith.subf %53, %54 : vector<1x128xf32>
    %56 = vector.extract_strided_slice %5 {offsets = [0, 0], sizes = [128, 128], strides = [1, 1]} : vector<128x512xf32> to vector<128x128xf32>
    %57 = vector.broadcast %52 : vector<1x128xf32> to vector<128x128xf32>
    %58 = arith.mulf %56, %57 : vector<128x128xf32>
    %59 = vector.broadcast %55 : vector<1x128xf32> to vector<128x128xf32>
    %60 = arith.addf %58, %59 : vector<128x128xf32>
    %cst_23 = arith.constant 0.000000e+00 : f32
    %61 = vector.broadcast %cst_23 : f32 to vector<128x128xf32>
    %62 = arith.cmpf ogt, %60, %61 : vector<128x128xf32>
    %cst_24 = arith.constant 1.000000e-01 : f32
    %63 = vector.broadcast %cst_24 : f32 to vector<128x128xf32>
    %64 = arith.mulf %63, %60 : vector<128x128xf32>
    %65 = arith.select %62, %60, %64 : vector<128x128xi1>, vector<128x128xf32>
    %66 = arith.truncf %65 : vector<128x128xf32> to vector<128x128xbf16>
    %c0_25 = arith.constant 0 : index
    %c0_26 = arith.constant 0 : index
    %67 = vector.load %arg5[%c0_25, %c0_26] : memref<128x512xbf16, #tpu.memory_space<vmem>>, vector<128x128xbf16>
    tpu.vector_store %arg5[%c0_25, %c0_26], %66 {strides = array<i32>} : memref<128x512xbf16, #tpu.memory_space<vmem>>, vector<128x128xbf16>,
    %68 = vector.extract_strided_slice %5 {offsets = [0, 128], sizes = [128, 128], strides = [1, 1]} : vector<128x512xf32> to vector<128x128xf32>
    %69 = vector.broadcast %52 : vector<1x128xf32> to vector<128x128xf32>
    %70 = arith.mulf %68, %69 : vector<128x128xf32>
    %71 = vector.broadcast %55 : vector<1x128xf32> to vector<128x128xf32>
    %72 = arith.addf %70, %71 : vector<128x128xf32>
    %cst_27 = arith.constant 0.000000e+00 : f32
    %73 = vector.broadcast %cst_27 : f32 to vector<128x128xf32>
    %74 = arith.cmpf ogt, %72, %73 : vector<128x128xf32>
    %cst_28 = arith.constant 1.000000e-01 : f32
    %75 = vector.broadcast %cst_28 : f32 to vector<128x128xf32>
    %76 = arith.mulf %75, %72 : vector<128x128xf32>
    %77 = arith.select %74, %72, %76 : vector<128x128xi1>, vector<128x128xf32>
    %78 = arith.truncf %77 : vector<128x128xf32> to vector<128x128xbf16>
    %c0_29 = arith.constant 0 : index
    %c128 = arith.constant 128 : index
    %79 = vector.load %arg5[%c0_29, %c128] : memref<128x512xbf16, #tpu.memory_space<vmem>>, vector<128x128xbf16>
    tpu.vector_store %arg5[%c0_29, %c128], %78 {strides = array<i32>} : memref<128x512xbf16, #tpu.memory_space<vmem>>, vector<128x128xbf16>,
    %80 = vector.extract_strided_slice %5 {offsets = [0, 256], sizes = [128, 128], strides = [1, 1]} : vector<128x512xf32> to vector<128x128xf32>
    %81 = vector.broadcast %52 : vector<1x128xf32> to vector<128x128xf32>
    %82 = arith.mulf %80, %81 : vector<128x128xf32>
    %83 = vector.broadcast %55 : vector<1x128xf32> to vector<128x128xf32>
    %84 = arith.addf %82, %83 : vector<128x128xf32>
    %cst_30 = arith.constant 0.000000e+00 : f32
    %85 = vector.broadcast %cst_30 : f32 to vector<128x128xf32>
    %86 = arith.cmpf ogt, %84, %85 : vector<128x128xf32>
    %cst_31 = arith.constant 1.000000e-01 : f32
    %87 = vector.broadcast %cst_31 : f32 to vector<128x128xf32>
    %88 = arith.mulf %87, %84 : vector<128x128xf32>
    %89 = arith.select %86, %84, %88 : vector<128x128xi1>, vector<128x128xf32>
    %90 = arith.truncf %89 : vector<128x128xf32> to vector<128x128xbf16>
    %c0_32 = arith.constant 0 : index
    %c256 = arith.constant 256 : index
    %91 = vector.load %arg5[%c0_32, %c256] : memref<128x512xbf16, #tpu.memory_space<vmem>>, vector<128x128xbf16>
    tpu.vector_store %arg5[%c0_32, %c256], %90 {strides = array<i32>} : memref<128x512xbf16, #tpu.memory_space<vmem>>, vector<128x128xbf16>,
    %92 = vector.extract_strided_slice %5 {offsets = [0, 384], sizes = [128, 128], strides = [1, 1]} : vector<128x512xf32> to vector<128x128xf32>
    %93 = vector.broadcast %52 : vector<1x128xf32> to vector<128x128xf32>
    %94 = arith.mulf %92, %93 : vector<128x128xf32>
    %95 = vector.broadcast %55 : vector<1x128xf32> to vector<128x128xf32>
    %96 = arith.addf %94, %95 : vector<128x128xf32>
    %cst_33 = arith.constant 0.000000e+00 : f32
    %97 = vector.broadcast %cst_33 : f32 to vector<128x128xf32>
    %98 = arith.cmpf ogt, %96, %97 : vector<128x128xf32>
    %cst_34 = arith.constant 1.000000e-01 : f32
    %99 = vector.broadcast %cst_34 : f32 to vector<128x128xf32>
    %100 = arith.mulf %99, %96 : vector<128x128xf32>
    %101 = arith.select %98, %96, %100 : vector<128x128xi1>, vector<128x128xf32>
    %102 = arith.truncf %101 : vector<128x128xf32> to vector<128x128xbf16>
    %c0_35 = arith.constant 0 : index
    %c384 = arith.constant 384 : index
    %103 = vector.load %arg5[%c0_35, %c384] : memref<128x512xbf16, #tpu.memory_space<vmem>>, vector<128x128xbf16>
    tpu.vector_store %arg5[%c0_35, %c384], %102 {strides = array<i32>} : memref<128x512xbf16, #tpu.memory_space<vmem>>, vector<128x128xbf16>,
    return
  }
}

module attributes {stable_mosaic.version = 11 : i64} {
  func.func @_fused_layer_kernel(%arg0: memref<512x576xbf16, #tpu.memory_space<vmem>>, %arg1: memref<576x128xbf16, #tpu.memory_space<vmem>>, %arg2: memref<1x128xf32, #tpu.memory_space<vmem>>, %arg3: memref<512x128xbf16, #tpu.memory_space<vmem>>) attributes {dimension_semantics = [], scalar_prefetch = 0 : i64, scratch_operands = 0 : i64, tpu.core_type = #tpu.core_type<tc>} {
    %c0 = arith.constant 0 : index
    %c0_0 = arith.constant 0 : index
    %0 = vector.load %arg0[%c0, %c0_0] : memref<512x576xbf16, #tpu.memory_space<vmem>>, vector<512x576xbf16>
    %c0_1 = arith.constant 0 : index
    %c0_2 = arith.constant 0 : index
    %1 = vector.load %arg1[%c0_1, %c0_2] : memref<576x128xbf16, #tpu.memory_space<vmem>>, vector<576x128xbf16>
    %cst = arith.constant dense<0.000000e+00> : vector<512x128xf32>
    %2 = tpu.matmul %0, %1, %cst {dimension_numbers = #tpu.dot_dimension_numbers<[1], [0], [0], [1], [0, 0, 1, 1], [], []>} : vector<512x576xbf16>, vector<576x128xbf16>, vector<512x128xf32> -> vector<512x128xf32>
    %c0_3 = arith.constant 0 : index
    %c0_4 = arith.constant 0 : index
    %3 = vector.load %arg2[%c0_3, %c0_4] : memref<1x128xf32, #tpu.memory_space<vmem>>, vector<1x128xf32>
    %4 = vector.broadcast %3 : vector<1x128xf32> to vector<512x128xf32>
    %5 = arith.addf %2, %4 : vector<512x128xf32>
    %6 = arith.negf %5 : vector<512x128xf32>
    %7 = math.exp %6 : vector<512x128xf32>
    %cst_5 = arith.constant 1.000000e+00 : f32
    %8 = vector.broadcast %cst_5 : f32 to vector<512x128xf32>
    %9 = arith.addf %8, %7 : vector<512x128xf32>
    %10 = arith.divf %8, %9 : vector<512x128xf32>
    %11 = arith.truncf %10 : vector<512x128xf32> to vector<512x128xbf16>
    %c0_6 = arith.constant 0 : index
    %c0_7 = arith.constant 0 : index
    %12 = vector.load %arg3[%c0_6, %c0_7] : memref<512x128xbf16, #tpu.memory_space<vmem>>, vector<512x128xbf16>
    tpu.vector_store %arg3[%c0_6, %c0_7], %11 {strides = array<i32>} : memref<512x128xbf16, #tpu.memory_space<vmem>>, vector<512x128xbf16>,
    return
  }
}

</mosaic_0001>

<bundles_post_ra>
// kernel: autoencoder_forward.6
= control target key start
LH: loop header
LB: loop body
LE: loop exit
PB: predicated region body
PF: predicated region fallthrough
CT: control target
= control target key end

     0   :  { %vm108_vm0 = vcmask 392192   ;;  %s845_s1 = inlined_call_operand.vmem [shape: bf16[48,128], index: 1, kind: input, shape index: {}]   ;;  %s846_s0 = inlined_call_operand.vmem [shape: bf16[128,48], index: 0, kind: input, shape index: {}]   ;;  %s847_s2 = inlined_call_operand.vmem [shape: f32[1,128], index: 2, kind: input, shape index: {}]   ;;  %s848_s3 = inlined_call_operand.vmem [shape: f32[1,128], index: 3, kind: input, shape index: {}]   ;;  %s849_s4 = inlined_call_operand.vmem [shape: f32[1,128], index: 4, kind: input, shape index: {}]   ;;  %s850_s5 = inlined_call_operand.vmem [shape: bf16[128,128], index: 5, kind: output, shape index: {}]  }
   0x1   :  { %v616_v0 = vld [vmem:[%s845_s1 + $0x10] sm:$0xff]   ;;  %v617_v1 = vld [vmem:[%s845_s1 + $0x8] sm:$0xff]   ;;  %v619_v2 = vld [vmem:[%s846_s0] sm:$0xff]  }
   0x2   :  { %588 = vmatprep.subr.bf16.mxu0 %v616_v0  ;;  %610 = vmatprep.subr.bf16.mxu1 %v616_v0  ;;  %v618_v3 = vld [vmem:[%s845_s1] sm:$0xff]   ;;  %v620_v5 = vld [vmem:[%s846_s0 + $0x8] sm:$0xff]   ;;  %v621_v7 = vld [vmem:[%s846_s0 + $0x10] sm:$0xff]  }
   0x3   :  { %589 = vmatpush3.bf16.msra.mxu0 %v616_v0  ;;  %613 = vmatpush3.bf16.msra.mxu1 %v616_v0  ;;  %v623_v4 = vld [vmem:[%s846_s0 + $0x20] sm:$0xff]   ;;  %v624_v6 = vld [vmem:[%s846_s0 + $0x28] sm:$0xff]   ;;  %v625_v8 = vld [vmem:[%s846_s0 + $0x30] sm:$0xff]  }
   0x4   :  { %590 = vmatprep.subr.bf16.mxu0 %v617_v1  ;;  %611 = vmatprep.subr.bf16.mxu1 %v617_v1  ;;  %v622_v9 = vld [vmem:[%s846_s0 + $0x18] sm:$0xff]   ;;  %v703_v15 = vld [vmem:[%s847_s2] ss:$0 sm:$0xff] }
   0x5   :  { %594 = vmatprep.mubr.msk.bf16.mxu0 %vm108_vm0, %v619_v2  ;;  %602 = vmatprep.mubr.msk.bf16.mxu1 %vm108_vm0, %v623_v4  ;;  %v626_v10 = vld [vmem:[%s846_s0 + $0x38] sm:$0xff]  }
   0x7   :  { %591 = vmatpush3.bf16.msra.mxu0 %v617_v1  ;;  %614 = vmatpush3.bf16.msra.mxu1 %v617_v1 }
   0x8   :  { %592 = vmatprep.subr.bf16.mxu0 %v618_v3  ;;  %612 = vmatprep.subr.bf16.mxu1 %v618_v3 }
   0xb   :  { %593 = vmatpush3.bf16.msra.mxu0 %v618_v3  ;;  %615 = vmatpush3.bf16.msra.mxu1 %v618_v3 }
   0xe   :  { %595 = vmatmul.mubr.msk.bf16.vlgmr.msra.gmra.mxu0 %vm108_vm0, %v620_v5  ;;  %603 = vmatmul.mubr.msk.bf16.vlgmr.msra.gmra.mxu1 %vm108_vm0, %v624_v6 }
   0xf   :  { %598 = vmatprep.mubr.msk.bf16.mxu0 %vm108_vm0, %v621_v7  ;;  %606 = vmatprep.mubr.msk.bf16.mxu1 %vm108_vm0, %v625_v8 }
  0x16   :  { %599 = vmatmul.mubr.msk.bf16.gmra.mxu0 %vm108_vm0, %v622_v9  ;;  %607 = vmatmul.mubr.msk.bf16.gmra.mxu1 %vm108_vm0, %v626_v10 }
  0xce   :  { %v596_v11 = vpop.f32.mrf.mxu0  ;;  %v604_v12 = vpop.f32.mrf.mxu1 }
  0xcf   :  { %v709_v20 = vadd.f32 %v596_v11, %v703_v15  ;;  %v760_v58 = vadd.f32 %v604_v12, %v703_v15 }
  0xd0   :  { %v167_v13 = vpop.f32.mrf.mxu0  ;;  %v199_v14 = vpop.f32.mrf.mxu1 }
  0xd1   :  { %v706_v17 = vadd.f32 %v703_v15, %v167_v13  ;;  %v254_v29 = vmul.f32 %v709_v20, %v709_v20  ;;  %v750_v50 = vadd.f32 %v703_v15, %v199_v14  ;;  %v262_v3 = vmul.f32 %v760_v58, %v760_v58 }
  0xd2   :  { %v597_v16 = vpop.f32.mrf.mxu0  ;;  %v605_v19 = vpop.f32.mrf.mxu1 }
  0xd3   :  { %v252_v23 = vmul.f32 %v706_v17, %v706_v17  ;;  %v717_v24 = vadd.f32 %v597_v16, %v703_v15  ;;  %v260_v59 = vmul.f32 %v750_v50, %v750_v50  ;;  %v766_v62 = vadd.f32 %v605_v19, %v703_v15 }
  0xd4   :  { %v170_v18 = vpop.f32.mrf.mxu0  ;;  %v202_v28 = vpop.f32.mrf.mxu1 }
  0xd5   :  { %v712_v21 = vadd.f32 %v703_v15, %v170_v18  ;;  %v255_v34 = vmul.f32 %v717_v24, %v717_v24  ;;  %v756_v55 = vadd.f32 %v703_v15, %v202_v28  ;;  %v263_v7 = vmul.f32 %v766_v62, %v766_v62 }
  0xd6   :  { %v600_v22 = vpop.f32.mrf.mxu0  ;;  %v608_v39 = vpop.f32.mrf.mxu1 }
  0xd7   :  { %v230_v25 = vadd.f32 %v712_v21, %v706_v17  ;;  %v253_v26 = vmul.f32 %v712_v21, %v712_v21  ;;  %v733_v37 = vadd.f32 %v600_v22, %v703_v15  ;;  %v261_v0 = vmul.f32 %v756_v55, %v756_v55 }
  0xd8   :  { %v183_v27 = vpop.f32.mrf.mxu0  ;;  %v215_v48 = vpop.f32.mrf.mxu1  ;;  %v224_v11 = vadd.f32 %v608_v39, %v703_v15 }
  0xd9   :  { %v231_v30 = vadd.f32 %v230_v25, %v709_v20  ;;  %v268_v31 = vadd.f32 %v253_v26, %v252_v23  ;;  %v727_v32 = vadd.f32 %v703_v15, %v183_v27  ;;  %v258_v49 = vmul.f32 %v733_v37, %v733_v37 }
  0xda   :  { %v601_v33 = vpop.f32.mrf.mxu0  ;;  %v609_v57 = vpop.f32.mrf.mxu1  ;;  %v775_v6 = vadd.f32 %v703_v15, %v215_v48  ;;  %v266_v23 = vmul.f32 %v224_v11, %v224_v11 }
  0xdb   :  { %v269_v35 = vadd.f32 %v268_v31, %v254_v29  ;;  %v232_v36 = vadd.f32 %v231_v30, %v717_v24  ;;  %v256_v41 = vmul.f32 %v727_v32, %v727_v32  ;;  %v742_v45 = vadd.f32 %v601_v33, %v703_v15 }
  0xdc   :  { %v186_v38 = vpop.f32.mrf.mxu0  ;;  %v218_v2 = vpop.f32.mrf.mxu1  ;;  %v264_v13 = vmul.f32 %v775_v6, %v775_v6  ;;  %v227_v18 = vadd.f32 %v609_v57, %v703_v15 }
  0xdd   :  { %v233_v40 = vadd.f32 %v232_v36, %v727_v32  ;;  %v270_v42 = vadd.f32 %v269_v35, %v255_v34  ;;  %v739_v43 = vadd.f32 %v703_v15, %v186_v38  ;;  %v259_v53 = vmul.f32 %v742_v45, %v742_v45 }
  0xde   :  { %v219_v10 = vadd.f32 %v703_v15, %v218_v2  ;;  %v267_v27 = vmul.f32 %v227_v18, %v227_v18 }
  0xdf   :  { %v271_v44 = vadd.f32 %v270_v42, %v256_v41  ;;  %v234_v46 = vadd.f32 %v233_v40, %v739_v43  ;;  %v257_v47 = vmul.f32 %v739_v43, %v739_v43 }
  0xe0   :  { %v265_v22 = vmul.f32 %v219_v10, %v219_v10 }
  0xe1   :  { %v235_v51 = vadd.f32 %v234_v46, %v733_v37  ;;  %v272_v52 = vadd.f32 %v271_v44, %v257_v47 }
  0xe3   :  { %v273_v54 = vadd.f32 %v272_v52, %v258_v49  ;;  %v236_v56 = vadd.f32 %v235_v51, %v742_v45 }
  0xe5   :  { %v237_v60 = vadd.f32 %v236_v56, %v750_v50  ;;  %v274_v61 = vadd.f32 %v273_v54, %v259_v53  ;;  %v303_v53 = vlaneseq  ;;  %v295_v56 = vld [vmem:[%s848_s3] sm:$0x1] }
  0xe7   :  { %v238_v63 = vadd.f32 %v237_v60, %v756_v55  ;;  %v275_v1 = vadd.f32 %v274_v61, %v260_v59  ;;  %v304_v54 = vshrl.u32 %v303_v53, 7  ;;  %v299_v61 = vld [vmem:[%s849_s4] sm:$0x1] }
  0xe9   :  { %v239_v4 = vadd.f32 %v238_v63, %v760_v58  ;;  %v276_v5 = vadd.f32 %v275_v1, %v261_v0  ;;  %v305_v57 = vsub.s32 0, %v304_v54 }
  0xeb   :  { %v277_v8 = vadd.f32 %v276_v5, %v262_v3  ;;  %v240_v9 = vadd.f32 %v239_v4, %v766_v62 }
  0xed   :  { %v241_v12 = vadd.f32 %v240_v9, %v775_v6  ;;  %v278_v14 = vadd.f32 %v277_v8, %v263_v7 }
  0xef   :  { %v279_v16 = vadd.f32 %v278_v14, %v264_v13  ;;  %v242_v19 = vadd.f32 %v241_v12, %v219_v10 }
  0xf1   :  { %v243_v25 = vadd.f32 %v242_v19, %v224_v11  ;;  %v280_v26 = vadd.f32 %v279_v16, %v265_v22 }
  0xf3   :  { %v244_v28 = vadd.f32 %v243_v25, %v227_v18  ;;  %v281_v29 = vadd.f32 %v280_v26, %v266_v23 }
  0xf5   :  { %v245_v30 = vrot.slane %v244_v28, 4  ;;  %v282_v31 = vadd.f32 %v281_v29, %v267_v27 }
  0xf7   :  { %v246_v33 = vadd.f32 %v245_v30, %v244_v28  ;;  %v283_v34 = vrot.slane %v282_v31, 4 }
  0xf9   :  { %v247_v35 = vrot.slane %v246_v33, 2  ;;  %v284_v36 = vadd.f32 %v283_v34, %v282_v31 }
  0xfb   :  { %v248_v38 = vadd.f32 %v247_v35, %v246_v33  ;;  %v285_v39 = vrot.slane %v284_v36, 2 }
  0xfd   :  { %v249_v40 = vrot.slane %v248_v38, 1  ;;  %v286_v41 = vadd.f32 %v285_v39, %v284_v36 }
  0xff   :  { %v250_v42 = vadd.f32 %v249_v40, %v248_v38  ;;  %v287_v15 = vrot.slane %v286_v41, 1 }
 0x101   :  { %v288_v44 = vadd.f32 %v287_v15, %v286_v41  ;;  %v290_v46 = vmul.f32 0.0078125, %v250_v42 }
 0x103   :  { %v291_v47 = vmul.f32 0.0078125, %v288_v44  ;;  %v292_v48 = vmul.f32 %v290_v46, %v290_v46 }
 0x105   :  { %v293_v49 = vsub.f32 %v291_v47, %v292_v48 }
 0x107   :  { %v294_v51 = vmax.f32 %v293_v49, 0.0 }
 0x109   :  { %v296_v52 = vadd.f32 1e-05, %v294_v51 }
 0x10b   :  { %627 = vrsqrt.f32 %v296_v52 }
 0x118   :  { %v628_v59 = vpop.eup %627 }
 0x119   :  { %v298_v60 = vmul.f32 %v628_v59, %v295_v56 }
 0x11b   :  { %v300_v63 = vmul.f32 %v298_v60, %v290_v46  ;;  %v306_v0 = vrot.slane %v298_v60, %v305_v57 }
 0x11d   :  { %v301_v1 = vsub.f32 %v299_v61, %v300_v63  ;;  %v308_v2 = vmul.f32 %v306_v0, %v706_v17  ;;  %v309_v3 = vmul.f32 %v306_v0, %v712_v21  ;;  %v310_v4 = vmul.f32 %v306_v0, %v709_v20 }
 0x11e   :  { %v311_v5 = vmul.f32 %v306_v0, %v717_v24  ;;  %v312_v7 = vmul.f32 %v306_v0, %v727_v32  ;;  %v313_v8 = vmul.f32 %v306_v0, %v739_v43  ;;  %v314_v9 = vmul.f32 %v306_v0, %v733_v37 }
 0x11f   :  { %v315_v12 = vmul.f32 %v306_v0, %v742_v45  ;;  %v316_v13 = vmul.f32 %v306_v0, %v750_v50  ;;  %v317_v14 = vmul.f32 %v306_v0, %v756_v55  ;;  %v318_v17 = vmul.f32 %v306_v0, %v760_v58 }
 0x120   :  { %v319_v21 = vmul.f32 %v306_v0, %v766_v62  ;;  %v328_v16 = vrot.slane %v301_v1, %v305_v57  ;;  %v320_v20 = vmul.f32 %v306_v0, %v775_v6  ;;  %v321_v24 = vmul.f32 %v306_v0, %v219_v10 }
 0x121   :  { %v322_v19 = vmul.f32 %v306_v0, %v224_v11  ;;  %v323_v32 = vmul.f32 %v306_v0, %v227_v18 }
 0x122   :  { %v330_v22 = vadd.f32 %v328_v16, %v308_v2  ;;  %v331_v43 = vadd.f32 %v328_v16, %v309_v3  ;;  %v332_v23 = vadd.f32 %v328_v16, %v310_v4  ;;  %v333_v37 = vadd.f32 %v328_v16, %v311_v5 }
 0x123   :  { %v334_v25 = vadd.f32 %v328_v16, %v312_v7  ;;  %v335_v45 = vadd.f32 %v328_v16, %v313_v8  ;;  %v336_v26 = vadd.f32 %v328_v16, %v314_v9  ;;  %v337_v50 = vadd.f32 %v328_v16, %v315_v12 }
 0x124   :  { %v338_v27 = vadd.f32 %v328_v16, %v316_v13  ;;  %v339_v55 = vadd.f32 %v328_v16, %v317_v14  ;;  %v340_v28 = vadd.f32 %v328_v16, %v318_v17  ;;  %v341_v58 = vadd.f32 %v328_v16, %v319_v21 }
 0x125   :  { %v342_v29 = vadd.f32 %v328_v16, %v320_v20  ;;  %v343_v62 = vadd.f32 %v328_v16, %v321_v24  ;;  %v344_v30 = vadd.f32 %v328_v16, %v322_v19  ;;  %v345_v31 = vadd.f32 %v328_v16, %v323_v32 }
 0x126   :  { %vm346_vm1 = vcmp.gt.f32.partialorder %v330_v22, 0.0  ;;  %vm347_vm2 = vcmp.gt.f32.partialorder %v331_v43, 0.0  ;;  %vm348_vm3 = vcmp.gt.f32.partialorder %v332_v23, 0.0  ;;  %vm349_vm4 = vcmp.gt.f32.partialorder %v333_v37, 0.0 }
 0x127   :  { %vm350_vm5 = vcmp.gt.f32.partialorder %v334_v25, 0.0  ;;  %vm351_vm6 = vcmp.gt.f32.partialorder %v335_v45, 0.0  ;;  %vm352_vm7 = vcmp.gt.f32.partialorder %v336_v26, 0.0  ;;  %vm353_vm8 = vcmp.gt.f32.partialorder %v337_v50, 0.0 }
 0x128   :  { %vm354_vm9 = vcmp.gt.f32.partialorder %v338_v27, 0.0  ;;  %vm355_vm10 = vcmp.gt.f32.partialorder %v339_v55, 0.0  ;;  %vm356_vm11 = vcmp.gt.f32.partialorder %v340_v28, 0.0  ;;  %vm357_vm12 = vcmp.gt.f32.partialorder %v341_v58, 0.0 }
 0x129   :  { %vm358_vm13 = vcmp.gt.f32.partialorder %v342_v29, 0.0  ;;  %vm359_vm14 = vcmp.gt.f32.partialorder %v343_v62, 0.0  ;;  %vm360_vm15 = vcmp.gt.f32.partialorder %v344_v30, 0.0  ;;  %vm361_vm0 = vcmp.gt.f32.partialorder %v345_v31, 0.0 }
 0x12a   :  { %v362_v6 = vmul.f32 0.1, %v330_v22  ;;  %v363_v10 = vmul.f32 0.1, %v331_v43  ;;  %v364_v11 = vmul.f32 0.1, %v332_v23 }
 0x12b   :  { %v365_v18 = vmul.f32 0.1, %v333_v37  ;;  %v366_v33 = vmul.f32 0.1, %v334_v25  ;;  %v367_v34 = vmul.f32 0.1, %v335_v45 }
 0x12c   :  { %v368_v35 = vmul.f32 0.1, %v336_v26  ;;  %v369_v36 = vmul.f32 0.1, %v337_v50  ;;  %v370_v38 = vmul.f32 0.1, %v338_v27  ;;  %v378_v39 = vsel %vm346_vm1, %v330_v22, %v362_v6 }
 0x12d   :  { %v371_v40 = vmul.f32 0.1, %v339_v55  ;;  %v372_v41 = vmul.f32 0.1, %v340_v28  ;;  %v373_v42 = vmul.f32 0.1, %v341_v58  ;;  %v379_v15 = vsel %vm347_vm2, %v331_v43, %v363_v10 }
 0x12e   :  { %v374_v44 = vmul.f32 0.1, %v342_v29  ;;  %v375_v46 = vmul.f32 0.1, %v343_v62  ;;  %v376_v47 = vmul.f32 0.1, %v344_v30  ;;  %v380_v48 = vsel %vm348_vm3, %v332_v23, %v364_v11 }
 0x12f   :  { %v377_v49 = vmul.f32 0.1, %v345_v31  ;;  %v381_v51 = vsel %vm349_vm4, %v333_v37, %v365_v18  ;;  %v382_v52 = vsel %vm350_vm5, %v334_v25, %v366_v33  ;;  %v383_v53 = vsel %vm351_vm6, %v335_v45, %v367_v34 }
 0x130   :  { %v384_v54 = vsel %vm352_vm7, %v336_v26, %v368_v35  ;;  %v385_v56 = vsel %vm353_vm8, %v337_v50, %v369_v36  ;;  %v386_v57 = vsel %vm354_vm9, %v338_v27, %v370_v38  ;;  %v387_v59 = vsel %vm355_vm10, %v339_v55, %v371_v40 }
 0x131   :  { %v388_v60 = vsel %vm356_vm11, %v340_v28, %v372_v41  ;;  %v389_v61 = vsel %vm357_vm12, %v341_v58, %v373_v42  ;;  %v390_v63 = vsel %vm358_vm13, %v342_v29, %v374_v44  ;;  %v391_v0 = vsel %vm359_vm14, %v343_v62, %v375_v46 }
 0x132   :  { %v392_v1 = vsel %vm360_vm15, %v344_v30, %v376_v47  ;;  %v393_v2 = vsel %vm361_vm0, %v345_v31, %v377_v49  ;;  %v533_v3 = vpack.c.bf16 %v379_v15, %v378_v39  ;;  %v538_v4 = vpack.c.bf16 %v381_v51, %v380_v48 }
 0x133   :  { %v543_v5 = vpack.c.bf16 %v383_v53, %v382_v52  ;;  %v548_v7 = vpack.c.bf16 %v385_v56, %v384_v54  ;;  %v553_v8 = vpack.c.bf16 %v387_v59, %v386_v57  ;;  %v558_v9 = vpack.c.bf16 %v389_v61, %v388_v60 }
 0x134   :  { %534 = vst [vmem:[%s850_s5] sm:$0xff] %v533_v3   ;;  %570 = vst [vmem:[%s850_s5 + $0x8] sm:$0xff] %v538_v4   ;;  %v563_v12 = vpack.c.bf16 %v391_v0, %v390_v63  ;;  %v568_v13 = vpack.c.bf16 %v393_v2, %v392_v1 }
 0x135   :  { %571 = vst [vmem:[%s850_s5 + $0x10] sm:$0xff] %v543_v5   ;;  %572 = vst [vmem:[%s850_s5 + $0x18] sm:$0xff] %v548_v7  }
 0x136   :  { %573 = vst [vmem:[%s850_s5 + $0x20] sm:$0xff] %v553_v8   ;;  %574 = vst [vmem:[%s850_s5 + $0x28] sm:$0xff] %v558_v9  }
 0x137   :  { %575 = vst [vmem:[%s850_s5 + $0x30] sm:$0xff] %v563_v12   ;;  %576 = vst [vmem:[%s850_s5 + $0x38] sm:$0xff] %v568_v13  }

// kernel: autoencoder_forward.7
= control target key start
LH: loop header
LB: loop body
LE: loop exit
PB: predicated region body
PF: predicated region fallthrough
CT: control target
= control target key end

     0   :  { %s1487_s1 = inlined_call_operand.vmem [shape: bf16[1024,128], index: 1, kind: input, shape index: {}]   ;;  %s1488_s0 = inlined_call_operand.vmem [shape: bf16[32,1024], index: 0, kind: input, shape index: {}]   ;;  %s1489_s2 = inlined_call_operand.vmem [shape: f32[1,128], index: 2, kind: input, shape index: {}]   ;;  %s1490_s3 = inlined_call_operand.vmem [shape: f32[1,128], index: 3, kind: input, shape index: {}]   ;;  %s1491_s4 = inlined_call_operand.vmem [shape: f32[1,128], index: 4, kind: input, shape index: {}]   ;;  %s1492_s5 = inlined_call_operand.vmem [shape: bf16[32,128], index: 5, kind: output, shape index: {}]  }
   0x1   :  { %v1136_v0 = vld [vmem:[%s1487_s1 + $0x78] sm:$0xff]   ;;  %v1140_v4 = vld [vmem:[%s1487_s1 + $0x70] sm:$0xff]   ;;  %v1144_v8 = vld [vmem:[%s1487_s1 + $0x68] sm:$0xff]  }
   0x2   :  { %v1137_v1 = vld [vmem:[%s1487_s1 + $0xf8] sm:$0xff]   ;;  %1024 = vmatprep.subr.bf16.mxu0 %v1136_v0  ;;  %v1141_v5 = vld [vmem:[%s1487_s1 + $0xf0] sm:$0xff]   ;;  %v1145_v9 = vld [vmem:[%s1487_s1 + $0xe8] sm:$0xff]  }
   0x3   :  { %v1138_v2 = vld [vmem:[%s1487_s1 + $0x38] sm:$0xff]   ;;  %1052 = vmatprep.subr.bf16.mxu1 %v1137_v1  ;;  %v1142_v6 = vld [vmem:[%s1487_s1 + $0x30] sm:$0xff]   ;;  %v1146_v10 = vld [vmem:[%s1487_s1 + $0x28] sm:$0xff]  }
   0x4   :  { %v1139_v3 = vld [vmem:[%s1487_s1 + $0xb8] sm:$0xff]   ;;  %1025 = vmatpush3.bf16.msra.mxu0 %v1138_v2  ;;  %v1143_v7 = vld [vmem:[%s1487_s1 + $0xb0] sm:$0xff]   ;;  %v1147_v11 = vld [vmem:[%s1487_s1 + $0xa8] sm:$0xff]  }
   0x5   :  { %1053 = vmatpush3.bf16.msra.mxu1 %v1139_v3  ;;  %1026 = vmatprep.subr.bf16.mxu0 %v1140_v4  ;;  %v1148_v12 = vld [vmem:[%s1487_s1 + $0x60] sm:$0xff]   ;;  %v1152_v16 = vld [vmem:[%s1487_s1 + $0x58] sm:$0xff]   ;;  %v1156_v20 = vld [vmem:[%s1487_s1 + $0x50] sm:$0xff]  }
   0x6   :  { %1054 = vmatprep.subr.bf16.mxu1 %v1141_v5  ;;  %v1149_v13 = vld [vmem:[%s1487_s1 + $0xe0] sm:$0xff]   ;;  %v1153_v17 = vld [vmem:[%s1487_s1 + $0xd8] sm:$0xff]   ;;  %v1157_v21 = vld [vmem:[%s1487_s1 + $0xd0] sm:$0xff]  }
   0x7   :  { %v1150_v14 = vld [vmem:[%s1487_s1 + $0x20] sm:$0xff]   ;;  %v1154_v18 = vld [vmem:[%s1487_s1 + $0x18] sm:$0xff]   ;;  %v1158_v22 = vld [vmem:[%s1487_s1 + $0x10] sm:$0xff]  }
   0x8   :  { %1027 = vmatpush3.bf16.msra.mxu0 %v1142_v6  ;;  %v1151_v15 = vld [vmem:[%s1487_s1 + $0xa0] sm:$0xff]   ;;  %v1155_v19 = vld [vmem:[%s1487_s1 + $0x98] sm:$0xff]   ;;  %v1159_v23 = vld [vmem:[%s1487_s1 + $0x90] sm:$0xff]  }
   0x9   :  { %1055 = vmatpush3.bf16.msra.mxu1 %v1143_v7  ;;  %1028 = vmatprep.subr.bf16.mxu0 %v1144_v8  ;;  %v1160_v24 = vld [vmem:[%s1487_s1 + $0x48] sm:$0xff]   ;;  %v1164_v28 = vld [vmem:[%s1487_s1 + $0x40] sm:$0xff]   ;;  %v1168_v40 = vld [vmem:[%s1487_s1 + $0x178] sm:$0xff]  }
   0xa   :  { %1056 = vmatprep.subr.bf16.mxu1 %v1145_v9  ;;  %v1161_v25 = vld [vmem:[%s1487_s1 + $0xc8] sm:$0xff]   ;;  %v1165_v29 = vld [vmem:[%s1487_s1 + $0xc0] sm:$0xff]   ;;  %v1169_v41 = vld [vmem:[%s1487_s1 + $0x1f8] sm:$0xff]  }
   0xb   :  { %v1162_v26 = vld [vmem:[%s1487_s1 + $0x8] sm:$0xff]   ;;  %v1166_v30 = vld [vmem:[%s1487_s1] sm:$0xff]   ;;  %v1170_v42 = vld [vmem:[%s1487_s1 + $0x138] sm:$0xff]  }
   0xc   :  { %1029 = vmatpush3.bf16.msra.mxu0 %v1146_v10  ;;  %v1163_v27 = vld [vmem:[%s1487_s1 + $0x88] sm:$0xff]   ;;  %v1167_v31 = vld [vmem:[%s1487_s1 + $0x80] sm:$0xff]   ;;  %v1171_v43 = vld [vmem:[%s1487_s1 + $0x1b8] sm:$0xff]  }
   0xd   :  { %1057 = vmatpush3.bf16.msra.mxu1 %v1147_v11  ;;  %1030 = vmatprep.subr.bf16.mxu0 %v1148_v12  ;;  %v21_v32 = vld [vmem:[%s1488_s0] sm:$0xff]  ;;  %v22_v34 = vld [vmem:[%s1488_s0 + $0x8] sm:$0xff]  ;;  %v1172_v44 = vld [vmem:[%s1487_s1 + $0x170] sm:$0xff]  }
   0xe   :  { %1058 = vmatprep.subr.bf16.mxu1 %v1149_v13  ;;  %v25_v33 = vld [vmem:[%s1488_s0 + $0x20] sm:$0xff]  ;;  %v26_v37 = vld [vmem:[%s1488_s0 + $0x28] sm:$0xff]  ;;  %v1173_v45 = vld [vmem:[%s1487_s1 + $0x1f0] sm:$0xff]  }
   0xf   :  { %v925_v35 = vcombine.low %v21_v32, %v25_v33  ;;  %v926_v36 = vcombine.high %v21_v32, %v25_v33  ;;  %v927_v38 = vcombine.low %v22_v34, %v26_v37  ;;  %v928_v39 = vcombine.high %v22_v34, %v26_v37  ;;  %v1174_v46 = vld [vmem:[%s1487_s1 + $0x130] sm:$0xff]   ;;  %v1176_v48 = vld [vmem:[%s1487_s1 + $0x168] sm:$0xff]   ;;  %v1180_v52 = vld [vmem:[%s1487_s1 + $0x160] sm:$0xff]  }
  0x10   :  { %1031 = vmatpush3.bf16.msra.mxu0 %v1150_v14  ;;  %v1175_v47 = vld [vmem:[%s1487_s1 + $0x1b0] sm:$0xff]   ;;  %v1177_v49 = vld [vmem:[%s1487_s1 + $0x1e8] sm:$0xff]   ;;  %v1181_v53 = vld [vmem:[%s1487_s1 + $0x1e0] sm:$0xff]  }
  0x11   :  { %1059 = vmatpush3.bf16.msra.mxu1 %v1151_v15  ;;  %1032 = vmatprep.subr.bf16.mxu0 %v1152_v16  ;;  %v1178_v50 = vld [vmem:[%s1487_s1 + $0x128] sm:$0xff]   ;;  %v1182_v54 = vld [vmem:[%s1487_s1 + $0x120] sm:$0xff]   ;;  %v1184_v56 = vld [vmem:[%s1487_s1 + $0x158] sm:$0xff]  }
  0x12   :  { %1060 = vmatprep.subr.bf16.mxu1 %v1153_v17  ;;  %668 = vmatprep.mubr.bf16.mxu0 %v926_v36  ;;  %v1179_v51 = vld [vmem:[%s1487_s1 + $0x1a8] sm:$0xff]   ;;  %v1183_v55 = vld [vmem:[%s1487_s1 + $0x1a0] sm:$0xff]   ;;  %v1185_v57 = vld [vmem:[%s1487_s1 + $0x1d8] sm:$0xff]  }
  0x13   :  { %717 = vmatprep.mubr.bf16.mxu1 %v928_v39  ;;  %v29_v58 = vld [vmem:[%s1488_s0 + $0x40] sm:$0xff]  ;;  %v1186_v61 = vld [vmem:[%s1487_s1 + $0x118] sm:$0xff]   ;;  %v30_v0 = vld [vmem:[%s1488_s0 + $0x48] sm:$0xff] }
  0x14   :  { %1033 = vmatpush3.bf16.msra.mxu0 %v1154_v18  ;;  %v33_v59 = vld [vmem:[%s1488_s0 + $0x60] sm:$0xff]  ;;  %v1187_v63 = vld [vmem:[%s1487_s1 + $0x198] sm:$0xff]   ;;  %v34_v1 = vld [vmem:[%s1488_s0 + $0x68] sm:$0xff] }
  0x15   :  { %1061 = vmatpush3.bf16.msra.mxu1 %v1155_v19  ;;  %1034 = vmatprep.subr.bf16.mxu0 %v1156_v20  ;;  %v934_v60 = vcombine.high %v29_v58, %v33_v59  ;;  %v933_v62 = vcombine.low %v29_v58, %v33_v59  ;;  %v936_v2 = vcombine.high %v30_v0, %v34_v1  ;;  %v1188_v4 = vld [vmem:[%s1487_s1 + $0x150] sm:$0xff]   ;;  %v1192_v8 = vld [vmem:[%s1487_s1 + $0x148] sm:$0xff]   ;;  %v1196_v12 = vld [vmem:[%s1487_s1 + $0x140] sm:$0xff]  }
  0x16   :  { %1062 = vmatprep.subr.bf16.mxu1 %v1157_v21  ;;  %v935_v3 = vcombine.low %v30_v0, %v34_v1  ;;  %v1189_v5 = vld [vmem:[%s1487_s1 + $0x1d0] sm:$0xff]   ;;  %v1193_v9 = vld [vmem:[%s1487_s1 + $0x1c8] sm:$0xff]   ;;  %v1197_v13 = vld [vmem:[%s1487_s1 + $0x1c0] sm:$0xff]  }
  0x17   :  { %v1190_v6 = vld [vmem:[%s1487_s1 + $0x110] sm:$0xff]   ;;  %v1194_v10 = vld [vmem:[%s1487_s1 + $0x108] sm:$0xff]   ;;  %v1198_v14 = vld [vmem:[%s1487_s1 + $0x100] sm:$0xff]  }
  0x18   :  { %1035 = vmatpush3.bf16.msra.mxu0 %v1158_v22  ;;  %v1191_v7 = vld [vmem:[%s1487_s1 + $0x190] sm:$0xff]   ;;  %v1195_v11 = vld [vmem:[%s1487_s1 + $0x188] sm:$0xff]   ;;  %v1199_v15 = vld [vmem:[%s1487_s1 + $0x180] sm:$0xff]  }
  0x19   :  { %1063 = vmatpush3.bf16.msra.mxu1 %v1159_v23  ;;  %1036 = vmatprep.subr.bf16.mxu0 %v1160_v24  ;;  %v23_v16 = vld [vmem:[%s1488_s0 + $0x10] sm:$0xff]  ;;  %v24_v18 = vld [vmem:[%s1488_s0 + $0x18] sm:$0xff] }
  0x1a   :  { %1064 = vmatprep.subr.bf16.mxu1 %v1161_v25  ;;  %v27_v17 = vld [vmem:[%s1488_s0 + $0x30] sm:$0xff]  ;;  %v28_v19 = vld [vmem:[%s1488_s0 + $0x38] sm:$0xff] }
  0x1b   :  { %v929_v20 = vcombine.low %v23_v16, %v27_v17  ;;  %v930_v21 = vcombine.high %v23_v16, %v27_v17  ;;  %v931_v22 = vcombine.low %v24_v18, %v28_v19  ;;  %v932_v23 = vcombine.high %v24_v18, %v28_v19  ;;  %v31_v24 = vld [vmem:[%s1488_s0 + $0x50] sm:$0xff] }
  0x1c   :  { %1037 = vmatpush3.bf16.msra.mxu0 %v1162_v26  ;;  %v35_v25 = vld [vmem:[%s1488_s0 + $0x70] sm:$0xff]  ;;  %v32_v26 = vld [vmem:[%s1488_s0 + $0x58] sm:$0xff] }
  0x1d   :  { %1065 = vmatpush3.bf16.msra.mxu1 %v1163_v27  ;;  %1038 = vmatprep.subr.bf16.mxu0 %v1164_v28  ;;  %v938_v27 = vcombine.high %v31_v24, %v35_v25  ;;  %v36_v28 = vld [vmem:[%s1488_s0 + $0x78] sm:$0xff] }
  0x1e   :  { %1066 = vmatprep.subr.bf16.mxu1 %v1165_v29  ;;  %v940_v29 = vcombine.high %v32_v26, %v36_v28 }
  0x20   :  { %1039 = vmatpush3.bf16.msra.mxu0 %v1166_v30  ;;  %v937_v30 = vcombine.low %v31_v24, %v35_v25 }
  0x21   :  { %1067 = vmatpush3.bf16.msra.mxu1 %v1167_v31  ;;  %1080 = vmatprep.subr.bf16.mxu0 %v1168_v40  ;;  %v939_v31 = vcombine.low %v32_v26, %v36_v28 }
  0x22   :  { %1108 = vmatprep.subr.bf16.mxu1 %v1169_v41 }
  0x23   :  { %669 = vmatmul.mubr.bf16.vlgmr.msra.gmra.mxu0 %v925_v35 }
  0x24   :  { %718 = vmatmul.mubr.bf16.vlgmr.msra.gmra.mxu1 %v927_v38  ;;  %1081 = vmatpush3.bf16.msra.mxu0 %v1170_v42 }
  0x25   :  { %1109 = vmatpush3.bf16.msra.mxu1 %v1171_v43  ;;  %1082 = vmatprep.subr.bf16.mxu0 %v1172_v44 }
  0x26   :  { %1110 = vmatprep.subr.bf16.mxu1 %v1173_v45  ;;  %676 = vmatprep.mubr.bf16.mxu0 %v934_v60 }
  0x27   :  { %725 = vmatprep.mubr.bf16.mxu1 %v936_v2 }
  0x28   :  { %1083 = vmatpush3.bf16.msra.mxu0 %v1174_v46 }
  0x29   :  { %1111 = vmatpush3.bf16.msra.mxu1 %v1175_v47  ;;  %1084 = vmatprep.subr.bf16.mxu0 %v1176_v48 }
  0x2a   :  { %1112 = vmatprep.subr.bf16.mxu1 %v1177_v49  ;;  %v924_v49 = vld [vmem:[%s1489_s2] ss:$0 sm:$0xff] }
  0x2b   :  { %677 = vmatmul.mubr.bf16.gmra.mxu0 %v933_v62 }
  0x2c   :  { %1085 = vmatpush3.bf16.msra.mxu0 %v1178_v50  ;;  %726 = vmatmul.mubr.bf16.gmra.mxu1 %v935_v3 }
  0x2d   :  { %1113 = vmatpush3.bf16.msra.mxu1 %v1179_v51  ;;  %1086 = vmatprep.subr.bf16.mxu0 %v1180_v52 }
  0x2e   :  { %1114 = vmatprep.subr.bf16.mxu1 %v1181_v53  ;;  %766 = vmatprep.mubr.bf16.mxu0 %v930_v21 }
  0x2f   :  { %815 = vmatprep.mubr.bf16.mxu1 %v932_v23 }
  0x30   :  { %1087 = vmatpush3.bf16.msra.mxu0 %v1182_v54 }
  0x31   :  { %1115 = vmatpush3.bf16.msra.mxu1 %v1183_v55  ;;  %1088 = vmatprep.subr.bf16.mxu0 %v1184_v56 }
  0x32   :  { %1116 = vmatprep.subr.bf16.mxu1 %v1185_v57 }
  0x34   :  { %1089 = vmatpush3.bf16.msra.mxu0 %v1186_v61 }
  0x35   :  { %1117 = vmatpush3.bf16.msra.mxu1 %v1187_v63  ;;  %1090 = vmatprep.subr.bf16.mxu0 %v1188_v4 }
  0x36   :  { %1118 = vmatprep.subr.bf16.mxu1 %v1189_v5 }
  0x38   :  { %1091 = vmatpush3.bf16.msra.mxu0 %v1190_v6 }
  0x39   :  { %1119 = vmatpush3.bf16.msra.mxu1 %v1191_v7  ;;  %1092 = vmatprep.subr.bf16.mxu0 %v1192_v8 }
  0x3a   :  { %1120 = vmatprep.subr.bf16.mxu1 %v1193_v9 }
  0x3c   :  { %1093 = vmatpush3.bf16.msra.mxu0 %v1194_v10 }
  0x3d   :  { %1121 = vmatpush3.bf16.msra.mxu1 %v1195_v11  ;;  %1094 = vmatprep.subr.bf16.mxu0 %v1196_v12 }
  0x3e   :  { %1122 = vmatprep.subr.bf16.mxu1 %v1197_v13 }
  0x40   :  { %1095 = vmatpush3.bf16.msra.mxu0 %v1198_v14 }
  0x41   :  { %1123 = vmatpush3.bf16.msra.mxu1 %v1199_v15 }
  0x43   :  { %767 = vmatmul.mubr.bf16.vlgmr.msra.gmra.mxu0 %v929_v20 }
  0x44   :  { %816 = vmatmul.mubr.bf16.vlgmr.msra.gmra.mxu1 %v931_v22  ;;  %774 = vmatprep.mubr.bf16.mxu0 %v938_v27 }
  0x45   :  { %823 = vmatprep.mubr.bf16.mxu1 %v940_v29 }
  0x4b   :  { %775 = vmatmul.mubr.bf16.gmra.mxu0 %v937_v30 }
  0x4c   :  { %824 = vmatmul.mubr.bf16.gmra.mxu1 %v939_v31 }
  0xe3   :  { %v1040_v32 = vpop.f32.mrf.mxu0 }
  0xe4   :  { %v1068_v33 = vpop.f32.mrf.mxu1 }
  0xe5   :  { %v1041_v34 = vpop.f32.mrf.mxu0 }
  0xe6   :  { %v1069_v35 = vpop.f32.mrf.mxu1  ;;  %v1042_v46 = vadd.f32 %v1041_v34, %v1040_v32 }
  0xe7   :  { %v1043_v36 = vpop.f32.mrf.mxu0  ;;  %v1070_v54 = vadd.f32 %v1069_v35, %v1068_v33 }
  0xe8   :  { %v1071_v37 = vpop.f32.mrf.mxu1  ;;  %v671_v53 = vadd.f32 %v1042_v46, %v924_v49 }
  0xe9   :  { %v1044_v38 = vpop.f32.mrf.mxu0 }
  0xea   :  { %v1072_v39 = vpop.f32.mrf.mxu1  ;;  %v1045_v50 = vadd.f32 %v1044_v38, %v1043_v36  ;;  %v720_v63 = vadd.f32 %v1070_v54, %v671_v53 }
  0xeb   :  { %v1046_v40 = vpop.f32.mrf.mxu0  ;;  %v1073_v62 = vadd.f32 %v1072_v39, %v1071_v37 }
  0xec   :  { %v1074_v41 = vpop.f32.mrf.mxu1  ;;  %v674_v58 = vadd.f32 %v1045_v50, %v924_v49 }
  0xed   :  { %v1047_v42 = vpop.f32.mrf.mxu0 }
  0xee   :  { %v1075_v43 = vpop.f32.mrf.mxu1  ;;  %v1048_v55 = vadd.f32 %v1047_v42, %v1046_v40  ;;  %v723_v4 = vadd.f32 %v1073_v62, %v674_v58 }
  0xef   :  { %v1049_v44 = vpop.f32.mrf.mxu0  ;;  %v1076_v1 = vadd.f32 %v1075_v43, %v1074_v41 }
  0xf0   :  { %v1077_v45 = vpop.f32.mrf.mxu1  ;;  %v679_v0 = vadd.f32 %v1048_v55, %v924_v49 }
  0xf1   :  { %v1050_v47 = vpop.f32.mrf.mxu0 }
  0xf2   :  { %v1078_v48 = vpop.f32.mrf.mxu1  ;;  %v1051_v5 = vadd.f32 %v1050_v47, %v1049_v44  ;;  %v728_v12 = vadd.f32 %v1076_v1, %v679_v0 }
  0xf3   :  { %v1079_v17 = vadd.f32 %v1078_v48, %v1077_v45 }
  0xf4   :  { %v682_v16 = vadd.f32 %v1051_v5, %v924_v49 }
  0xf6   :  { %v731_v27 = vadd.f32 %v1079_v17, %v682_v16 }
 0x103   :  { %v1096_v51 = vpop.f32.mrf.mxu0 }
 0x104   :  { %v1124_v52 = vpop.f32.mrf.mxu1 }
 0x105   :  { %v1097_v56 = vpop.f32.mrf.mxu0 }
 0x106   :  { %v1125_v57 = vpop.f32.mrf.mxu1  ;;  %v1098_v59 = vadd.f32 %v1097_v56, %v1096_v51 }
 0x107   :  { %v1099_v60 = vpop.f32.mrf.mxu0  ;;  %v1126_v13 = vadd.f32 %v1125_v57, %v1124_v52 }
 0x108   :  { %v1127_v61 = vpop.f32.mrf.mxu1  ;;  %v769_v7 = vadd.f32 %v1098_v59, %v720_v63  ;;  %v861_v63 = vld [vmem:[%s1490_s3] sm:$0x1] }
 0x109   :  { %v1100_v2 = vpop.f32.mrf.mxu0 }
 0x10a   :  { %v1128_v3 = vpop.f32.mrf.mxu1  ;;  %v1101_v6 = vadd.f32 %v1100_v2, %v1099_v60  ;;  %v818_v20 = vadd.f32 %v1126_v13, %v769_v7 }
 0x10b   :  { %v1102_v8 = vpop.f32.mrf.mxu0  ;;  %v1129_v11 = vadd.f32 %v1128_v3, %v1127_v61  ;;  %v869_v61 = vlaneseq  ;;  %v865_v3 = vld [vmem:[%s1491_s4] sm:$0x1] }
 0x10c   :  { %v1130_v9 = vpop.f32.mrf.mxu1  ;;  %v772_v10 = vadd.f32 %v1101_v6, %v723_v4  ;;  %v842_v31 = vmul.f32 %v818_v20, %v818_v20 }
 0x10d   :  { %v1103_v14 = vpop.f32.mrf.mxu0  ;;  %v870_v62 = vshrl.u32 %v869_v61, 7 }
 0x10e   :  { %v1131_v15 = vpop.f32.mrf.mxu1  ;;  %v821_v18 = vadd.f32 %v1129_v11, %v772_v10  ;;  %v1104_v19 = vadd.f32 %v1103_v14, %v1102_v8 }
 0x10f   :  { %v1105_v21 = vpop.f32.mrf.mxu0  ;;  %v1132_v24 = vadd.f32 %v1131_v15, %v1130_v9  ;;  %v871_v0 = vsub.s32 0, %v870_v62 }
 0x110   :  { %v1133_v22 = vpop.f32.mrf.mxu1  ;;  %v777_v23 = vadd.f32 %v1104_v19, %v728_v12  ;;  %v843_v28 = vmul.f32 %v821_v18, %v821_v18  ;;  %v832_v32 = vadd.f32 %v821_v18, %v818_v20 }
 0x111   :  { %v1106_v25 = vpop.f32.mrf.mxu0 }
 0x112   :  { %v1134_v26 = vpop.f32.mrf.mxu1  ;;  %v826_v29 = vadd.f32 %v1132_v24, %v777_v23  ;;  %v1107_v30 = vadd.f32 %v1106_v25, %v1105_v21  ;;  %v846_v36 = vadd.f32 %v843_v28, %v842_v31 }
 0x113   :  { %v1135_v35 = vadd.f32 %v1134_v26, %v1133_v22 }
 0x114   :  { %v844_v33 = vmul.f32 %v826_v29, %v826_v29  ;;  %v780_v34 = vadd.f32 %v1107_v30, %v731_v27  ;;  %v833_v37 = vadd.f32 %v832_v32, %v826_v29 }
 0x116   :  { %v829_v38 = vadd.f32 %v1135_v35, %v780_v34  ;;  %v847_v39 = vadd.f32 %v846_v36, %v844_v33 }
 0x118   :  { %v834_v40 = vadd.f32 %v833_v37, %v829_v38  ;;  %v845_v41 = vmul.f32 %v829_v38, %v829_v38 }
 0x11a   :  { %v835_v42 = vrot.slane %v834_v40, 4  ;;  %v848_v43 = vadd.f32 %v847_v39, %v845_v41 }
 0x11c   :  { %v836_v44 = vadd.f32 %v835_v42, %v834_v40  ;;  %v849_v45 = vrot.slane %v848_v43, 4 }
 0x11e   :  { %v837_v46 = vrot.slane %v836_v44, 2  ;;  %v850_v47 = vadd.f32 %v849_v45, %v848_v43 }
 0x120   :  { %v838_v48 = vadd.f32 %v837_v46, %v836_v44  ;;  %v851_v49 = vrot.slane %v850_v47, 2 }
 0x122   :  { %v839_v50 = vrot.slane %v838_v48, 1  ;;  %v852_v51 = vadd.f32 %v851_v49, %v850_v47 }
 0x124   :  { %v840_v52 = vadd.f32 %v839_v50, %v838_v48  ;;  %v853_v53 = vrot.slane %v852_v51, 1 }
 0x126   :  { %v854_v54 = vadd.f32 %v853_v53, %v852_v51  ;;  %v856_v55 = vmul.f32 0.03125, %v840_v52 }
 0x128   :  { %v857_v56 = vmul.f32 0.03125, %v854_v54  ;;  %v858_v57 = vmul.f32 %v856_v55, %v856_v55 }
 0x12a   :  { %v859_v58 = vsub.f32 %v857_v56, %v858_v57 }
 0x12c   :  { %v860_v59 = vmax.f32 %v859_v58, 0.0 }
 0x12e   :  { %v862_v60 = vadd.f32 1e-05, %v860_v59 }
 0x130   :  { %1200 = vrsqrt.f32 %v862_v60 }
 0x13d   :  { %v1201_v1 = vpop.eup %1200 }
 0x13e   :  { %v864_v2 = vmul.f32 %v1201_v1, %v861_v63 }
 0x140   :  { %v866_v4 = vmul.f32 %v864_v2, %v856_v55  ;;  %v872_v5 = vrot.slane %v864_v2, %v871_v0 }
 0x142   :  { %v867_v6 = vsub.f32 %v865_v3, %v866_v4  ;;  %v874_v7 = vmul.f32 %v872_v5, %v818_v20  ;;  %v875_v8 = vmul.f32 %v872_v5, %v821_v18  ;;  %v876_v9 = vmul.f32 %v872_v5, %v826_v29 }
 0x143   :  { %v877_v10 = vmul.f32 %v872_v5, %v829_v38 }
 0x144   :  { %v882_v11 = vrot.slane %v867_v6, %v871_v0 }
 0x146   :  { %v884_v12 = vadd.f32 %v882_v11, %v874_v7  ;;  %v885_v13 = vadd.f32 %v882_v11, %v875_v8  ;;  %v886_v14 = vadd.f32 %v882_v11, %v876_v9  ;;  %v887_v15 = vadd.f32 %v882_v11, %v877_v10 }
 0x148   :  { %vm888_vm0 = vcmp.gt.f32.partialorder %v884_v12, 0.0  ;;  %vm889_vm1 = vcmp.gt.f32.partialorder %v885_v13, 0.0  ;;  %vm890_vm2 = vcmp.gt.f32.partialorder %v886_v14, 0.0  ;;  %vm891_vm3 = vcmp.gt.f32.partialorder %v887_v15, 0.0 }
 0x149   :  { %v892_v16 = vmul.f32 0.1, %v884_v12  ;;  %v893_v17 = vmul.f32 0.1, %v885_v13  ;;  %v894_v19 = vmul.f32 0.1, %v886_v14 }
 0x14a   :  { %v895_v21 = vmul.f32 0.1, %v887_v15 }
 0x14b   :  { %v896_v22 = vsel %vm888_vm0, %v884_v12, %v892_v16  ;;  %v897_v23 = vsel %vm889_vm1, %v885_v13, %v893_v17  ;;  %v898_v24 = vsel %vm890_vm2, %v886_v14, %v894_v19 }
 0x14c   :  { %v899_v20 = vsel %vm891_vm3, %v887_v15, %v895_v21  ;;  %v1016_v18 = vpack.c.bf16 %v897_v23, %v896_v22 }
 0x14d   :  { %v1021_v25 = vpack.c.bf16 %v899_v20, %v898_v24 }
 0x14e   :  { %1017 = vst [vmem:[%s1492_s5] sm:$0xff] %v1016_v18  }
 0x14f   :  { %1023 = vst [vmem:[%s1492_s5 + $0x8] sm:$0xff] %v1021_v25  }

// kernel: autoencoder_forward.8
= control target key start
LH: loop header
LB: loop body
LE: loop exit
PB: predicated region body
PF: predicated region fallthrough
CT: control target
= control target key end

     0   :  { %s1640_s1 = inlined_call_operand.vmem [shape: bf16[1152,128], index: 1, kind: input, shape index: {}]   ;;  %s1641_s0 = inlined_call_operand.vmem [shape: bf16[32,1152], index: 0, kind: input, shape index: {}]   ;;  %s1642_s2 = inlined_call_operand.vmem [shape: f32[1,128], index: 2, kind: input, shape index: {}]   ;;  %s1643_s3 = inlined_call_operand.vmem [shape: bf16[32,128], index: 3, kind: output, shape index: {}]  }
   0x1   :  { %v1235_v0 = vld [vmem:[%s1640_s1 + $0x78] sm:$0xff]   ;;  %v1239_v4 = vld [vmem:[%s1640_s1 + $0x70] sm:$0xff]   ;;  %v1243_v8 = vld [vmem:[%s1640_s1 + $0x68] sm:$0xff]  }
   0x2   :  { %v1236_v1 = vld [vmem:[%s1640_s1 + $0x38] sm:$0xff]   ;;  %1093 = vmatprep.subr.bf16.mxu0 %v1235_v0  ;;  %v1240_v5 = vld [vmem:[%s1640_s1 + $0x30] sm:$0xff]   ;;  %v1244_v9 = vld [vmem:[%s1640_s1 + $0x28] sm:$0xff]  }
   0x3   :  { %v1237_v2 = vld [vmem:[%s1640_s1 + $0xf8] sm:$0xff]   ;;  %1094 = vmatpush3.bf16.msra.mxu0 %v1236_v1  ;;  %v1241_v6 = vld [vmem:[%s1640_s1 + $0xf0] sm:$0xff]   ;;  %v1245_v10 = vld [vmem:[%s1640_s1 + $0xe8] sm:$0xff]  }
   0x4   :  { %v1238_v3 = vld [vmem:[%s1640_s1 + $0xb8] sm:$0xff]   ;;  %1121 = vmatprep.subr.bf16.mxu1 %v1237_v2  ;;  %1095 = vmatprep.subr.bf16.mxu0 %v1239_v4  ;;  %v1242_v7 = vld [vmem:[%s1640_s1 + $0xb0] sm:$0xff]   ;;  %v1246_v11 = vld [vmem:[%s1640_s1 + $0xa8] sm:$0xff]  }
   0x5   :  { %1122 = vmatpush3.bf16.msra.mxu1 %v1238_v3  ;;  %v1247_v12 = vld [vmem:[%s1640_s1 + $0x60] sm:$0xff]   ;;  %v1251_v16 = vld [vmem:[%s1640_s1 + $0x58] sm:$0xff]   ;;  %v1255_v20 = vld [vmem:[%s1640_s1 + $0x50] sm:$0xff]  }
   0x6   :  { %1123 = vmatprep.subr.bf16.mxu1 %v1241_v6  ;;  %v1248_v13 = vld [vmem:[%s1640_s1 + $0x20] sm:$0xff]   ;;  %v1252_v17 = vld [vmem:[%s1640_s1 + $0x18] sm:$0xff]   ;;  %v1256_v21 = vld [vmem:[%s1640_s1 + $0x10] sm:$0xff]  }
   0x7   :  { %1096 = vmatpush3.bf16.msra.mxu0 %v1240_v5  ;;  %v1249_v14 = vld [vmem:[%s1640_s1 + $0xe0] sm:$0xff]   ;;  %v1253_v18 = vld [vmem:[%s1640_s1 + $0xd8] sm:$0xff]   ;;  %v1257_v22 = vld [vmem:[%s1640_s1 + $0xd0] sm:$0xff]  }
   0x8   :  { %1097 = vmatprep.subr.bf16.mxu0 %v1243_v8  ;;  %v1250_v15 = vld [vmem:[%s1640_s1 + $0xa0] sm:$0xff]   ;;  %v1254_v19 = vld [vmem:[%s1640_s1 + $0x98] sm:$0xff]   ;;  %v1258_v23 = vld [vmem:[%s1640_s1 + $0x90] sm:$0xff]  }
   0x9   :  { %1124 = vmatpush3.bf16.msra.mxu1 %v1242_v7  ;;  %v1259_v24 = vld [vmem:[%s1640_s1 + $0x48] sm:$0xff]   ;;  %v1263_v28 = vld [vmem:[%s1640_s1 + $0x40] sm:$0xff]   ;;  %v1270_v34 = vld [vmem:[%s1640_s1 + $0x178] sm:$0xff]  }
   0xa   :  { %1125 = vmatprep.subr.bf16.mxu1 %v1245_v10  ;;  %v1260_v25 = vld [vmem:[%s1640_s1 + $0x8] sm:$0xff]   ;;  %v1264_v29 = vld [vmem:[%s1640_s1] sm:$0xff]   ;;  %v1274_v37 = vld [vmem:[%s1640_s1 + $0x138] sm:$0xff]  }
   0xb   :  { %1098 = vmatpush3.bf16.msra.mxu0 %v1244_v9  ;;  %v1261_v26 = vld [vmem:[%s1640_s1 + $0xc8] sm:$0xff]   ;;  %v1265_v30 = vld [vmem:[%s1640_s1 + $0xc0] sm:$0xff]   ;;  %v1275_v38 = vld [vmem:[%s1640_s1 + $0x1f8] sm:$0xff]  }
   0xc   :  { %1099 = vmatprep.subr.bf16.mxu0 %v1247_v12  ;;  %v1262_v27 = vld [vmem:[%s1640_s1 + $0x88] sm:$0xff]   ;;  %v1266_v31 = vld [vmem:[%s1641_s0] ss:$36 sps:$4 sm:$0xff]   ;;  %v1276_v39 = vld [vmem:[%s1640_s1 + $0x1b8] sm:$0xff]  }
   0xd   :  { %1126 = vmatpush3.bf16.msra.mxu1 %v1246_v11  ;;  %v1268_v32 = vld [vmem:[%s1641_s0 + $0x4] ss:$36 sps:$4 sm:$0xff]   ;;  %v1273_v36 = vld [vmem:[%s1641_s0 + $0xc] ss:$36 sps:$4 sm:$0xff]   ;;  %v1289_v52 = vld [vmem:[%s1640_s1 + $0x158] sm:$0xff]  }
   0xe   :  { %1127 = vmatprep.subr.bf16.mxu1 %v1249_v14  ;;  %v1269_v33 = vld [vmem:[%s1640_s1 + $0x80] sm:$0xff]   ;;  %742 = vmatprep.mubr.bf16.mxu0 %v1268_v32  ;;  %v1271_v35 = vld [vmem:[%s1641_s0 + $0x8] ss:$36 sps:$4 sm:$0xff]   ;;  %v1277_v40 = vld [vmem:[%s1640_s1 + $0x170] sm:$0xff]  }
   0xf   :  { %1100 = vmatpush3.bf16.msra.mxu0 %v1248_v13  ;;  %791 = vmatprep.mubr.bf16.mxu1 %v1273_v36  ;;  %v1278_v41 = vld [vmem:[%s1640_s1 + $0x130] sm:$0xff]   ;;  %v1281_v44 = vld [vmem:[%s1640_s1 + $0x168] sm:$0xff]   ;;  %v1285_v48 = vld [vmem:[%s1640_s1 + $0x160] sm:$0xff]  }
  0x10   :  { %1101 = vmatprep.subr.bf16.mxu0 %v1251_v16  ;;  %v1279_v42 = vld [vmem:[%s1640_s1 + $0x1f0] sm:$0xff]   ;;  %v1282_v45 = vld [vmem:[%s1640_s1 + $0x128] sm:$0xff]   ;;  %v1286_v49 = vld [vmem:[%s1640_s1 + $0x120] sm:$0xff]  }
  0x11   :  { %1128 = vmatpush3.bf16.msra.mxu1 %v1250_v15  ;;  %v1280_v43 = vld [vmem:[%s1640_s1 + $0x1b0] sm:$0xff]   ;;  %v1283_v46 = vld [vmem:[%s1640_s1 + $0x1e8] sm:$0xff]   ;;  %v1287_v50 = vld [vmem:[%s1640_s1 + $0x1e0] sm:$0xff]  }
  0x12   :  { %1129 = vmatprep.subr.bf16.mxu1 %v1253_v18  ;;  %v1284_v47 = vld [vmem:[%s1640_s1 + $0x1a8] sm:$0xff]   ;;  %v1288_v51 = vld [vmem:[%s1640_s1 + $0x1a0] sm:$0xff]   ;;  %v1290_v53 = vld [vmem:[%s1640_s1 + $0x118] sm:$0xff]  }
  0x13   :  { %1102 = vmatpush3.bf16.msra.mxu0 %v1252_v17  ;;  %v1291_v54 = vld [vmem:[%s1641_s0 + $0x4c] ss:$36 sps:$4 sm:$0xff]   ;;  %v1293_v55 = vld [vmem:[%s1640_s1 + $0x1d8] sm:$0xff]   ;;  %v1307_v4 = vld [vmem:[%s1640_s1 + $0x140] sm:$0xff]  }
  0x14   :  { %1103 = vmatprep.subr.bf16.mxu0 %v1255_v20  ;;  %v1294_v56 = vld [vmem:[%s1641_s0 + $0x48] ss:$36 sps:$4 sm:$0xff]   ;;  %v1295_v57 = vld [vmem:[%s1640_s1 + $0x198] sm:$0xff]   ;;  %v1298_v59 = vld [vmem:[%s1640_s1 + $0x150] sm:$0xff]  }
  0x15   :  { %1130 = vmatpush3.bf16.msra.mxu1 %v1254_v19  ;;  %v1296_v58 = vld [vmem:[%s1641_s0 + $0x54] ss:$36 sps:$4 sm:$0xff]   ;;  %v1303_v0 = vld [vmem:[%s1640_s1 + $0x148] sm:$0xff]   ;;  %v1308_v5 = vld [vmem:[%s1640_s1 + $0x100] sm:$0xff]  }
  0x16   :  { %1131 = vmatprep.subr.bf16.mxu1 %v1257_v22  ;;  %v1299_v60 = vld [vmem:[%s1641_s0 + $0x50] ss:$36 sps:$4 sm:$0xff]   ;;  %v1304_v1 = vld [vmem:[%s1640_s1 + $0x108] sm:$0xff]   ;;  %v1309_v6 = vld [vmem:[%s1640_s1 + $0x1c0] sm:$0xff]  }
  0x17   :  { %1104 = vmatpush3.bf16.msra.mxu0 %v1256_v21  ;;  %v1300_v61 = vld [vmem:[%s1640_s1 + $0x110] sm:$0xff]   ;;  %v1305_v2 = vld [vmem:[%s1640_s1 + $0x1c8] sm:$0xff]   ;;  %v1313_v9 = vld [vmem:[%s1640_s1 + $0x180] sm:$0xff]  }
  0x18   :  { %1105 = vmatprep.subr.bf16.mxu0 %v1259_v24  ;;  %v1301_v62 = vld [vmem:[%s1640_s1 + $0x1d0] sm:$0xff]   ;;  %v1306_v3 = vld [vmem:[%s1640_s1 + $0x188] sm:$0xff]   ;;  %v1314_v10 = vld [vmem:[%s1640_s1 + $0x238] sm:$0xff]  }
  0x19   :  { %1132 = vmatpush3.bf16.msra.mxu1 %v1258_v23  ;;  %v1302_v63 = vld [vmem:[%s1640_s1 + $0x190] sm:$0xff]   ;;  %v1315_v11 = vld [vmem:[%s1641_s0 + $0x18] ss:$36 sps:$4 sm:$0xff]   ;;  %v1322_v16 = vld [vmem:[%s1640_s1 + $0x228] sm:$0xff]  }
  0x1a   :  { %1133 = vmatprep.subr.bf16.mxu1 %v1261_v26  ;;  %v1310_v7 = vld [vmem:[%s1641_s0 + $0x10] ss:$36 sps:$4 sm:$0xff]   ;;  %v1317_v12 = vld [vmem:[%s1641_s0 + $0x1c] ss:$36 sps:$4 sm:$0xff]   ;;  %v1323_v17 = vld [vmem:[%s1641_s0 + $0x64] ss:$36 sps:$4 sm:$0xff]  }
  0x1b   :  { %1106 = vmatpush3.bf16.msra.mxu0 %v1260_v25  ;;  %v1312_v8 = vld [vmem:[%s1641_s0 + $0x14] ss:$36 sps:$4 sm:$0xff]   ;;  %v1319_v14 = vld [vmem:[%s1641_s0 + $0x5c] ss:$36 sps:$4 sm:$0xff]   ;;  %v1329_v23 = vld [vmem:[%s1640_s1 + $0x208] sm:$0xff]  }
  0x1c   :  { %1107 = vmatprep.subr.bf16.mxu0 %v1263_v28  ;;  %v1318_v13 = vld [vmem:[%s1640_s1 + $0x230] sm:$0xff]   ;;  %v1321_v15 = vld [vmem:[%s1641_s0 + $0x58] ss:$36 sps:$4 sm:$0xff]   ;;  %v1325_v18 = vld [vmem:[%s1641_s0 + $0x60] ss:$36 sps:$4 sm:$0xff]  }
  0x1d   :  { %1134 = vmatpush3.bf16.msra.mxu1 %v1262_v27  ;;  %v1326_v19 = vld [vmem:[%s1640_s1 + $0x220] sm:$0xff]   ;;  %v1327_v20 = vld [vmem:[%s1640_s1 + $0x218] sm:$0xff]   ;;  %v1328_v22 = vld [vmem:[%s1640_s1 + $0x210] sm:$0xff]  }
  0x1e   :  { %1135 = vmatprep.subr.bf16.mxu1 %v1265_v30  ;;  %v1331_v21 = vld [vmem:[%s1641_s0 + $0x20] ss:$36 sps:$4 sm:$0xff]   ;;  %v1332_v25 = vld [vmem:[%s1641_s0 + $0x68] ss:$36 sps:$4 sm:$0xff]  }
  0x1f   :  { %1108 = vmatpush3.bf16.msra.mxu0 %v1264_v29  ;;  %v1330_v24 = vld [vmem:[%s1640_s1 + $0x200] sm:$0xff]  }
  0x20   :  { %1149 = vmatprep.subr.bf16.mxu0 %v1270_v34 }
  0x21   :  { %1136 = vmatpush3.bf16.msra.mxu1 %v1269_v33 }
  0x22   :  { %743 = vmatmul.mubr.bf16.vlgmr.msra.gmra.mxu0 %v1266_v31  ;;  %1177 = vmatprep.subr.bf16.mxu1 %v1275_v38 }
  0x23   :  { %1150 = vmatpush3.bf16.msra.mxu0 %v1274_v37  ;;  %750 = vmatprep.mubr.bf16.mxu0 %v1291_v54 }
  0x24   :  { %792 = vmatmul.mubr.bf16.vlgmr.msra.gmra.mxu1 %v1271_v35  ;;  %1151 = vmatprep.subr.bf16.mxu0 %v1277_v40 }
  0x25   :  { %1178 = vmatpush3.bf16.msra.mxu1 %v1276_v39  ;;  %799 = vmatprep.mubr.bf16.mxu1 %v1296_v58 }
  0x26   :  { %1179 = vmatprep.subr.bf16.mxu1 %v1279_v42 }
  0x27   :  { %1152 = vmatpush3.bf16.msra.mxu0 %v1278_v41 }
  0x28   :  { %1153 = vmatprep.subr.bf16.mxu0 %v1281_v44 }
  0x29   :  { %1180 = vmatpush3.bf16.msra.mxu1 %v1280_v43 }
  0x2a   :  { %1181 = vmatprep.subr.bf16.mxu1 %v1283_v46  ;;  %751 = vmatmul.mubr.bf16.gmra.mxu0 %v1294_v56 }
  0x2b   :  { %1154 = vmatpush3.bf16.msra.mxu0 %v1282_v45  ;;  %840 = vmatprep.mubr.bf16.mxu0 %v1312_v8 }
  0x2c   :  { %1155 = vmatprep.subr.bf16.mxu0 %v1285_v48  ;;  %800 = vmatmul.mubr.bf16.gmra.mxu1 %v1299_v60 }
  0x2d   :  { %1182 = vmatpush3.bf16.msra.mxu1 %v1284_v47  ;;  %889 = vmatprep.mubr.bf16.mxu1 %v1317_v12 }
  0x2e   :  { %1183 = vmatprep.subr.bf16.mxu1 %v1287_v50 }
  0x2f   :  { %1156 = vmatpush3.bf16.msra.mxu0 %v1286_v49 }
  0x30   :  { %1157 = vmatprep.subr.bf16.mxu0 %v1289_v52 }
  0x31   :  { %1184 = vmatpush3.bf16.msra.mxu1 %v1288_v51 }
  0x32   :  { %1185 = vmatprep.subr.bf16.mxu1 %v1293_v55 }
  0x33   :  { %1158 = vmatpush3.bf16.msra.mxu0 %v1290_v53 }
  0x34   :  { %1159 = vmatprep.subr.bf16.mxu0 %v1298_v59 }
  0x35   :  { %1186 = vmatpush3.bf16.msra.mxu1 %v1295_v57  ;;  %v983_v57 = vld [vmem:[%s1642_s2] ss:$0 sm:$0xff] }
  0x36   :  { %1187 = vmatprep.subr.bf16.mxu1 %v1301_v62 }
  0x37   :  { %1160 = vmatpush3.bf16.msra.mxu0 %v1300_v61 }
  0x38   :  { %1161 = vmatprep.subr.bf16.mxu0 %v1303_v0 }
  0x39   :  { %1188 = vmatpush3.bf16.msra.mxu1 %v1302_v63 }
  0x3a   :  { %1189 = vmatprep.subr.bf16.mxu1 %v1305_v2 }
  0x3b   :  { %1162 = vmatpush3.bf16.msra.mxu0 %v1304_v1 }
  0x3c   :  { %1163 = vmatprep.subr.bf16.mxu0 %v1307_v4 }
  0x3d   :  { %1190 = vmatpush3.bf16.msra.mxu1 %v1306_v3 }
  0x3e   :  { %1191 = vmatprep.subr.bf16.mxu1 %v1309_v6 }
  0x3f   :  { %1164 = vmatpush3.bf16.msra.mxu0 %v1308_v5 }
  0x40   :  { %1215 = vmatprep.subr.bf16.mxu0 %v1314_v10 }
  0x41   :  { %1192 = vmatpush3.bf16.msra.mxu1 %v1313_v9 }
  0x42   :  { %841 = vmatmul.mubr.bf16.vlgmr.msra.gmra.mxu0 %v1310_v7 }
  0x43   :  { %1216 = vmatpush3.bf16.msra.mxu0 %v1314_v10  ;;  %848 = vmatprep.mubr.bf16.mxu0 %v1319_v14 }
  0x44   :  { %890 = vmatmul.mubr.bf16.vlgmr.msra.gmra.mxu1 %v1315_v11  ;;  %1217 = vmatprep.subr.bf16.mxu0 %v1318_v13 }
  0x45   :  { %897 = vmatprep.mubr.bf16.mxu1 %v1323_v17 }
  0x47   :  { %1218 = vmatpush3.bf16.msra.mxu0 %v1318_v13 }
  0x48   :  { %1219 = vmatprep.subr.bf16.mxu0 %v1322_v16 }
  0x4a   :  { %849 = vmatmul.mubr.bf16.gmra.mxu0 %v1321_v15 }
  0x4b   :  { %1220 = vmatpush3.bf16.msra.mxu0 %v1322_v16  ;;  %1231 = vmatprep.mubr.bf16.mxu0 %v1331_v21 }
  0x4c   :  { %898 = vmatmul.mubr.bf16.gmra.mxu1 %v1325_v18  ;;  %1221 = vmatprep.subr.bf16.mxu0 %v1326_v19 }
  0x4f   :  { %1222 = vmatpush3.bf16.msra.mxu0 %v1326_v19 }
  0x50   :  { %1223 = vmatprep.subr.bf16.mxu0 %v1327_v20 }
  0x53   :  { %1224 = vmatpush3.bf16.msra.mxu0 %v1327_v20 }
  0x54   :  { %1225 = vmatprep.subr.bf16.mxu0 %v1328_v22 }
  0x57   :  { %1226 = vmatpush3.bf16.msra.mxu0 %v1328_v22 }
  0x58   :  { %1227 = vmatprep.subr.bf16.mxu0 %v1329_v23 }
  0x5b   :  { %1228 = vmatpush3.bf16.msra.mxu0 %v1329_v23 }
  0x5c   :  { %1229 = vmatprep.subr.bf16.mxu0 %v1330_v24 }
  0x5f   :  { %1230 = vmatpush3.bf16.msra.mxu0 %v1330_v24 }
  0x62   :  { %1232 = vmatmul.mubr.bf16.vlgmr.msra.gmra.mxu0 %v1332_v25 }
  0xe2   :  { %v1109_v26 = vpop.f32.mrf.mxu0 }
  0xe4   :  { %v1137_v27 = vpop.f32.mrf.mxu1  ;;  %v1110_v28 = vpop.f32.mrf.mxu0 }
  0xe5   :  { %v1111_v54 = vadd.f32 %v1110_v28, %v1109_v26 }
  0xe6   :  { %v1138_v29 = vpop.f32.mrf.mxu1  ;;  %v1112_v30 = vpop.f32.mrf.mxu0 }
  0xe7   :  { %v745_v62 = vadd.f32 %v1111_v54, %v983_v57  ;;  %v1139_v63 = vadd.f32 %v1138_v29, %v1137_v27 }
  0xe8   :  { %v1140_v31 = vpop.f32.mrf.mxu1  ;;  %v1113_v32 = vpop.f32.mrf.mxu0 }
  0xe9   :  { %v1114_v61 = vadd.f32 %v1113_v32, %v1112_v30  ;;  %v794_v10 = vadd.f32 %v1139_v63, %v745_v62 }
  0xea   :  { %v1115_v33 = vpop.f32.mrf.mxu0  ;;  %v1141_v34 = vpop.f32.mrf.mxu1 }
  0xeb   :  { %v748_v7 = vadd.f32 %v1114_v61, %v983_v57  ;;  %v1142_v8 = vadd.f32 %v1141_v34, %v1140_v31 }
  0xec   :  { %v1143_v35 = vpop.f32.mrf.mxu1  ;;  %v1116_v36 = vpop.f32.mrf.mxu0 }
  0xed   :  { %v1117_v53 = vadd.f32 %v1116_v36, %v1115_v33  ;;  %v797_v18 = vadd.f32 %v1142_v8, %v748_v7 }
  0xee   :  { %v1144_v37 = vpop.f32.mrf.mxu1  ;;  %v1118_v38 = vpop.f32.mrf.mxu0 }
  0xef   :  { %v753_v59 = vadd.f32 %v1117_v53, %v983_v57  ;;  %v1145_v60 = vadd.f32 %v1144_v37, %v1143_v35 }
  0xf0   :  { %v1146_v39 = vpop.f32.mrf.mxu1  ;;  %v1119_v40 = vpop.f32.mrf.mxu0 }
  0xf1   :  { %v1120_v58 = vadd.f32 %v1119_v40, %v1118_v38  ;;  %v802_v5 = vadd.f32 %v1145_v60, %v753_v59 }
  0xf2   :  { %v1147_v42 = vpop.f32.mrf.mxu1 }
  0xf3   :  { %v756_v3 = vadd.f32 %v1120_v58, %v983_v57  ;;  %v1148_v4 = vadd.f32 %v1147_v42, %v1146_v39 }
  0xf5   :  { %v805_v14 = vadd.f32 %v1148_v4, %v756_v3 }
 0x102   :  { %v1165_v41 = vpop.f32.mrf.mxu0 }
 0x104   :  { %v1166_v43 = vpop.f32.mrf.mxu0  ;;  %v1193_v44 = vpop.f32.mrf.mxu1 }
 0x105   :  { %v1167_v6 = vadd.f32 %v1166_v43, %v1165_v41 }
 0x106   :  { %v1168_v45 = vpop.f32.mrf.mxu0  ;;  %v1194_v46 = vpop.f32.mrf.mxu1 }
 0x107   :  { %v843_v16 = vadd.f32 %v1167_v6, %v794_v10  ;;  %v1195_v17 = vadd.f32 %v1194_v46, %v1193_v44 }
 0x108   :  { %v1169_v47 = vpop.f32.mrf.mxu0  ;;  %v1196_v48 = vpop.f32.mrf.mxu1 }
 0x109   :  { %v1170_v15 = vadd.f32 %v1169_v47, %v1168_v45  ;;  %v892_v26 = vadd.f32 %v1195_v17, %v843_v16 }
 0x10a   :  { %v1171_v49 = vpop.f32.mrf.mxu0  ;;  %v1197_v50 = vpop.f32.mrf.mxu1 }
 0x10b   :  { %v846_v23 = vadd.f32 %v1170_v15, %v797_v18  ;;  %v1198_v24 = vadd.f32 %v1197_v50, %v1196_v48 }
 0x10c   :  { %v1172_v51 = vpop.f32.mrf.mxu0  ;;  %v1199_v52 = vpop.f32.mrf.mxu1 }
 0x10d   :  { %v1173_v0 = vadd.f32 %v1172_v51, %v1171_v49  ;;  %v895_v32 = vadd.f32 %v1198_v24, %v846_v23 }
 0x10e   :  { %v1174_v55 = vpop.f32.mrf.mxu0  ;;  %v1200_v56 = vpop.f32.mrf.mxu1 }
 0x10f   :  { %v851_v11 = vadd.f32 %v1173_v0, %v802_v5  ;;  %v1201_v12 = vadd.f32 %v1200_v56, %v1199_v52 }
 0x110   :  { %v1175_v1 = vpop.f32.mrf.mxu0  ;;  %v1202_v2 = vpop.f32.mrf.mxu1 }
 0x111   :  { %v1176_v9 = vadd.f32 %v1175_v1, %v1174_v55  ;;  %v900_v21 = vadd.f32 %v1201_v12, %v851_v11 }
 0x112   :  { %v1203_v13 = vpop.f32.mrf.mxu1 }
 0x113   :  { %v854_v19 = vadd.f32 %v1176_v9, %v805_v14  ;;  %v1204_v20 = vadd.f32 %v1203_v13, %v1202_v2 }
 0x115   :  { %v903_v28 = vadd.f32 %v1204_v20, %v854_v19 }
 0x122   :  { %v1233_v22 = vpop.f32.mrf.mxu0 }
 0x123   :  { %v949_v25 = vadd.f32 %v1233_v22, %v900_v21 }
 0x124   :  { %v940_v27 = vpop.f32.mrf.mxu0 }
 0x125   :  { %v941_v29 = vadd.f32 %v940_v27, %v892_v26  ;;  %1333 = vtanh.f32 %v949_v25 }
 0x126   :  { %v1234_v30 = vpop.f32.mrf.mxu0 }
 0x127   :  { %v952_v31 = vadd.f32 %v1234_v30, %v903_v28 }
 0x128   :  { %v943_v33 = vpop.f32.mrf.mxu0 }
 0x129   :  { %1335 = vtanh.f32 %v952_v31  ;;  %v944_v34 = vadd.f32 %v943_v33, %v895_v32 }
 0x12a   :  { %1337 = vtanh.f32 %v941_v29 }
 0x12b   :  { %1339 = vtanh.f32 %v944_v34 }
 0x132   :  { %v1334_v35 = vpop.eup %1333 }
 0x136   :  { %v1336_v36 = vpop.eup %1335 }
 0x137   :  { %v1338_v37 = vpop.eup %1337  ;;  %v1090_v38 = vpack.c.bf16 %v1336_v36, %v1334_v35 }
 0x138   :  { %v1340_v39 = vpop.eup %1339 }
 0x139   :  { %1092 = vst [vmem:[%s1643_s3 + $0x8] sm:$0xff] %v1090_v38   ;;  %v1085_v40 = vpack.c.bf16 %v1340_v39, %v1338_v37 }
 0x13b   :  { %1086 = vst [vmem:[%s1643_s3] sm:$0xff] %v1085_v40  }

// kernel: autoencoder_forward.9
= control target key start
LH: loop header
LB: loop body
LE: loop exit
PB: predicated region body
PF: predicated region fallthrough
CT: control target
= control target key end

     0   :  { %v599_v1 = vmov 0   ;;  %vm129_vm0 = vcmask 392192   ;;  %v39_v15 = vlaneseq  ;;  %s892_s1 = inlined_call_operand.vmem [shape: bf16[48,512], index: 1, kind: input, shape index: {}]   ;;  %s893_s0 = inlined_call_operand.vmem [shape: bf16[32,48], index: 0, kind: input, shape index: {}]   ;;  %s894_s2 = inlined_call_operand.vmem [shape: f32[1,512], index: 2, kind: input, shape index: {}]   ;;  %s895_s3 = inlined_call_operand.vmem [shape: f32[1,128], index: 3, kind: input, shape index: {}]   ;;  %s896_s4 = inlined_call_operand.vmem [shape: f32[1,128], index: 4, kind: input, shape index: {}]   ;;  %s897_s5 = inlined_call_operand.vmem [shape: bf16[32,512], index: 5, kind: output, shape index: {}]  }
   0x1   :  { %v577_v0 = vld [vmem:[%s892_s1 + $0x44] ss:$16 sps:$4 sm:$0xff]   ;;  %168 = vmatprep.mubr.bf16.mxu0 %v599_v1  ;;  %221 = vmatprep.mubr.bf16.mxu1 %v599_v1  ;;  %v579_v2 = vld [vmem:[%s892_s1 + $0x4c] ss:$16 sps:$4 sm:$0xff]   ;;  %v581_v3 = vld [vmem:[%s892_s1 + $0x40] ss:$16 sps:$4 sm:$0xff]  }
   0x2   :  { %146 = vmatprep.subr.bf16.mxu0 %v577_v0  ;;  %v582_v4 = vld [vmem:[%s892_s1 + $0x48] ss:$16 sps:$4 sm:$0xff]   ;;  %199 = vmatprep.subr.bf16.mxu1 %v579_v2  ;;  %v583_v5 = vld [vmem:[%s892_s1 + $0x24] ss:$16 sps:$4 sm:$0xff]   ;;  %v585_v6 = vld [vmem:[%s892_s1 + $0x2c] ss:$16 sps:$4 sm:$0xff]  }
   0x3   :  { %147 = vmatpush1.bf16.msra.mxu0 %v581_v3  ;;  %200 = vmatpush1.bf16.msra.mxu1 %v582_v4  ;;  %v587_v7 = vld [vmem:[%s892_s1 + $0x20] ss:$16 sps:$4 sm:$0xff]   ;;  %v588_v8 = vld [vmem:[%s892_s1 + $0x28] ss:$16 sps:$4 sm:$0xff]   ;;  %v589_v9 = vld [vmem:[%s892_s1 + $0x4] ss:$16 sps:$4 sm:$0xff]  }
   0x4   :  { %148 = vmatprep.subr.bf16.mxu0 %v583_v5  ;;  %201 = vmatprep.subr.bf16.mxu1 %v585_v6  ;;  %v591_v10 = vld [vmem:[%s892_s1 + $0xc] ss:$16 sps:$4 sm:$0xff]   ;;  %v593_v11 = vld [vmem:[%s892_s1] ss:$16 sps:$4 sm:$0xff]   ;;  %v594_v12 = vld [vmem:[%s892_s1 + $0x8] ss:$16 sps:$4 sm:$0xff]  }
   0x5   :  { %v595_v13 = vld [vmem:[%s893_s0] sm:$0xff]   ;;  %v596_v14 = vld [vmem:[%s893_s0 + $0x8] sm:$0xff]   ;;  %v40_v16 = vshrl.u32 %v39_v15, 7 }
   0x6   :  { %v37_v19 = vld [vmem:[%s894_s2] sm:$0xf] }
   0x7   :  { %149 = vmatpush1.bf16.msra.mxu0 %v587_v7  ;;  %202 = vmatpush1.bf16.msra.mxu1 %v588_v8  ;;  %v49_v17 = vsub.s32 2, %v40_v16  ;;  %v672_v18 = vsub.s32 0, %v40_v16  ;;  %v45_v20 = vsub.s32 1, %v40_v16  ;;  %v53_v21 = vsub.s32 3, %v40_v16 }
   0x8   :  { %150 = vmatprep.subr.bf16.mxu0 %v589_v9  ;;  %203 = vmatprep.subr.bf16.mxu1 %v591_v10 }
   0x9   :  { %v50_v22 = vrot.slane %v37_v19, %v49_v17  ;;  %v42_v23 = vrot.slane %v37_v19, %v672_v18  ;;  %v678_v24 = vrot.slane %v37_v19, %v45_v20  ;;  %v680_v25 = vrot.slane %v37_v19, %v53_v21 }
   0xb   :  { %151 = vmatpush1.bf16.msra.mxu0 %v593_v11  ;;  %204 = vmatpush1.bf16.msra.mxu1 %v594_v12 }
   0xe   :  { %540 = vmatmul.mubr.msk.bf16.vlgmr.msra.gmra.mxu0 %vm129_vm0, %v595_v13  ;;  %542 = vmatmul.mubr.msk.bf16.vlgmr.msra.gmra.mxu1 %vm129_vm0, %v595_v13 }
   0xf   :  { %178 = vmatprep.mubr.bf16.mxu0 %v599_v1  ;;  %231 = vmatprep.mubr.bf16.mxu1 %v599_v1 }
  0x16   :  { %541 = vmatmul.mubr.msk.bf16.gmra.mxu0 %vm129_vm0, %v596_v14  ;;  %543 = vmatmul.mubr.msk.bf16.gmra.mxu1 %vm129_vm0, %v596_v14 }
  0xce   :  { %v170_v26 = vpop.f32.mrf.mxu0  ;;  %v223_v27 = vpop.f32.mrf.mxu1 }
  0xcf   :  { %v682_v28 = vadd.f32 %v223_v27, %v50_v22  ;;  %v684_v29 = vadd.f32 %v170_v26, %v42_v23 }
  0xd0   :  { %v172_v30 = vpop.f32.mrf.mxu0  ;;  %v225_v31 = vpop.f32.mrf.mxu1 }
  0xd1   :  { %v687_v32 = vadd.f32 %v172_v30, %v678_v24  ;;  %v690_v33 = vadd.f32 %v225_v31, %v680_v25  ;;  %v300_v36 = vmul.f32 %v682_v28, %v682_v28  ;;  %v252_v39 = vmul.f32 %v684_v29, %v684_v29 }
  0xd2   :  { %v174_v34 = vpop.f32.mrf.mxu0  ;;  %v227_v35 = vpop.f32.mrf.mxu1 }
  0xd3   :  { %v694_v37 = vadd.f32 %v174_v34, %v42_v23  ;;  %v696_v38 = vadd.f32 %v227_v35, %v50_v22  ;;  %v276_v42 = vmul.f32 %v687_v32, %v687_v32  ;;  %v324_v43 = vmul.f32 %v690_v33, %v690_v33 }
  0xd4   :  { %v176_v40 = vpop.f32.mrf.mxu0  ;;  %v229_v41 = vpop.f32.mrf.mxu1 }
  0xd5   :  { %v253_v44 = vmul.f32 %v694_v37, %v694_v37  ;;  %v301_v45 = vmul.f32 %v696_v38, %v696_v38  ;;  %v242_v46 = vadd.f32 %v694_v37, %v684_v29  ;;  %v290_v47 = vadd.f32 %v696_v38, %v682_v28 }
  0xd6   :  { %v713_v48 = vadd.f32 %v176_v40, %v678_v24  ;;  %v716_v49 = vadd.f32 %v229_v41, %v680_v25  ;;  %v180_v50 = vpop.f32.mrf.mxu0  ;;  %v233_v51 = vpop.f32.mrf.mxu1 }
  0xd7   :  { %v256_v52 = vadd.f32 %v253_v44, %v252_v39  ;;  %v304_v53 = vadd.f32 %v301_v45, %v300_v36  ;;  %v718_v54 = vadd.f32 %v180_v50, %v42_v23  ;;  %v720_v55 = vadd.f32 %v233_v51, %v50_v22 }
  0xd8   :  { %v266_v56 = vadd.f32 %v713_v48, %v687_v32  ;;  %v277_v57 = vmul.f32 %v713_v48, %v713_v48  ;;  %v314_v58 = vadd.f32 %v716_v49, %v690_v33  ;;  %v325_v59 = vmul.f32 %v716_v49, %v716_v49  ;;  %v182_v60 = vpop.f32.mrf.mxu0  ;;  %v235_v61 = vpop.f32.mrf.mxu1 }
  0xd9   :  { %v243_v62 = vadd.f32 %v242_v46, %v718_v54  ;;  %v254_v63 = vmul.f32 %v718_v54, %v718_v54  ;;  %v291_v0 = vadd.f32 %v290_v47, %v720_v55  ;;  %v302_v1 = vmul.f32 %v720_v55, %v720_v55 }
  0xda   :  { %v280_v2 = vadd.f32 %v277_v57, %v276_v42  ;;  %v328_v3 = vadd.f32 %v325_v59, %v324_v43  ;;  %v737_v4 = vadd.f32 %v182_v60, %v678_v24  ;;  %v740_v5 = vadd.f32 %v235_v61, %v680_v25  ;;  %v184_v6 = vpop.f32.mrf.mxu0  ;;  %v237_v7 = vpop.f32.mrf.mxu1 }
  0xdb   :  { %v257_v8 = vadd.f32 %v256_v52, %v254_v63  ;;  %v305_v9 = vadd.f32 %v304_v53, %v302_v1  ;;  %v742_v10 = vadd.f32 %v184_v6, %v42_v23  ;;  %v744_v11 = vadd.f32 %v237_v7, %v50_v22 }
  0xdc   :  { %v267_v12 = vadd.f32 %v266_v56, %v737_v4  ;;  %v278_v13 = vmul.f32 %v737_v4, %v737_v4  ;;  %v315_v14 = vadd.f32 %v314_v58, %v740_v5  ;;  %v326_v15 = vmul.f32 %v740_v5, %v740_v5  ;;  %v186_v16 = vpop.f32.mrf.mxu0  ;;  %v239_v17 = vpop.f32.mrf.mxu1 }
  0xdd   :  { %v244_v19 = vadd.f32 %v243_v62, %v742_v10  ;;  %v255_v20 = vmul.f32 %v742_v10, %v742_v10  ;;  %v292_v21 = vadd.f32 %v291_v0, %v744_v11  ;;  %v303_v22 = vmul.f32 %v744_v11, %v744_v11 }
  0xde   :  { %v281_v23 = vadd.f32 %v280_v2, %v278_v13  ;;  %v329_v26 = vadd.f32 %v328_v3, %v326_v15  ;;  %v759_v27 = vadd.f32 %v186_v16, %v678_v24  ;;  %v762_v30 = vadd.f32 %v239_v17, %v680_v25 }
  0xdf   :  { %v245_v31 = vrot.slane %v244_v19, 4  ;;  %v258_v34 = vadd.f32 %v257_v8, %v255_v20  ;;  %v293_v35 = vrot.slane %v292_v21, 4  ;;  %v306_v36 = vadd.f32 %v305_v9, %v303_v22 }
  0xe0   :  { %v268_v39 = vadd.f32 %v267_v12, %v759_v27  ;;  %v279_v40 = vmul.f32 %v759_v27, %v759_v27  ;;  %v316_v41 = vadd.f32 %v315_v14, %v762_v30  ;;  %v327_v42 = vmul.f32 %v762_v30, %v762_v30 }
  0xe1   :  { %v246_v43 = vadd.f32 %v245_v31, %v244_v19  ;;  %v259_v24 = vrot.slane %v258_v34, 4  ;;  %v294_v44 = vadd.f32 %v293_v35, %v292_v21  ;;  %v307_v45 = vrot.slane %v306_v36, 4 }
  0xe2   :  { %v269_v25 = vrot.slane %v268_v39, 4  ;;  %v282_v46 = vadd.f32 %v281_v23, %v279_v40  ;;  %v317_v47 = vrot.slane %v316_v41, 4  ;;  %v330_v50 = vadd.f32 %v329_v26, %v327_v42 }
  0xe3   :  { %v247_v51 = vrot.slane %v246_v43, 2  ;;  %v260_v52 = vadd.f32 %v259_v24, %v258_v34  ;;  %v295_v53 = vrot.slane %v294_v44, 2  ;;  %v308_v56 = vadd.f32 %v307_v45, %v306_v36 }
  0xe4   :  { %v270_v57 = vadd.f32 %v269_v25, %v268_v39  ;;  %v283_v58 = vrot.slane %v282_v46, 4  ;;  %v318_v59 = vadd.f32 %v317_v47, %v316_v41  ;;  %v331_v60 = vrot.slane %v330_v50, 4 }
  0xe5   :  { %v248_v61 = vadd.f32 %v247_v51, %v246_v43  ;;  %v261_v62 = vrot.slane %v260_v52, 2  ;;  %v296_v63 = vadd.f32 %v295_v53, %v294_v44  ;;  %v309_v0 = vrot.slane %v308_v56, 2 }
  0xe6   :  { %v271_v1 = vrot.slane %v270_v57, 2  ;;  %v284_v2 = vadd.f32 %v283_v58, %v282_v46  ;;  %v319_v3 = vrot.slane %v318_v59, 2  ;;  %v332_v6 = vadd.f32 %v331_v60, %v330_v50  ;;  %v343_v58 = vld [vmem:[%s895_s3] sm:$0x1] }
  0xe7   :  { %v249_v7 = vrot.slane %v248_v61, 1  ;;  %v262_v8 = vadd.f32 %v261_v62, %v260_v52  ;;  %v310_v9 = vadd.f32 %v309_v0, %v308_v56  ;;  %v297_v16 = vrot.slane %v296_v63, 1 }
  0xe8   :  { %v272_v12 = vadd.f32 %v271_v1, %v270_v57  ;;  %v285_v13 = vrot.slane %v284_v2, 2  ;;  %v320_v14 = vadd.f32 %v319_v3, %v318_v59  ;;  %v333_v15 = vrot.slane %v332_v6, 2 }
  0xe9   :  { %v263_v17 = vrot.slane %v262_v8, 1  ;;  %v250_v22 = vadd.f32 %v249_v7, %v248_v61  ;;  %v311_v23 = vrot.slane %v310_v9, 1  ;;  %v298_v35 = vadd.f32 %v297_v16, %v296_v63  ;;  %v347_v61 = vld [vmem:[%s896_s4] sm:$0x1] }
  0xea   :  { %v273_v19 = vrot.slane %v272_v12, 1  ;;  %v286_v20 = vadd.f32 %v285_v13, %v284_v2  ;;  %v334_v21 = vadd.f32 %v333_v15, %v332_v6  ;;  %v321_v34 = vrot.slane %v320_v14, 1 }
  0xeb   :  { %v264_v36 = vadd.f32 %v263_v17, %v262_v8  ;;  %v312_v42 = vadd.f32 %v311_v23, %v310_v9 }
  0xec   :  { %v274_v26 = vadd.f32 %v273_v19, %v272_v12  ;;  %v287_v31 = vrot.slane %v286_v20, 1  ;;  %v335_v41 = vrot.slane %v334_v21, 1  ;;  %v322_v44 = vadd.f32 %v321_v34, %v320_v14 }
  0xee   :  { %v275_v39 = vadd.f32 %v274_v26, %v250_v22  ;;  %v288_v40 = vadd.f32 %v287_v31, %v286_v20  ;;  %v336_v46 = vadd.f32 %v335_v41, %v334_v21 }
  0xf0   :  { %v289_v43 = vadd.f32 %v288_v40, %v264_v36  ;;  %v299_v24 = vadd.f32 %v298_v35, %v275_v39 }
  0xf2   :  { %v313_v45 = vadd.f32 %v312_v42, %v289_v43  ;;  %v323_v25 = vadd.f32 %v322_v44, %v299_v24 }
  0xf4   :  { %v337_v47 = vadd.f32 %v336_v46, %v313_v45  ;;  %v338_v50 = vmul.f32 0.0078125, %v323_v25 }
  0xf6   :  { %v339_v51 = vmul.f32 0.0078125, %v337_v47  ;;  %v340_v52 = vmul.f32 %v338_v50, %v338_v50 }
  0xf8   :  { %v341_v53 = vsub.f32 %v339_v51, %v340_v52 }
  0xfa   :  { %v342_v56 = vmax.f32 %v341_v53, 0.0 }
  0xfc   :  { %v344_v57 = vadd.f32 1e-05, %v342_v56 }
  0xfe   :  { %597 = vrsqrt.f32 %v344_v57 }
 0x10b   :  { %v598_v59 = vpop.eup %597 }
 0x10c   :  { %v346_v60 = vmul.f32 %v598_v59, %v343_v58 }
 0x10e   :  { %v348_v62 = vmul.f32 %v346_v60, %v338_v50  ;;  %v777_v63 = vrot.slane %v346_v60, %v672_v18 }
 0x110   :  { %v349_v0 = vsub.f32 %v347_v61, %v348_v62  ;;  %v356_v1 = vmul.f32 %v777_v63, %v684_v29  ;;  %v357_v2 = vmul.f32 %v777_v63, %v694_v37  ;;  %v358_v3 = vmul.f32 %v777_v63, %v718_v54 }
 0x111   :  { %v359_v6 = vmul.f32 %v777_v63, %v742_v10  ;;  %v402_v7 = vmul.f32 %v777_v63, %v687_v32  ;;  %v403_v8 = vmul.f32 %v777_v63, %v713_v48  ;;  %v404_v9 = vmul.f32 %v777_v63, %v737_v4 }
 0x112   :  { %v794_v29 = vrot.slane %v349_v0, %v672_v18  ;;  %v405_v37 = vmul.f32 %v777_v63, %v759_v27  ;;  %v442_v54 = vmul.f32 %v777_v63, %v682_v28  ;;  %v443_v10 = vmul.f32 %v777_v63, %v696_v38 }
 0x113   :  { %v444_v32 = vmul.f32 %v777_v63, %v720_v55  ;;  %v445_v48 = vmul.f32 %v777_v63, %v744_v11  ;;  %v808_v4 = vmul.f32 %v777_v63, %v690_v33  ;;  %v812_v18 = vmul.f32 %v777_v63, %v716_v49 }
 0x114   :  { %v366_v27 = vadd.f32 %v794_v29, %v356_v1  ;;  %v367_v28 = vadd.f32 %v794_v29, %v357_v2  ;;  %v368_v38 = vadd.f32 %v794_v29, %v358_v3  ;;  %v369_v12 = vadd.f32 %v794_v29, %v359_v6 }
 0x115   :  { %v406_v55 = vadd.f32 %v402_v7, %v794_v29  ;;  %v407_v11 = vadd.f32 %v403_v8, %v794_v29  ;;  %v408_v13 = vadd.f32 %v404_v9, %v794_v29  ;;  %v409_v33 = vadd.f32 %v405_v37, %v794_v29 }
 0x116   :  { %vm370_vm1 = vcmp.gt.f32.partialorder %v366_v27, 0.0  ;;  %vm371_vm2 = vcmp.gt.f32.partialorder %v367_v28, 0.0  ;;  %vm372_vm3 = vcmp.gt.f32.partialorder %v368_v38, 0.0  ;;  %vm373_vm4 = vcmp.gt.f32.partialorder %v369_v12, 0.0 }
 0x117   :  { %v374_v49 = vmul.f32 0.1, %v366_v27  ;;  %v375_v14 = vmul.f32 0.1, %v367_v28  ;;  %v376_v15 = vmul.f32 0.1, %v368_v38  ;;  %v446_v16 = vadd.f32 %v442_v54, %v794_v29 }
 0x118   :  { %v377_v17 = vmul.f32 0.1, %v369_v12  ;;  %vm410_vm5 = vcmp.gt.f32.partialorder %v406_v55, 0.0  ;;  %vm411_vm6 = vcmp.gt.f32.partialorder %v407_v11, 0.0  ;;  %vm412_vm7 = vcmp.gt.f32.partialorder %v408_v13, 0.0 }
 0x119   :  { %v378_v19 = vsel %vm370_vm1, %v366_v27, %v374_v49  ;;  %v379_v20 = vsel %vm371_vm2, %v367_v28, %v375_v14  ;;  %v380_v21 = vsel %vm372_vm3, %v368_v38, %v376_v15  ;;  %vm413_vm8 = vcmp.gt.f32.partialorder %v409_v33, 0.0 }
 0x11a   :  { %v381_v22 = vsel %vm373_vm4, %v369_v12, %v377_v17  ;;  %v560_v23 = vpack.c.bf16 %v378_v19, %v378_v19  ;;  %v561_v26 = vpack.c.bf16 %v379_v20, %v379_v20  ;;  %v562_v31 = vpack.c.bf16 %v380_v21, %v380_v21 }
 0x11b   :  { %v563_v34 = vpack.c.bf16 %v381_v22, %v381_v22  ;;  %v414_v35 = vmul.f32 0.1, %v406_v55  ;;  %v415_v36 = vmul.f32 0.1, %v407_v11  ;;  %v416_v39 = vmul.f32 0.1, %v408_v13 }
 0x11c   :  { %398 = vst [vmem:[%s897_s5] sm:$0xf] %v560_v23  ;;  %399 = vst [vmem:[%s897_s5 + $0x10] sm:$0xf] %v561_v26  ;;  %v417_v40 = vmul.f32 0.1, %v409_v33  ;;  %v447_v41 = vadd.f32 %v443_v10, %v794_v29  ;;  %v448_v42 = vadd.f32 %v444_v32, %v794_v29  ;;  %v449_v43 = vadd.f32 %v445_v48, %v794_v29 }
 0x11d   :  { %400 = vst [vmem:[%s897_s5 + $0x20] sm:$0xf] %v562_v31  ;;  %401 = vst [vmem:[%s897_s5 + $0x30] sm:$0xf] %v563_v34  ;;  %v418_v24 = vsel %vm410_vm5, %v406_v55, %v414_v35  ;;  %v419_v44 = vsel %vm411_vm6, %v407_v11, %v415_v36  ;;  %v420_v45 = vsel %vm412_vm7, %v408_v13, %v416_v39  ;;  %vm450_vm9 = vcmp.gt.f32.partialorder %v446_v16, 0.0 }
 0x11e   :  { %v421_v25 = vsel %vm413_vm8, %v409_v33, %v417_v40  ;;  %v564_v46 = vpack.c.bf16 %v418_v24, %v418_v24  ;;  %v565_v47 = vpack.c.bf16 %v419_v44, %v419_v44  ;;  %v566_v50 = vpack.c.bf16 %v420_v45, %v420_v45 }
 0x11f   :  { %v567_v51 = vpack.c.bf16 %v421_v25, %v421_v25  ;;  %vm451_vm10 = vcmp.gt.f32.partialorder %v447_v41, 0.0  ;;  %vm452_vm11 = vcmp.gt.f32.partialorder %v448_v42, 0.0  ;;  %vm453_vm12 = vcmp.gt.f32.partialorder %v449_v43, 0.0 }
 0x120   :  { %438 = vst [vmem:[%s897_s5 + $0x4] sm:$0xf] %v564_v46  ;;  %439 = vst [vmem:[%s897_s5 + $0x14] sm:$0xf] %v565_v47  ;;  %v454_v52 = vmul.f32 0.1, %v446_v16  ;;  %v484_v57 = vmul.f32 %v777_v63, %v740_v5  ;;  %v485_v59 = vmul.f32 %v777_v63, %v762_v30  ;;  %v486_v60 = vadd.f32 %v808_v4, %v794_v29 }
 0x121   :  { %440 = vst [vmem:[%s897_s5 + $0x24] sm:$0xf] %v566_v50  ;;  %v455_v53 = vmul.f32 0.1, %v447_v41  ;;  %v456_v56 = vmul.f32 0.1, %v448_v42  ;;  %v487_v61 = vadd.f32 %v812_v18, %v794_v29 }
 0x122   :  { %441 = vst [vmem:[%s897_s5 + $0x34] sm:$0xf] %v567_v51  ;;  %v457_v58 = vmul.f32 0.1, %v449_v43  ;;  %v458_v62 = vsel %vm450_vm9, %v446_v16, %v454_v52  ;;  %v488_v1 = vadd.f32 %v484_v57, %v794_v29  ;;  %v489_v63 = vadd.f32 %v485_v59, %v794_v29 }
 0x123   :  { %v459_v0 = vsel %vm451_vm10, %v447_v41, %v455_v53  ;;  %v460_v5 = vsel %vm452_vm11, %v448_v42, %v456_v56  ;;  %v568_v3 = vpack.c.bf16 %v458_v62, %v458_v62  ;;  %vm490_vm13 = vcmp.gt.f32.partialorder %v486_v60, 0.0 }
 0x124   :  { %v461_v2 = vsel %vm453_vm12, %v449_v43, %v457_v58  ;;  %v569_v6 = vpack.c.bf16 %v459_v0, %v459_v0  ;;  %v570_v7 = vpack.c.bf16 %v460_v5, %v460_v5  ;;  %vm491_vm14 = vcmp.gt.f32.partialorder %v487_v61, 0.0 }
 0x125   :  { %v571_v30 = vpack.c.bf16 %v461_v2, %v461_v2  ;;  %478 = vst [vmem:[%s897_s5 + $0x8] sm:$0xf] %v568_v3  ;;  %vm492_vm15 = vcmp.gt.f32.partialorder %v488_v1, 0.0  ;;  %v494_v8 = vmul.f32 0.1, %v486_v60  ;;  %vm493_vm0 = vcmp.gt.f32.partialorder %v489_v63, 0.0 }
 0x126   :  { %479 = vst [vmem:[%s897_s5 + $0x18] sm:$0xf] %v569_v6  ;;  %480 = vst [vmem:[%s897_s5 + $0x28] sm:$0xf] %v570_v7  ;;  %v495_v9 = vmul.f32 0.1, %v487_v61 }
 0x127   :  { %481 = vst [vmem:[%s897_s5 + $0x38] sm:$0xf] %v571_v30  ;;  %v496_v29 = vmul.f32 0.1, %v488_v1  ;;  %v497_v37 = vmul.f32 0.1, %v489_v63  ;;  %v498_v54 = vsel %vm490_vm13, %v486_v60, %v494_v8 }
 0x128   :  { %v499_v10 = vsel %vm491_vm14, %v487_v61, %v495_v9  ;;  %v572_v4 = vpack.c.bf16 %v498_v54, %v498_v54 }
 0x129   :  { %v500_v32 = vsel %vm492_vm15, %v488_v1, %v496_v29  ;;  %v501_v48 = vsel %vm493_vm0, %v489_v63, %v497_v37  ;;  %v573_v18 = vpack.c.bf16 %v499_v10, %v499_v10 }
 0x12a   :  { %v574_v27 = vpack.c.bf16 %v500_v32, %v500_v32  ;;  %v575_v28 = vpack.c.bf16 %v501_v48, %v501_v48  ;;  %518 = vst [vmem:[%s897_s5 + $0xc] sm:$0xf] %v572_v4 }
 0x12b   :  { %519 = vst [vmem:[%s897_s5 + $0x1c] sm:$0xf] %v573_v18 }
 0x12c   :  { %520 = vst [vmem:[%s897_s5 + $0x2c] sm:$0xf] %v574_v27  ;;  %521 = vst [vmem:[%s897_s5 + $0x3c] sm:$0xf] %v575_v28 }

// kernel: autoencoder_forward.11
= control target key start
LH: loop header
LB: loop body
LE: loop exit
PB: predicated region body
PF: predicated region fallthrough
CT: control target
= control target key end

     0   :  { %v4244_v0 = vmov 0   ;;  %vm1302_vm0 = vcmask 523264   ;;  %s5469_s1 = inlined_call_operand.vmem [shape: bf16[576,128], index: 1, kind: input, shape index: {}]   ;;  %s5470_s0 = inlined_call_operand.vmem [shape: bf16[512,576], index: 0, kind: input, shape index: {}]   ;;  %s5471_s2 = inlined_call_operand.vmem [shape: f32[1,128], index: 2, kind: input, shape index: {}]   ;;  %s5472_s3 = inlined_call_operand.vmem [shape: bf16[512,128], index: 3, kind: output, shape index: {}]  }
   0x1   :  { %1399 = vmatprep.subr.bf16.mxu0 %v4244_v0  ;;  %3694 = vmatprep.subr.bf16.mxu1 %v4244_v0  ;;  %v3727_v1 = vld [vmem:[%s5469_s1 + $0x38] sm:$0xff]   ;;  %v3728_v2 = vld [vmem:[%s5469_s1 + $0x30] sm:$0xff]   ;;  %v3729_v3 = vld [vmem:[%s5469_s1 + $0x28] sm:$0xff]  }
   0x2   :  { %1400 = vmatpush1.bf16.msra.mxu0 %v3727_v1  ;;  %3710 = vmatpush1.bf16.msra.mxu1 %v3727_v1  ;;  %v3730_v4 = vld [vmem:[%s5469_s1 + $0x20] sm:$0xff]   ;;  %v3731_v5 = vld [vmem:[%s5469_s1 + $0x18] sm:$0xff]   ;;  %v3732_v7 = vld [vmem:[%s5469_s1 + $0x10] sm:$0xff]  }
   0x3   :  { %1401 = vmatprep.subr.bf16.mxu0 %v4244_v0  ;;  %3695 = vmatprep.subr.bf16.mxu1 %v4244_v0  ;;  %v3745_v6 = vld [vmem:[%s5470_s0 + $0x4] ss:$20 sps:$4 sm:$0xff]   ;;  %v3733_v9 = vld [vmem:[%s5469_s1 + $0x8] sm:$0xff]   ;;  %v3736_v12 = vld [vmem:[%s5469_s1 + $0x70] sm:$0xff]  }
   0x4   :  { %v3748_v8 = vld [vmem:[%s5470_s0 + $0x3c4] ss:$20 sps:$4 sm:$0xff]   ;;  %1431 = vmatprep.mubr.bf16.mxu0 %v3745_v6  ;;  %v3737_v13 = vld [vmem:[%s5469_s1 + $0x68] sm:$0xff]   ;;  %v3740_v16 = vld [vmem:[%s5469_s1 + $0x50] sm:$0xff]  }
   0x5   :  { %1623 = vmatprep.mubr.bf16.mxu1 %v3748_v8  ;;  %v3734_v10 = vld [vmem:[%s5469_s1] sm:$0xff]   ;;  %v3735_v11 = vld [vmem:[%s5469_s1 + $0x78] sm:$0xff]   ;;  %v3741_v17 = vld [vmem:[%s5469_s1 + $0x48] sm:$0xff]  }
   0x6   :  { %1402 = vmatpush1.bf16.msra.mxu0 %v3728_v2  ;;  %3711 = vmatpush1.bf16.msra.mxu1 %v3728_v2  ;;  %v3738_v14 = vld [vmem:[%s5469_s1 + $0x60] sm:$0xff]   ;;  %v3739_v15 = vld [vmem:[%s5469_s1 + $0x58] sm:$0xff]   ;;  %v3798_v25 = vld [vmem:[%s5469_s1 + $0x110] sm:$0xff]  }
   0x7   :  { %1403 = vmatprep.subr.bf16.mxu0 %v4244_v0  ;;  %3696 = vmatprep.subr.bf16.mxu1 %v4244_v0  ;;  %v3742_v18 = vld [vmem:[%s5469_s1 + $0x40] sm:$0xff]   ;;  %v3749_v19 = vld [vmem:[%s5469_s1 + $0x118] sm:$0xff]   ;;  %v3751_v26 = vld [vmem:[%s5469_s1 + $0xb0] sm:$0xff]  }
   0x8   :  { %v3743_v20 = vld [vmem:[%s5470_s0] ss:$20 sps:$4 sm:$0xff]   ;;  %v3750_v22 = vld [vmem:[%s5469_s1 + $0xb8] sm:$0xff]   ;;  %v3758_v29 = vld [vmem:[%s5469_s1 + $0xa8] sm:$0xff]  }
   0x9   :  { %v3746_v21 = vld [vmem:[%s5470_s0 + $0x3c0] ss:$20 sps:$4 sm:$0xff]   ;;  %v3756_v27 = vld [vmem:[%s5470_s0 + $0x28] ss:$20 sps:$4 sm:$0xff]   ;;  %v3764_v34 = vld [vmem:[%s5470_s0 + $0x50] ss:$20 sps:$4 sm:$0xff]  }
   0xa   :  { %1404 = vmatpush1.bf16.msra.mxu0 %v3729_v3  ;;  %3712 = vmatpush1.bf16.msra.mxu1 %v3729_v3  ;;  %v3752_v23 = vld [vmem:[%s5470_s0 + $0x2c] ss:$20 sps:$4 sm:$0xff]   ;;  %v3757_v28 = vld [vmem:[%s5470_s0 + $0x3e8] ss:$20 sps:$4 sm:$0xff]   ;;  %v3765_v35 = vld [vmem:[%s5470_s0 + $0x410] ss:$20 sps:$4 sm:$0xff]  }
   0xb   :  { %1405 = vmatprep.subr.bf16.mxu0 %v4244_v0  ;;  %3697 = vmatprep.subr.bf16.mxu1 %v4244_v0  ;;  %v3754_v24 = vld [vmem:[%s5470_s0 + $0x3ec] ss:$20 sps:$4 sm:$0xff]   ;;  %v3760_v31 = vld [vmem:[%s5470_s0 + $0x54] ss:$20 sps:$4 sm:$0xff]   ;;  %v3766_v36 = vld [vmem:[%s5469_s1 + $0x98] sm:$0xff]  }
   0xc   :  { %v3839_v30 = vld [vmem:[%s5469_s1 + $0x108] sm:$0xff]   ;;  %v3759_v33 = vld [vmem:[%s5469_s1 + $0xa0] sm:$0xff]   ;;  %v3768_v37 = vld [vmem:[%s5470_s0 + $0x7c] ss:$20 sps:$4 sm:$0xff]  }
   0xd   :  { %v3762_v32 = vld [vmem:[%s5470_s0 + $0x414] ss:$20 sps:$4 sm:$0xff]   ;;  %v3770_v38 = vld [vmem:[%s5470_s0 + $0x43c] ss:$20 sps:$4 sm:$0xff]   ;;  %v3772_v40 = vld [vmem:[%s5470_s0 + $0x78] ss:$20 sps:$4 sm:$0xff]  }
   0xe   :  { %1406 = vmatpush1.bf16.msra.mxu0 %v3730_v4  ;;  %3713 = vmatpush1.bf16.msra.mxu1 %v3730_v4  ;;  %v3767_v39 = vld [vmem:[%s5469_s1 + $0x90] sm:$0xff]   ;;  %v3773_v41 = vld [vmem:[%s5470_s0 + $0x438] ss:$20 sps:$4 sm:$0xff]   ;;  %v3876_v44 = vld [vmem:[%s5469_s1 + $0x100] sm:$0xff]  }
   0xf   :  { %1407 = vmatprep.subr.bf16.mxu0 %v4244_v0  ;;  %3698 = vmatprep.subr.bf16.mxu1 %v4244_v0  ;;  %v3774_v42 = vld [vmem:[%s5469_s1 + $0x88] sm:$0xff]   ;;  %v3776_v43 = vld [vmem:[%s5470_s0 + $0xa4] ss:$20 sps:$4 sm:$0xff]   ;;  %v3780_v47 = vld [vmem:[%s5470_s0 + $0xa0] ss:$20 sps:$4 sm:$0xff]  }
  0x10   :  { %v3778_v45 = vld [vmem:[%s5470_s0 + $0x464] ss:$20 sps:$4 sm:$0xff]   ;;  %v3781_v48 = vld [vmem:[%s5470_s0 + $0x460] ss:$20 sps:$4 sm:$0xff]   ;;  %v3788_v53 = vld [vmem:[%s5470_s0 + $0xc8] ss:$20 sps:$4 sm:$0xff]  }
  0x11   :  { %v3775_v46 = vld [vmem:[%s5469_s1 + $0x80] sm:$0xff]   ;;  %v3782_v49 = vld [vmem:[%s5469_s1 + $0xf8] sm:$0xff]   ;;  %v3783_v52 = vld [vmem:[%s5469_s1 + $0xf0] sm:$0xff]  }
  0x12   :  { %1408 = vmatpush1.bf16.msra.mxu0 %v3731_v5  ;;  %3714 = vmatpush1.bf16.msra.mxu1 %v3731_v5  ;;  %v3784_v50 = vld [vmem:[%s5470_s0 + $0xcc] ss:$20 sps:$4 sm:$0xff]   ;;  %v3789_v54 = vld [vmem:[%s5470_s0 + $0x488] ss:$20 sps:$4 sm:$0xff]   ;;  %v3796_v59 = vld [vmem:[%s5470_s0 + $0xf0] ss:$20 sps:$4 sm:$0xff]  }
  0x13   :  { %1409 = vmatprep.subr.bf16.mxu0 %v4244_v0  ;;  %3699 = vmatprep.subr.bf16.mxu1 %v4244_v0  ;;  %v3786_v51 = vld [vmem:[%s5470_s0 + $0x48c] ss:$20 sps:$4 sm:$0xff]   ;;  %v3792_v56 = vld [vmem:[%s5470_s0 + $0xf4] ss:$20 sps:$4 sm:$0xff]   ;;  %v3797_v60 = vld [vmem:[%s5470_s0 + $0x4b0] ss:$20 sps:$4 sm:$0xff]  }
  0x14   :  { %v3790_v55 = vld [vmem:[%s5469_s1 + $0xe8] sm:$0xff]   ;;  %v3791_v58 = vld [vmem:[%s5469_s1 + $0xe0] sm:$0xff]   ;;  %v3799_v61 = vld [vmem:[%s5469_s1 + $0xd8] sm:$0xff]  }
  0x15   :  { %v3794_v57 = vld [vmem:[%s5470_s0 + $0x4b4] ss:$20 sps:$4 sm:$0xff]   ;;  %v3801_v62 = vld [vmem:[%s5470_s0 + $0x11c] ss:$20 sps:$4 sm:$0xff]   ;;  %v3805_v2 = vld [vmem:[%s5470_s0 + $0x118] ss:$20 sps:$4 sm:$0xff]  }
  0x16   :  { %1410 = vmatpush1.bf16.msra.mxu0 %v3732_v7  ;;  %3715 = vmatpush1.bf16.msra.mxu1 %v3732_v7  ;;  %v3803_v63 = vld [vmem:[%s5470_s0 + $0x4dc] ss:$20 sps:$4 sm:$0xff]   ;;  %v3806_v3 = vld [vmem:[%s5470_s0 + $0x4d8] ss:$20 sps:$4 sm:$0xff]   ;;  %v3808_v7 = vld [vmem:[%s5469_s1 + $0xc0] sm:$0xff]  }
  0x17   :  { %1411 = vmatprep.subr.bf16.mxu0 %v4244_v0  ;;  %3700 = vmatprep.subr.bf16.mxu1 %v4244_v0  ;;  %v3800_v1 = vld [vmem:[%s5469_s1 + $0xd0] sm:$0xff]   ;;  %v3807_v4 = vld [vmem:[%s5469_s1 + $0xc8] sm:$0xff]   ;;  %v3809_v5 = vld [vmem:[%s5470_s0 + $0x144] ss:$20 sps:$4 sm:$0xff]  }
  0x18   :  { %v3813_v6 = vld [vmem:[%s5470_s0 + $0xc] ss:$20 sps:$4 sm:$0xff]   ;;  %v3811_v8 = vld [vmem:[%s5470_s0 + $0x8] ss:$20 sps:$4 sm:$0xff]  }
  0x1a   :  { %1412 = vmatpush1.bf16.msra.mxu0 %v3733_v9  ;;  %3716 = vmatpush1.bf16.msra.mxu1 %v3733_v9  ;;  %v3814_v9 = vld [vmem:[%s5470_s0 + $0x140] ss:$20 sps:$4 sm:$0xff]  }
  0x1b   :  { %1413 = vmatprep.subr.bf16.mxu0 %v4244_v0  ;;  %3701 = vmatprep.subr.bf16.mxu1 %v4244_v0 }
  0x1e   :  { %1414 = vmatpush1.bf16.msra.mxu0 %v3734_v10  ;;  %3717 = vmatpush1.bf16.msra.mxu1 %v3734_v10  ;;  %v3815_v10 = vld [vmem:[%s5470_s0 + $0x16c] ss:$20 sps:$4 sm:$0xff]  }
  0x1f   :  { %1415 = vmatprep.subr.bf16.mxu0 %v4244_v0  ;;  %3702 = vmatprep.subr.bf16.mxu1 %v4244_v0 }
  0x22   :  { %1416 = vmatpush2.bf16.msra.mxu0 %v3735_v11  ;;  %3718 = vmatpush2.bf16.msra.mxu1 %v3735_v11  ;;  %v3817_v11 = vld [vmem:[%s5470_s0 + $0x34] ss:$20 sps:$4 sm:$0xff]  }
  0x23   :  { %1417 = vmatprep.subr.bf16.mxu0 %v4244_v0  ;;  %3703 = vmatprep.subr.bf16.mxu1 %v4244_v0 }
  0x26   :  { %1418 = vmatpush2.bf16.msra.mxu0 %v3736_v12  ;;  %3719 = vmatpush2.bf16.msra.mxu1 %v3736_v12  ;;  %v3820_v12 = vld [vmem:[%s5470_s0 + $0x30] ss:$20 sps:$4 sm:$0xff]  }
  0x27   :  { %1419 = vmatprep.subr.bf16.mxu0 %v4244_v0  ;;  %3704 = vmatprep.subr.bf16.mxu1 %v4244_v0 }
  0x2a   :  { %1420 = vmatpush2.bf16.msra.mxu0 %v3737_v13  ;;  %3720 = vmatpush2.bf16.msra.mxu1 %v3737_v13  ;;  %v3821_v13 = vld [vmem:[%s5470_s0 + $0x194] ss:$20 sps:$4 sm:$0xff]  }
  0x2b   :  { %1421 = vmatprep.subr.bf16.mxu0 %v4244_v0  ;;  %3705 = vmatprep.subr.bf16.mxu1 %v4244_v0 }
  0x2e   :  { %1422 = vmatpush2.bf16.msra.mxu0 %v3738_v14  ;;  %3721 = vmatpush2.bf16.msra.mxu1 %v3738_v14  ;;  %v3823_v14 = vld [vmem:[%s5470_s0 + $0x5c] ss:$20 sps:$4 sm:$0xff]  }
  0x2f   :  { %1423 = vmatprep.subr.bf16.mxu0 %v4244_v0  ;;  %3706 = vmatprep.subr.bf16.mxu1 %v4244_v0 }
  0x32   :  { %1424 = vmatpush2.bf16.msra.mxu0 %v3739_v15  ;;  %3722 = vmatpush2.bf16.msra.mxu1 %v3739_v15  ;;  %v3825_v15 = vld [vmem:[%s5470_s0 + $0x190] ss:$20 sps:$4 sm:$0xff]  }
  0x33   :  { %1425 = vmatprep.subr.bf16.mxu0 %v4244_v0  ;;  %3707 = vmatprep.subr.bf16.mxu1 %v4244_v0 }
  0x36   :  { %1426 = vmatpush2.bf16.msra.mxu0 %v3740_v16  ;;  %3723 = vmatpush2.bf16.msra.mxu1 %v3740_v16  ;;  %v3826_v16 = vld [vmem:[%s5470_s0 + $0x58] ss:$20 sps:$4 sm:$0xff]  }
  0x37   :  { %1427 = vmatprep.subr.bf16.mxu0 %v4244_v0  ;;  %3708 = vmatprep.subr.bf16.mxu1 %v4244_v0 }
  0x3a   :  { %1428 = vmatpush2.bf16.msra.mxu0 %v3741_v17  ;;  %3724 = vmatpush2.bf16.msra.mxu1 %v3741_v17  ;;  %v3827_v17 = vld [vmem:[%s5470_s0 + $0x1bc] ss:$20 sps:$4 sm:$0xff]  }
  0x3b   :  { %1429 = vmatprep.subr.bf16.mxu0 %v4244_v0  ;;  %3709 = vmatprep.subr.bf16.mxu1 %v4244_v0 }
  0x3e   :  { %1430 = vmatpush2.bf16.msra.mxu0 %v3742_v18  ;;  %3725 = vmatpush2.bf16.msra.mxu1 %v3742_v18  ;;  %v3829_v18 = vld [vmem:[%s5470_s0 + $0x84] ss:$20 sps:$4 sm:$0xff]  }
  0x3f   :  { %1688 = vmatprep.subr.bf16.mxu1 %v4244_v0  ;;  %3622 = vmatprep.subr.bf16.mxu0 %v3749_v19 }
  0x41   :  { %1432 = vmatmul.mubr.bf16.vlgmr.msra.gmra.mxu0 %v3743_v20  ;;  %1624 = vmatmul.mubr.bf16.vlgmr.msra.gmra.mxu1 %v3746_v21  ;;  %v3832_v20 = vld [vmem:[%s5470_s0 + $0x80] ss:$20 sps:$4 sm:$0xff]   ;;  %v3833_v21 = vld [vmem:[%s5470_s0 + $0x1e4] ss:$20 sps:$4 sm:$0xff]  }
  0x42   :  { %1689 = vmatpush1.bf16.msra.mxu1 %v3750_v22  ;;  %3623 = vmatpush3.bf16.msra.mxu0 %v3749_v19  ;;  %v3831_v19 = vld [vmem:[%s5470_s0 + $0x1b8] ss:$20 sps:$4 sm:$0xff]  }
  0x43   :  { %1690 = vmatprep.subr.bf16.mxu1 %v4244_v0  ;;  %1439 = vmatprep.mubr.bf16.mxu0 %v3752_v23  ;;  %v3835_v22 = vld [vmem:[%s5470_s0 + $0xac] ss:$20 sps:$4 sm:$0xff]  }
  0x44   :  { %1631 = vmatprep.mubr.bf16.mxu1 %v3754_v24  ;;  %3624 = vmatprep.subr.bf16.mxu0 %v3798_v25  ;;  %v3837_v23 = vld [vmem:[%s5470_s0 + $0x1e0] ss:$20 sps:$4 sm:$0xff]   ;;  %v3838_v24 = vld [vmem:[%s5470_s0 + $0xa8] ss:$20 sps:$4 sm:$0xff]  }
  0x46   :  { %1691 = vmatpush1.bf16.msra.mxu1 %v3751_v26  ;;  %3625 = vmatpush3.bf16.msra.mxu0 %v3798_v25  ;;  %v3840_v25 = vld [vmem:[%s5470_s0 + $0x20c] ss:$20 sps:$4 sm:$0xff]   ;;  %v3842_v26 = vld [vmem:[%s5470_s0 + $0xd4] ss:$20 sps:$4 sm:$0xff]  }
  0x47   :  { %1692 = vmatprep.subr.bf16.mxu1 %v4244_v0  ;;  %3626 = vmatprep.subr.bf16.mxu0 %v3839_v30 }
  0x49   :  { %1440 = vmatmul.mubr.bf16.gmra.mxu0 %v3756_v27  ;;  %1632 = vmatmul.mubr.bf16.gmra.mxu1 %v3757_v28  ;;  %v3844_v27 = vld [vmem:[%s5470_s0 + $0x208] ss:$20 sps:$4 sm:$0xff]   ;;  %v3845_v28 = vld [vmem:[%s5470_s0 + $0xd0] ss:$20 sps:$4 sm:$0xff]  }
  0x4a   :  { %1693 = vmatpush1.bf16.msra.mxu1 %v3758_v29  ;;  %1447 = vmatprep.mubr.bf16.mxu0 %v3760_v31  ;;  %v3846_v29 = vld [vmem:[%s5470_s0 + $0x234] ss:$20 sps:$4 sm:$0xff]   ;;  %v3850_v31 = vld [vmem:[%s5470_s0 + $0x230] ss:$20 sps:$4 sm:$0xff]  }
  0x4b   :  { %1694 = vmatprep.subr.bf16.mxu1 %v4244_v0  ;;  %1639 = vmatprep.mubr.bf16.mxu1 %v3762_v32  ;;  %v3851_v32 = vld [vmem:[%s5470_s0 + $0xf8] ss:$20 sps:$4 sm:$0xff]  }
  0x4c   :  { %3627 = vmatpush3.bf16.msra.mxu0 %v3839_v30  ;;  %v3848_v30 = vld [vmem:[%s5470_s0 + $0xfc] ss:$20 sps:$4 sm:$0xff]  }
  0x4d   :  { %3628 = vmatprep.subr.bf16.mxu0 %v3876_v44 }
  0x4e   :  { %1695 = vmatpush1.bf16.msra.mxu1 %v3759_v33  ;;  %v3852_v33 = vld [vmem:[%s5470_s0 + $0x25c] ss:$20 sps:$4 sm:$0xff]  }
  0x4f   :  { %1696 = vmatprep.subr.bf16.mxu1 %v4244_v0 }
  0x50   :  { %3629 = vmatpush3.bf16.msra.mxu0 %v3876_v44  ;;  %v3869_v44 = vld [vmem:[%s5470_s0 + $0x170] ss:$20 sps:$4 sm:$0xff]  }
  0x51   :  { %1448 = vmatmul.mubr.bf16.gmra.mxu0 %v3764_v34  ;;  %1640 = vmatmul.mubr.bf16.gmra.mxu1 %v3765_v35  ;;  %v3854_v34 = vld [vmem:[%s5470_s0 + $0x124] ss:$20 sps:$4 sm:$0xff]  }
  0x52   :  { %1697 = vmatpush1.bf16.msra.mxu1 %v3766_v36  ;;  %1455 = vmatprep.mubr.bf16.mxu0 %v3768_v37  ;;  %v3856_v35 = vld [vmem:[%s5470_s0 + $0x258] ss:$20 sps:$4 sm:$0xff]   ;;  %v3857_v36 = vld [vmem:[%s5470_s0 + $0x120] ss:$20 sps:$4 sm:$0xff]  }
  0x53   :  { %1698 = vmatprep.subr.bf16.mxu1 %v4244_v0  ;;  %1647 = vmatprep.mubr.bf16.mxu1 %v3770_v38  ;;  %v3858_v37 = vld [vmem:[%s5470_s0 + $0x284] ss:$20 sps:$4 sm:$0xff]   ;;  %v3860_v38 = vld [vmem:[%s5470_s0 + $0x14c] ss:$20 sps:$4 sm:$0xff]  }
  0x56   :  { %1699 = vmatpush1.bf16.msra.mxu1 %v3767_v39  ;;  %v3862_v39 = vld [vmem:[%s5470_s0 + $0x280] ss:$20 sps:$4 sm:$0xff]  }
  0x57   :  { %1700 = vmatprep.subr.bf16.mxu1 %v4244_v0 }
  0x59   :  { %1456 = vmatmul.mubr.bf16.gmra.mxu0 %v3772_v40  ;;  %1648 = vmatmul.mubr.bf16.gmra.mxu1 %v3773_v41  ;;  %v3863_v40 = vld [vmem:[%s5470_s0 + $0x148] ss:$20 sps:$4 sm:$0xff]   ;;  %v3864_v41 = vld [vmem:[%s5470_s0 + $0x2ac] ss:$20 sps:$4 sm:$0xff]  }
  0x5a   :  { %1701 = vmatpush1.bf16.msra.mxu1 %v3774_v42  ;;  %1463 = vmatprep.mubr.bf16.mxu0 %v3776_v43  ;;  %v3866_v42 = vld [vmem:[%s5470_s0 + $0x174] ss:$20 sps:$4 sm:$0xff]  }
  0x5b   :  { %1702 = vmatprep.subr.bf16.mxu1 %v4244_v0  ;;  %1655 = vmatprep.mubr.bf16.mxu1 %v3778_v45  ;;  %v3868_v43 = vld [vmem:[%s5470_s0 + $0x2a8] ss:$20 sps:$4 sm:$0xff]  }
  0x5c   :  { %v3870_v45 = vld [vmem:[%s5470_s0 + $0x2d4] ss:$20 sps:$4 sm:$0xff]  }
  0x5e   :  { %1703 = vmatpush1.bf16.msra.mxu1 %v3775_v46  ;;  %v3872_v46 = vld [vmem:[%s5470_s0 + $0x19c] ss:$20 sps:$4 sm:$0xff]  }
  0x5f   :  { %1704 = vmatprep.subr.bf16.mxu1 %v4244_v0 }
  0x61   :  { %1464 = vmatmul.mubr.bf16.gmra.mxu0 %v3780_v47  ;;  %1656 = vmatmul.mubr.bf16.gmra.mxu1 %v3781_v48  ;;  %v3874_v47 = vld [vmem:[%s5470_s0 + $0x2d0] ss:$20 sps:$4 sm:$0xff]   ;;  %v3875_v48 = vld [vmem:[%s5470_s0 + $0x198] ss:$20 sps:$4 sm:$0xff]  }
  0x62   :  { %1705 = vmatpush2.bf16.msra.mxu1 %v3782_v49  ;;  %1471 = vmatprep.mubr.bf16.mxu0 %v3784_v50  ;;  %v3877_v49 = vld [vmem:[%s5470_s0 + $0x2fc] ss:$20 sps:$4 sm:$0xff]   ;;  %v3879_v50 = vld [vmem:[%s5470_s0 + $0x1c4] ss:$20 sps:$4 sm:$0xff]  }
  0x63   :  { %1706 = vmatprep.subr.bf16.mxu1 %v4244_v0  ;;  %1663 = vmatprep.mubr.bf16.mxu1 %v3786_v51  ;;  %v3881_v51 = vld [vmem:[%s5470_s0 + $0x2f8] ss:$20 sps:$4 sm:$0xff]  }
  0x66   :  { %1707 = vmatpush2.bf16.msra.mxu1 %v3783_v52  ;;  %v3882_v52 = vld [vmem:[%s5470_s0 + $0x1c0] ss:$20 sps:$4 sm:$0xff]  }
  0x67   :  { %1708 = vmatprep.subr.bf16.mxu1 %v4244_v0 }
  0x69   :  { %1472 = vmatmul.mubr.bf16.gmra.mxu0 %v3788_v53  ;;  %1664 = vmatmul.mubr.bf16.gmra.mxu1 %v3789_v54  ;;  %v3883_v53 = vld [vmem:[%s5470_s0 + $0x324] ss:$20 sps:$4 sm:$0xff]   ;;  %v3885_v54 = vld [vmem:[%s5470_s0 + $0x1ec] ss:$20 sps:$4 sm:$0xff]  }
  0x6a   :  { %1709 = vmatpush2.bf16.msra.mxu1 %v3790_v55  ;;  %1479 = vmatprep.mubr.bf16.mxu0 %v3792_v56  ;;  %v3887_v55 = vld [vmem:[%s5470_s0 + $0x320] ss:$20 sps:$4 sm:$0xff]   ;;  %v3888_v56 = vld [vmem:[%s5470_s0 + $0x1e8] ss:$20 sps:$4 sm:$0xff]  }
  0x6b   :  { %1710 = vmatprep.subr.bf16.mxu1 %v4244_v0  ;;  %1671 = vmatprep.mubr.bf16.mxu1 %v3794_v57  ;;  %v3889_v57 = vld [vmem:[%s5470_s0 + $0x34c] ss:$20 sps:$4 sm:$0xff]  }
  0x6e   :  { %1711 = vmatpush2.bf16.msra.mxu1 %v3791_v58  ;;  %v3891_v58 = vld [vmem:[%s5470_s0 + $0x214] ss:$20 sps:$4 sm:$0xff]  }
  0x6f   :  { %1712 = vmatprep.subr.bf16.mxu1 %v4244_v0 }
  0x71   :  { %1480 = vmatmul.mubr.bf16.gmra.mxu0 %v3796_v59  ;;  %1672 = vmatmul.mubr.bf16.gmra.mxu1 %v3797_v60  ;;  %v3893_v59 = vld [vmem:[%s5470_s0 + $0x348] ss:$20 sps:$4 sm:$0xff]   ;;  %v3894_v60 = vld [vmem:[%s5470_s0 + $0x210] ss:$20 sps:$4 sm:$0xff]  }
  0x72   :  { %1713 = vmatpush2.bf16.msra.mxu1 %v3799_v61  ;;  %1487 = vmatprep.mubr.bf16.mxu0 %v3801_v62  ;;  %v3895_v61 = vld [vmem:[%s5470_s0 + $0x374] ss:$20 sps:$4 sm:$0xff]   ;;  %v3897_v62 = vld [vmem:[%s5470_s0 + $0x23c] ss:$20 sps:$4 sm:$0xff]  }
  0x73   :  { %1714 = vmatprep.subr.bf16.mxu1 %v4244_v0  ;;  %1679 = vmatprep.mubr.bf16.mxu1 %v3803_v63  ;;  %v3899_v63 = vld [vmem:[%s5470_s0 + $0x370] ss:$20 sps:$4 sm:$0xff]  }
  0x76   :  { %1715 = vmatpush2.bf16.msra.mxu1 %v3800_v1  ;;  %v3900_v1 = vld [vmem:[%s5470_s0 + $0x238] ss:$20 sps:$4 sm:$0xff]  }
  0x77   :  { %1716 = vmatprep.subr.bf16.mxu1 %v4244_v0 }
  0x79   :  { %1488 = vmatmul.mubr.bf16.gmra.mxu0 %v3805_v2  ;;  %1680 = vmatmul.mubr.bf16.gmra.mxu1 %v3806_v3  ;;  %v3901_v2 = vld [vmem:[%s5470_s0 + $0x39c] ss:$20 sps:$4 sm:$0xff]   ;;  %v3903_v3 = vld [vmem:[%s5470_s0 + $0x264] ss:$20 sps:$4 sm:$0xff]  }
  0x7a   :  { %1717 = vmatpush2.bf16.msra.mxu1 %v3807_v4  ;;  %1495 = vmatprep.mubr.bf16.mxu0 %v3809_v5  ;;  %v3905_v4 = vld [vmem:[%s5470_s0 + $0x398] ss:$20 sps:$4 sm:$0xff]   ;;  %v3906_v5 = vld [vmem:[%s5470_s0 + $0x260] ss:$20 sps:$4 sm:$0xff]  }
  0x7b   :  { %1718 = vmatprep.subr.bf16.mxu1 %v4244_v0  ;;  %1720 = vmatprep.mubr.bf16.mxu1 %v3813_v6  ;;  %v3819_v0 = vld [vmem:[%s5470_s0 + $0x168] ss:$20 sps:$4 sm:$0xff]   ;;  %v3907_v6 = vld [vmem:[%s5470_s0 + $0x28c] ss:$20 sps:$4 sm:$0xff]  }
  0x7e   :  { %1719 = vmatpush2.bf16.msra.mxu1 %v3808_v7  ;;  %v3909_v7 = vld [vmem:[%s5470_s0 + $0x10] ss:$20 sps:$4 sm:$0xff]  }
  0x81   :  { %1496 = vmatmul.mubr.bf16.gmra.mxu0 %v3814_v9  ;;  %1721 = vmatmul.mubr.bf16.vlgmr.msra.gmra.mxu1 %v3811_v8  ;;  %v3910_v8 = vld [vmem:[%s5470_s0 + $0x288] ss:$20 sps:$4 sm:$0xff]   ;;  %v3911_v9 = vld [vmem:[%s5470_s0 + $0x38] ss:$20 sps:$4 sm:$0xff]  }
  0x82   :  { %1503 = vmatprep.mubr.bf16.mxu0 %v3815_v10  ;;  %1728 = vmatprep.mubr.bf16.mxu1 %v3817_v11  ;;  %v3912_v10 = vld [vmem:[%s5470_s0 + $0x2b4] ss:$20 sps:$4 sm:$0xff]  }
  0x83   :  { %v3914_v11 = vld [vmem:[%s5470_s0 + $0x60] ss:$20 sps:$4 sm:$0xff]  }
  0x89   :  { %1504 = vmatmul.mubr.bf16.gmra.mxu0 %v3819_v0  ;;  %1729 = vmatmul.mubr.bf16.gmra.mxu1 %v3820_v12 }
  0x8a   :  { %1511 = vmatprep.mubr.bf16.mxu0 %v3821_v13  ;;  %1736 = vmatprep.mubr.bf16.mxu1 %v3823_v14 }
  0x91   :  { %1512 = vmatmul.mubr.bf16.gmra.mxu0 %v3825_v15  ;;  %1737 = vmatmul.mubr.bf16.gmra.mxu1 %v3826_v16 }
  0x92   :  { %1519 = vmatprep.mubr.bf16.mxu0 %v3827_v17  ;;  %1744 = vmatprep.mubr.bf16.mxu1 %v3829_v18  ;;  %v3915_v17 = vld [vmem:[%s5470_s0 + $0x2b0] ss:$20 sps:$4 sm:$0xff]   ;;  %v3916_v18 = vld [vmem:[%s5470_s0 + $0x88] ss:$20 sps:$4 sm:$0xff]  }
  0x99   :  { %1520 = vmatmul.mubr.bf16.gmra.mxu0 %v3831_v19  ;;  %1745 = vmatmul.mubr.bf16.gmra.mxu1 %v3832_v20  ;;  %v3917_v19 = vld [vmem:[%s5470_s0 + $0x2dc] ss:$20 sps:$4 sm:$0xff]  }
  0x9a   :  { %1527 = vmatprep.mubr.bf16.mxu0 %v3833_v21  ;;  %1752 = vmatprep.mubr.bf16.mxu1 %v3835_v22  ;;  %v3919_v20 = vld [vmem:[%s5470_s0 + $0xb0] ss:$20 sps:$4 sm:$0xff]  }
  0xa1   :  { %1528 = vmatmul.mubr.bf16.gmra.mxu0 %v3837_v23  ;;  %1753 = vmatmul.mubr.bf16.gmra.mxu1 %v3838_v24 }
  0xa2   :  { %1535 = vmatprep.mubr.bf16.mxu0 %v3840_v25  ;;  %1760 = vmatprep.mubr.bf16.mxu1 %v3842_v26 }
  0xa9   :  { %1536 = vmatmul.mubr.bf16.gmra.mxu0 %v3844_v27  ;;  %1761 = vmatmul.mubr.bf16.gmra.mxu1 %v3845_v28 }
  0xaa   :  { %1543 = vmatprep.mubr.bf16.mxu0 %v3846_v29  ;;  %1768 = vmatprep.mubr.bf16.mxu1 %v3848_v30  ;;  %v3920_v29 = vld [vmem:[%s5470_s0 + $0x2d8] ss:$20 sps:$4 sm:$0xff]  }
  0xab   :  { %v3921_v30 = vld [vmem:[%s5470_s0 + $0xd8] ss:$20 sps:$4 sm:$0xff]  }
  0xb1   :  { %1544 = vmatmul.mubr.bf16.gmra.mxu0 %v3850_v31  ;;  %1769 = vmatmul.mubr.bf16.gmra.mxu1 %v3851_v32  ;;  %v3922_v31 = vld [vmem:[%s5470_s0 + $0x304] ss:$20 sps:$4 sm:$0xff]   ;;  %v3924_v32 = vld [vmem:[%s5470_s0 + $0x100] ss:$20 sps:$4 sm:$0xff]  }
  0xb2   :  { %1551 = vmatprep.mubr.bf16.mxu0 %v3852_v33  ;;  %1776 = vmatprep.mubr.bf16.mxu1 %v3854_v34 }
  0xb9   :  { %1552 = vmatmul.mubr.bf16.gmra.mxu0 %v3856_v35  ;;  %1777 = vmatmul.mubr.bf16.gmra.mxu1 %v3857_v36 }
  0xba   :  { %1559 = vmatprep.mubr.bf16.mxu0 %v3858_v37  ;;  %1784 = vmatprep.mubr.bf16.mxu1 %v3860_v38 }
  0xc1   :  { %1560 = vmatmul.mubr.bf16.gmra.mxu0 %v3862_v39  ;;  %1785 = vmatmul.mubr.bf16.gmra.mxu1 %v3863_v40 }
  0xc2   :  { %1567 = vmatprep.mubr.bf16.mxu0 %v3864_v41  ;;  %1792 = vmatprep.mubr.bf16.mxu1 %v3866_v42  ;;  %v3925_v41 = vld [vmem:[%s5470_s0 + $0x300] ss:$20 sps:$4 sm:$0xff]   ;;  %v3926_v42 = vld [vmem:[%s5470_s0 + $0x128] ss:$20 sps:$4 sm:$0xff]  }
  0xc9   :  { %1568 = vmatmul.mubr.bf16.gmra.mxu0 %v3868_v43  ;;  %1793 = vmatmul.mubr.bf16.gmra.mxu1 %v3869_v44  ;;  %v3929_v43 = vld [vmem:[%s5470_s0 + $0x32c] ss:$20 sps:$4 sm:$0xff]   ;;  %v3930_v44 = vld [vmem:[%s5470_s0 + $0x150] ss:$20 sps:$4 sm:$0xff]  }
  0xca   :  { %1575 = vmatprep.mubr.bf16.mxu0 %v3870_v45  ;;  %1800 = vmatprep.mubr.bf16.mxu1 %v3872_v46 }
  0xd1   :  { %1576 = vmatmul.mubr.bf16.gmra.mxu0 %v3874_v47  ;;  %1801 = vmatmul.mubr.bf16.gmra.mxu1 %v3875_v48 }
  0xd2   :  { %1583 = vmatprep.mubr.bf16.mxu0 %v3877_v49  ;;  %1808 = vmatprep.mubr.bf16.mxu1 %v3879_v50 }
  0xd9   :  { %1584 = vmatmul.mubr.bf16.gmra.mxu0 %v3881_v51  ;;  %1809 = vmatmul.mubr.bf16.gmra.mxu1 %v3882_v52 }
  0xda   :  { %1591 = vmatprep.mubr.bf16.mxu0 %v3883_v53  ;;  %1816 = vmatprep.mubr.bf16.mxu1 %v3885_v54  ;;  %v3927_v53 = vld [vmem:[%s5470_s0 + $0x328] ss:$20 sps:$4 sm:$0xff]   ;;  %v3931_v54 = vld [vmem:[%s5470_s0 + $0x178] ss:$20 sps:$4 sm:$0xff]  }
  0xe1   :  { %1592 = vmatmul.mubr.bf16.gmra.mxu0 %v3887_v55  ;;  %1817 = vmatmul.mubr.bf16.gmra.mxu1 %v3888_v56  ;;  %v3934_v55 = vld [vmem:[%s5470_s0 + $0x354] ss:$20 sps:$4 sm:$0xff]  }
  0xe2   :  { %1599 = vmatprep.mubr.bf16.mxu0 %v3889_v57  ;;  %1824 = vmatprep.mubr.bf16.mxu1 %v3891_v58  ;;  %v3935_v56 = vld [vmem:[%s5470_s0 + $0x1a0] ss:$20 sps:$4 sm:$0xff]  }
  0xe9   :  { %1600 = vmatmul.mubr.bf16.gmra.mxu0 %v3893_v59  ;;  %1825 = vmatmul.mubr.bf16.gmra.mxu1 %v3894_v60 }
  0xea   :  { %1607 = vmatprep.mubr.bf16.mxu0 %v3895_v61  ;;  %1832 = vmatprep.mubr.bf16.mxu1 %v3897_v62 }
  0xf1   :  { %1608 = vmatmul.mubr.bf16.gmra.mxu0 %v3899_v63  ;;  %1833 = vmatmul.mubr.bf16.gmra.mxu1 %v3900_v1 }
  0xf2   :  { %1615 = vmatprep.mubr.bf16.mxu0 %v3901_v2  ;;  %1840 = vmatprep.mubr.bf16.mxu1 %v3903_v3  ;;  %v3932_v2 = vld [vmem:[%s5470_s0 + $0x350] ss:$20 sps:$4 sm:$0xff]   ;;  %v3936_v3 = vld [vmem:[%s5470_s0 + $0x1c8] ss:$20 sps:$4 sm:$0xff]  }
  0xf9   :  { %1616 = vmatmul.mubr.bf16.gmra.mxu0 %v3905_v4  ;;  %1841 = vmatmul.mubr.bf16.gmra.mxu1 %v3906_v5  ;;  %v3939_v4 = vld [vmem:[%s5470_s0 + $0x37c] ss:$20 sps:$4 sm:$0xff]  }
  0xfa   :  { %1848 = vmatprep.mubr.bf16.mxu1 %v3907_v6  ;;  %3630 = vmatprep.mubr.msk.bf16.mxu0 %vm1302_vm0, %v3909_v7  ;;  %v3940_v5 = vld [vmem:[%s5470_s0 + $0x1f0] ss:$20 sps:$4 sm:$0xff]  }
 0x101   :  { %v4728_v0 = vpop.f32.mrf.mxu0  ;;  %v4730_v12 = vpop.f32.mrf.mxu1  ;;  %1849 = vmatmul.mubr.bf16.gmra.mxu1 %v3910_v8  ;;  %3631 = vmatmul.mubr.msk.bf16.vlgmr.msra.gmra.mxu0 %vm1302_vm0, %v3911_v9 }
 0x102   :  { %5473 = vst [vmem:[#allocation2_spill] sm:$0xff] %v4730_v12  ;;  %1856 = vmatprep.mubr.bf16.mxu1 %v3912_v10  ;;  %3634 = vmatprep.mubr.msk.bf16.mxu0 %vm1302_vm0, %v3914_v11 }
 0x103   :  { %v1435_v13 = vpop.f32.mrf.mxu0  ;;  %v1627_v14 = vpop.f32.mrf.mxu1 }
 0x105   :  { %v4734_v15 = vpop.f32.mrf.mxu0  ;;  %v4736_v16 = vpop.f32.mrf.mxu1 }
 0x106   :  { %5474 = vst [vmem:[#allocation3_spill] sm:$0xff] %v4736_v16 }
 0x107   :  { %v1438_v21 = vpop.f32.mrf.mxu0  ;;  %v1630_v22 = vpop.f32.mrf.mxu1 }
 0x109   :  { %v4750_v23 = vpop.f32.mrf.mxu0  ;;  %v4752_v24 = vpop.f32.mrf.mxu1  ;;  %1857 = vmatmul.mubr.bf16.gmra.mxu1 %v3915_v17  ;;  %3635 = vmatmul.mubr.msk.bf16.gmra.mxu0 %vm1302_vm0, %v3916_v18  ;;  %v3937_v17 = vld [vmem:[%s5470_s0 + $0x378] ss:$20 sps:$4 sm:$0xff]  }
 0x10a   :  { %5475 = vst [vmem:[#allocation4_spill] sm:$0xff] %v4752_v24  ;;  %1864 = vmatprep.mubr.bf16.mxu1 %v3917_v19  ;;  %3638 = vmatprep.mubr.msk.bf16.mxu0 %vm1302_vm0, %v3919_v20  ;;  %v3941_v18 = vld [vmem:[%s5470_s0 + $0x218] ss:$20 sps:$4 sm:$0xff]   ;;  %v3945_v20 = vld [vmem:[%s5470_s0 + $0x240] ss:$20 sps:$4 sm:$0xff]  }
 0x10b   :  { %v1443_v25 = vpop.f32.mrf.mxu0  ;;  %v1635_v26 = vpop.f32.mrf.mxu1  ;;  %v3944_v19 = vld [vmem:[%s5470_s0 + $0x3a4] ss:$20 sps:$4 sm:$0xff]  }
 0x10d   :  { %v4756_v27 = vpop.f32.mrf.mxu0  ;;  %v4758_v28 = vpop.f32.mrf.mxu1 }
 0x10e   :  { %5476 = vst [vmem:[#allocation5_spill] sm:$0xff] %v4758_v28 }
 0x10f   :  { %v1446_v33 = vpop.f32.mrf.mxu0  ;;  %v1638_v34 = vpop.f32.mrf.mxu1 }
 0x110   :  { %v3942_v33 = vld [vmem:[%s5470_s0 + $0x3a0] ss:$20 sps:$4 sm:$0xff]   ;;  %v3946_v34 = vld [vmem:[%s5470_s0 + $0x268] ss:$20 sps:$4 sm:$0xff]  }
 0x111   :  { %v4772_v35 = vpop.f32.mrf.mxu0  ;;  %v4774_v36 = vpop.f32.mrf.mxu1  ;;  %1865 = vmatmul.mubr.bf16.gmra.mxu1 %v3920_v29  ;;  %3639 = vmatmul.mubr.msk.bf16.gmra.mxu0 %vm1302_vm0, %v3921_v30 }
 0x112   :  { %5477 = vst [vmem:[#allocation6_spill] sm:$0xff] %v4774_v36  ;;  %1872 = vmatprep.mubr.bf16.mxu1 %v3922_v31  ;;  %3642 = vmatprep.mubr.msk.bf16.mxu0 %vm1302_vm0, %v3924_v32 }
 0x113   :  { %v1451_v37 = vpop.f32.mrf.mxu0  ;;  %v1643_v38 = vpop.f32.mrf.mxu1 }
 0x114   :  { %v3949_v37 = vld [vmem:[%s5470_s0 + $0x3cc] ss:$20 sps:$4 sm:$0xff]   ;;  %v3950_v38 = vld [vmem:[%s5470_s0 + $0x290] ss:$20 sps:$4 sm:$0xff]  }
 0x115   :  { %v4778_v39 = vpop.f32.mrf.mxu0  ;;  %v4780_v40 = vpop.f32.mrf.mxu1 }
 0x116   :  { %5478 = vst [vmem:[#allocation7_spill] sm:$0xff] %v4780_v40 }
 0x117   :  { %v1454_v45 = vpop.f32.mrf.mxu0  ;;  %v1646_v46 = vpop.f32.mrf.mxu1 }
 0x119   :  { %v4794_v47 = vpop.f32.mrf.mxu0  ;;  %v4796_v48 = vpop.f32.mrf.mxu1  ;;  %1873 = vmatmul.mubr.bf16.gmra.mxu1 %v3925_v41  ;;  %3643 = vmatmul.mubr.msk.bf16.gmra.mxu0 %vm1302_vm0, %v3926_v42 }
 0x11a   :  { %5479 = vst [vmem:[#allocation8_spill] sm:$0xff] %v4796_v48  ;;  %1880 = vmatprep.mubr.bf16.mxu1 %v3929_v43  ;;  %3646 = vmatprep.mubr.msk.bf16.mxu0 %vm1302_vm0, %v3930_v44 }
 0x11b   :  { %v1459_v49 = vpop.f32.mrf.mxu0  ;;  %v1651_v50 = vpop.f32.mrf.mxu1 }
 0x11c   :  { %v4891_v49 = vld [vmem:[%s5471_s2] ss:$0 sm:$0xff] }
 0x11d   :  { %v4800_v51 = vpop.f32.mrf.mxu0  ;;  %v4802_v52 = vpop.f32.mrf.mxu1 }
 0x11e   :  { %5480 = vst [vmem:[#allocation9_spill] sm:$0xff] %v4802_v52 }
 0x11f   :  { %v1462_v57 = vpop.f32.mrf.mxu0  ;;  %v1654_v58 = vpop.f32.mrf.mxu1 }
 0x120   :  { %v3955_v57 = vld [vmem:[%s5470_s0 + $0x2e0] ss:$20 sps:$4 sm:$0xff]  }
 0x121   :  { %v4816_v59 = vpop.f32.mrf.mxu0  ;;  %v4818_v60 = vpop.f32.mrf.mxu1  ;;  %1881 = vmatmul.mubr.bf16.gmra.mxu1 %v3927_v53  ;;  %3647 = vmatmul.mubr.msk.bf16.gmra.mxu0 %vm1302_vm0, %v3931_v54  ;;  %v3947_v54 = vld [vmem:[%s5470_s0 + $0x3c8] ss:$20 sps:$4 sm:$0xff]  }
 0x122   :  { %5481 = vst [vmem:[#allocation10_spill] sm:$0xff] %v4818_v60  ;;  %1888 = vmatprep.mubr.bf16.mxu1 %v3934_v55  ;;  %3650 = vmatprep.mubr.msk.bf16.mxu0 %vm1302_vm0, %v3935_v56  ;;  %v3951_v55 = vld [vmem:[%s5470_s0 + $0x2b8] ss:$20 sps:$4 sm:$0xff]   ;;  %v3954_v56 = vld [vmem:[%s5470_s0 + $0x3f4] ss:$20 sps:$4 sm:$0xff]  }
 0x123   :  { %v1467_v61 = vpop.f32.mrf.mxu0  ;;  %v1659_v62 = vpop.f32.mrf.mxu1 }
 0x124   :  { %v1434_v62 = vadd.f32 %v4891_v49, %v4728_v0  ;;  %v3952_v0 = vld [vmem:[%s5470_s0 + $0x3f0] ss:$20 sps:$4 sm:$0xff]  }
 0x125   :  { %v4822_v63 = vpop.f32.mrf.mxu0  ;;  %v4824_v1 = vpop.f32.mrf.mxu1 }
 0x126   :  { %5482 = vst [vmem:[#allocation11_spill] sm:$0xff] %v4824_v1 }
 0x127   :  { %v1470_v6 = vpop.f32.mrf.mxu0  ;;  %v1662_v7 = vpop.f32.mrf.mxu1 }
 0x128   :  { %v1437_v7 = vadd.f32 %v4891_v49, %v4734_v15  ;;  %v3960_v15 = vld [vmem:[%s5470_s0 + $0x330] ss:$20 sps:$4 sm:$0xff]  }
 0x129   :  { %v4838_v8 = vpop.f32.mrf.mxu0  ;;  %v4840_v9 = vpop.f32.mrf.mxu1  ;;  %1889 = vmatmul.mubr.bf16.gmra.mxu1 %v3932_v2  ;;  %3651 = vmatmul.mubr.msk.bf16.gmra.mxu0 %vm1302_vm0, %v3936_v3 }
 0x12a   :  { %5483 = vst [vmem:[#allocation12_spill] sm:$0xff] %v4840_v9  ;;  %1896 = vmatprep.mubr.bf16.mxu1 %v3939_v4  ;;  %3654 = vmatprep.mubr.msk.bf16.mxu0 %vm1302_vm0, %v3940_v5 }
 0x12b   :  { %v1475_v10 = vpop.f32.mrf.mxu0  ;;  %v1667_v11 = vpop.f32.mrf.mxu1 }
 0x12d   :  { %v4844_v13 = vpop.f32.mrf.mxu0  ;;  %v4846_v14 = vpop.f32.mrf.mxu1 }
 0x12e   :  { %5484 = vst [vmem:[#allocation13_spill] sm:$0xff] %v4846_v14 }
 0x12f   :  { %v1478_v21 = vpop.f32.mrf.mxu0  ;;  %v1670_v22 = vpop.f32.mrf.mxu1 }
 0x130   :  { %v1442_v22 = vadd.f32 %v4891_v49, %v4750_v23  ;;  %v3957_v23 = vld [vmem:[%s5470_s0 + $0x418] ss:$20 sps:$4 sm:$0xff]  }
 0x131   :  { %v4860_v25 = vpop.f32.mrf.mxu0  ;;  %v4862_v26 = vpop.f32.mrf.mxu1  ;;  %1897 = vmatmul.mubr.bf16.gmra.mxu1 %v3937_v17  ;;  %3655 = vmatmul.mubr.msk.bf16.gmra.mxu0 %vm1302_vm0, %v3941_v18  ;;  %v3956_v17 = vld [vmem:[%s5470_s0 + $0x308] ss:$20 sps:$4 sm:$0xff]  }
 0x132   :  { %5485 = vst [vmem:[#allocation14_spill] sm:$0xff] %v4862_v26  ;;  %1904 = vmatprep.mubr.bf16.mxu1 %v3944_v19  ;;  %3658 = vmatprep.mubr.msk.bf16.mxu0 %vm1302_vm0, %v3945_v20  ;;  %v3959_v19 = vld [vmem:[%s5470_s0 + $0x41c] ss:$20 sps:$4 sm:$0xff]  }
 0x133   :  { %v1483_v29 = vpop.f32.mrf.mxu0  ;;  %v1675_v30 = vpop.f32.mrf.mxu1 }
 0x135   :  { %v4866_v31 = vpop.f32.mrf.mxu0  ;;  %v4868_v32 = vpop.f32.mrf.mxu1 }
 0x136   :  { %5486 = vst [vmem:[#allocation15_spill] sm:$0xff] %v4868_v32 }
 0x137   :  { %v1486_v41 = vpop.f32.mrf.mxu0  ;;  %v1678_v42 = vpop.f32.mrf.mxu1 }
 0x139   :  { %v4882_v43 = vpop.f32.mrf.mxu0  ;;  %v4884_v44 = vpop.f32.mrf.mxu1  ;;  %1905 = vmatmul.mubr.bf16.gmra.mxu1 %v3942_v33  ;;  %3659 = vmatmul.mubr.msk.bf16.gmra.mxu0 %vm1302_vm0, %v3946_v34 }
 0x13a   :  { %5487 = vst [vmem:[#allocation16_spill] sm:$0xff] %v4884_v44  ;;  %1912 = vmatprep.mubr.bf16.mxu1 %v3949_v37  ;;  %3662 = vmatprep.mubr.msk.bf16.mxu0 %vm1302_vm0, %v3950_v38  ;;  %v1445_v38 = vadd.f32 %v4891_v49, %v4756_v27  ;;  %v3965_v27 = vld [vmem:[%s5470_s0 + $0x380] ss:$20 sps:$4 sm:$0xff]  }
 0x13b   :  { %v1491_v45 = vpop.f32.mrf.mxu0  ;;  %v1683_v46 = vpop.f32.mrf.mxu1 }
 0x13c   :  { %v3961_v45 = vld [vmem:[%s5470_s0 + $0x358] ss:$20 sps:$4 sm:$0xff]  }
 0x13d   :  { %v4893_v50 = vpop.f32.mrf.mxu0  ;;  %v4895_v53 = vpop.f32.mrf.mxu1 }
 0x13e   :  { %5488 = vst [vmem:[#allocation17_spill] sm:$0xff] %v4895_v53 }
 0x13f   :  { %v1494_v58 = vpop.f32.mrf.mxu0  ;;  %v1686_v61 = vpop.f32.mrf.mxu1 }
 0x141   :  { %v4911_v2 = vpop.f32.mrf.mxu0  ;;  %v1722_v3 = vpop.f32.mrf.mxu1  ;;  %1913 = vmatmul.mubr.bf16.gmra.mxu1 %v3947_v54  ;;  %3663 = vmatmul.mubr.msk.bf16.gmra.mxu0 %vm1302_vm0, %v3951_v55  ;;  %v3964_v54 = vld [vmem:[%s5470_s0 + $0x444] ss:$20 sps:$4 sm:$0xff]  }
 0x142   :  { %v4914_v4 = vadd.f32 %v1722_v3, %v1434_v62  ;;  %1920 = vmatprep.mubr.bf16.mxu1 %v3954_v56  ;;  %3666 = vmatprep.mubr.msk.bf16.mxu0 %vm1302_vm0, %v3955_v57  ;;  %v1450_v57 = vadd.f32 %v4891_v49, %v4772_v35  ;;  %v3962_v35 = vld [vmem:[%s5470_s0 + $0x440] ss:$20 sps:$4 sm:$0xff]  }
 0x143   :  { %v1499_v5 = vpop.f32.mrf.mxu0  ;;  %v1724_v6 = vpop.f32.mrf.mxu1 }
 0x144   :  { %v1453_v6 = vadd.f32 %v4891_v49, %v4778_v39  ;;  %v3970_v39 = vld [vmem:[%s5470_s0 + $0x3d0] ss:$20 sps:$4 sm:$0xff]  }
 0x145   :  { %v4919_v10 = vpop.f32.mrf.mxu0  ;;  %v1725_v11 = vpop.f32.mrf.mxu1 }
 0x146   :  { %v4927_v18 = vadd.f32 %v1725_v11, %v1437_v7 }
 0x147   :  { %v1502_v20 = vpop.f32.mrf.mxu0  ;;  %v1727_v21 = vpop.f32.mrf.mxu1 }
 0x148   :  { %v1458_v21 = vadd.f32 %v4891_v49, %v4794_v47  ;;  %v3967_v47 = vld [vmem:[%s5470_s0 + $0x468] ss:$20 sps:$4 sm:$0xff]  }
 0x149   :  { %v4937_v29 = vpop.f32.mrf.mxu0  ;;  %v1730_v30 = vpop.f32.mrf.mxu1  ;;  %1921 = vmatmul.mubr.bf16.gmra.mxu1 %v3952_v0  ;;  %3667 = vmatmul.mubr.msk.bf16.gmra.mxu0 %vm1302_vm0, %v3956_v17  ;;  %v3966_v0 = vld [vmem:[%s5470_s0 + $0x3a8] ss:$20 sps:$4 sm:$0xff]  }
 0x14a   :  { %v4940_v33 = vadd.f32 %v1730_v30, %v1442_v22  ;;  %1928 = vmatprep.mubr.bf16.mxu1 %v3959_v19  ;;  %3670 = vmatprep.mubr.msk.bf16.mxu0 %vm1302_vm0, %v3960_v15  ;;  %v3969_v19 = vld [vmem:[%s5470_s0 + $0x46c] ss:$20 sps:$4 sm:$0xff]  }
 0x14b   :  { %v1507_v34 = vpop.f32.mrf.mxu0  ;;  %v1732_v37 = vpop.f32.mrf.mxu1 }
 0x14d   :  { %v4945_v41 = vpop.f32.mrf.mxu0  ;;  %v1733_v42 = vpop.f32.mrf.mxu1 }
 0x14e   :  { %v4953_v46 = vadd.f32 %v1733_v42, %v1445_v38  ;;  %v1461_v42 = vadd.f32 %v4891_v49, %v4800_v51  ;;  %v3975_v51 = vld [vmem:[%s5470_s0 + $0x420] ss:$20 sps:$4 sm:$0xff]  }
 0x14f   :  { %v1510_v55 = vpop.f32.mrf.mxu0  ;;  %v1735_v56 = vpop.f32.mrf.mxu1 }
 0x150   :  { %v3974_v55 = vld [vmem:[%s5470_s0 + $0x494] ss:$20 sps:$4 sm:$0xff]  }
 0x151   :  { %v4963_v58 = vpop.f32.mrf.mxu0  ;;  %v1738_v61 = vpop.f32.mrf.mxu1  ;;  %1929 = vmatmul.mubr.bf16.gmra.mxu1 %v3957_v23  ;;  %3671 = vmatmul.mubr.msk.bf16.gmra.mxu0 %vm1302_vm0, %v3961_v45 }
 0x152   :  { %v4966_v62 = vadd.f32 %v1738_v61, %v1450_v57  ;;  %1936 = vmatprep.mubr.bf16.mxu1 %v3964_v54  ;;  %3674 = vmatprep.mubr.msk.bf16.mxu0 %vm1302_vm0, %v3965_v27  ;;  %v3971_v54 = vld [vmem:[%s5470_s0 + $0x3f8] ss:$20 sps:$4 sm:$0xff]   ;;  %v1466_v61 = vadd.f32 %v4891_v49, %v4816_v59  ;;  %v3972_v59 = vld [vmem:[%s5470_s0 + $0x490] ss:$20 sps:$4 sm:$0xff]  }
 0x153   :  { %v1515_v3 = vpop.f32.mrf.mxu0  ;;  %v1740_v5 = vpop.f32.mrf.mxu1 }
 0x155   :  { %v4971_v7 = vpop.f32.mrf.mxu0  ;;  %v1741_v11 = vpop.f32.mrf.mxu1 }
 0x156   :  { %v4979_v17 = vadd.f32 %v1741_v11, %v1453_v6 }
 0x157   :  { %v1518_v15 = vpop.f32.mrf.mxu0  ;;  %v1743_v20 = vpop.f32.mrf.mxu1 }
 0x158   :  { %v3976_v15 = vld [vmem:[%s5470_s0 + $0x448] ss:$20 sps:$4 sm:$0xff]  }
 0x159   :  { %v4989_v22 = vpop.f32.mrf.mxu0  ;;  %v1746_v30 = vpop.f32.mrf.mxu1  ;;  %1937 = vmatmul.mubr.bf16.gmra.mxu1 %v3962_v35  ;;  %3675 = vmatmul.mubr.msk.bf16.gmra.mxu0 %vm1302_vm0, %v3966_v0  ;;  %v1469_v0 = vadd.f32 %v4891_v49, %v4822_v63  ;;  %v3980_v63 = vld [vmem:[%s5470_s0 + $0x470] ss:$20 sps:$4 sm:$0xff]  }
 0x15a   :  { %v4992_v34 = vadd.f32 %v1746_v30, %v1458_v21  ;;  %1944 = vmatprep.mubr.bf16.mxu1 %v3969_v19  ;;  %3678 = vmatprep.mubr.msk.bf16.mxu0 %vm1302_vm0, %v3970_v39  ;;  %v3979_v21 = vld [vmem:[%s5470_s0 + $0x4bc] ss:$20 sps:$4 sm:$0xff]  }
 0x15b   :  { %v1523_v37 = vpop.f32.mrf.mxu0  ;;  %v1748_v38 = vpop.f32.mrf.mxu1 }
 0x15c   :  { %v1474_v38 = vadd.f32 %v4891_v49, %v4838_v8  ;;  %v3977_v8 = vld [vmem:[%s5470_s0 + $0x4b8] ss:$20 sps:$4 sm:$0xff]  }
 0x15d   :  { %v4997_v23 = vpop.f32.mrf.mxu0  ;;  %v1749_v45 = vpop.f32.mrf.mxu1 }
 0x15e   :  { %v5005_v27 = vadd.f32 %v1749_v45, %v1461_v42 }
 0x15f   :  { %v1526_v56 = vpop.f32.mrf.mxu0  ;;  %v1751_v57 = vpop.f32.mrf.mxu1 }
 0x161   :  { %v5015_v3 = vpop.f32.mrf.mxu0  ;;  %v1754_v5 = vpop.f32.mrf.mxu1  ;;  %1945 = vmatmul.mubr.bf16.gmra.mxu1 %v3967_v47  ;;  %3679 = vmatmul.mubr.msk.bf16.gmra.mxu0 %vm1302_vm0, %v3971_v54 }
 0x162   :  { %v5018_v6 = vadd.f32 %v1754_v5, %v1466_v61  ;;  %1952 = vmatprep.mubr.bf16.mxu1 %v3974_v55  ;;  %3682 = vmatprep.mubr.msk.bf16.mxu0 %vm1302_vm0, %v3975_v51  ;;  %v1477_v51 = vadd.f32 %v4891_v49, %v4844_v13  ;;  %v3981_v61 = vld [vmem:[%s5470_s0 + $0x498] ss:$20 sps:$4 sm:$0xff]   ;;  %v3985_v13 = vld [vmem:[%s5470_s0 + $0x4c0] ss:$20 sps:$4 sm:$0xff]  }
 0x163   :  { %v1531_v11 = vpop.f32.mrf.mxu0  ;;  %v1756_v35 = vpop.f32.mrf.mxu1 }
 0x164   :  { %v3984_v11 = vld [vmem:[%s5470_s0 + $0x4e4] ss:$20 sps:$4 sm:$0xff]  }
 0x165   :  { %v5023_v19 = vpop.f32.mrf.mxu0  ;;  %v1757_v39 = vpop.f32.mrf.mxu1 }
 0x166   :  { %v5031_v20 = vadd.f32 %v1757_v39, %v1469_v0  ;;  %v1482_v39 = vadd.f32 %v4891_v49, %v4860_v25  ;;  %v3982_v25 = vld [vmem:[%s5470_s0 + $0x4e0] ss:$20 sps:$4 sm:$0xff]  }
 0x167   :  { %v1534_v30 = vpop.f32.mrf.mxu0  ;;  %v1759_v37 = vpop.f32.mrf.mxu1 }
 0x168   :  { %v1485_v37 = vadd.f32 %v4891_v49, %v4866_v31 }
 0x169   :  { %v5041_v42 = vpop.f32.mrf.mxu0  ;;  %v1762_v45 = vpop.f32.mrf.mxu1  ;;  %1953 = vmatmul.mubr.bf16.gmra.mxu1 %v3972_v59  ;;  %3683 = vmatmul.mubr.msk.bf16.gmra.mxu0 %vm1302_vm0, %v3976_v15 }
 0x16a   :  { %v5044_v47 = vadd.f32 %v1762_v45, %v1474_v38  ;;  %1960 = vmatprep.mubr.bf16.mxu1 %v3979_v21  ;;  %3686 = vmatprep.mubr.msk.bf16.mxu0 %vm1302_vm0, %v3980_v63 }
 0x16b   :  { %v1539_v54 = vpop.f32.mrf.mxu0  ;;  %v1764_v55 = vpop.f32.mrf.mxu1 }
 0x16c   :  { %v3986_v54 = vld [vmem:[%s5470_s0 + $0x4e8] ss:$20 sps:$4 sm:$0xff]  }
 0x16d   :  { %v5049_v56 = vpop.f32.mrf.mxu0  ;;  %v1765_v57 = vpop.f32.mrf.mxu1 }
 0x16e   :  { %v5057_v5 = vadd.f32 %v1765_v57, %v1477_v51 }
 0x16f   :  { %v1542_v35 = vpop.f32.mrf.mxu0  ;;  %v1767_v0 = vpop.f32.mrf.mxu1 }
 0x170   :  { %v1493_v0 = vadd.f32 %v4891_v49, %v4893_v50  ;;  %v1501_v50 = vadd.f32 %v4891_v49, %v4919_v10  ;;  %v1509_v10 = vadd.f32 %v4891_v49, %v4945_v41  ;;  %v1517_v41 = vadd.f32 %v4891_v49, %v4971_v7 }
 0x171   :  { %v5067_v59 = vpop.f32.mrf.mxu0  ;;  %v1770_v15 = vpop.f32.mrf.mxu1  ;;  %1961 = vmatmul.mubr.bf16.gmra.mxu1 %v3977_v8  ;;  %3687 = vmatmul.mubr.msk.bf16.gmra.mxu0 %vm1302_vm0, %v3981_v61  ;;  %v1490_v8 = vadd.f32 %v4891_v49, %v4882_v43  ;;  %v1525_v7 = vadd.f32 %v4891_v49, %v4997_v23  ;;  %v1533_v23 = vadd.f32 %v4891_v49, %v5023_v19 }
 0x172   :  { %v5070_v21 = vadd.f32 %v1770_v15, %v1482_v39  ;;  %1968 = vmatprep.mubr.bf16.mxu1 %v3984_v11  ;;  %3690 = vmatprep.mubr.msk.bf16.mxu0 %vm1302_vm0, %v3985_v13  ;;  %v1541_v19 = vadd.f32 %v4891_v49, %v5049_v56 }
 0x173   :  { %v1547_v63 = vpop.f32.mrf.mxu0  ;;  %v1772_v30 = vpop.f32.mrf.mxu1 }
 0x175   :  { %v5075_v38 = vpop.f32.mrf.mxu0  ;;  %v1773_v45 = vpop.f32.mrf.mxu1 }
 0x176   :  { %v5083_v55 = vadd.f32 %v1773_v45, %v1485_v37  ;;  %v1498_v37 = vadd.f32 %v4891_v49, %v4911_v2  ;;  %v1506_v2 = vadd.f32 %v4891_v49, %v4937_v29  ;;  %v1514_v29 = vadd.f32 %v4891_v49, %v4963_v58 }
 0x177   :  { %v1550_v51 = vpop.f32.mrf.mxu0  ;;  %v1775_v57 = vpop.f32.mrf.mxu1  ;;  %v1522_v58 = vadd.f32 %v4891_v49, %v4989_v22  ;;  %v1530_v22 = vadd.f32 %v4891_v49, %v5015_v3  ;;  %v1538_v3 = vadd.f32 %v4891_v49, %v5041_v42  ;;  %v1546_v42 = vadd.f32 %v4891_v49, %v5067_v59 }
 0x178   :  { %v1549_v56 = vadd.f32 %v4891_v49, %v5075_v38 }
 0x179   :  { %v5087_v61 = vpop.f32.mrf.mxu0  ;;  %v1778_v31 = vpop.f32.mrf.mxu1  ;;  %1969 = vmatmul.mubr.bf16.gmra.mxu1 %v3982_v25  ;;  %3691 = vmatmul.mubr.msk.bf16.gmra.mxu0 %vm1302_vm0, %v3986_v54 }
 0x17a   :  { %v5090_v11 = vadd.f32 %v1778_v31, %v1490_v8  ;;  %v1554_v59 = vadd.f32 %v4891_v49, %v5087_v61 }
 0x17b   :  { %v1555_v13 = vpop.f32.mrf.mxu0  ;;  %v1780_v35 = vpop.f32.mrf.mxu1 }
 0x17d   :  { %v5094_v39 = vpop.f32.mrf.mxu0  ;;  %v1781_v15 = vpop.f32.mrf.mxu1 }
 0x17e   :  { %v5096_v63 = vadd.f32 %v1781_v15, %v1493_v0 }
 0x17f   :  { %v1558_v30 = vpop.f32.mrf.mxu0  ;;  %v1783_v43 = vpop.f32.mrf.mxu1 }
 0x181   :  { %v5100_v45 = vpop.f32.mrf.mxu0  ;;  %v1786_v25 = vpop.f32.mrf.mxu1 }
 0x182   :  { %v5102_v54 = vadd.f32 %v1786_v25, %v1498_v37 }
 0x183   :  { %v1563_v51 = vpop.f32.mrf.mxu0  ;;  %v1788_v57 = vpop.f32.mrf.mxu1 }
 0x185   :  { %v5106_v8 = vpop.f32.mrf.mxu0  ;;  %v1789_v31 = vpop.f32.mrf.mxu1 }
 0x186   :  { %v5108_v13 = vadd.f32 %v1789_v31, %v1501_v50 }
 0x187   :  { %v1566_v35 = vpop.f32.mrf.mxu0  ;;  %v1791_v0 = vpop.f32.mrf.mxu1 }
 0x189   :  { %v5112_v15 = vpop.f32.mrf.mxu0  ;;  %v1794_v30 = vpop.f32.mrf.mxu1 }
 0x18a   :  { %v5114_v43 = vadd.f32 %v1794_v30, %v1506_v2 }
 0x18b   :  { %v1571_v37 = vpop.f32.mrf.mxu0  ;;  %v1796_v25 = vpop.f32.mrf.mxu1 }
 0x18d   :  { %v5118_v51 = vpop.f32.mrf.mxu0  ;;  %v1797_v57 = vpop.f32.mrf.mxu1 }
 0x18e   :  { %v5120_v50 = vadd.f32 %v1797_v57, %v1509_v10 }
 0x18f   :  { %v1574_v31 = vpop.f32.mrf.mxu0  ;;  %v1799_v35 = vpop.f32.mrf.mxu1 }
 0x191   :  { %v5124_v0 = vpop.f32.mrf.mxu0  ;;  %v1802_v53 = vpop.f32.mrf.mxu1 }
 0x192   :  { %v5126_v2 = vadd.f32 %v1802_v53, %v1514_v29 }
 0x193   :  { %v1579_v30 = vpop.f32.mrf.mxu0  ;;  %v1804_v37 = vpop.f32.mrf.mxu1 }
 0x195   :  { %v5130_v25 = vpop.f32.mrf.mxu0  ;;  %v1805_v32 = vpop.f32.mrf.mxu1 }
 0x196   :  { %v5132_v10 = vadd.f32 %v1805_v32, %v1517_v41 }
 0x197   :  { %v1582_v57 = vpop.f32.mrf.mxu0  ;;  %v1807_v31 = vpop.f32.mrf.mxu1 }
 0x199   :  { %v5136_v35 = vpop.f32.mrf.mxu0  ;;  %v1810_v44 = vpop.f32.mrf.mxu1 }
 0x19a   :  { %v5138_v53 = vadd.f32 %v1810_v44, %v1522_v58 }
 0x19b   :  { %v1587_v29 = vpop.f32.mrf.mxu0  ;;  %v1812_v30 = vpop.f32.mrf.mxu1 }
 0x19d   :  { %v5142_v37 = vpop.f32.mrf.mxu0  ;;  %v1813_v26 = vpop.f32.mrf.mxu1 }
 0x19e   :  { %v5144_v32 = vadd.f32 %v1813_v26, %v1525_v7 }
 0x19f   :  { %v1590_v41 = vpop.f32.mrf.mxu0  ;;  %v1815_v57 = vpop.f32.mrf.mxu1 }
 0x1a1   :  { %v5148_v31 = vpop.f32.mrf.mxu0  ;;  %v1818_v1 = vpop.f32.mrf.mxu1 }
 0x1a2   :  { %v5150_v44 = vadd.f32 %v1818_v1, %v1530_v22 }
 0x1a3   :  { %v1595_v58 = vpop.f32.mrf.mxu0  ;;  %v1820_v29 = vpop.f32.mrf.mxu1 }
 0x1a5   :  { %v5154_v30 = vpop.f32.mrf.mxu0  ;;  %v1821_v14 = vpop.f32.mrf.mxu1 }
 0x1a6   :  { %v5156_v26 = vadd.f32 %v1821_v14, %v1533_v23 }
 0x1a7   :  { %v1598_v7 = vpop.f32.mrf.mxu0  ;;  %v1823_v41 = vpop.f32.mrf.mxu1 }
 0x1a9   :  { %v5160_v57 = vpop.f32.mrf.mxu0  ;;  %v1826_v60 = vpop.f32.mrf.mxu1 }
 0x1aa   :  { %v5162_v1 = vadd.f32 %v1826_v60, %v1538_v3 }
 0x1ab   :  { %v1603_v22 = vpop.f32.mrf.mxu0  ;;  %v1828_v58 = vpop.f32.mrf.mxu1 }
 0x1ad   :  { %v5166_v29 = vpop.f32.mrf.mxu0  ;;  %v1829_v9 = vpop.f32.mrf.mxu1 }
 0x1ae   :  { %v5168_v14 = vadd.f32 %v1829_v9, %v1541_v19 }
 0x1af   :  { %v1606_v23 = vpop.f32.mrf.mxu0  ;;  %v1831_v7 = vpop.f32.mrf.mxu1 }
 0x1b1   :  { %v5172_v41 = vpop.f32.mrf.mxu0  ;;  %v1834_v40 = vpop.f32.mrf.mxu1 }
 0x1b2   :  { %v5174_v60 = vadd.f32 %v1834_v40, %v1546_v42 }
 0x1b3   :  { %v1611_v3 = vpop.f32.mrf.mxu0  ;;  %v1836_v22 = vpop.f32.mrf.mxu1 }
 0x1b5   :  { %v5178_v58 = vpop.f32.mrf.mxu0  ;;  %v1837_v52 = vpop.f32.mrf.mxu1 }
 0x1b6   :  { %v5180_v9 = vadd.f32 %v1837_v52, %v1549_v56  ;;  %v1562_v52 = vadd.f32 %v4891_v49, %v5100_v45 }
 0x1b7   :  { %v1614_v19 = vpop.f32.mrf.mxu0  ;;  %v1839_v23 = vpop.f32.mrf.mxu1 }
 0x1b9   :  { %v5184_v7 = vpop.f32.mrf.mxu0  ;;  %v1842_v36 = vpop.f32.mrf.mxu1 }
 0x1ba   :  { %v5186_v40 = vadd.f32 %v1842_v36, %v1554_v59  ;;  %v1565_v59 = vadd.f32 %v4891_v49, %v5106_v8 }
 0x1bb   :  { %v1619_v42 = vpop.f32.mrf.mxu0  ;;  %v1844_v3 = vpop.f32.mrf.mxu1 }
 0x1bd   :  { %v5188_v22 = vpop.f32.mrf.mxu0  ;;  %v5190_v38 = vpop.f32.mrf.mxu1 }
 0x1bf   :  { %v1622_v48 = vpop.f32.mrf.mxu0  ;;  %v1847_v16 = vpop.f32.mrf.mxu1 }
 0x1c1   :  { %v1850_v56 = vpop.f32.mrf.mxu1  ;;  %v3632_v19 = vpop.f32.mrf.mxu0 }
 0x1c2   :  { %v5194_v23 = vadd.f32 %v1850_v56, %v1562_v52  ;;  %v2020_v61 = vadd.f32 %v3632_v19, %v4940_v33 }
 0x1c3   :  { %v1852_v28 = vpop.f32.mrf.mxu1  ;;  %v2011_v36 = vpop.f32.mrf.mxu0 }
 0x1c4   :  { %v3205_v42 = vmul.f32 -1.442695, %v2020_v61  ;;  %v2012_v3 = vadd.f32 %v2011_v36, %v4914_v4 }
 0x1c5   :  { %v1853_v24 = vpop.f32.mrf.mxu1  ;;  %v3633_v48 = vpop.f32.mrf.mxu0 }
 0x1c6   :  { %3987 = vpow2.f32 %v3205_v42  ;;  %v3203_v16 = vmul.f32 -1.442695, %v2012_v3  ;;  %v5200_v12 = vadd.f32 %v1853_v24, %v1565_v59  ;;  %v2023_v45 = vadd.f32 %v3633_v48, %v4953_v46 }
 0x1c7   :  { %v1855_v52 = vpop.f32.mrf.mxu1  ;;  %v2014_v56 = vpop.f32.mrf.mxu0 }
 0x1c8   :  { %3989 = vpow2.f32 %v3203_v16  ;;  %v3206_v33 = vmul.f32 -1.442695, %v2023_v45  ;;  %v2015_v28 = vadd.f32 %v2014_v56, %v4927_v18 }
 0x1c9   :  { %v5204_v19 = vpop.f32.mrf.mxu1  ;;  %v3636_v8 = vpop.f32.mrf.mxu0 }
 0x1ca   :  { %3991 = vpow2.f32 %v3206_v33  ;;  %v3204_v61 = vmul.f32 -1.442695, %v2015_v28  ;;  %v2036_v4 = vadd.f32 %v3636_v8, %v4992_v34 }
 0x1cb   :  { %v1860_v36 = vpop.f32.mrf.mxu1  ;;  %v2027_v42 = vpop.f32.mrf.mxu0 }
 0x1cc   :  { %3993 = vpow2.f32 %v3204_v61  ;;  %v3209_v24 = vmul.f32 -1.442695, %v2036_v4  ;;  %v2028_v59 = vadd.f32 %v2027_v42, %v4966_v62 }
 0x1cd   :  { %v5208_v46 = vpop.f32.mrf.mxu1  ;;  %v3637_v3 = vpop.f32.mrf.mxu0 }
 0x1ce   :  { %3995 = vpow2.f32 %v3209_v24  ;;  %v3207_v48 = vmul.f32 -1.442695, %v2028_v59  ;;  %v2039_v18 = vadd.f32 %v3637_v3, %v5005_v27 }
 0x1cf   :  { %v1863_v16 = vpop.f32.mrf.mxu1  ;;  %v2030_v45 = vpop.f32.mrf.mxu0 }
 0x1d0   :  { %3997 = vpow2.f32 %v3207_v48  ;;  %v3210_v52 = vmul.f32 -1.442695, %v2039_v18  ;;  %v2031_v56 = vadd.f32 %v2030_v45, %v4979_v17 }
 0x1d1   :  { %v5212_v34 = vpop.f32.mrf.mxu1  ;;  %v3640_v33 = vpop.f32.mrf.mxu0 }
 0x1d2   :  { %3999 = vpow2.f32 %v3210_v52  ;;  %v3208_v28 = vmul.f32 -1.442695, %v2031_v56  ;;  %v2052_v62 = vadd.f32 %v3640_v33, %v5044_v47 }
 0x1d3   :  { %v3988_v8 = vpop.eup %3987  ;;  %v1868_v61 = vpop.f32.mrf.mxu1 }
 0x1d4   :  { %v2043_v4 = vpop.f32.mrf.mxu0  ;;  %v2460_v36 = vadd.f32 1.0, %v3988_v8  ;;  %4001 = vpow2.f32 %v3208_v28  ;;  %v3213_v42 = vmul.f32 -1.442695, %v2052_v62 }
 0x1d5   :  { %v2044_v27 = vadd.f32 %v2043_v4, %v5018_v6  ;;  %v3990_v24 = vpop.eup %3989  ;;  %v5216_v59 = vpop.f32.mrf.mxu1 }
 0x1d6   :  { %v3641_v3 = vpop.f32.mrf.mxu0  ;;  %4003 = vrcp.f32 %v2460_v36  ;;  %v2458_v17 = vadd.f32 1.0, %v3990_v24 }
 0x1d7   :  { %v3211_v48 = vmul.f32 -1.442695, %v2044_v27  ;;  %v3992_v18 = vpop.eup %3991  ;;  %4005 = vpow2.f32 %v3213_v42  ;;  %v2055_v16 = vadd.f32 %v3641_v3, %v5057_v5  ;;  %v1871_v47 = vpop.f32.mrf.mxu1 }
 0x1d8   :  { %v2046_v45 = vpop.f32.mrf.mxu0  ;;  %4007 = vrcp.f32 %v2458_v17  ;;  %v2461_v52 = vadd.f32 1.0, %v3992_v18 }
 0x1d9   :  { %v2047_v56 = vadd.f32 %v2046_v45, %v5031_v20  ;;  %v3994_v33 = vpop.eup %3993  ;;  %4009 = vpow2.f32 %v3211_v48  ;;  %v3214_v6 = vmul.f32 -1.442695, %v2055_v16  ;;  %v5220_v28 = vpop.f32.mrf.mxu1 }
 0x1da   :  { %v3644_v62 = vpop.f32.mrf.mxu0  ;;  %4011 = vrcp.f32 %v2461_v52  ;;  %v2459_v8 = vadd.f32 1.0, %v3994_v33 }
 0x1db   :  { %v3212_v61 = vmul.f32 -1.442695, %v2047_v56  ;;  %v3996_v4 = vpop.eup %3995  ;;  %4013 = vpow2.f32 %v3214_v6  ;;  %v2068_v36 = vadd.f32 %v3644_v62, %v5090_v11  ;;  %v1876_v5 = vpop.f32.mrf.mxu1 }
 0x1dc   :  { %v2059_v42 = vpop.f32.mrf.mxu0  ;;  %4015 = vrcp.f32 %v2459_v8  ;;  %v2464_v27 = vadd.f32 1.0, %v3996_v4 }
 0x1dd   :  { %v2060_v24 = vadd.f32 %v2059_v42, %v5070_v21  ;;  %v3998_v20 = vpop.eup %3997  ;;  %4017 = vpow2.f32 %v3212_v61  ;;  %v3217_v3 = vmul.f32 -1.442695, %v2068_v36  ;;  %v5224_v17 = vpop.f32.mrf.mxu1 }
 0x1de   :  { %v3645_v48 = vpop.f32.mrf.mxu0  ;;  %4019 = vrcp.f32 %v2464_v27  ;;  %v2462_v18 = vadd.f32 1.0, %v3998_v20 }
 0x1df   :  { %v3215_v16 = vmul.f32 -1.442695, %v2060_v24  ;;  %v4000_v47 = vpop.eup %3999  ;;  %4021 = vpow2.f32 %v3217_v3  ;;  %v2071_v45 = vadd.f32 %v3645_v48, %v5096_v63  ;;  %v1879_v11 = vpop.f32.mrf.mxu1 }
 0x1e0   :  { %v2062_v52 = vpop.f32.mrf.mxu0  ;;  %4023 = vrcp.f32 %v2462_v18  ;;  %v2465_v56 = vadd.f32 1.0, %v4000_v47 }
 0x1e1   :  { %v2063_v33 = vadd.f32 %v2062_v52, %v5083_v55  ;;  %v4002_v21 = vpop.eup %4001  ;;  %4025 = vpow2.f32 %v3215_v16  ;;  %v3218_v6 = vmul.f32 -1.442695, %v2071_v45  ;;  %v5228_v62 = vpop.f32.mrf.mxu1 }
 0x1e2   :  { %v3648_v8 = vpop.f32.mrf.mxu0  ;;  %4027 = vrcp.f32 %v2465_v56  ;;  %v2463_v61 = vadd.f32 1.0, %v4002_v21 }
 0x1e3   :  { %v3216_v4 = vmul.f32 -1.442695, %v2063_v33  ;;  %v4004_v36 = vpop.eup %4003  ;;  %4029 = vpow2.f32 %v3218_v6  ;;  %v2084_v5 = vadd.f32 %v3648_v8, %v5114_v43  ;;  %v1884_v63 = vpop.f32.mrf.mxu1 }
 0x1e4   :  { %v2075_v42 = vpop.f32.mrf.mxu0  ;;  %v4006_v27 = vpop.eup %4005  ;;  %4031 = vrcp.f32 %v2463_v61 }
 0x1e5   :  { %v2076_v24 = vadd.f32 %v2075_v42, %v5102_v54  ;;  %v4008_v55 = vpop.eup %4007  ;;  %v2468_v20 = vadd.f32 1.0, %v4006_v27  ;;  %4033 = vpow2.f32 %v3216_v4  ;;  %v3221_v3 = vmul.f32 -1.442695, %v2084_v5  ;;  %v5232_v48 = vpop.f32.mrf.mxu1 }
 0x1e6   :  { %v3649_v18 = vpop.f32.mrf.mxu0  ;;  %v4010_v16 = vpop.eup %4009 }
 0x1e7   :  { %v3219_v47 = vmul.f32 -1.442695, %v2076_v24  ;;  %v2087_v45 = vadd.f32 %v3649_v18, %v5120_v50  ;;  %v4012_v11 = vpop.eup %4011  ;;  %4035 = vrcp.f32 %v2468_v20  ;;  %v2466_v43 = vadd.f32 1.0, %v4010_v16  ;;  %v1887_v52 = vpop.f32.mrf.mxu1 }
 0x1e8   :  { %v2078_v56 = vpop.f32.mrf.mxu0  ;;  %v4014_v33 = vpop.eup %4013  ;;  %v3403_v21 = vpack.c.bf16 %v4012_v11, %v4004_v36  ;;  %4037 = vpow2.f32 %v3221_v3 }
 0x1e9   :  { %v3222_v54 = vmul.f32 -1.442695, %v2087_v45  ;;  %v2079_v6 = vadd.f32 %v2078_v56, %v5108_v13  ;;  %v4016_v8 = vpop.eup %4015  ;;  %4039 = vrcp.f32 %v2466_v43  ;;  %v2469_v61 = vadd.f32 1.0, %v4014_v33  ;;  %v5236_v4 = vpop.f32.mrf.mxu1 }
 0x1ea   :  { %v3652_v5 = vpop.f32.mrf.mxu0  ;;  %v4018_v63 = vpop.eup %4017  ;;  %3555 = vst [vmem:[%s5472_s3 + $0x8] sm:$0xff] %v3403_v21   ;;  %v3398_v50 = vpack.c.bf16 %v4016_v8, %v4008_v55  ;;  %4041 = vpow2.f32 %v3219_v47 }
 0x1eb   :  { %v3220_v42 = vmul.f32 -1.442695, %v2079_v6  ;;  %v4020_v27 = vpop.eup %4019  ;;  %4043 = vrcp.f32 %v2469_v61  ;;  %v2467_v36 = vadd.f32 1.0, %v4018_v63  ;;  %v2100_v24 = vadd.f32 %v3652_v5, %v5138_v53  ;;  %v1892_v13 = vpop.f32.mrf.mxu1 }
 0x1ec   :  { %v2091_v20 = vpop.f32.mrf.mxu0  ;;  %v4022_v3 = vpop.eup %4021  ;;  %3399 = vst [vmem:[%s5472_s3] sm:$0xff] %v3398_v50   ;;  %4045 = vpow2.f32 %v3222_v54 }
 0x1ed   :  { %v2092_v18 = vadd.f32 %v2091_v20, %v5126_v2  ;;  %v4024_v16 = vpop.eup %4023  ;;  %4047 = vrcp.f32 %v2467_v36  ;;  %v2472_v55 = vadd.f32 1.0, %v4022_v3  ;;  %v3225_v47 = vmul.f32 -1.442695, %v2100_v24  ;;  %v5246_v45 = vpop.f32.mrf.mxu1 }
 0x1ee   :  { %v3653_v11 = vpop.f32.mrf.mxu0  ;;  %v4026_v43 = vpop.eup %4025  ;;  %4049 = vpow2.f32 %v3220_v42 }
 0x1ef   :  { %v3223_v53 = vmul.f32 -1.442695, %v2092_v18  ;;  %v2103_v52 = vadd.f32 %v3653_v11, %v5144_v32  ;;  %v4028_v56 = vpop.eup %4027  ;;  %4051 = vrcp.f32 %v2472_v55  ;;  %v2470_v33 = vadd.f32 1.0, %v4026_v43  ;;  %v1895_v21 = vpop.f32.mrf.mxu1 }
 0x1f0   :  { %v2094_v6 = vpop.f32.mrf.mxu0  ;;  %v4030_v54 = vpop.eup %4029  ;;  %v3413_v8 = vpack.c.bf16 %v4028_v56, %v4020_v27  ;;  %4053 = vpow2.f32 %v3225_v47 }
 0x1f1   :  { %v3226_v2 = vmul.f32 -1.442695, %v2103_v52  ;;  %v2095_v61 = vadd.f32 %v2094_v6, %v5132_v10  ;;  %v4032_v5 = vpop.eup %4031  ;;  %4055 = vrcp.f32 %v2470_v33  ;;  %v2473_v63 = vadd.f32 1.0, %v4030_v54  ;;  %v5250_v50 = vpop.f32.mrf.mxu1 }
 0x1f2   :  { %v3656_v42 = vpop.f32.mrf.mxu0  ;;  %v4034_v36 = vpop.eup %4033  ;;  %3557 = vst [vmem:[%s5472_s3 + $0x18] sm:$0xff] %v3413_v8   ;;  %v3408_v32 = vpack.c.bf16 %v4032_v5, %v4024_v16  ;;  %4057 = vpow2.f32 %v3223_v53 }
 0x1f3   :  { %v3224_v24 = vmul.f32 -1.442695, %v2095_v61  ;;  %4059 = vrcp.f32 %v2473_v63  ;;  %v2471_v27 = vadd.f32 1.0, %v4034_v36  ;;  %v2116_v13 = vadd.f32 %v3656_v42, %v5162_v1  ;;  %v1900_v20 = vpop.f32.mrf.mxu1 }
 0x1f4   :  { %v2107_v10 = vpop.f32.mrf.mxu0  ;;  %v4036_v3 = vpop.eup %4035  ;;  %3556 = vst [vmem:[%s5472_s3 + $0x10] sm:$0xff] %v3408_v32   ;;  %4061 = vpow2.f32 %v3226_v2 }
 0x1f5   :  { %v2108_v18 = vadd.f32 %v2107_v10, %v5150_v44  ;;  %v4038_v55 = vpop.eup %4037  ;;  %4063 = vrcp.f32 %v2471_v27  ;;  %v3229_v47 = vmul.f32 -1.442695, %v2116_v13  ;;  %v5260_v16 = vpop.f32.mrf.mxu1 }
 0x1f6   :  { %v3657_v11 = vpop.f32.mrf.mxu0  ;;  %v4040_v43 = vpop.eup %4039  ;;  %v2476_v53 = vadd.f32 1.0, %v4038_v55  ;;  %4065 = vpow2.f32 %v3224_v24 }
 0x1f7   :  { %v3227_v1 = vmul.f32 -1.442695, %v2108_v18  ;;  %v4042_v52 = vpop.eup %4041  ;;  %4067 = vpow2.f32 %v3229_v47  ;;  %v2119_v56 = vadd.f32 %v3657_v11, %v5168_v14  ;;  %v1903_v33 = vpop.f32.mrf.mxu1  ;;  %v1557_v14 = vadd.f32 %v4891_v49, %v5094_v39 }
 0x1f8   :  { %v2110_v21 = vpop.f32.mrf.mxu0  ;;  %v4044_v6 = vpop.eup %4043  ;;  %4069 = vrcp.f32 %v2476_v53  ;;  %v2474_v54 = vadd.f32 1.0, %v4042_v52 }
 0x1f9   :  { %v2111_v44 = vadd.f32 %v2110_v21, %v5156_v26  ;;  %v4046_v8 = vpop.eup %4045  ;;  %v3423_v2 = vpack.c.bf16 %v4044_v6, %v4036_v3  ;;  %4071 = vpow2.f32 %v3227_v1  ;;  %v3230_v61 = vmul.f32 -1.442695, %v2119_v56  ;;  %v5264_v5 = vpop.f32.mrf.mxu1 }
 0x1fa   :  { %v3660_v63 = vpop.f32.mrf.mxu0  ;;  %v4048_v42 = vpop.eup %4047  ;;  %4073 = vrcp.f32 %v2474_v54  ;;  %v2477_v36 = vadd.f32 1.0, %v4046_v8  ;;  %v1846_v47 = vadd.f32 %v5190_v38, %v1557_v14 }
 0x1fb   :  { %v3228_v32 = vmul.f32 -1.442695, %v2111_v44  ;;  %v4050_v24 = vpop.eup %4049  ;;  %3559 = vst [vmem:[%s5472_s3 + $0x28] sm:$0xff] %v3423_v2   ;;  %v3418_v26 = vpack.c.bf16 %v4048_v42, %v4040_v43  ;;  %4075 = vpow2.f32 %v3230_v61  ;;  %v2132_v27 = vadd.f32 %v3660_v63, %v5186_v40  ;;  %v1908_v13 = vpop.f32.mrf.mxu1 }
 0x1fc   :  { %v2123_v20 = vpop.f32.mrf.mxu0  ;;  %v4052_v10 = vpop.eup %4051  ;;  %4077 = vrcp.f32 %v2477_v36  ;;  %v2475_v3 = vadd.f32 1.0, %v4050_v24 }
 0x1fd   :  { %v2124_v18 = vadd.f32 %v2123_v20, %v5174_v60  ;;  %v4054_v55 = vpop.eup %4053  ;;  %3558 = vst [vmem:[%s5472_s3 + $0x20] sm:$0xff] %v3418_v26   ;;  %4079 = vpow2.f32 %v3228_v32  ;;  %v3233_v39 = vmul.f32 -1.442695, %v2132_v27  ;;  %v5277_v11 = vpop.f32.mrf.mxu1  ;;  %v1570_v60 = vadd.f32 %v4891_v49, %v5112_v15  ;;  %v5288_v49 = vld [vmem:[%s5471_s2] ss:$0 sm:$0xff] }
 0x1fe   :  { %v3661_v43 = vpop.f32.mrf.mxu0  ;;  %v4056_v40 = vpop.eup %4055  ;;  %4081 = vrcp.f32 %v2475_v3  ;;  %v2480_v53 = vadd.f32 1.0, %v4054_v55  ;;  %v1573_v15 = vadd.f32 %v5288_v49, %v5118_v51 }
 0x1ff   :  { %v3231_v1 = vmul.f32 -1.442695, %v2124_v18  ;;  %v4058_v52 = vpop.eup %4057  ;;  %4083 = vpow2.f32 %v3233_v39  ;;  %v2135_v56 = vadd.f32 %v3661_v43, %v1846_v47  ;;  %v1911_v38 = vpop.f32.mrf.mxu1  ;;  %v1859_v8 = vadd.f32 %v5204_v19, %v1570_v60 }
 0x200   :  { %v2126_v33 = vpop.f32.mrf.mxu0  ;;  %v4060_v21 = vpop.eup %4059  ;;  %4085 = vrcp.f32 %v2480_v53  ;;  %v2478_v6 = vadd.f32 1.0, %v4058_v52  ;;  %v1862_v20 = vadd.f32 %v5208_v46, %v1573_v15  ;;  %v1578_v38 = vadd.f32 %v5288_v49, %v5124_v0 }
 0x201   :  { %v2127_v54 = vadd.f32 %v2126_v33, %v5180_v9  ;;  %v4062_v44 = vpop.eup %4061  ;;  %v3433_v2 = vpack.c.bf16 %v4060_v21, %v4052_v10  ;;  %4087 = vpow2.f32 %v3231_v1  ;;  %v3234_v61 = vmul.f32 -1.442695, %v2135_v56  ;;  %v5283_v63 = vpop.f32.mrf.mxu1 }
 0x202   :  { %v3664_v42 = vpop.f32.mrf.mxu0  ;;  %v4064_v36 = vpop.eup %4063  ;;  %4089 = vrcp.f32 %v2478_v6  ;;  %v2481_v9 = vadd.f32 1.0, %v4062_v44  ;;  %v1586_v1 = vadd.f32 %v5288_v49, %v5136_v35 }
 0x203   :  { %v3232_v32 = vmul.f32 -1.442695, %v2127_v54  ;;  %v4066_v24 = vpop.eup %4065  ;;  %3561 = vst [vmem:[%s5472_s3 + $0x38] sm:$0xff] %v3433_v2   ;;  %v3428_v19 = vpack.c.bf16 %v4064_v36, %v4056_v40  ;;  %4091 = vpow2.f32 %v3234_v61  ;;  %v2148_v14 = vadd.f32 %v3664_v42, %v1859_v8  ;;  %v1916_v26 = vpop.f32.mrf.mxu1 }
 0x204   :  { %v2139_v27 = vpop.f32.mrf.mxu0  ;;  %v4068_v13 = vpop.eup %4067  ;;  %4093 = vrcp.f32 %v2481_v9  ;;  %v2479_v10 = vadd.f32 1.0, %v4066_v24  ;;  %v1589_v54 = vadd.f32 %v5288_v49, %v5142_v37  ;;  %v1875_v44 = vadd.f32 %v5220_v28, %v1586_v1 }
 0x205   :  { %v2140_v51 = vadd.f32 %v2139_v27, %v5194_v23  ;;  %v4070_v3 = vpop.eup %4069  ;;  %3560 = vst [vmem:[%s5472_s3 + $0x30] sm:$0xff] %v3428_v19   ;;  %v2484_v18 = vadd.f32 1.0, %v4068_v13  ;;  %4095 = vpow2.f32 %v3232_v32  ;;  %v3237_v55 = vmul.f32 -1.442695, %v2148_v14  ;;  %v5300_v47 = vpop.f32.mrf.mxu1 }
 0x206   :  { %v3665_v39 = vpop.f32.mrf.mxu0  ;;  %v4072_v43 = vpop.eup %4071  ;;  %4097 = vrcp.f32 %v2479_v10  ;;  %v1867_v42 = vadd.f32 %v5212_v34, %v1578_v38  ;;  %v1878_v19 = vadd.f32 %v5224_v17, %v1589_v54 }
 0x207   :  { %v3235_v40 = vmul.f32 -1.442695, %v2140_v51  ;;  %v2151_v53 = vadd.f32 %v3665_v39, %v1862_v20  ;;  %v4074_v46 = vpop.eup %4073  ;;  %4099 = vrcp.f32 %v2484_v18  ;;  %v2482_v23 = vadd.f32 1.0, %v4072_v43  ;;  %v1919_v52 = vpop.f32.mrf.mxu1 }
 0x208   :  { %v2142_v60 = vpop.f32.mrf.mxu0  ;;  %v4076_v56 = vpop.eup %4075  ;;  %4101 = vpow2.f32 %v3237_v55  ;;  %v1602_v55 = vadd.f32 %v5288_v49, %v5160_v57 }
 0x209   :  { %v3238_v33 = vmul.f32 -1.442695, %v2151_v53  ;;  %v2143_v21 = vadd.f32 %v2142_v60, %v5200_v12  ;;  %v4078_v6 = vpop.eup %4077  ;;  %4103 = vrcp.f32 %v2482_v23  ;;  %v2485_v35 = vadd.f32 1.0, %v4076_v56  ;;  %v5310_v8 = vpop.f32.mrf.mxu1 }
 0x20a   :  { %v3668_v2 = vpop.f32.mrf.mxu0  ;;  %v4080_v61 = vpop.eup %4079  ;;  %v3443_v36 = vpack.c.bf16 %v4078_v6, %v4070_v3  ;;  %4105 = vpow2.f32 %v3235_v40  ;;  %v1581_v12 = vadd.f32 %v5288_v49, %v5130_v25  ;;  %v1891_v52 = vadd.f32 %v5236_v4, %v1602_v55 }
 0x20b   :  { %v3236_v0 = vmul.f32 -1.442695, %v2143_v21  ;;  %v4082_v15 = vpop.eup %4081  ;;  %4107 = vrcp.f32 %v2485_v35  ;;  %v2483_v9 = vadd.f32 1.0, %v4080_v61  ;;  %v2164_v37 = vadd.f32 %v3668_v2, %v1875_v44  ;;  %v1924_v32 = vpop.f32.mrf.mxu1 }
 0x20c   :  { %v2155_v28 = vpop.f32.mrf.mxu0  ;;  %v4084_v24 = vpop.eup %4083  ;;  %3563 = vst [vmem:[%s5472_s3 + $0x48] sm:$0xff] %v3443_v36   ;;  %v3438_v34 = vpack.c.bf16 %v4082_v15, %v4074_v46  ;;  %4109 = vpow2.f32 %v3238_v33  ;;  %v1870_v51 = vadd.f32 %v5216_v59, %v1581_v12  ;;  %v1594_v46 = vadd.f32 %v5288_v49, %v5148_v31 }
 0x20d   :  { %v2156_v14 = vadd.f32 %v2155_v28, %v1867_v42  ;;  %v4086_v26 = vpop.eup %4085  ;;  %4111 = vrcp.f32 %v2483_v9  ;;  %v2488_v27 = vadd.f32 1.0, %v4084_v24  ;;  %v3241_v13 = vmul.f32 -1.442695, %v2164_v37  ;;  %v5319_v25 = vpop.f32.mrf.mxu1 }
 0x20e   :  { %v3669_v20 = vpop.f32.mrf.mxu0  ;;  %v4088_v10 = vpop.eup %4087  ;;  %3562 = vst [vmem:[%s5472_s3 + $0x40] sm:$0xff] %v3438_v34   ;;  %4113 = vpow2.f32 %v3236_v0  ;;  %v1883_v33 = vadd.f32 %v5228_v62, %v1594_v46  ;;  %v1605_v31 = vadd.f32 %v5288_v49, %v5166_v29  ;;  %v1597_v42 = vadd.f32 %v5288_v49, %v5154_v30 }
 0x20f   :  { %v3239_v17 = vmul.f32 -1.442695, %v2156_v14  ;;  %v2167_v3 = vadd.f32 %v3669_v20, %v1878_v19  ;;  %v4090_v18 = vpop.eup %4089  ;;  %4115 = vrcp.f32 %v2488_v27  ;;  %v2486_v39 = vadd.f32 1.0, %v4088_v10  ;;  %v1927_v43 = vpop.f32.mrf.mxu1 }
 0x210   :  { %v2158_v40 = vpop.f32.mrf.mxu0  ;;  %v4092_v53 = vpop.eup %4091  ;;  %4117 = vpow2.f32 %v3241_v13  ;;  %v1894_v15 = vadd.f32 %v5246_v45, %v1605_v31  ;;  %v1886_v32 = vadd.f32 %v5232_v48, %v1597_v42  ;;  %v1618_v19 = vadd.f32 %v5288_v49, %v5184_v7 }
 0x211   :  { %v3242_v59 = vmul.f32 -1.442695, %v2167_v3  ;;  %v2159_v1 = vadd.f32 %v2158_v40, %v1870_v51  ;;  %v4094_v23 = vpop.eup %4093  ;;  %4119 = vrcp.f32 %v2486_v39  ;;  %v2489_v60 = vadd.f32 1.0, %v4092_v53  ;;  %v5330_v56 = vpop.f32.mrf.mxu1 }
 0x212   :  { %v3672_v38 = vpop.f32.mrf.mxu0  ;;  %v4096_v57 = vpop.eup %4095  ;;  %v3453_v21 = vpack.c.bf16 %v4094_v23, %v4086_v26  ;;  %4121 = vpow2.f32 %v3239_v17  ;;  %v1610_v27 = vadd.f32 %v5288_v49, %v5172_v41  ;;  %v1907_v51 = vadd.f32 %v5264_v5, %v1618_v19 }
 0x213   :  { %v3240_v6 = vmul.f32 -1.442695, %v2159_v1  ;;  %v4098_v54 = vpop.eup %4097  ;;  %4123 = vrcp.f32 %v2489_v60  ;;  %v2487_v44 = vadd.f32 1.0, %v4096_v57  ;;  %v2180_v35 = vadd.f32 %v3672_v38, %v1891_v52  ;;  %v1932_v2 = vpop.f32.mrf.mxu1 }
 0x214   :  { %v2171_v4 = vpop.f32.mrf.mxu0  ;;  %v4100_v61 = vpop.eup %4099  ;;  %3565 = vst [vmem:[%s5472_s3 + $0x58] sm:$0xff] %v3453_v21   ;;  %v3448_v62 = vpack.c.bf16 %v4098_v54, %v4090_v18  ;;  %4125 = vpow2.f32 %v3242_v59  ;;  %v1899_v55 = vadd.f32 %v5250_v50, %v1610_v27  ;;  %v1621_v41 = vadd.f32 %v5288_v49, %v5188_v22  ;;  %v5490_v2 = vld [vmem:[#allocation4_spill] sm:$0xff] }
 0x215   :  { %v2172_v36 = vadd.f32 %v2171_v4, %v1883_v33  ;;  %v4102_v0 = vpop.eup %4101  ;;  %4127 = vrcp.f32 %v2487_v44  ;;  %v3245_v29 = vmul.f32 -1.442695, %v2180_v35  ;;  %v5341_v12 = vpop.f32.mrf.mxu1  ;;  %v1613_v50 = vadd.f32 %v5288_v49, %v5178_v58  ;;  %v5489_v44 = vld [vmem:[#allocation2_spill] sm:$0xff] }
 0x216   :  { %v3673_v9 = vpop.f32.mrf.mxu0  ;;  %v4104_v37 = vpop.eup %4103  ;;  %3564 = vst [vmem:[%s5472_s3 + $0x50] sm:$0xff] %v3448_v62   ;;  %v2492_v30 = vadd.f32 1.0, %v4102_v0  ;;  %4129 = vpow2.f32 %v3240_v6  ;;  %v1910_v22 = vadd.f32 %v5277_v11, %v1621_v41  ;;  %v1626_v35 = vadd.f32 %v5288_v49, %v5489_v44 }
 0x217   :  { %v3243_v28 = vmul.f32 -1.442695, %v2172_v36  ;;  %v4106_v24 = vpop.eup %4105  ;;  %4131 = vpow2.f32 %v3245_v29  ;;  %v2183_v45 = vadd.f32 %v3673_v9, %v1894_v15  ;;  %v1935_v34 = vpop.f32.mrf.mxu1  ;;  %v1902_v6 = vadd.f32 %v5260_v16, %v1613_v50  ;;  %v5491_v36 = vld [vmem:[#allocation5_spill] sm:$0xff] }
 0x218   :  { %v2174_v14 = vpop.f32.mrf.mxu0  ;;  %v4108_v26 = vpop.eup %4107  ;;  %4133 = vrcp.f32 %v2492_v30  ;;  %v2490_v48 = vadd.f32 1.0, %v4106_v24  ;;  %v1634_v4 = vadd.f32 %v5288_v49, %v5490_v2  ;;  %v1637_v0 = vadd.f32 %v5288_v49, %v5491_v36 }
 0x219   :  { %v2175_v13 = vadd.f32 %v2174_v14, %v1886_v32  ;;  %v4110_v20 = vpop.eup %4109  ;;  %v3463_v10 = vpack.c.bf16 %v4108_v26, %v4100_v61  ;;  %4135 = vpow2.f32 %v3243_v28  ;;  %v3246_v17 = vmul.f32 -1.442695, %v2183_v45  ;;  %v5352_v3 = vpop.f32.mrf.mxu1  ;;  %v5492_v26 = vld [vmem:[#allocation3_spill] sm:$0xff] }
 0x21a   :  { %v3676_v7 = vpop.f32.mrf.mxu0  ;;  %v4112_v18 = vpop.eup %4111  ;;  %4137 = vrcp.f32 %v2490_v48  ;;  %v2493_v39 = vadd.f32 1.0, %v4110_v20  ;;  %v1915_v19 = vadd.f32 %v5283_v63, %v1626_v35  ;;  %v1629_v27 = vadd.f32 %v5288_v49, %v5492_v26 }
 0x21b   :  { %v3244_v43 = vmul.f32 -1.442695, %v2175_v13  ;;  %v4114_v40 = vpop.eup %4113  ;;  %3567 = vst [vmem:[%s5472_s3 + $0x68] sm:$0xff] %v3463_v10   ;;  %v3458_v5 = vpack.c.bf16 %v4112_v18, %v4104_v37  ;;  %4139 = vpow2.f32 %v3246_v17  ;;  %v2196_v53 = vadd.f32 %v3676_v7, %v1907_v51  ;;  %v1940_v46 = vpop.f32.mrf.mxu1 }
 0x21c   :  { %v2187_v59 = vpop.f32.mrf.mxu0  ;;  %v4116_v1 = vpop.eup %4115  ;;  %4141 = vrcp.f32 %v2493_v39  ;;  %v2491_v23 = vadd.f32 1.0, %v4114_v40  ;;  %v1923_v37 = vadd.f32 %v5310_v8, %v1634_v4  ;;  %v1926_v51 = vadd.f32 %v5319_v25, %v1637_v0  ;;  %v5493_v46 = vld [vmem:[#allocation8_spill] sm:$0xff] }
 0x21d   :  { %v2188_v52 = vadd.f32 %v2187_v59, %v1899_v55  ;;  %v4118_v60 = vpop.eup %4117  ;;  %3566 = vst [vmem:[%s5472_s3 + $0x60] sm:$0xff] %v3458_v5   ;;  %4143 = vpow2.f32 %v3244_v43  ;;  %v3249_v38 = vmul.f32 -1.442695, %v2196_v53  ;;  %v5366_v57 = vpop.f32.mrf.mxu1  ;;  %v1918_v41 = vadd.f32 %v5300_v47, %v1629_v27  ;;  %v5495_v47 = vld [vmem:[#allocation9_spill] sm:$0xff] }
 0x21e   :  { %v3677_v33 = vpop.f32.mrf.mxu0  ;;  %v4120_v21 = vpop.eup %4119  ;;  %4145 = vrcp.f32 %v2491_v23  ;;  %v2496_v58 = vadd.f32 1.0, %v4118_v60  ;;  %v1650_v59 = vadd.f32 %v5288_v49, %v5493_v46  ;;  %v5494_v60 = vld [vmem:[#allocation6_spill] sm:$0xff] }
 0x21f   :  { %v3247_v54 = vmul.f32 -1.442695, %v2188_v52  ;;  %v4122_v31 = vpop.eup %4121  ;;  %4147 = vpow2.f32 %v3249_v38  ;;  %v2199_v11 = vadd.f32 %v3677_v33, %v1910_v22  ;;  %v1943_v61 = vpop.f32.mrf.mxu1  ;;  %v1642_v22 = vadd.f32 %v5288_v49, %v5494_v60 }
 0x220   :  { %v2190_v42 = vpop.f32.mrf.mxu0  ;;  %v4124_v62 = vpop.eup %4123  ;;  %4149 = vrcp.f32 %v2496_v58  ;;  %v2494_v16 = vadd.f32 1.0, %v4122_v31 }
 0x221   :  { %v2191_v15 = vadd.f32 %v2190_v42, %v1902_v6  ;;  %v4126_v29 = vpop.eup %4125  ;;  %v3473_v9 = vpack.c.bf16 %v4124_v62, %v4116_v1  ;;  %4151 = vpow2.f32 %v3247_v54  ;;  %v3250_v32 = vmul.f32 -1.442695, %v2199_v11  ;;  %v5376_v30 = vpop.f32.mrf.mxu1  ;;  %v5496_v42 = vld [vmem:[#allocation7_spill] sm:$0xff] }
 0x222   :  { %v3680_v28 = vpop.f32.mrf.mxu0  ;;  %v4128_v24 = vpop.eup %4127  ;;  %4153 = vrcp.f32 %v2494_v16  ;;  %v2497_v45 = vadd.f32 1.0, %v4126_v29  ;;  %v1653_v6 = vadd.f32 %v5288_v49, %v5495_v47  ;;  %v1939_v54 = vadd.f32 %v5352_v3, %v1650_v59  ;;  %v5499_v59 = vld [vmem:[#allocation13_spill] sm:$0xff] }
 0x223   :  { %v3248_v34 = vmul.f32 -1.442695, %v2191_v15  ;;  %v4130_v14 = vpop.eup %4129  ;;  %3569 = vst [vmem:[%s5472_s3 + $0x78] sm:$0xff] %v3473_v9   ;;  %v3468_v8 = vpack.c.bf16 %v4128_v24, %v4120_v21  ;;  %4155 = vpow2.f32 %v3250_v32  ;;  %v2212_v48 = vadd.f32 %v3680_v28, %v1923_v37  ;;  %v1948_v13 = vpop.f32.mrf.mxu1 }
 0x224   :  { %v2203_v20 = vpop.f32.mrf.mxu0  ;;  %v4132_v10 = vpop.eup %4131  ;;  %4157 = vrcp.f32 %v2497_v45  ;;  %v2495_v63 = vadd.f32 1.0, %v4130_v14  ;;  %v1931_v4 = vadd.f32 %v5330_v56, %v1642_v22  ;;  %v1645_v62 = vadd.f32 %v5288_v49, %v5496_v42 }
 0x225   :  { %v2204_v17 = vadd.f32 %v2203_v20, %v1915_v19  ;;  %v4134_v7 = vpop.eup %4133  ;;  %3568 = vst [vmem:[%s5472_s3 + $0x70] sm:$0xff] %v3468_v8   ;;  %v2500_v18 = vadd.f32 1.0, %v4132_v10  ;;  %4159 = vpow2.f32 %v3248_v34  ;;  %v3253_v55 = vmul.f32 -1.442695, %v2212_v48  ;;  %v5388_v39 = vpop.f32.mrf.mxu1 }
 0x226   :  { %v3681_v43 = vpop.f32.mrf.mxu0  ;;  %v4136_v40 = vpop.eup %4135  ;;  %4161 = vrcp.f32 %v2495_v63  ;;  %v1942_v9 = vadd.f32 %v5366_v57, %v1653_v6  ;;  %v1934_v34 = vadd.f32 %v5341_v12, %v1645_v62  ;;  %v5497_v57 = vld [vmem:[#allocation12_spill] sm:$0xff] }
 0x227   :  { %v3251_v5 = vmul.f32 -1.442695, %v2204_v17  ;;  %v2215_v25 = vadd.f32 %v3681_v43, %v1926_v51  ;;  %v4138_v53 = vpop.eup %4137  ;;  %4163 = vrcp.f32 %v2500_v18  ;;  %v2498_v1 = vadd.f32 1.0, %v4136_v40  ;;  %v1951_v50 = vpop.f32.mrf.mxu1  ;;  %v5498_v51 = vld [vmem:[#allocation10_spill] sm:$0xff] }
 0x228   :  { %v2206_v23 = vpop.f32.mrf.mxu0  ;;  %v4140_v52 = vpop.eup %4139  ;;  %4165 = vpow2.f32 %v3253_v55  ;;  %v1666_v8 = vadd.f32 %v5288_v49, %v5497_v57  ;;  %v1658_v63 = vadd.f32 %v5288_v49, %v5498_v51 }
 0x229   :  { %v3254_v38 = vmul.f32 -1.442695, %v2215_v25  ;;  %v2207_v33 = vadd.f32 %v2206_v23, %v1918_v41  ;;  %v4142_v21 = vpop.eup %4141  ;;  %4167 = vrcp.f32 %v2498_v1  ;;  %v2501_v58 = vadd.f32 1.0, %v4140_v52  ;;  %v1954_v31 = vpop.f32.mrf.mxu1 }
 0x22a   :  { %v3684_v44 = vpop.f32.mrf.mxu0  ;;  %v4144_v35 = vpop.eup %4143  ;;  %v3483_v2 = vpack.c.bf16 %v4142_v21, %v4134_v7  ;;  %4169 = vpow2.f32 %v3251_v5  ;;  %v1955_v55 = vadd.f32 %v1954_v31, %v1666_v8  ;;  %v1947_v25 = vadd.f32 %v5376_v30, %v1658_v63 }
 0x22b   :  { %v3252_v11 = vmul.f32 -1.442695, %v2207_v33  ;;  %v4146_v61 = vpop.eup %4145  ;;  %4171 = vrcp.f32 %v2501_v58  ;;  %v2499_v36 = vadd.f32 1.0, %v4144_v35  ;;  %v2228_v0 = vadd.f32 %v3684_v44, %v1939_v54  ;;  %v1956_v16 = vpop.f32.mrf.mxu1 }
 0x22c   :  { %v2219_v15 = vpop.f32.mrf.mxu0  ;;  %v4148_v29 = vpop.eup %4147  ;;  %3571 = vst [vmem:[%s5472_s3 + $0x88] sm:$0xff] %v3483_v2   ;;  %v3478_v3 = vpack.c.bf16 %v4146_v61, %v4138_v53  ;;  %4173 = vpow2.f32 %v3254_v38  ;;  %v1669_v1 = vadd.f32 %v5288_v49, %v5499_v59  ;;  %v5500_v38 = vld [vmem:[#allocation11_spill] sm:$0xff]  ;;  %v5501_v61 = vld [vmem:[#allocation14_spill] sm:$0xff] }
 0x22d   :  { %v2220_v56 = vadd.f32 %v2219_v15, %v1931_v4  ;;  %v4150_v37 = vpop.eup %4149  ;;  %4175 = vrcp.f32 %v2499_v36  ;;  %v2504_v32 = vadd.f32 1.0, %v4148_v29  ;;  %v3257_v28 = vmul.f32 -1.442695, %v2228_v0  ;;  %v1957_v24 = vpop.f32.mrf.mxu1  ;;  %v5502_v15 = vld [vmem:[#allocation16_spill] sm:$0xff] }
 0x22e   :  { %v3685_v19 = vpop.f32.mrf.mxu0  ;;  %v4152_v45 = vpop.eup %4151  ;;  %3570 = vst [vmem:[%s5472_s3 + $0x80] sm:$0xff] %v3478_v3   ;;  %4177 = vpow2.f32 %v3252_v11  ;;  %v1661_v33 = vadd.f32 %v5288_v49, %v5500_v38  ;;  %v1958_v6 = vadd.f32 %v1957_v24, %v1669_v1  ;;  %v1674_v42 = vadd.f32 %v5288_v49, %v5501_v61 }
 0x22f   :  { %v3255_v14 = vmul.f32 -1.442695, %v2220_v56  ;;  %v2231_v26 = vadd.f32 %v3685_v19, %v1942_v9  ;;  %v4154_v27 = vpop.eup %4153  ;;  %4179 = vrcp.f32 %v2504_v32  ;;  %v2502_v48 = vadd.f32 1.0, %v4152_v45  ;;  %v1959_v13 = vpop.f32.mrf.mxu1 }
 0x230   :  { %v2222_v20 = vpop.f32.mrf.mxu0  ;;  %v4156_v10 = vpop.eup %4155  ;;  %4181 = vpow2.f32 %v3257_v28  ;;  %v1950_v2 = vadd.f32 %v5388_v39, %v1661_v33  ;;  %v1682_v29 = vadd.f32 %v5288_v49, %v5502_v15 }
 0x231   :  { %v3258_v17 = vmul.f32 -1.442695, %v2231_v26  ;;  %v2223_v7 = vadd.f32 %v2222_v20, %v1934_v34  ;;  %v4158_v18 = vpop.eup %4157  ;;  %4183 = vrcp.f32 %v2502_v48  ;;  %v2505_v12 = vadd.f32 1.0, %v4156_v10  ;;  %v1962_v43 = vpop.f32.mrf.mxu1 }
 0x232   :  { %v3688_v40 = vpop.f32.mrf.mxu0  ;;  %v4160_v41 = vpop.eup %4159  ;;  %v3493_v5 = vpack.c.bf16 %v4158_v18, %v4150_v37  ;;  %4185 = vpow2.f32 %v3255_v14  ;;  %v1963_v39 = vadd.f32 %v1962_v43, %v1674_v42 }
 0x233   :  { %v3256_v53 = vmul.f32 -1.442695, %v2223_v7  ;;  %v4162_v46 = vpop.eup %4161  ;;  %4187 = vrcp.f32 %v2505_v12  ;;  %v2503_v50 = vadd.f32 1.0, %v4160_v41  ;;  %v2244_v23 = vadd.f32 %v3688_v40, %v1955_v55  ;;  %v1964_v52 = vpop.f32.mrf.mxu1  ;;  %v5504_v7 = vld [vmem:[#allocation17_spill] sm:$0xff] }
 0x234   :  { %v2235_v60 = vpop.f32.mrf.mxu0  ;;  %v4164_v22 = vpop.eup %4163  ;;  %3573 = vst [vmem:[%s5472_s3 + $0x98] sm:$0xff] %v3493_v5   ;;  %v3488_v30 = vpack.c.bf16 %v4162_v46, %v4154_v27  ;;  %4189 = vpow2.f32 %v3258_v17  ;;  %v5503_v27 = vld [vmem:[#allocation15_spill] sm:$0xff]  ;;  %v1685_v18 = vadd.f32 %v5288_v49, %v5504_v7 }
 0x235   :  { %v2236_v21 = vadd.f32 %v2235_v60, %v1947_v25  ;;  %v4166_v47 = vpop.eup %4165  ;;  %4191 = vrcp.f32 %v2503_v50  ;;  %v3261_v58 = vmul.f32 -1.442695, %v2244_v23  ;;  %v1965_v54 = vpop.f32.mrf.mxu1  ;;  %v1677_v57 = vadd.f32 %v5288_v49, %v5503_v27 }
 0x236   :  { %v3689_v31 = vpop.f32.mrf.mxu0  ;;  %v4168_v44 = vpop.eup %4167  ;;  %3572 = vst [vmem:[%s5472_s3 + $0x90] sm:$0xff] %v3488_v30   ;;  %v2508_v35 = vadd.f32 1.0, %v4166_v47  ;;  %4193 = vpow2.f32 %v3256_v53 }
 0x237   :  { %v3259_v4 = vmul.f32 -1.442695, %v2236_v21  ;;  %v4170_v11 = vpop.eup %4169  ;;  %4195 = vpow2.f32 %v3261_v58  ;;  %v2247_v62 = vadd.f32 %v3689_v31, %v1958_v6  ;;  %v1967_v36 = vpop.f32.mrf.mxu1  ;;  %v1966_v41 = vadd.f32 %v1965_v54, %v1677_v57 }
 0x238   :  { %v2238_v0 = vpop.f32.mrf.mxu0  ;;  %v4172_v16 = vpop.eup %4171  ;;  %4197 = vrcp.f32 %v2508_v35  ;;  %v2506_v3 = vadd.f32 1.0, %v4170_v11 }
 0x239   :  { %v2239_v9 = vadd.f32 %v2238_v0, %v1950_v2  ;;  %v4174_v56 = vpop.eup %4173  ;;  %v3503_v37 = vpack.c.bf16 %v4172_v16, %v4164_v22  ;;  %4199 = vpow2.f32 %v3259_v4  ;;  %v3262_v32 = vmul.f32 -1.442695, %v2247_v62  ;;  %v1970_v28 = vpop.f32.mrf.mxu1 }
 0x23a   :  { %v3692_v24 = vpop.f32.mrf.mxu0  ;;  %v4176_v19 = vpop.eup %4175  ;;  %4201 = vrcp.f32 %v2506_v3  ;;  %v2509_v45 = vadd.f32 1.0, %v4174_v56  ;;  %v1971_v14 = vadd.f32 %v1970_v28, %v1682_v29 }
 0x23b   :  { %v3260_v34 = vmul.f32 -1.442695, %v2239_v9  ;;  %v4178_v26 = vpop.eup %4177  ;;  %3575 = vst [vmem:[%s5472_s3 + $0xa8] sm:$0xff] %v3503_v37   ;;  %v3498_v8 = vpack.c.bf16 %v4176_v19, %v4168_v44  ;;  %4203 = vpow2.f32 %v3262_v32  ;;  %v1972_v48 = vpop.f32.mrf.mxu1 }
 0x23c   :  { %v2251_v13 = vpop.f32.mrf.mxu0  ;;  %v4180_v20 = vpop.eup %4179  ;;  %4205 = vrcp.f32 %v2509_v45  ;;  %v2507_v10 = vadd.f32 1.0, %v4178_v26  ;;  %v2260_v51 = vadd.f32 %v3692_v24, %v1971_v14 }
 0x23d   :  { %v2252_v63 = vadd.f32 %v2251_v13, %v1963_v39  ;;  %v4182_v17 = vpop.eup %4181  ;;  %3574 = vst [vmem:[%s5472_s3 + $0xa0] sm:$0xff] %v3498_v8   ;;  %4207 = vpow2.f32 %v3260_v34  ;;  %v1973_v12 = vpop.f32.mrf.mxu1 }
 0x23e   :  { %v3693_v55 = vpop.f32.mrf.mxu0  ;;  %v4184_v43 = vpop.eup %4183  ;;  %4209 = vrcp.f32 %v2507_v10  ;;  %v2512_v40 = vadd.f32 1.0, %v4182_v17  ;;  %v3265_v5 = vmul.f32 -1.442695, %v2260_v51  ;;  %v1974_v46 = vadd.f32 %v1973_v12, %v1685_v18 }
 0x23f   :  { %v4186_v25 = vpop.eup %4185  ;;  %v3263_v53 = vmul.f32 -1.442695, %v2252_v63  ;;  %v1975_v59 = vpop.f32.mrf.mxu1 }
 0x240   :  { %v2254_v1 = vpop.f32.mrf.mxu0  ;;  %v4188_v50 = vpop.eup %4187  ;;  %4211 = vrcp.f32 %v2512_v40  ;;  %v2510_v49 = vadd.f32 1.0, %v4186_v25  ;;  %v2263_v22 = vadd.f32 %v3693_v55, %v1974_v46 }
 0x241   :  { %v2255_v23 = vadd.f32 %v2254_v1, %v1966_v41  ;;  %v4190_v52 = vpop.eup %4189  ;;  %v3513_v60 = vpack.c.bf16 %v4188_v50, %v4180_v20  ;;  %4213 = vpow2.f32 %v3265_v5 }
 0x242   :  { %v4192_v38 = vpop.eup %4191  ;;  %4215 = vrcp.f32 %v2510_v49  ;;  %v2513_v33 = vadd.f32 1.0, %v4190_v52  ;;  %v3266_v47 = vmul.f32 -1.442695, %v2263_v22 }
 0x243   :  { %v4194_v30 = vpop.eup %4193  ;;  %3577 = vst [vmem:[%s5472_s3 + $0xb8] sm:$0xff] %v3513_v60   ;;  %v3508_v21 = vpack.c.bf16 %v4192_v38, %v4184_v43  ;;  %4217 = vpow2.f32 %v3263_v53  ;;  %v3264_v54 = vmul.f32 -1.442695, %v2255_v23 }
 0x244   :  { %v4196_v6 = vpop.eup %4195  ;;  %4219 = vrcp.f32 %v2513_v33  ;;  %v2511_v58 = vadd.f32 1.0, %v4194_v30 }
 0x245   :  { %v4198_v31 = vpop.eup %4197  ;;  %3576 = vst [vmem:[%s5472_s3 + $0xb0] sm:$0xff] %v3508_v21   ;;  %4221 = vpow2.f32 %v3266_v47  ;;  %v2516_v35 = vadd.f32 1.0, %v4196_v6 }
 0x246   :  { %v4200_v44 = vpop.eup %4199  ;;  %4223 = vrcp.f32 %v2511_v58 }
 0x247   :  { %v4202_v2 = vpop.eup %4201  ;;  %v2514_v11 = vadd.f32 1.0, %v4200_v44  ;;  %4225 = vpow2.f32 %v3264_v54 }
 0x248   :  { %v4204_v4 = vpop.eup %4203  ;;  %4227 = vrcp.f32 %v2516_v35 }
 0x249   :  { %v4206_v61 = vpop.eup %4205  ;;  %v2517_v42 = vadd.f32 1.0, %v4204_v4 }
 0x24a   :  { %v4208_v62 = vpop.eup %4207  ;;  %v3523_v36 = vpack.c.bf16 %v4206_v61, %v4198_v31 }
 0x24b   :  { %v4210_v0 = vpop.eup %4209  ;;  %4229 = vrcp.f32 %v2517_v42  ;;  %v2515_v16 = vadd.f32 1.0, %v4208_v62 }
 0x24c   :  { %3579 = vst [vmem:[%s5472_s3 + $0xc8] sm:$0xff] %v3523_v36   ;;  %v3518_v15 = vpack.c.bf16 %v4210_v0, %v4202_v2  ;;  %4231 = vrcp.f32 %v2514_v11 }
 0x24d   :  { %v4212_v29 = vpop.eup %4211  ;;  %4233 = vrcp.f32 %v2515_v16 }
 0x24e   :  { %v4214_v3 = vpop.eup %4213  ;;  %3578 = vst [vmem:[%s5472_s3 + $0xc0] sm:$0xff] %v3518_v15  }
 0x24f   :  { %v4216_v9 = vpop.eup %4215  ;;  %v2520_v37 = vadd.f32 1.0, %v4214_v3 }
 0x250   :  { %v4218_v56 = vpop.eup %4217 }
 0x251   :  { %v4220_v39 = vpop.eup %4219  ;;  %v2518_v19 = vadd.f32 1.0, %v4218_v56  ;;  %4235 = vrcp.f32 %v2520_v37 }
 0x252   :  { %v4222_v32 = vpop.eup %4221  ;;  %v3533_v28 = vpack.c.bf16 %v4220_v39, %v4212_v29 }
 0x253   :  { %v4224_v24 = vpop.eup %4223  ;;  %v2521_v45 = vadd.f32 1.0, %v4222_v32 }
 0x254   :  { %3581 = vst [vmem:[%s5472_s3 + $0xd8] sm:$0xff] %v3533_v28   ;;  %v3528_v34 = vpack.c.bf16 %v4224_v24, %v4216_v9  ;;  %v4226_v14 = vpop.eup %4225 }
 0x255   :  { %4237 = vrcp.f32 %v2521_v45  ;;  %v2519_v26 = vadd.f32 1.0, %v4226_v14  ;;  %v4228_v27 = vpop.eup %4227 }
 0x256   :  { %3580 = vst [vmem:[%s5472_s3 + $0xd0] sm:$0xff] %v3528_v34   ;;  %4239 = vrcp.f32 %v2518_v19 }
 0x257   :  { %4241 = vrcp.f32 %v2519_v26 }
 0x258   :  { %v4230_v57 = vpop.eup %4229 }
 0x259   :  { %v4232_v8 = vpop.eup %4231  ;;  %v3543_v48 = vpack.c.bf16 %v4230_v57, %v4228_v27 }
 0x25a   :  { %v4234_v13 = vpop.eup %4233 }
 0x25b   :  { %3583 = vst [vmem:[%s5472_s3 + $0xe8] sm:$0xff] %v3543_v48   ;;  %v3538_v20 = vpack.c.bf16 %v4234_v13, %v4232_v8 }
 0x25d   :  { %3582 = vst [vmem:[%s5472_s3 + $0xe0] sm:$0xff] %v3538_v20  }
 0x25e   :  { %v4236_v10 = vpop.eup %4235 }
 0x262   :  { %v4238_v51 = vpop.eup %4237 }
 0x263   :  { %v3553_v63 = vpack.c.bf16 %v4238_v51, %v4236_v10  ;;  %v4240_v17 = vpop.eup %4239 }
 0x264   :  { %v4242_v7 = vpop.eup %4241 }
 0x265   :  { %3585 = vst [vmem:[%s5472_s3 + $0xf8] sm:$0xff] %v3553_v63   ;;  %v3548_v18 = vpack.c.bf16 %v4242_v7, %v4240_v17 }
 0x267   :  { %3584 = vst [vmem:[%s5472_s3 + $0xf0] sm:$0xff] %v3548_v18  }

// kernel: autoencoder_forward.10
= control target key start
LH: loop header
LB: loop body
LE: loop exit
PB: predicated region body
PF: predicated region fallthrough
CT: control target
= control target key end

     0   :  { %s8080_s1 = inlined_call_operand.vmem [shape: bf16[1152,512], index: 1, kind: input, shape index: {}]   ;;  %s8081_s0 = inlined_call_operand.vmem [shape: bf16[128,1152], index: 0, kind: input, shape index: {}]   ;;  %s8082_s2 = inlined_call_operand.vmem [shape: f32[1,512], index: 2, kind: input, shape index: {}]   ;;  %s8083_s3 = inlined_call_operand.vmem [shape: f32[1,128], index: 3, kind: input, shape index: {}]   ;;  %s8084_s4 = inlined_call_operand.vmem [shape: f32[1,128], index: 4, kind: input, shape index: {}]   ;;  %s8085_s5 = inlined_call_operand.vmem [shape: bf16[128,512], index: 5, kind: output, shape index: {}]  }
   0x1   :  { %v4746_v0 = vld [vmem:[%s8080_s1 + $0xe4] ss:$16 sps:$4 sm:$0xff]   ;;  %v4750_v2 = vld [vmem:[%s8080_s1 + $0xe0] ss:$16 sps:$4 sm:$0xff]  }
   0x2   :  { %v4748_v1 = vld [vmem:[%s8080_s1 + $0x2e4] ss:$16 sps:$4 sm:$0xff]   ;;  %2219 = vmatprep.subr.bf16.mxu0 %v4746_v0  ;;  %v4751_v3 = vld [vmem:[%s8080_s1 + $0x2e0] ss:$16 sps:$4 sm:$0xff]  }
   0x3   :  { %2332 = vmatprep.subr.bf16.mxu1 %v4748_v1  ;;  %v4752_v4 = vld [vmem:[%s8080_s1 + $0xc4] ss:$16 sps:$4 sm:$0xff]   ;;  %2220 = vmatpush1.bf16.msra.mxu0 %v4750_v2  ;;  %v4756_v6 = vld [vmem:[%s8080_s1 + $0xc0] ss:$16 sps:$4 sm:$0xff]  }
   0x4   :  { %2333 = vmatpush1.bf16.msra.mxu1 %v4751_v3  ;;  %v4754_v5 = vld [vmem:[%s8080_s1 + $0x2c4] ss:$16 sps:$4 sm:$0xff]   ;;  %2221 = vmatprep.subr.bf16.mxu0 %v4752_v4  ;;  %v4757_v7 = vld [vmem:[%s8080_s1 + $0x2c0] ss:$16 sps:$4 sm:$0xff]  }
   0x5   :  { %2334 = vmatprep.subr.bf16.mxu1 %v4754_v5  ;;  %v4758_v8 = vld [vmem:[%s8080_s1 + $0xa4] ss:$16 sps:$4 sm:$0xff]   ;;  %v4762_v10 = vld [vmem:[%s8080_s1 + $0xa0] ss:$16 sps:$4 sm:$0xff]   ;;  %v4845_v5 = vld [vmem:[%s8081_s0 + $0x8] ss:$36 sps:$4 sm:$0xff]  }
   0x6   :  { %v4760_v9 = vld [vmem:[%s8080_s1 + $0x2a4] ss:$16 sps:$4 sm:$0xff]   ;;  %v4763_v11 = vld [vmem:[%s8080_s1 + $0x2a0] ss:$16 sps:$4 sm:$0xff]  }
   0x7   :  { %2222 = vmatpush1.bf16.msra.mxu0 %v4756_v6  ;;  %v4764_v12 = vld [vmem:[%s8080_s1 + $0x84] ss:$16 sps:$4 sm:$0xff]   ;;  %v4768_v14 = vld [vmem:[%s8080_s1 + $0x80] ss:$16 sps:$4 sm:$0xff]  }
   0x8   :  { %2335 = vmatpush1.bf16.msra.mxu1 %v4757_v7  ;;  %2223 = vmatprep.subr.bf16.mxu0 %v4758_v8  ;;  %v4766_v13 = vld [vmem:[%s8080_s1 + $0x284] ss:$16 sps:$4 sm:$0xff]   ;;  %v4769_v15 = vld [vmem:[%s8080_s1 + $0x280] ss:$16 sps:$4 sm:$0xff]  }
   0x9   :  { %2336 = vmatprep.subr.bf16.mxu1 %v4760_v9  ;;  %v4770_v16 = vld [vmem:[%s8080_s1 + $0x64] ss:$16 sps:$4 sm:$0xff]   ;;  %v4774_v18 = vld [vmem:[%s8080_s1 + $0x60] ss:$16 sps:$4 sm:$0xff]  }
   0xa   :  { %v4772_v17 = vld [vmem:[%s8080_s1 + $0x264] ss:$16 sps:$4 sm:$0xff]   ;;  %v4775_v19 = vld [vmem:[%s8080_s1 + $0x260] ss:$16 sps:$4 sm:$0xff]  }
   0xb   :  { %2224 = vmatpush1.bf16.msra.mxu0 %v4762_v10  ;;  %v4776_v20 = vld [vmem:[%s8080_s1 + $0x44] ss:$16 sps:$4 sm:$0xff]   ;;  %v4780_v22 = vld [vmem:[%s8080_s1 + $0x40] ss:$16 sps:$4 sm:$0xff]  }
   0xc   :  { %2337 = vmatpush1.bf16.msra.mxu1 %v4763_v11  ;;  %2225 = vmatprep.subr.bf16.mxu0 %v4764_v12  ;;  %v4778_v21 = vld [vmem:[%s8080_s1 + $0x244] ss:$16 sps:$4 sm:$0xff]   ;;  %v4781_v23 = vld [vmem:[%s8080_s1 + $0x240] ss:$16 sps:$4 sm:$0xff]  }
   0xd   :  { %2338 = vmatprep.subr.bf16.mxu1 %v4766_v13  ;;  %v4782_v24 = vld [vmem:[%s8080_s1 + $0x24] ss:$16 sps:$4 sm:$0xff]   ;;  %v4786_v26 = vld [vmem:[%s8080_s1 + $0x20] ss:$16 sps:$4 sm:$0xff]  }
   0xe   :  { %v4784_v25 = vld [vmem:[%s8080_s1 + $0x224] ss:$16 sps:$4 sm:$0xff]   ;;  %v4787_v27 = vld [vmem:[%s8080_s1 + $0x220] ss:$16 sps:$4 sm:$0xff]  }
   0xf   :  { %2226 = vmatpush1.bf16.msra.mxu0 %v4768_v14  ;;  %v4788_v28 = vld [vmem:[%s8080_s1 + $0x4] ss:$16 sps:$4 sm:$0xff]   ;;  %v4792_v30 = vld [vmem:[%s8080_s1] ss:$16 sps:$4 sm:$0xff]  }
  0x10   :  { %2339 = vmatpush1.bf16.msra.mxu1 %v4769_v15  ;;  %2227 = vmatprep.subr.bf16.mxu0 %v4770_v16  ;;  %v4790_v29 = vld [vmem:[%s8080_s1 + $0x204] ss:$16 sps:$4 sm:$0xff]   ;;  %v4793_v31 = vld [vmem:[%s8080_s1 + $0x200] ss:$16 sps:$4 sm:$0xff]   ;;  %v4864_v16 = vld [vmem:[%s8081_s0 + $0x48] ss:$36 sps:$4 sm:$0xff]  }
  0x11   :  { %2340 = vmatprep.subr.bf16.mxu1 %v4772_v17  ;;  %v4794_v32 = vld [vmem:[%s8080_s1 + $0x1e4] ss:$16 sps:$4 sm:$0xff]   ;;  %v4798_v34 = vld [vmem:[%s8080_s1 + $0x1e0] ss:$16 sps:$4 sm:$0xff]  }
  0x12   :  { %v4796_v33 = vld [vmem:[%s8080_s1 + $0x3e4] ss:$16 sps:$4 sm:$0xff]   ;;  %v4799_v35 = vld [vmem:[%s8080_s1 + $0x3e0] ss:$16 sps:$4 sm:$0xff]  }
  0x13   :  { %2228 = vmatpush1.bf16.msra.mxu0 %v4774_v18  ;;  %v4800_v36 = vld [vmem:[%s8080_s1 + $0x1c4] ss:$16 sps:$4 sm:$0xff]   ;;  %v4804_v38 = vld [vmem:[%s8080_s1 + $0x1c0] ss:$16 sps:$4 sm:$0xff]  }
  0x14   :  { %2341 = vmatpush1.bf16.msra.mxu1 %v4775_v19  ;;  %2229 = vmatprep.subr.bf16.mxu0 %v4776_v20  ;;  %v4802_v37 = vld [vmem:[%s8080_s1 + $0x3c4] ss:$16 sps:$4 sm:$0xff]   ;;  %v4805_v39 = vld [vmem:[%s8080_s1 + $0x3c0] ss:$16 sps:$4 sm:$0xff]  }
  0x15   :  { %2342 = vmatprep.subr.bf16.mxu1 %v4778_v21  ;;  %v4806_v40 = vld [vmem:[%s8080_s1 + $0x1a4] ss:$16 sps:$4 sm:$0xff]   ;;  %v4810_v42 = vld [vmem:[%s8080_s1 + $0x1a0] ss:$16 sps:$4 sm:$0xff]  }
  0x16   :  { %v4808_v41 = vld [vmem:[%s8080_s1 + $0x3a4] ss:$16 sps:$4 sm:$0xff]   ;;  %v4811_v43 = vld [vmem:[%s8080_s1 + $0x3a0] ss:$16 sps:$4 sm:$0xff]  }
  0x17   :  { %2230 = vmatpush1.bf16.msra.mxu0 %v4780_v22  ;;  %v4812_v44 = vld [vmem:[%s8080_s1 + $0x184] ss:$16 sps:$4 sm:$0xff]   ;;  %v4816_v46 = vld [vmem:[%s8080_s1 + $0x180] ss:$16 sps:$4 sm:$0xff]  }
  0x18   :  { %2343 = vmatpush1.bf16.msra.mxu1 %v4781_v23  ;;  %2231 = vmatprep.subr.bf16.mxu0 %v4782_v24  ;;  %v4814_v45 = vld [vmem:[%s8080_s1 + $0x384] ss:$16 sps:$4 sm:$0xff]   ;;  %v4817_v47 = vld [vmem:[%s8080_s1 + $0x380] ss:$16 sps:$4 sm:$0xff]  }
  0x19   :  { %2344 = vmatprep.subr.bf16.mxu1 %v4784_v25  ;;  %v4818_v48 = vld [vmem:[%s8080_s1 + $0x164] ss:$16 sps:$4 sm:$0xff]   ;;  %v4847_v51 = vld [vmem:[%s8081_s0 + $0xc] ss:$36 sps:$4 sm:$0xff]   ;;  %v4880_v23 = vld [vmem:[%s8081_s0 + $0x9c] ss:$36 sps:$4 sm:$0xff]  }
  0x1a   :  { %v4844_v49 = vld [vmem:[%s8081_s0 + $0x4] ss:$36 sps:$4 sm:$0xff]   ;;  %v4822_v52 = vld [vmem:[%s8080_s1 + $0x160] ss:$16 sps:$4 sm:$0xff]   ;;  %2364 = vmatprep.mubr.bf16.mxu1 %v4847_v51  ;;  %v4862_v11 = vld [vmem:[%s8081_s0 + $0x54] ss:$36 sps:$4 sm:$0xff]  }
  0x1b   :  { %2232 = vmatpush1.bf16.msra.mxu0 %v4786_v26  ;;  %v4820_v50 = vld [vmem:[%s8080_s1 + $0x364] ss:$16 sps:$4 sm:$0xff]   ;;  %2251 = vmatprep.mubr.bf16.mxu0 %v4844_v49  ;;  %v4823_v53 = vld [vmem:[%s8080_s1 + $0x360] ss:$16 sps:$4 sm:$0xff]  }
  0x1c   :  { %2345 = vmatpush1.bf16.msra.mxu1 %v4787_v27  ;;  %2233 = vmatprep.subr.bf16.mxu0 %v4788_v28  ;;  %v4824_v54 = vld [vmem:[%s8080_s1 + $0x144] ss:$16 sps:$4 sm:$0xff]   ;;  %v4828_v56 = vld [vmem:[%s8080_s1 + $0x140] ss:$16 sps:$4 sm:$0xff]  }
  0x1d   :  { %2346 = vmatprep.subr.bf16.mxu1 %v4790_v29  ;;  %v4826_v55 = vld [vmem:[%s8080_s1 + $0x344] ss:$16 sps:$4 sm:$0xff]   ;;  %v4829_v57 = vld [vmem:[%s8080_s1 + $0x340] ss:$16 sps:$4 sm:$0xff]   ;;  %v4883_v29 = vld [vmem:[%s8081_s0 + $0x98] ss:$36 sps:$4 sm:$0xff]  }
  0x1e   :  { %v4830_v58 = vld [vmem:[%s8080_s1 + $0x124] ss:$16 sps:$4 sm:$0xff]   ;;  %v4834_v60 = vld [vmem:[%s8080_s1 + $0x120] ss:$16 sps:$4 sm:$0xff]  }
  0x1f   :  { %2234 = vmatpush1.bf16.msra.mxu0 %v4792_v30  ;;  %v4832_v59 = vld [vmem:[%s8080_s1 + $0x324] ss:$16 sps:$4 sm:$0xff]   ;;  %v4835_v61 = vld [vmem:[%s8080_s1 + $0x320] ss:$16 sps:$4 sm:$0xff]  }
  0x20   :  { %2347 = vmatpush1.bf16.msra.mxu1 %v4793_v31  ;;  %2235 = vmatprep.subr.bf16.mxu0 %v4794_v32  ;;  %v4836_v62 = vld [vmem:[%s8080_s1 + $0x104] ss:$16 sps:$4 sm:$0xff]   ;;  %v4840_v0 = vld [vmem:[%s8080_s1 + $0x100] ss:$16 sps:$4 sm:$0xff]  }
  0x21   :  { %2348 = vmatprep.subr.bf16.mxu1 %v4796_v33  ;;  %v4838_v63 = vld [vmem:[%s8080_s1 + $0x304] ss:$16 sps:$4 sm:$0xff]   ;;  %v4841_v1 = vld [vmem:[%s8080_s1 + $0x300] ss:$16 sps:$4 sm:$0xff]  }
  0x22   :  { %v4850_v2 = vld [vmem:[%s8080_s1 + $0x4e4] ss:$16 sps:$4 sm:$0xff]   ;;  %v4848_v6 = vld [vmem:[%s8080_s1 + $0x4e0] ss:$16 sps:$4 sm:$0xff]  }
  0x23   :  { %2236 = vmatpush2.bf16.msra.mxu0 %v4798_v34  ;;  %v4853_v3 = vld [vmem:[%s8080_s1 + $0x6e4] ss:$16 sps:$4 sm:$0xff]   ;;  %v4851_v7 = vld [vmem:[%s8080_s1 + $0x6e0] ss:$16 sps:$4 sm:$0xff]  }
  0x24   :  { %2349 = vmatpush2.bf16.msra.mxu1 %v4799_v35  ;;  %2237 = vmatprep.subr.bf16.mxu0 %v4800_v36  ;;  %v4842_v4 = vld [vmem:[%s8081_s0] ss:$36 sps:$4 sm:$0xff]   ;;  %v4860_v10 = vld [vmem:[%s8081_s0 + $0x4c] ss:$36 sps:$4 sm:$0xff]   ;;  %v4878_v22 = vld [vmem:[%s8081_s0 + $0x94] ss:$36 sps:$4 sm:$0xff]  }
  0x25   :  { %2350 = vmatprep.subr.bf16.mxu1 %v4802_v37  ;;  %v4856_v8 = vld [vmem:[%s8080_s1 + $0x4c4] ss:$16 sps:$4 sm:$0xff]   ;;  %v4854_v12 = vld [vmem:[%s8080_s1 + $0x4c0] ss:$16 sps:$4 sm:$0xff]  }
  0x26   :  { %v4859_v9 = vld [vmem:[%s8080_s1 + $0x6c4] ss:$16 sps:$4 sm:$0xff]   ;;  %v4857_v13 = vld [vmem:[%s8080_s1 + $0x6c0] ss:$16 sps:$4 sm:$0xff]  }
  0x27   :  { %2238 = vmatpush2.bf16.msra.mxu0 %v4804_v38  ;;  %v4868_v14 = vld [vmem:[%s8080_s1 + $0x4a4] ss:$16 sps:$4 sm:$0xff]   ;;  %v4866_v18 = vld [vmem:[%s8080_s1 + $0x4a0] ss:$16 sps:$4 sm:$0xff]  }
  0x28   :  { %2351 = vmatpush2.bf16.msra.mxu1 %v4805_v39  ;;  %2239 = vmatprep.subr.bf16.mxu0 %v4806_v40  ;;  %v4871_v15 = vld [vmem:[%s8080_s1 + $0x6a4] ss:$16 sps:$4 sm:$0xff]   ;;  %v4869_v19 = vld [vmem:[%s8080_s1 + $0x6a0] ss:$16 sps:$4 sm:$0xff]   ;;  %v4900_v40 = vld [vmem:[%s8081_s0 + $0xd8] ss:$36 sps:$4 sm:$0xff]  }
  0x29   :  { %2352 = vmatprep.subr.bf16.mxu1 %v4808_v41  ;;  %v4865_v17 = vld [vmem:[%s8081_s0 + $0x50] ss:$36 sps:$4 sm:$0xff]   ;;  %v4896_v34 = vld [vmem:[%s8081_s0 + $0xdc] ss:$36 sps:$4 sm:$0xff]   ;;  %v4898_v35 = vld [vmem:[%s8081_s0 + $0xe4] ss:$36 sps:$4 sm:$0xff]  }
  0x2a   :  { %v4874_v20 = vld [vmem:[%s8080_s1 + $0x484] ss:$16 sps:$4 sm:$0xff]   ;;  %v4872_v24 = vld [vmem:[%s8080_s1 + $0x480] ss:$16 sps:$4 sm:$0xff]  }
  0x2b   :  { %2240 = vmatpush2.bf16.msra.mxu0 %v4810_v42  ;;  %v4877_v21 = vld [vmem:[%s8080_s1 + $0x684] ss:$16 sps:$4 sm:$0xff]   ;;  %v4875_v25 = vld [vmem:[%s8080_s1 + $0x680] ss:$16 sps:$4 sm:$0xff]  }
  0x2c   :  { %2353 = vmatpush2.bf16.msra.mxu1 %v4811_v43  ;;  %2241 = vmatprep.subr.bf16.mxu0 %v4812_v44  ;;  %v4886_v26 = vld [vmem:[%s8080_s1 + $0x464] ss:$16 sps:$4 sm:$0xff]   ;;  %v4884_v30 = vld [vmem:[%s8080_s1 + $0x460] ss:$16 sps:$4 sm:$0xff]  }
  0x2d   :  { %2354 = vmatprep.subr.bf16.mxu1 %v4814_v45  ;;  %v4889_v27 = vld [vmem:[%s8080_s1 + $0x664] ss:$16 sps:$4 sm:$0xff]   ;;  %v4887_v31 = vld [vmem:[%s8080_s1 + $0x660] ss:$16 sps:$4 sm:$0xff]  }
  0x2e   :  { %v4882_v28 = vld [vmem:[%s8081_s0 + $0x90] ss:$36 sps:$4 sm:$0xff]   ;;  %v4901_v41 = vld [vmem:[%s8081_s0 + $0xe0] ss:$36 sps:$4 sm:$0xff]  }
  0x2f   :  { %2242 = vmatpush2.bf16.msra.mxu0 %v4816_v46  ;;  %v4892_v32 = vld [vmem:[%s8080_s1 + $0x444] ss:$16 sps:$4 sm:$0xff]   ;;  %v4890_v36 = vld [vmem:[%s8080_s1 + $0x440] ss:$16 sps:$4 sm:$0xff]  }
  0x30   :  { %2355 = vmatpush2.bf16.msra.mxu1 %v4817_v47  ;;  %2243 = vmatprep.subr.bf16.mxu0 %v4818_v48  ;;  %v4895_v33 = vld [vmem:[%s8080_s1 + $0x644] ss:$16 sps:$4 sm:$0xff]   ;;  %v4893_v37 = vld [vmem:[%s8080_s1 + $0x640] ss:$16 sps:$4 sm:$0xff]  }
  0x31   :  { %2356 = vmatprep.subr.bf16.mxu1 %v4820_v50  ;;  %v4904_v38 = vld [vmem:[%s8080_s1 + $0x424] ss:$16 sps:$4 sm:$0xff]   ;;  %v4902_v42 = vld [vmem:[%s8080_s1 + $0x420] ss:$16 sps:$4 sm:$0xff]  }
  0x32   :  { %v4907_v39 = vld [vmem:[%s8080_s1 + $0x624] ss:$16 sps:$4 sm:$0xff]   ;;  %v4905_v43 = vld [vmem:[%s8080_s1 + $0x620] ss:$16 sps:$4 sm:$0xff]  }
  0x33   :  { %2244 = vmatpush2.bf16.msra.mxu0 %v4822_v52  ;;  %v4910_v44 = vld [vmem:[%s8080_s1 + $0x404] ss:$16 sps:$4 sm:$0xff]   ;;  %v4916_v47 = vld [vmem:[%s8081_s0 + $0x12c] ss:$36 sps:$4 sm:$0xff]  }
  0x34   :  { %2357 = vmatpush2.bf16.msra.mxu1 %v4823_v53  ;;  %2245 = vmatprep.subr.bf16.mxu0 %v4824_v54  ;;  %v4913_v45 = vld [vmem:[%s8080_s1 + $0x604] ss:$16 sps:$4 sm:$0xff]   ;;  %v4908_v48 = vld [vmem:[%s8080_s1 + $0x400] ss:$16 sps:$4 sm:$0xff]   ;;  %v4919_v53 = vld [vmem:[%s8081_s0 + $0x128] ss:$36 sps:$4 sm:$0xff]  }
  0x35   :  { %2358 = vmatprep.subr.bf16.mxu1 %v4826_v55  ;;  %v4914_v46 = vld [vmem:[%s8081_s0 + $0x124] ss:$36 sps:$4 sm:$0xff]   ;;  %v4911_v49 = vld [vmem:[%s8080_s1 + $0x600] ss:$16 sps:$4 sm:$0xff]  }
  0x36   :  { %v4922_v50 = vld [vmem:[%s8080_s1 + $0x5e4] ss:$16 sps:$4 sm:$0xff]   ;;  %v4920_v54 = vld [vmem:[%s8080_s1 + $0x5e0] ss:$16 sps:$4 sm:$0xff]  }
  0x37   :  { %2246 = vmatpush2.bf16.msra.mxu0 %v4828_v56  ;;  %v4925_v51 = vld [vmem:[%s8080_s1 + $0x7e4] ss:$16 sps:$4 sm:$0xff]   ;;  %v4923_v55 = vld [vmem:[%s8080_s1 + $0x7e0] ss:$16 sps:$4 sm:$0xff]  }
  0x38   :  { %2359 = vmatpush2.bf16.msra.mxu1 %v4829_v57  ;;  %2247 = vmatprep.subr.bf16.mxu0 %v4830_v58  ;;  %v4918_v52 = vld [vmem:[%s8081_s0 + $0x120] ss:$36 sps:$4 sm:$0xff]   ;;  %v4932_v58 = vld [vmem:[%s8081_s0 + $0x16c] ss:$36 sps:$4 sm:$0xff]  }
  0x39   :  { %2360 = vmatprep.subr.bf16.mxu1 %v4832_v59  ;;  %v4928_v56 = vld [vmem:[%s8080_s1 + $0x5c4] ss:$16 sps:$4 sm:$0xff]  }
  0x3a   :  { %v4931_v57 = vld [vmem:[%s8080_s1 + $0x7c4] ss:$16 sps:$4 sm:$0xff]  }
  0x3b   :  { %2248 = vmatpush2.bf16.msra.mxu0 %v4834_v60  ;;  %v4934_v59 = vld [vmem:[%s8081_s0 + $0x174] ss:$36 sps:$4 sm:$0xff]   ;;  %v4926_v60 = vld [vmem:[%s8080_s1 + $0x5c0] ss:$16 sps:$4 sm:$0xff]  }
  0x3c   :  { %2361 = vmatpush2.bf16.msra.mxu1 %v4835_v61  ;;  %2249 = vmatprep.subr.bf16.mxu0 %v4836_v62  ;;  %v4929_v61 = vld [vmem:[%s8080_s1 + $0x7c0] ss:$16 sps:$4 sm:$0xff]   ;;  %v4940_v62 = vld [vmem:[%s8080_s1 + $0x5a4] ss:$16 sps:$4 sm:$0xff]  }
  0x3d   :  { %2362 = vmatprep.subr.bf16.mxu1 %v4838_v63  ;;  %v4943_v63 = vld [vmem:[%s8080_s1 + $0x7a4] ss:$16 sps:$4 sm:$0xff]  }
  0x3f   :  { %2250 = vmatpush2.bf16.msra.mxu0 %v4840_v0  ;;  %v4936_v0 = vld [vmem:[%s8081_s0 + $0x168] ss:$36 sps:$4 sm:$0xff]  }
  0x40   :  { %2363 = vmatpush2.bf16.msra.mxu1 %v4841_v1  ;;  %2445 = vmatprep.subr.bf16.mxu0 %v4850_v2  ;;  %v4937_v1 = vld [vmem:[%s8081_s0 + $0x170] ss:$36 sps:$4 sm:$0xff]  }
  0x41   :  { %2558 = vmatprep.subr.bf16.mxu1 %v4853_v3  ;;  %v4938_v2 = vld [vmem:[%s8080_s1 + $0x5a0] ss:$16 sps:$4 sm:$0xff]  }
  0x42   :  { %2252 = vmatmul.mubr.bf16.vlgmr.msra.gmra.mxu0 %v4842_v4  ;;  %v4941_v3 = vld [vmem:[%s8080_s1 + $0x7a0] ss:$16 sps:$4 sm:$0xff]   ;;  %v4946_v4 = vld [vmem:[%s8080_s1 + $0x584] ss:$16 sps:$4 sm:$0xff]  }
  0x43   :  { %2365 = vmatmul.mubr.bf16.vlgmr.msra.gmra.mxu1 %v4845_v5  ;;  %2446 = vmatpush1.bf16.msra.mxu0 %v4848_v6  ;;  %v4949_v5 = vld [vmem:[%s8080_s1 + $0x784] ss:$16 sps:$4 sm:$0xff]  }
  0x44   :  { %2559 = vmatpush1.bf16.msra.mxu1 %v4851_v7  ;;  %2447 = vmatprep.subr.bf16.mxu0 %v4856_v8  ;;  %v4950_v6 = vld [vmem:[%s8081_s0 + $0x1b4] ss:$36 sps:$4 sm:$0xff]   ;;  %v4952_v7 = vld [vmem:[%s8081_s0 + $0x1bc] ss:$36 sps:$4 sm:$0xff]  }
  0x45   :  { %2560 = vmatprep.subr.bf16.mxu1 %v4859_v9  ;;  %2261 = vmatprep.mubr.bf16.mxu0 %v4860_v10  ;;  %v4944_v8 = vld [vmem:[%s8080_s1 + $0x580] ss:$16 sps:$4 sm:$0xff]   ;;  %v4958_v10 = vld [vmem:[%s8080_s1 + $0x564] ss:$16 sps:$4 sm:$0xff]  }
  0x46   :  { %2374 = vmatprep.mubr.bf16.mxu1 %v4862_v11  ;;  %v4947_v9 = vld [vmem:[%s8080_s1 + $0x780] ss:$16 sps:$4 sm:$0xff]  }
  0x47   :  { %2448 = vmatpush1.bf16.msra.mxu0 %v4854_v12  ;;  %v4954_v11 = vld [vmem:[%s8081_s0 + $0x1b0] ss:$36 sps:$4 sm:$0xff]  }
  0x48   :  { %2561 = vmatpush1.bf16.msra.mxu1 %v4857_v13  ;;  %2449 = vmatprep.subr.bf16.mxu0 %v4868_v14  ;;  %v4961_v12 = vld [vmem:[%s8080_s1 + $0x764] ss:$16 sps:$4 sm:$0xff]   ;;  %v4955_v13 = vld [vmem:[%s8081_s0 + $0x1b8] ss:$36 sps:$4 sm:$0xff]   ;;  %v4956_v14 = vld [vmem:[%s8080_s1 + $0x560] ss:$16 sps:$4 sm:$0xff]  }
  0x49   :  { %2562 = vmatprep.subr.bf16.mxu1 %v4871_v15  ;;  %v4959_v15 = vld [vmem:[%s8080_s1 + $0x760] ss:$16 sps:$4 sm:$0xff]  }
  0x4a   :  { %2262 = vmatmul.mubr.bf16.gmra.mxu0 %v4864_v16  ;;  %v4964_v16 = vld [vmem:[%s8080_s1 + $0x544] ss:$16 sps:$4 sm:$0xff]  }
  0x4b   :  { %2375 = vmatmul.mubr.bf16.gmra.mxu1 %v4865_v17  ;;  %2450 = vmatpush1.bf16.msra.mxu0 %v4866_v18  ;;  %v4967_v17 = vld [vmem:[%s8080_s1 + $0x744] ss:$16 sps:$4 sm:$0xff]   ;;  %v4968_v18 = vld [vmem:[%s8081_s0 + $0x1fc] ss:$36 sps:$4 sm:$0xff]  }
  0x4c   :  { %2563 = vmatpush1.bf16.msra.mxu1 %v4869_v19  ;;  %2451 = vmatprep.subr.bf16.mxu0 %v4874_v20  ;;  %v4970_v19 = vld [vmem:[%s8081_s0 + $0x204] ss:$36 sps:$4 sm:$0xff]   ;;  %v4962_v20 = vld [vmem:[%s8080_s1 + $0x540] ss:$16 sps:$4 sm:$0xff]  }
  0x4d   :  { %2564 = vmatprep.subr.bf16.mxu1 %v4877_v21  ;;  %2271 = vmatprep.mubr.bf16.mxu0 %v4878_v22  ;;  %v4965_v21 = vld [vmem:[%s8080_s1 + $0x740] ss:$16 sps:$4 sm:$0xff]   ;;  %v4976_v22 = vld [vmem:[%s8080_s1 + $0x524] ss:$16 sps:$4 sm:$0xff]  }
  0x4e   :  { %2384 = vmatprep.mubr.bf16.mxu1 %v4880_v23  ;;  %v4979_v23 = vld [vmem:[%s8080_s1 + $0x724] ss:$16 sps:$4 sm:$0xff]  }
  0x4f   :  { %2452 = vmatpush1.bf16.msra.mxu0 %v4872_v24  ;;  %v4972_v24 = vld [vmem:[%s8081_s0 + $0x1f8] ss:$36 sps:$4 sm:$0xff]  }
  0x50   :  { %2565 = vmatpush1.bf16.msra.mxu1 %v4875_v25  ;;  %2453 = vmatprep.subr.bf16.mxu0 %v4886_v26  ;;  %v4973_v25 = vld [vmem:[%s8081_s0 + $0x200] ss:$36 sps:$4 sm:$0xff]  }
  0x51   :  { %2566 = vmatprep.subr.bf16.mxu1 %v4889_v27  ;;  %v4974_v26 = vld [vmem:[%s8080_s1 + $0x520] ss:$16 sps:$4 sm:$0xff]  }
  0x52   :  { %2272 = vmatmul.mubr.bf16.gmra.mxu0 %v4882_v28  ;;  %v4977_v27 = vld [vmem:[%s8080_s1 + $0x720] ss:$16 sps:$4 sm:$0xff]   ;;  %v4982_v28 = vld [vmem:[%s8080_s1 + $0x504] ss:$16 sps:$4 sm:$0xff]  }
  0x53   :  { %2385 = vmatmul.mubr.bf16.gmra.mxu1 %v4883_v29  ;;  %2454 = vmatpush1.bf16.msra.mxu0 %v4884_v30  ;;  %v4985_v29 = vld [vmem:[%s8080_s1 + $0x704] ss:$16 sps:$4 sm:$0xff]  }
  0x54   :  { %2567 = vmatpush1.bf16.msra.mxu1 %v4887_v31  ;;  %2455 = vmatprep.subr.bf16.mxu0 %v4892_v32  ;;  %v4988_v30 = vld [vmem:[%s8081_s0 + $0x14] ss:$36 sps:$4 sm:$0xff]   ;;  %v4991_v31 = vld [vmem:[%s8081_s0 + $0x1c] ss:$36 sps:$4 sm:$0xff]  }
  0x55   :  { %2568 = vmatprep.subr.bf16.mxu1 %v4895_v33  ;;  %2281 = vmatprep.mubr.bf16.mxu0 %v4896_v34  ;;  %v4980_v32 = vld [vmem:[%s8080_s1 + $0x500] ss:$16 sps:$4 sm:$0xff]   ;;  %v4994_v34 = vld [vmem:[%s8080_s1 + $0x8e4] ss:$16 sps:$4 sm:$0xff]  }
  0x56   :  { %2394 = vmatprep.mubr.bf16.mxu1 %v4898_v35  ;;  %v4983_v33 = vld [vmem:[%s8080_s1 + $0x700] ss:$16 sps:$4 sm:$0xff]   ;;  %v4997_v35 = vld [vmem:[%s8080_s1 + $0xec] ss:$16 sps:$4 sm:$0xff]  }
  0x57   :  { %2456 = vmatpush1.bf16.msra.mxu0 %v4890_v36  ;;  %v4986_v36 = vld [vmem:[%s8081_s0 + $0x10] ss:$36 sps:$4 sm:$0xff]  }
  0x58   :  { %2569 = vmatpush1.bf16.msra.mxu1 %v4893_v37  ;;  %2457 = vmatprep.subr.bf16.mxu0 %v4904_v38  ;;  %v4989_v37 = vld [vmem:[%s8081_s0 + $0x18] ss:$36 sps:$4 sm:$0xff]   ;;  %v4992_v38 = vld [vmem:[%s8080_s1 + $0x8e0] ss:$16 sps:$4 sm:$0xff]  }
  0x59   :  { %2570 = vmatprep.subr.bf16.mxu1 %v4907_v39  ;;  %v4995_v39 = vld [vmem:[%s8080_s1 + $0xe8] ss:$16 sps:$4 sm:$0xff]  }
  0x5a   :  { %2282 = vmatmul.mubr.bf16.gmra.mxu0 %v4900_v40  ;;  %v5000_v40 = vld [vmem:[%s8080_s1 + $0xcc] ss:$16 sps:$4 sm:$0xff]  }
  0x5b   :  { %2395 = vmatmul.mubr.bf16.gmra.mxu1 %v4901_v41  ;;  %2458 = vmatpush1.bf16.msra.mxu0 %v4902_v42  ;;  %v5001_v41 = vld [vmem:[%s8081_s0 + $0x5c] ss:$36 sps:$4 sm:$0xff]   ;;  %v5003_v42 = vld [vmem:[%s8081_s0 + $0x64] ss:$36 sps:$4 sm:$0xff]  }
  0x5c   :  { %2571 = vmatpush1.bf16.msra.mxu1 %v4905_v43  ;;  %2459 = vmatprep.subr.bf16.mxu0 %v4910_v44  ;;  %v5009_v43 = vld [vmem:[%s8080_s1 + $0x8c4] ss:$16 sps:$4 sm:$0xff]   ;;  %v4998_v44 = vld [vmem:[%s8080_s1 + $0xc8] ss:$16 sps:$4 sm:$0xff]  }
  0x5d   :  { %2572 = vmatprep.subr.bf16.mxu1 %v4913_v45  ;;  %2291 = vmatprep.mubr.bf16.mxu0 %v4914_v46  ;;  %v5007_v45 = vld [vmem:[%s8080_s1 + $0x8c0] ss:$16 sps:$4 sm:$0xff]   ;;  %v5012_v46 = vld [vmem:[%s8080_s1 + $0xac] ss:$16 sps:$4 sm:$0xff]  }
  0x5e   :  { %2404 = vmatprep.mubr.bf16.mxu1 %v4916_v47  ;;  %v5024_v47 = vld [vmem:[%s8080_s1 + $0x8a4] ss:$16 sps:$4 sm:$0xff]  }
  0x5f   :  { %2460 = vmatpush1.bf16.msra.mxu0 %v4908_v48  ;;  %v5005_v48 = vld [vmem:[%s8081_s0 + $0x58] ss:$36 sps:$4 sm:$0xff]  }
  0x60   :  { %2573 = vmatpush1.bf16.msra.mxu1 %v4911_v49  ;;  %2461 = vmatprep.subr.bf16.mxu0 %v4922_v50  ;;  %v5006_v49 = vld [vmem:[%s8081_s0 + $0x60] ss:$36 sps:$4 sm:$0xff]   ;;  %v5010_v50 = vld [vmem:[%s8080_s1 + $0xa8] ss:$16 sps:$4 sm:$0xff]  }
  0x61   :  { %2574 = vmatprep.subr.bf16.mxu1 %v4925_v51  ;;  %v5015_v51 = vld [vmem:[%s8080_s1 + $0x8c] ss:$16 sps:$4 sm:$0xff]  }
  0x62   :  { %2292 = vmatmul.mubr.bf16.gmra.mxu0 %v4918_v52  ;;  %v5016_v52 = vld [vmem:[%s8081_s0 + $0xa4] ss:$36 sps:$4 sm:$0xff]  }
  0x63   :  { %2405 = vmatmul.mubr.bf16.gmra.mxu1 %v4919_v53  ;;  %2462 = vmatpush2.bf16.msra.mxu0 %v4920_v54  ;;  %v5018_v53 = vld [vmem:[%s8081_s0 + $0xac] ss:$36 sps:$4 sm:$0xff]  }
  0x64   :  { %2575 = vmatpush2.bf16.msra.mxu1 %v4923_v55  ;;  %2463 = vmatprep.subr.bf16.mxu0 %v4928_v56  ;;  %v5022_v54 = vld [vmem:[%s8080_s1 + $0x8a0] ss:$16 sps:$4 sm:$0xff]   ;;  %v5039_v55 = vld [vmem:[%s8080_s1 + $0x884] ss:$16 sps:$4 sm:$0xff]   ;;  %v5013_v56 = vld [vmem:[%s8080_s1 + $0x88] ss:$16 sps:$4 sm:$0xff]  }
  0x65   :  { %2576 = vmatprep.subr.bf16.mxu1 %v4931_v57  ;;  %2301 = vmatprep.mubr.bf16.mxu0 %v4932_v58  ;;  %v5020_v57 = vld [vmem:[%s8081_s0 + $0xa0] ss:$36 sps:$4 sm:$0xff]   ;;  %v5027_v58 = vld [vmem:[%s8080_s1 + $0x6c] ss:$16 sps:$4 sm:$0xff]  }
  0x66   :  { %2414 = vmatprep.mubr.bf16.mxu1 %v4934_v59  ;;  %v5021_v59 = vld [vmem:[%s8081_s0 + $0xa8] ss:$36 sps:$4 sm:$0xff]  }
  0x67   :  { %2464 = vmatpush2.bf16.msra.mxu0 %v4926_v60  ;;  %v5037_v60 = vld [vmem:[%s8080_s1 + $0x880] ss:$16 sps:$4 sm:$0xff]  }
  0x68   :  { %2577 = vmatpush2.bf16.msra.mxu1 %v4929_v61  ;;  %2465 = vmatprep.subr.bf16.mxu0 %v4940_v62  ;;  %v5025_v61 = vld [vmem:[%s8080_s1 + $0x68] ss:$16 sps:$4 sm:$0xff]   ;;  %v5030_v62 = vld [vmem:[%s8080_s1 + $0x4c] ss:$16 sps:$4 sm:$0xff]  }
  0x69   :  { %2578 = vmatprep.subr.bf16.mxu1 %v4943_v63  ;;  %v5031_v63 = vld [vmem:[%s8081_s0 + $0xec] ss:$36 sps:$4 sm:$0xff]  }
  0x6a   :  { %2302 = vmatmul.mubr.bf16.gmra.mxu0 %v4936_v0  ;;  %v5033_v0 = vld [vmem:[%s8081_s0 + $0xf4] ss:$36 sps:$4 sm:$0xff]  }
  0x6b   :  { %2415 = vmatmul.mubr.bf16.gmra.mxu1 %v4937_v1  ;;  %2466 = vmatpush2.bf16.msra.mxu0 %v4938_v2  ;;  %v5054_v1 = vld [vmem:[%s8080_s1 + $0x864] ss:$16 sps:$4 sm:$0xff]   ;;  %v5052_v2 = vld [vmem:[%s8080_s1 + $0x860] ss:$16 sps:$4 sm:$0xff]  }
  0x6c   :  { %2579 = vmatpush2.bf16.msra.mxu1 %v4941_v3  ;;  %2467 = vmatprep.subr.bf16.mxu0 %v4946_v4  ;;  %v5028_v3 = vld [vmem:[%s8080_s1 + $0x48] ss:$16 sps:$4 sm:$0xff]   ;;  %v5069_v4 = vld [vmem:[%s8080_s1 + $0x844] ss:$16 sps:$4 sm:$0xff]  }
  0x6d   :  { %2580 = vmatprep.subr.bf16.mxu1 %v4949_v5  ;;  %2311 = vmatprep.mubr.bf16.mxu0 %v4950_v6  ;;  %v5042_v5 = vld [vmem:[%s8080_s1 + $0x2c] ss:$16 sps:$4 sm:$0xff]  }
  0x6e   :  { %2424 = vmatprep.mubr.bf16.mxu1 %v4952_v7  ;;  %v5035_v6 = vld [vmem:[%s8081_s0 + $0xe8] ss:$36 sps:$4 sm:$0xff]   ;;  %v5036_v7 = vld [vmem:[%s8081_s0 + $0xf0] ss:$36 sps:$4 sm:$0xff]  }
  0x6f   :  { %2468 = vmatpush2.bf16.msra.mxu0 %v4944_v8  ;;  %v5040_v8 = vld [vmem:[%s8080_s1 + $0x28] ss:$16 sps:$4 sm:$0xff]  }
  0x70   :  { %2581 = vmatpush2.bf16.msra.mxu1 %v4947_v9  ;;  %2469 = vmatprep.subr.bf16.mxu0 %v4958_v10  ;;  %v5045_v9 = vld [vmem:[%s8080_s1 + $0xc] ss:$16 sps:$4 sm:$0xff]   ;;  %v5046_v10 = vld [vmem:[%s8081_s0 + $0x134] ss:$36 sps:$4 sm:$0xff]  }
  0x71   :  { %2582 = vmatprep.subr.bf16.mxu1 %v4961_v12  ;;  %v5067_v12 = vld [vmem:[%s8080_s1 + $0x840] ss:$16 sps:$4 sm:$0xff]  }
  0x72   :  { %2312 = vmatmul.mubr.bf16.gmra.mxu0 %v4954_v11  ;;  %v5048_v11 = vld [vmem:[%s8081_s0 + $0x13c] ss:$36 sps:$4 sm:$0xff]  }
  0x73   :  { %2425 = vmatmul.mubr.bf16.gmra.mxu1 %v4955_v13  ;;  %2470 = vmatpush2.bf16.msra.mxu0 %v4956_v14  ;;  %v5084_v13 = vld [vmem:[%s8080_s1 + $0x824] ss:$16 sps:$4 sm:$0xff]   ;;  %v5043_v14 = vld [vmem:[%s8080_s1 + $0x8] ss:$16 sps:$4 sm:$0xff]  }
  0x74   :  { %2583 = vmatpush2.bf16.msra.mxu1 %v4959_v15  ;;  %2471 = vmatprep.subr.bf16.mxu0 %v4964_v16  ;;  %v5050_v15 = vld [vmem:[%s8081_s0 + $0x130] ss:$36 sps:$4 sm:$0xff]   ;;  %v5057_v16 = vld [vmem:[%s8080_s1 + $0x1ec] ss:$16 sps:$4 sm:$0xff]  }
  0x75   :  { %2584 = vmatprep.subr.bf16.mxu1 %v4967_v17  ;;  %2321 = vmatprep.mubr.bf16.mxu0 %v4968_v18  ;;  %v5051_v17 = vld [vmem:[%s8081_s0 + $0x138] ss:$36 sps:$4 sm:$0xff]   ;;  %v5082_v18 = vld [vmem:[%s8080_s1 + $0x820] ss:$16 sps:$4 sm:$0xff]  }
  0x76   :  { %2434 = vmatprep.mubr.bf16.mxu1 %v4970_v19  ;;  %v5055_v19 = vld [vmem:[%s8080_s1 + $0x1e8] ss:$16 sps:$4 sm:$0xff]  }
  0x77   :  { %2472 = vmatpush2.bf16.msra.mxu0 %v4962_v20  ;;  %v5060_v20 = vld [vmem:[%s8080_s1 + $0x1cc] ss:$16 sps:$4 sm:$0xff]  }
  0x78   :  { %2585 = vmatpush2.bf16.msra.mxu1 %v4965_v21  ;;  %2473 = vmatprep.subr.bf16.mxu0 %v4976_v22  ;;  %v5061_v21 = vld [vmem:[%s8081_s0 + $0x17c] ss:$36 sps:$4 sm:$0xff]   ;;  %v5063_v22 = vld [vmem:[%s8081_s0 + $0x184] ss:$36 sps:$4 sm:$0xff]  }
  0x79   :  { %2586 = vmatprep.subr.bf16.mxu1 %v4979_v23  ;;  %v5099_v23 = vld [vmem:[%s8080_s1 + $0x804] ss:$16 sps:$4 sm:$0xff]  }
  0x7a   :  { %2322 = vmatmul.mubr.bf16.gmra.mxu0 %v4972_v24  ;;  %v5097_v24 = vld [vmem:[%s8080_s1 + $0x800] ss:$16 sps:$4 sm:$0xff]  }
  0x7b   :  { %2435 = vmatmul.mubr.bf16.gmra.mxu1 %v4973_v25  ;;  %2474 = vmatpush2.bf16.msra.mxu0 %v4974_v26  ;;  %v5058_v25 = vld [vmem:[%s8080_s1 + $0x1c8] ss:$16 sps:$4 sm:$0xff]   ;;  %v5109_v26 = vld [vmem:[%s8080_s1 + $0x2ec] ss:$16 sps:$4 sm:$0xff]  }
  0x7c   :  { %2587 = vmatpush2.bf16.msra.mxu1 %v4977_v27  ;;  %2475 = vmatprep.subr.bf16.mxu0 %v4982_v28  ;;  %v5072_v27 = vld [vmem:[%s8080_s1 + $0x1ac] ss:$16 sps:$4 sm:$0xff]  }
  0x7d   :  { %2588 = vmatprep.subr.bf16.mxu1 %v4985_v29  ;;  %2477 = vmatprep.mubr.bf16.mxu0 %v4988_v30  ;;  %v5065_v28 = vld [vmem:[%s8081_s0 + $0x178] ss:$36 sps:$4 sm:$0xff]   ;;  %v5066_v29 = vld [vmem:[%s8081_s0 + $0x180] ss:$36 sps:$4 sm:$0xff]  }
  0x7e   :  { %2590 = vmatprep.mubr.bf16.mxu1 %v4991_v31  ;;  %v5070_v30 = vld [vmem:[%s8080_s1 + $0x1a8] ss:$16 sps:$4 sm:$0xff]  }
  0x7f   :  { %2476 = vmatpush2.bf16.msra.mxu0 %v4980_v32  ;;  %v5076_v31 = vld [vmem:[%s8081_s0 + $0x1c4] ss:$36 sps:$4 sm:$0xff]   ;;  %v5075_v32 = vld [vmem:[%s8080_s1 + $0x18c] ss:$16 sps:$4 sm:$0xff]  }
  0x80   :  { %2589 = vmatpush2.bf16.msra.mxu1 %v4983_v33  ;;  %2671 = vmatprep.subr.bf16.mxu0 %v4994_v34  ;;  %v5078_v33 = vld [vmem:[%s8081_s0 + $0x1cc] ss:$36 sps:$4 sm:$0xff]   ;;  %v5073_v34 = vld [vmem:[%s8080_s1 + $0x188] ss:$16 sps:$4 sm:$0xff]  }
  0x81   :  { %2784 = vmatprep.subr.bf16.mxu1 %v4997_v35  ;;  %v5087_v35 = vld [vmem:[%s8080_s1 + $0x16c] ss:$16 sps:$4 sm:$0xff]  }
  0x82   :  { %2478 = vmatmul.mubr.bf16.vlgmr.msra.gmra.mxu0 %v4986_v36  ;;  %v5080_v36 = vld [vmem:[%s8081_s0 + $0x1c0] ss:$36 sps:$4 sm:$0xff]  }
  0x83   :  { %2591 = vmatmul.mubr.bf16.vlgmr.msra.gmra.mxu1 %v4989_v37  ;;  %2672 = vmatpush1.bf16.msra.mxu0 %v4992_v38  ;;  %v5081_v37 = vld [vmem:[%s8081_s0 + $0x1c8] ss:$36 sps:$4 sm:$0xff]  }
  0x84   :  { %2785 = vmatpush1.bf16.msra.mxu1 %v4995_v39  ;;  %2487 = vmatprep.mubr.bf16.mxu0 %v5001_v41  ;;  %v5085_v38 = vld [vmem:[%s8080_s1 + $0x168] ss:$16 sps:$4 sm:$0xff]   ;;  %v5091_v39 = vld [vmem:[%s8081_s0 + $0x20c] ss:$36 sps:$4 sm:$0xff]  }
  0x85   :  { %2786 = vmatprep.subr.bf16.mxu1 %v5000_v40  ;;  %2600 = vmatprep.mubr.bf16.mxu1 %v5003_v42  ;;  %v5090_v40 = vld [vmem:[%s8080_s1 + $0x14c] ss:$16 sps:$4 sm:$0xff]   ;;  %v5093_v41 = vld [vmem:[%s8081_s0 + $0x214] ss:$36 sps:$4 sm:$0xff]  }
  0x86   :  { %2673 = vmatprep.subr.bf16.mxu0 %v5009_v43  ;;  %v5088_v42 = vld [vmem:[%s8080_s1 + $0x148] ss:$16 sps:$4 sm:$0xff]   ;;  %v5102_v43 = vld [vmem:[%s8080_s1 + $0x12c] ss:$16 sps:$4 sm:$0xff]  }
  0x87   :  { %2674 = vmatpush1.bf16.msra.mxu0 %v5007_v45  ;;  %v5096_v45 = vld [vmem:[%s8081_s0 + $0x210] ss:$36 sps:$4 sm:$0xff]  }
  0x88   :  { %2787 = vmatpush1.bf16.msra.mxu1 %v4998_v44  ;;  %2675 = vmatprep.subr.bf16.mxu0 %v5024_v47  ;;  %v5095_v44 = vld [vmem:[%s8081_s0 + $0x208] ss:$36 sps:$4 sm:$0xff]  }
  0x89   :  { %2788 = vmatprep.subr.bf16.mxu1 %v5012_v46  ;;  %v5100_v46 = vld [vmem:[%s8080_s1 + $0x128] ss:$16 sps:$4 sm:$0xff]   ;;  %v5105_v47 = vld [vmem:[%s8080_s1 + $0x10c] ss:$16 sps:$4 sm:$0xff]  }
  0x8a   :  { %2488 = vmatmul.mubr.bf16.gmra.mxu0 %v5005_v48  ;;  %v5103_v48 = vld [vmem:[%s8080_s1 + $0x108] ss:$16 sps:$4 sm:$0xff]  }
  0x8b   :  { %2601 = vmatmul.mubr.bf16.gmra.mxu1 %v5006_v49  ;;  %2497 = vmatprep.mubr.bf16.mxu0 %v5016_v52  ;;  %v5349_v49 = vmov 0   ;;  %v6113_v52 = vld [vmem:[%s8081_s0 + $0x20] ss:$36 sps:$4 sm:$0xff]  }
  0x8c   :  { %2789 = vmatpush1.bf16.msra.mxu1 %v5010_v50  ;;  %2610 = vmatprep.mubr.bf16.mxu1 %v5018_v53  ;;  %v5284_v50 = vld [vmem:[%s8081_s0 + $0x4] ss:$36 sps:$4 sm:$0xff]  }
  0x8d   :  { %2790 = vmatprep.subr.bf16.mxu1 %v5015_v51  ;;  %2676 = vmatpush1.bf16.msra.mxu0 %v5022_v54  ;;  %v5112_v51 = vld [vmem:[%s8080_s1 + $0x4ec] ss:$16 sps:$4 sm:$0xff]   ;;  %v5107_v53 = vld [vmem:[%s8080_s1 + $0x2e8] ss:$16 sps:$4 sm:$0xff]  }
  0x8e   :  { %2677 = vmatprep.subr.bf16.mxu0 %v5039_v55  ;;  %v5110_v54 = vld [vmem:[%s8080_s1 + $0x4e8] ss:$16 sps:$4 sm:$0xff]   ;;  %v5115_v55 = vld [vmem:[%s8080_s1 + $0x2cc] ss:$16 sps:$4 sm:$0xff]  }
  0x90   :  { %2791 = vmatpush1.bf16.msra.mxu1 %v5013_v56  ;;  %v5118_v56 = vld [vmem:[%s8080_s1 + $0x4cc] ss:$16 sps:$4 sm:$0xff]  }
  0x91   :  { %2792 = vmatprep.subr.bf16.mxu1 %v5027_v58  ;;  %2678 = vmatpush1.bf16.msra.mxu0 %v5037_v60  ;;  %v5113_v58 = vld [vmem:[%s8080_s1 + $0x2c8] ss:$16 sps:$4 sm:$0xff]   ;;  %v5122_v60 = vld [vmem:[%s8080_s1 + $0x2ac] ss:$16 sps:$4 sm:$0xff]  }
  0x92   :  { %2498 = vmatmul.mubr.bf16.gmra.mxu0 %v5020_v57  ;;  %2679 = vmatprep.subr.bf16.mxu0 %v5054_v1  ;;  %v5285_v57 = vld [vmem:[%s8081_s0] ss:$36 sps:$4 sm:$0xff]   ;;  %v5123_v1 = vld [vmem:[%s8080_s1 + $0x4a8] ss:$16 sps:$4 sm:$0xff]  }
  0x93   :  { %2611 = vmatmul.mubr.bf16.gmra.mxu1 %v5021_v59  ;;  %2507 = vmatprep.mubr.bf16.mxu0 %v5031_v63  ;;  %v5116_v59 = vld [vmem:[%s8080_s1 + $0x4c8] ss:$16 sps:$4 sm:$0xff]  }
  0x94   :  { %2793 = vmatpush1.bf16.msra.mxu1 %v5025_v61  ;;  %2620 = vmatprep.mubr.bf16.mxu1 %v5033_v0  ;;  %v5125_v61 = vld [vmem:[%s8080_s1 + $0x4ac] ss:$16 sps:$4 sm:$0xff]   ;;  %v5120_v0 = vld [vmem:[%s8080_s1 + $0x2a8] ss:$16 sps:$4 sm:$0xff]  }
  0x95   :  { %2794 = vmatprep.subr.bf16.mxu1 %v5030_v62  ;;  %2680 = vmatpush1.bf16.msra.mxu0 %v5052_v2  ;;  %v5286_v62 = vld [vmem:[%s8081_s0 + $0x4c] ss:$36 sps:$4 sm:$0xff]  }
  0x96   :  { %2681 = vmatprep.subr.bf16.mxu0 %v5069_v4  ;;  %v6150_v63 = vld [vmem:[%s8081_s0 + $0x68] ss:$36 sps:$4 sm:$0xff]  }
  0x97   :  { %v5128_v2 = vld [vmem:[%s8080_s1 + $0x28c] ss:$16 sps:$4 sm:$0xff]   ;;  %v5126_v4 = vld [vmem:[%s8080_s1 + $0x288] ss:$16 sps:$4 sm:$0xff]  }
  0x98   :  { %2795 = vmatpush1.bf16.msra.mxu1 %v5028_v3  ;;  %v5131_v3 = vld [vmem:[%s8080_s1 + $0x48c] ss:$16 sps:$4 sm:$0xff]  }
  0x99   :  { %2796 = vmatprep.subr.bf16.mxu1 %v5042_v5  ;;  %2682 = vmatpush1.bf16.msra.mxu0 %v5067_v12  ;;  %v5287_v5 = vld [vmem:[%s8081_s0 + $0x48] ss:$36 sps:$4 sm:$0xff]  }
  0x9a   :  { %2508 = vmatmul.mubr.bf16.gmra.mxu0 %v5035_v6  ;;  %2683 = vmatprep.subr.bf16.mxu0 %v5084_v13  ;;  %v5129_v6 = vld [vmem:[%s8080_s1 + $0x488] ss:$16 sps:$4 sm:$0xff]   ;;  %v5141_v13 = vld [vmem:[%s8080_s1 + $0x24c] ss:$16 sps:$4 sm:$0xff]  }
  0x9b   :  { %2621 = vmatmul.mubr.bf16.gmra.mxu1 %v5036_v7  ;;  %2517 = vmatprep.mubr.bf16.mxu0 %v5046_v10  ;;  %v5135_v7 = vld [vmem:[%s8080_s1 + $0x26c] ss:$16 sps:$4 sm:$0xff]   ;;  %v6187_v10 = vld [vmem:[%s8081_s0 + $0xb0] ss:$36 sps:$4 sm:$0xff]   ;;  %v5136_v12 = vld [vmem:[%s8080_s1 + $0x468] ss:$16 sps:$4 sm:$0xff]  }
  0x9c   :  { %2797 = vmatpush1.bf16.msra.mxu1 %v5040_v8  ;;  %2630 = vmatprep.mubr.bf16.mxu1 %v5048_v11  ;;  %v5138_v8 = vld [vmem:[%s8080_s1 + $0x46c] ss:$16 sps:$4 sm:$0xff]   ;;  %v5133_v11 = vld [vmem:[%s8080_s1 + $0x268] ss:$16 sps:$4 sm:$0xff]  }
  0x9d   :  { %2798 = vmatprep.subr.bf16.mxu1 %v5045_v9  ;;  %2684 = vmatpush1.bf16.msra.mxu0 %v5082_v18  ;;  %v5288_v9 = vld [vmem:[%s8081_s0 + $0x94] ss:$36 sps:$4 sm:$0xff]   ;;  %v5148_v18 = vld [vmem:[%s8080_s1 + $0x22c] ss:$16 sps:$4 sm:$0xff]  }
  0x9e   :  { %2685 = vmatprep.subr.bf16.mxu0 %v5099_v23  ;;  %v5149_v23 = vld [vmem:[%s8080_s1 + $0x428] ss:$16 sps:$4 sm:$0xff]  }
  0xa0   :  { %2799 = vmatpush1.bf16.msra.mxu1 %v5043_v14  ;;  %v5144_v14 = vld [vmem:[%s8080_s1 + $0x44c] ss:$16 sps:$4 sm:$0xff]  }
  0xa1   :  { %2800 = vmatprep.subr.bf16.mxu1 %v5057_v16  ;;  %2686 = vmatpush1.bf16.msra.mxu0 %v5097_v24  ;;  %v5139_v16 = vld [vmem:[%s8080_s1 + $0x248] ss:$16 sps:$4 sm:$0xff]   ;;  %v5154_v24 = vld [vmem:[%s8080_s1 + $0x20c] ss:$16 sps:$4 sm:$0xff]  }
  0xa2   :  { %2518 = vmatmul.mubr.bf16.gmra.mxu0 %v5050_v15  ;;  %2897 = vmatprep.subr.bf16.mxu0 %v5109_v26  ;;  %v5289_v15 = vld [vmem:[%s8081_s0 + $0x90] ss:$36 sps:$4 sm:$0xff]   ;;  %v5291_v26 = vld [vmem:[%s8081_s0 + $0xd8] ss:$36 sps:$4 sm:$0xff]  }
  0xa3   :  { %2631 = vmatmul.mubr.bf16.gmra.mxu1 %v5051_v17  ;;  %2527 = vmatprep.mubr.bf16.mxu0 %v5061_v21  ;;  %v5142_v17 = vld [vmem:[%s8080_s1 + $0x448] ss:$16 sps:$4 sm:$0xff]  }
  0xa4   :  { %2801 = vmatpush2.bf16.msra.mxu1 %v5055_v19  ;;  %2640 = vmatprep.mubr.bf16.mxu1 %v5063_v22  ;;  %v5151_v19 = vld [vmem:[%s8080_s1 + $0x42c] ss:$16 sps:$4 sm:$0xff]   ;;  %v5146_v22 = vld [vmem:[%s8080_s1 + $0x228] ss:$16 sps:$4 sm:$0xff]  }
  0xa5   :  { %2802 = vmatprep.subr.bf16.mxu1 %v5060_v20  ;;  %v5290_v20 = vld [vmem:[%s8081_s0 + $0xdc] ss:$36 sps:$4 sm:$0xff]  }
  0xa6   :  { %v6224_v21 = vld [vmem:[%s8081_s0 + $0xf8] ss:$36 sps:$4 sm:$0xff]  }
  0xa8   :  { %2803 = vmatpush2.bf16.msra.mxu1 %v5058_v25  ;;  %v5157_v25 = vld [vmem:[%s8080_s1 + $0x40c] ss:$16 sps:$4 sm:$0xff]  }
  0xa9   :  { %2804 = vmatprep.subr.bf16.mxu1 %v5072_v27  ;;  %v5152_v27 = vld [vmem:[%s8080_s1 + $0x208] ss:$16 sps:$4 sm:$0xff]  }
  0xaa   :  { %2528 = vmatmul.mubr.bf16.gmra.mxu0 %v5065_v28  ;;  %v5155_v28 = vld [vmem:[%s8080_s1 + $0x408] ss:$16 sps:$4 sm:$0xff]  }
  0xab   :  { %2641 = vmatmul.mubr.bf16.gmra.mxu1 %v5066_v29  ;;  %2537 = vmatprep.mubr.bf16.mxu0 %v5076_v31  ;;  %v5161_v29 = vld [vmem:[%s8080_s1 + $0x3ec] ss:$16 sps:$4 sm:$0xff]   ;;  %v5292_v31 = vld [vmem:[%s8081_s0 + $0x124] ss:$36 sps:$4 sm:$0xff]  }
  0xac   :  { %2805 = vmatpush2.bf16.msra.mxu1 %v5070_v30  ;;  %2650 = vmatprep.mubr.bf16.mxu1 %v5078_v33  ;;  %v5164_v30 = vld [vmem:[%s8080_s1 + $0x5ec] ss:$16 sps:$4 sm:$0xff]   ;;  %v5159_v33 = vld [vmem:[%s8080_s1 + $0x3e8] ss:$16 sps:$4 sm:$0xff]  }
  0xad   :  { %2806 = vmatprep.subr.bf16.mxu1 %v5075_v32  ;;  %v6261_v32 = vld [vmem:[%s8081_s0 + $0x140] ss:$36 sps:$4 sm:$0xff]  }
  0xb0   :  { %2807 = vmatpush2.bf16.msra.mxu1 %v5073_v34  ;;  %v5162_v34 = vld [vmem:[%s8080_s1 + $0x5e8] ss:$16 sps:$4 sm:$0xff]  }
  0xb1   :  { %2808 = vmatprep.subr.bf16.mxu1 %v5087_v35  ;;  %v5167_v35 = vld [vmem:[%s8080_s1 + $0x3cc] ss:$16 sps:$4 sm:$0xff]  }
  0xb2   :  { %2538 = vmatmul.mubr.bf16.gmra.mxu0 %v5080_v36  ;;  %v5170_v36 = vld [vmem:[%s8080_s1 + $0x5cc] ss:$16 sps:$4 sm:$0xff]  }
  0xb3   :  { %2651 = vmatmul.mubr.bf16.gmra.mxu1 %v5081_v37  ;;  %2547 = vmatprep.mubr.bf16.mxu0 %v5091_v39  ;;  %v5293_v37 = vld [vmem:[%s8081_s0 + $0x120] ss:$36 sps:$4 sm:$0xff]   ;;  %v5168_v39 = vld [vmem:[%s8080_s1 + $0x5c8] ss:$16 sps:$4 sm:$0xff]  }
  0xb4   :  { %2809 = vmatpush2.bf16.msra.mxu1 %v5085_v38  ;;  %2660 = vmatprep.mubr.bf16.mxu1 %v5093_v41  ;;  %v5165_v38 = vld [vmem:[%s8080_s1 + $0x3c8] ss:$16 sps:$4 sm:$0xff]   ;;  %v5177_v41 = vld [vmem:[%s8080_s1 + $0x5ac] ss:$16 sps:$4 sm:$0xff]  }
  0xb5   :  { %2810 = vmatprep.subr.bf16.mxu1 %v5090_v40  ;;  %v5174_v40 = vld [vmem:[%s8080_s1 + $0x3ac] ss:$16 sps:$4 sm:$0xff]  }
  0xb8   :  { %2811 = vmatpush2.bf16.msra.mxu1 %v5088_v42  ;;  %v5294_v42 = vld [vmem:[%s8081_s0 + $0x16c] ss:$36 sps:$4 sm:$0xff]  }
  0xb9   :  { %2812 = vmatprep.subr.bf16.mxu1 %v5102_v43  ;;  %v6298_v43 = vld [vmem:[%s8081_s0 + $0x188] ss:$36 sps:$4 sm:$0xff]  }
  0xba   :  { %2548 = vmatmul.mubr.bf16.gmra.mxu0 %v5095_v44  ;;  %v5172_v44 = vld [vmem:[%s8080_s1 + $0x3a8] ss:$16 sps:$4 sm:$0xff]  }
  0xbb   :  { %2661 = vmatmul.mubr.bf16.gmra.mxu1 %v5096_v45  ;;  %2703 = vmatprep.mubr.bf16.mxu0 %v5349_v49  ;;  %v5175_v45 = vld [vmem:[%s8080_s1 + $0x5a8] ss:$16 sps:$4 sm:$0xff]  }
  0xbc   :  { %2813 = vmatpush2.bf16.msra.mxu1 %v5100_v46  ;;  %2816 = vmatprep.mubr.bf16.mxu1 %v5284_v50  ;;  %v5180_v46 = vld [vmem:[%s8080_s1 + $0x38c] ss:$16 sps:$4 sm:$0xff]   ;;  %v5178_v50 = vld [vmem:[%s8080_s1 + $0x388] ss:$16 sps:$4 sm:$0xff]  }
  0xbd   :  { %2814 = vmatprep.subr.bf16.mxu1 %v5105_v47  ;;  %v5183_v47 = vld [vmem:[%s8080_s1 + $0x58c] ss:$16 sps:$4 sm:$0xff]  }
  0xc0   :  { %2815 = vmatpush2.bf16.msra.mxu1 %v5103_v48  ;;  %v5295_v48 = vld [vmem:[%s8081_s0 + $0x168] ss:$36 sps:$4 sm:$0xff]  }
  0xc1   :  { %3010 = vmatprep.subr.bf16.mxu1 %v5112_v51  ;;  %v5181_v51 = vld [vmem:[%s8080_s1 + $0x588] ss:$16 sps:$4 sm:$0xff]  }
  0xc2   :  { %2704 = vmatmul.mubr.bf16.vlgmr.msra.gmra.mxu0 %v6113_v52 }
  0xc3   :  { %2817 = vmatmul.mubr.bf16.vlgmr.msra.gmra.mxu1 %v5285_v57  ;;  %2898 = vmatpush1.bf16.msra.mxu0 %v5107_v53  ;;  %v5187_v53 = vld [vmem:[%s8080_s1 + $0x36c] ss:$16 sps:$4 sm:$0xff]   ;;  %v5185_v57 = vld [vmem:[%s8080_s1 + $0x368] ss:$16 sps:$4 sm:$0xff]  }
  0xc4   :  { %3011 = vmatpush1.bf16.msra.mxu1 %v5110_v54  ;;  %2899 = vmatprep.subr.bf16.mxu0 %v5115_v55  ;;  %v5190_v54 = vld [vmem:[%s8080_s1 + $0x56c] ss:$16 sps:$4 sm:$0xff]   ;;  %v5296_v55 = vld [vmem:[%s8081_s0 + $0x1b4] ss:$36 sps:$4 sm:$0xff]  }
  0xc5   :  { %3012 = vmatprep.subr.bf16.mxu1 %v5118_v56  ;;  %2713 = vmatprep.mubr.bf16.mxu0 %v5349_v49  ;;  %v6335_v56 = vld [vmem:[%s8081_s0 + $0x1d0] ss:$36 sps:$4 sm:$0xff]  }
  0xc6   :  { %2826 = vmatprep.mubr.bf16.mxu1 %v5286_v62  ;;  %v5191_v62 = vld [vmem:[%s8080_s1 + $0x348] ss:$16 sps:$4 sm:$0xff]  }
  0xc7   :  { %2900 = vmatpush1.bf16.msra.mxu0 %v5113_v58  ;;  %v5188_v58 = vld [vmem:[%s8080_s1 + $0x568] ss:$16 sps:$4 sm:$0xff]  }
  0xc8   :  { %3013 = vmatpush1.bf16.msra.mxu1 %v5116_v59  ;;  %2901 = vmatprep.subr.bf16.mxu0 %v5122_v60  ;;  %v5193_v59 = vld [vmem:[%s8080_s1 + $0x34c] ss:$16 sps:$4 sm:$0xff]  }
  0xc9   :  { %3014 = vmatprep.subr.bf16.mxu1 %v5125_v61  ;;  %v5196_v60 = vld [vmem:[%s8080_s1 + $0x54c] ss:$16 sps:$4 sm:$0xff]   ;;  %v5297_v61 = vld [vmem:[%s8081_s0 + $0x1b0] ss:$36 sps:$4 sm:$0xff]  }
  0xca   :  { %2714 = vmatmul.mubr.bf16.gmra.mxu0 %v6150_v63 }
  0xcb   :  { %2827 = vmatmul.mubr.bf16.gmra.mxu1 %v5287_v5  ;;  %2902 = vmatpush1.bf16.msra.mxu0 %v5120_v0  ;;  %v5194_v0 = vld [vmem:[%s8080_s1 + $0x548] ss:$16 sps:$4 sm:$0xff]  }
  0xcc   :  { %3015 = vmatpush1.bf16.msra.mxu1 %v5123_v1  ;;  %2903 = vmatprep.subr.bf16.mxu0 %v5128_v2  ;;  %v391_v1 = vlaneseq  ;;  %v5200_v2 = vld [vmem:[%s8080_s1 + $0x32c] ss:$16 sps:$4 sm:$0xff]  }
  0xcd   :  { %3016 = vmatprep.subr.bf16.mxu1 %v5131_v3  ;;  %2723 = vmatprep.mubr.bf16.mxu0 %v5349_v49  ;;  %v5203_v3 = vld [vmem:[%s8080_s1 + $0x52c] ss:$16 sps:$4 sm:$0xff]  }
  0xce   :  { %2836 = vmatprep.mubr.bf16.mxu1 %v5288_v9  ;;  %v6372_v5 = vld [vmem:[%s8081_s0 + $0x218] ss:$36 sps:$4 sm:$0xff]  }
  0xcf   :  { %2904 = vmatpush1.bf16.msra.mxu0 %v5126_v4  ;;  %v5298_v4 = vld [vmem:[%s8081_s0 + $0x1fc] ss:$36 sps:$4 sm:$0xff]  }
  0xd0   :  { %3017 = vmatpush1.bf16.msra.mxu1 %v5129_v6  ;;  %2905 = vmatprep.subr.bf16.mxu0 %v5135_v7  ;;  %v5198_v6 = vld [vmem:[%s8080_s1 + $0x328] ss:$16 sps:$4 sm:$0xff]   ;;  %v5206_v9 = vld [vmem:[%s8080_s1 + $0x30c] ss:$16 sps:$4 sm:$0xff]  }
  0xd1   :  { %3018 = vmatprep.subr.bf16.mxu1 %v5138_v8  ;;  %v5201_v7 = vld [vmem:[%s8080_s1 + $0x528] ss:$16 sps:$4 sm:$0xff]   ;;  %v6380_v8 = vshrl.u32 %v391_v1, 7  ;;  %v5242_v1 = vld [vmem:[%s8080_s1 + $0x88c] ss:$16 sps:$4 sm:$0xff]  }
  0xd2   :  { %2724 = vmatmul.mubr.bf16.gmra.mxu0 %v6187_v10 }
  0xd3   :  { %2837 = vmatmul.mubr.bf16.gmra.mxu1 %v5289_v15  ;;  %2906 = vmatpush1.bf16.msra.mxu0 %v5133_v11  ;;  %v5209_v11 = vld [vmem:[%s8080_s1 + $0x50c] ss:$16 sps:$4 sm:$0xff]   ;;  %v6399_v15 = vsub.s32 0, %v6380_v8 }
  0xd4   :  { %3019 = vmatpush1.bf16.msra.mxu1 %v5136_v12  ;;  %2907 = vmatprep.subr.bf16.mxu0 %v5141_v13  ;;  %v5299_v12 = vld [vmem:[%s8081_s0 + $0x1f8] ss:$36 sps:$4 sm:$0xff]  }
  0xd5   :  { %3020 = vmatprep.subr.bf16.mxu1 %v5144_v14  ;;  %2733 = vmatprep.mubr.bf16.mxu0 %v5349_v49  ;;  %v5204_v13 = vld [vmem:[%s8080_s1 + $0x308] ss:$16 sps:$4 sm:$0xff]   ;;  %8138 = vst [vmem:[#allocation2_spill] sm:$0xff] %v6399_v15 }
  0xd6   :  { %2846 = vmatprep.mubr.bf16.mxu1 %v5290_v20  ;;  %v5207_v14 = vld [vmem:[%s8080_s1 + $0x508] ss:$16 sps:$4 sm:$0xff]  }
  0xd7   :  { %2908 = vmatpush1.bf16.msra.mxu0 %v5139_v16  ;;  %v389_v16 = vld [vmem:[%s8082_s2] sm:$0xf]  ;;  %v5301_v20 = vld [vmem:[%s8081_s0 + $0x14] ss:$36 sps:$4 sm:$0xff]  }
  0xd8   :  { %3021 = vmatpush1.bf16.msra.mxu1 %v5142_v17  ;;  %2909 = vmatprep.subr.bf16.mxu0 %v5148_v18  ;;  %v5212_v17 = vld [vmem:[%s8080_s1 + $0x6ec] ss:$16 sps:$4 sm:$0xff]  }
  0xd9   :  { %3022 = vmatprep.subr.bf16.mxu1 %v5151_v19  ;;  %v5215_v18 = vld [vmem:[%s8080_s1 + $0x8ec] ss:$16 sps:$4 sm:$0xff]  }
  0xda   :  { %2734 = vmatmul.mubr.bf16.gmra.mxu0 %v6224_v21  ;;  %v5300_v19 = vld [vmem:[%s8081_s0 + $0xc] ss:$36 sps:$4 sm:$0xff]  }
  0xdb   :  { %2847 = vmatmul.mubr.bf16.gmra.mxu1 %v5291_v26  ;;  %2910 = vmatpush1.bf16.msra.mxu0 %v5146_v22  ;;  %v397_v22 = vsub.s32 1, %v6380_v8  ;;  %v5218_v26 = vld [vmem:[%s8080_s1 + $0x6cc] ss:$16 sps:$4 sm:$0xff]  }
  0xdc   :  { %3023 = vmatpush1.bf16.msra.mxu1 %v5149_v23  ;;  %2911 = vmatprep.subr.bf16.mxu0 %v5154_v24  ;;  %v6418_v23 = vrot.slane %v389_v16, %v6399_v15  ;;  %v5210_v24 = vld [vmem:[%s8080_s1 + $0x6e8] ss:$16 sps:$4 sm:$0xff]  }
  0xdd   :  { %3024 = vmatprep.subr.bf16.mxu1 %v5157_v25  ;;  %2743 = vmatprep.mubr.bf16.mxu0 %v5349_v49  ;;  %v5213_v25 = vld [vmem:[%s8080_s1 + $0x8e8] ss:$16 sps:$4 sm:$0xff]  }
  0xde   :  { %2856 = vmatprep.mubr.bf16.mxu1 %v5292_v31  ;;  %v5302_v31 = vld [vmem:[%s8081_s0 + $0x8] ss:$36 sps:$4 sm:$0xff]  }
  0xdf   :  { %2912 = vmatpush1.bf16.msra.mxu0 %v5152_v27  ;;  %v6429_v27 = vrot.slane %v389_v16, %v397_v22  ;;  %v5240_v16 = vld [vmem:[%s8080_s1 + $0x888] ss:$16 sps:$4 sm:$0xff]  }
  0xe0   :  { %3025 = vmatpush1.bf16.msra.mxu1 %v5155_v28  ;;  %2913 = vmatprep.subr.bf16.mxu0 %v5161_v29  ;;  %v5224_v28 = vld [vmem:[%s8080_s1 + $0x8cc] ss:$16 sps:$4 sm:$0xff]   ;;  %v5228_v22 = vld [vmem:[%s8080_s1 + $0x668] ss:$16 sps:$4 sm:$0xff]  }
  0xe1   :  { %3026 = vmatprep.subr.bf16.mxu1 %v5164_v30 }
  0xe2   :  { %2744 = vmatmul.mubr.bf16.gmra.mxu0 %v6261_v32 }
  0xe3   :  { %2857 = vmatmul.mubr.bf16.gmra.mxu1 %v5293_v37  ;;  %2914 = vmatpush2.bf16.msra.mxu0 %v5159_v33  ;;  %v5303_v33 = vld [vmem:[%s8081_s0 + $0x10] ss:$36 sps:$4 sm:$0xff]  }
  0xe4   :  { %3027 = vmatpush2.bf16.msra.mxu1 %v5162_v34  ;;  %2915 = vmatprep.subr.bf16.mxu0 %v5167_v35  ;;  %v5216_v35 = vld [vmem:[%s8080_s1 + $0x6c8] ss:$16 sps:$4 sm:$0xff]  }
  0xe5   :  { %3028 = vmatprep.subr.bf16.mxu1 %v5170_v36  ;;  %2753 = vmatprep.mubr.bf16.mxu0 %v5349_v49  ;;  %v5222_v36 = vld [vmem:[%s8080_s1 + $0x8c8] ss:$16 sps:$4 sm:$0xff]  }
  0xe6   :  { %2866 = vmatprep.mubr.bf16.mxu1 %v5294_v42 }
  0xe7   :  { %2916 = vmatpush2.bf16.msra.mxu0 %v5165_v38 }
  0xe8   :  { %3029 = vmatpush2.bf16.msra.mxu1 %v5168_v39  ;;  %2917 = vmatprep.subr.bf16.mxu0 %v5174_v40  ;;  %v5304_v39 = vld [vmem:[%s8081_s0 + $0x54] ss:$36 sps:$4 sm:$0xff]   ;;  %v5221_v40 = vld [vmem:[%s8080_s1 + $0x6ac] ss:$16 sps:$4 sm:$0xff]  }
  0xe9   :  { %3030 = vmatprep.subr.bf16.mxu1 %v5177_v41  ;;  %v5233_v41 = vld [vmem:[%s8080_s1 + $0x8ac] ss:$16 sps:$4 sm:$0xff]  }
  0xea   :  { %2754 = vmatmul.mubr.bf16.gmra.mxu0 %v6298_v43 }
  0xeb   :  { %2867 = vmatmul.mubr.bf16.gmra.mxu1 %v5295_v48  ;;  %2918 = vmatpush2.bf16.msra.mxu0 %v5172_v44 }
  0xec   :  { %3031 = vmatpush2.bf16.msra.mxu1 %v5175_v45  ;;  %2919 = vmatprep.subr.bf16.mxu0 %v5180_v46  ;;  %v5305_v45 = vld [vmem:[%s8081_s0 + $0x5c] ss:$36 sps:$4 sm:$0xff]  }
  0xed   :  { %3032 = vmatprep.subr.bf16.mxu1 %v5183_v47  ;;  %2763 = vmatprep.mubr.bf16.mxu0 %v5349_v49 }
  0xee   :  { %2876 = vmatprep.mubr.bf16.mxu1 %v5296_v55  ;;  %v5227_v55 = vld [vmem:[%s8080_s1 + $0x68c] ss:$16 sps:$4 sm:$0xff]  }
  0xef   :  { %2920 = vmatpush2.bf16.msra.mxu0 %v5178_v50 }
  0xf0   :  { %3033 = vmatpush2.bf16.msra.mxu1 %v5181_v51  ;;  %2921 = vmatprep.subr.bf16.mxu0 %v5187_v53  ;;  %v5219_v51 = vld [vmem:[%s8080_s1 + $0x6a8] ss:$16 sps:$4 sm:$0xff]  }
  0xf1   :  { %3034 = vmatprep.subr.bf16.mxu1 %v5190_v54 }
  0xf2   :  { %2764 = vmatmul.mubr.bf16.gmra.mxu0 %v6335_v56 }
  0xf3   :  { %2877 = vmatmul.mubr.bf16.gmra.mxu1 %v5297_v61  ;;  %2922 = vmatpush2.bf16.msra.mxu0 %v5185_v57 }
  0xf4   :  { %3035 = vmatpush2.bf16.msra.mxu1 %v5188_v58  ;;  %2923 = vmatprep.subr.bf16.mxu0 %v5193_v59  ;;  %v5231_v59 = vld [vmem:[%s8080_s1 + $0x8a8] ss:$16 sps:$4 sm:$0xff]  }
  0xf5   :  { %3036 = vmatprep.subr.bf16.mxu1 %v5196_v60  ;;  %2773 = vmatprep.mubr.bf16.mxu0 %v5349_v49 }
  0xf6   :  { %2886 = vmatprep.mubr.bf16.mxu1 %v5298_v4  ;;  %v5225_v4 = vld [vmem:[%s8080_s1 + $0x688] ss:$16 sps:$4 sm:$0xff]  }
  0xf7   :  { %2924 = vmatpush2.bf16.msra.mxu0 %v5191_v62  ;;  %v5306_v62 = vld [vmem:[%s8081_s0 + $0x50] ss:$36 sps:$4 sm:$0xff]  }
  0xf8   :  { %3037 = vmatpush2.bf16.msra.mxu1 %v5194_v0  ;;  %2925 = vmatprep.subr.bf16.mxu0 %v5200_v2  ;;  %v5307_v0 = vld [vmem:[%s8081_s0 + $0x58] ss:$36 sps:$4 sm:$0xff]  }
  0xf9   :  { %3038 = vmatprep.subr.bf16.mxu1 %v5203_v3 }
  0xfa   :  { %2774 = vmatmul.mubr.bf16.gmra.mxu0 %v6372_v5 }
  0xfb   :  { %2887 = vmatmul.mubr.bf16.gmra.mxu1 %v5299_v12  ;;  %2926 = vmatpush2.bf16.msra.mxu0 %v5198_v6  ;;  %v5308_v6 = vld [vmem:[%s8081_s0 + $0x9c] ss:$36 sps:$4 sm:$0xff]  }
  0xfc   :  { %3039 = vmatpush2.bf16.msra.mxu1 %v5201_v7  ;;  %2927 = vmatprep.subr.bf16.mxu0 %v5206_v9  ;;  %v5230_v12 = vld [vmem:[%s8080_s1 + $0x66c] ss:$16 sps:$4 sm:$0xff]  }
  0xfd   :  { %3040 = vmatprep.subr.bf16.mxu1 %v5209_v11  ;;  %2929 = vmatprep.mubr.bf16.mxu0 %v5300_v19  ;;  %v5309_v11 = vld [vmem:[%s8081_s0 + $0xa4] ss:$36 sps:$4 sm:$0xff]  }
  0xfe   :  { %3042 = vmatprep.mubr.bf16.mxu1 %v5301_v20 }
  0xff   :  { %2928 = vmatpush2.bf16.msra.mxu0 %v5204_v13 }
 0x100   :  { %3041 = vmatpush2.bf16.msra.mxu1 %v5207_v14  ;;  %3123 = vmatprep.subr.bf16.mxu0 %v5212_v17 }
 0x101   :  { %3236 = vmatprep.subr.bf16.mxu1 %v5215_v18 }
 0x102   :  { %v2253_v29 = vpop.f32.mrf.mxu0  ;;  %2930 = vmatmul.mubr.bf16.vlgmr.msra.gmra.mxu0 %v5302_v31 }
 0x103   :  { %v2366_v30 = vpop.f32.mrf.mxu1  ;;  %3043 = vmatmul.mubr.bf16.vlgmr.msra.gmra.mxu1 %v5303_v33  ;;  %v2254_v34 = vadd.f32 %v2253_v29, %v6418_v23  ;;  %3124 = vmatpush1.bf16.msra.mxu0 %v5210_v24 }
 0x104   :  { %3237 = vmatpush1.bf16.msra.mxu1 %v5213_v25  ;;  %v2255_v37 = vpop.f32.mrf.mxu0  ;;  %3125 = vmatprep.subr.bf16.mxu0 %v5218_v26  ;;  %v5236_v26 = vld [vmem:[%s8080_s1 + $0x64c] ss:$16 sps:$4 sm:$0xff]  }
 0x105   :  { %v2368_v38 = vpop.f32.mrf.mxu1  ;;  %2939 = vmatprep.mubr.bf16.mxu0 %v5304_v39  ;;  %v6456_v42 = vadd.f32 %v2366_v30, %v2254_v34  ;;  %v2256_v44 = vadd.f32 %v2255_v37, %v6429_v27  ;;  %3052 = vmatprep.mubr.bf16.mxu1 %v5305_v45  ;;  %v5251_v30 = vld [vmem:[%s8080_s1 + $0x86c] ss:$16 sps:$4 sm:$0xff]   ;;  %v5234_v39 = vld [vmem:[%s8080_s1 + $0x648] ss:$16 sps:$4 sm:$0xff]  }
 0x106   :  { %3238 = vmatprep.subr.bf16.mxu1 %v5224_v28  ;;  %v2257_v46 = vpop.f32.mrf.mxu0  ;;  %v5310_v34 = vld [vmem:[%s8081_s0 + $0x98] ss:$36 sps:$4 sm:$0xff]  }
 0x107   :  { %v2370_v47 = vpop.f32.mrf.mxu1  ;;  %v6462_v48 = vadd.f32 %v2368_v38, %v2256_v44  ;;  %v2258_v50 = vadd.f32 %v2257_v46, %v6418_v23  ;;  %3126 = vmatpush1.bf16.msra.mxu0 %v5216_v35  ;;  %v5311_v35 = vld [vmem:[%s8081_s0 + $0xa0] ss:$36 sps:$4 sm:$0xff]   ;;  %v5313_v46 = vld [vmem:[%s8081_s0 + $0xec] ss:$36 sps:$4 sm:$0xff]  }
 0x108   :  { %3239 = vmatpush1.bf16.msra.mxu1 %v5222_v36  ;;  %v2259_v53 = vpop.f32.mrf.mxu0  ;;  %3127 = vmatprep.subr.bf16.mxu0 %v5221_v40  ;;  %v5249_v36 = vld [vmem:[%s8080_s1 + $0x868] ss:$16 sps:$4 sm:$0xff]  }
 0x109   :  { %v2372_v54 = vpop.f32.mrf.mxu1  ;;  %3240 = vmatprep.subr.bf16.mxu1 %v5233_v41  ;;  %v6471_v57 = vadd.f32 %v2370_v47, %v2258_v50  ;;  %v2260_v58 = vadd.f32 %v2259_v53, %v6429_v27  ;;  %v5312_v40 = vld [vmem:[%s8081_s0 + $0xe4] ss:$36 sps:$4 sm:$0xff]   ;;  %v5260_v41 = vld [vmem:[%s8080_s1 + $0x84c] ss:$16 sps:$4 sm:$0xff]  }
 0x10a   :  { %v2263_v60 = vpop.f32.mrf.mxu0  ;;  %2940 = vmatmul.mubr.bf16.gmra.mxu0 %v5306_v62  ;;  %v5239_v47 = vld [vmem:[%s8080_s1 + $0x62c] ss:$16 sps:$4 sm:$0xff]  }
 0x10b   :  { %v2376_v61 = vpop.f32.mrf.mxu1  ;;  %3053 = vmatmul.mubr.bf16.gmra.mxu1 %v5307_v0  ;;  %v6486_v2 = vadd.f32 %v2372_v54, %v2260_v58  ;;  %v2264_v3 = vadd.f32 %v2263_v60, %v6418_v23  ;;  %3128 = vmatpush1.bf16.msra.mxu0 %v5219_v51  ;;  %v5245_v62 = vld [vmem:[%s8080_s1 + $0x60c] ss:$16 sps:$4 sm:$0xff]  }
 0x10c   :  { %2949 = vmatprep.mubr.bf16.mxu0 %v5308_v6  ;;  %v2265_v7 = vpop.f32.mrf.mxu0  ;;  %3129 = vmatprep.subr.bf16.mxu0 %v5227_v55 }
 0x10d   :  { %v2378_v9 = vpop.f32.mrf.mxu1  ;;  %3062 = vmatprep.mubr.bf16.mxu1 %v5309_v11  ;;  %v6501_v13 = vadd.f32 %v2376_v61, %v2264_v3  ;;  %v2266_v14 = vadd.f32 %v2265_v7, %v6429_v27  ;;  %3241 = vmatpush1.bf16.msra.mxu1 %v5231_v59  ;;  %v5237_v59 = vld [vmem:[%s8080_s1 + $0x628] ss:$16 sps:$4 sm:$0xff]   ;;  %v5314_v7 = vld [vmem:[%s8081_s0 + $0xe0] ss:$36 sps:$4 sm:$0xff]   ;;  %v5269_v11 = vld [vmem:[%s8080_s1 + $0x82c] ss:$16 sps:$4 sm:$0xff]  }
 0x10e   :  { %v2267_v17 = vpop.f32.mrf.mxu0  ;;  %3242 = vmatprep.subr.bf16.mxu1 %v5242_v1  ;;  %v5258_v3 = vld [vmem:[%s8080_s1 + $0x848] ss:$16 sps:$4 sm:$0xff]  }
 0x10f   :  { %v2380_v18 = vpop.f32.mrf.mxu1  ;;  %v6507_v19 = vadd.f32 %v2378_v9, %v2266_v14  ;;  %v2268_v20 = vadd.f32 %v2267_v17, %v6418_v23  ;;  %3130 = vmatpush1.bf16.msra.mxu0 %v5225_v4  ;;  %v5315_v9 = vld [vmem:[%s8081_s0 + $0xe8] ss:$36 sps:$4 sm:$0xff]  }
 0x110   :  { %v2269_v24 = vpop.f32.mrf.mxu0  ;;  %3131 = vmatprep.subr.bf16.mxu0 %v5230_v12  ;;  %v5316_v17 = vld [vmem:[%s8081_s0 + $0x12c] ss:$36 sps:$4 sm:$0xff]  }
 0x111   :  { %v2382_v25 = vpop.f32.mrf.mxu1  ;;  %v6516_v28 = vadd.f32 %v2380_v18, %v2268_v20  ;;  %v2270_v29 = vadd.f32 %v2269_v24, %v6429_v27  ;;  %3243 = vmatpush1.bf16.msra.mxu1 %v5240_v16  ;;  %v5243_v16 = vld [vmem:[%s8080_s1 + $0x608] ss:$16 sps:$4 sm:$0xff]   ;;  %v5248_v24 = vld [vmem:[%s8080_s1 + $0x7ec] ss:$16 sps:$4 sm:$0xff]  }
 0x112   :  { %v2273_v31 = vpop.f32.mrf.mxu0  ;;  %2950 = vmatmul.mubr.bf16.gmra.mxu0 %v5310_v34  ;;  %3244 = vmatprep.subr.bf16.mxu1 %v5251_v30 }
 0x113   :  { %v2386_v33 = vpop.f32.mrf.mxu1  ;;  %3063 = vmatmul.mubr.bf16.gmra.mxu1 %v5311_v35  ;;  %v6531_v37 = vadd.f32 %v2382_v25, %v2270_v29  ;;  %v2274_v38 = vadd.f32 %v2273_v31, %v6418_v23  ;;  %3132 = vmatpush1.bf16.msra.mxu0 %v5228_v22  ;;  %v5317_v22 = vld [vmem:[%s8081_s0 + $0x134] ss:$36 sps:$4 sm:$0xff]  }
 0x114   :  { %2959 = vmatprep.mubr.bf16.mxu0 %v5312_v40  ;;  %v2275_v44 = vpop.f32.mrf.mxu0  ;;  %3133 = vmatprep.subr.bf16.mxu0 %v5236_v26  ;;  %v5267_v29 = vld [vmem:[%s8080_s1 + $0x828] ss:$16 sps:$4 sm:$0xff]  }
 0x115   :  { %v2388_v45 = vpop.f32.mrf.mxu1  ;;  %3072 = vmatprep.mubr.bf16.mxu1 %v5313_v46  ;;  %v6549_v50 = vadd.f32 %v2386_v33, %v2274_v38  ;;  %v2276_v51 = vadd.f32 %v2275_v44, %v6429_v27  ;;  %3245 = vmatpush1.bf16.msra.mxu1 %v5249_v36  ;;  %v5246_v35 = vld [vmem:[%s8080_s1 + $0x7e8] ss:$16 sps:$4 sm:$0xff]   ;;  %v5278_v44 = vld [vmem:[%s8080_s1 + $0x80c] ss:$16 sps:$4 sm:$0xff]  }
 0x116   :  { %v2277_v53 = vpop.f32.mrf.mxu0  ;;  %3246 = vmatprep.subr.bf16.mxu1 %v5260_v41 }
 0x117   :  { %v2390_v54 = vpop.f32.mrf.mxu1  ;;  %v6552_v55 = vadd.f32 %v2388_v45, %v2276_v51  ;;  %v2278_v58 = vadd.f32 %v2277_v53, %v6418_v23  ;;  %3134 = vmatpush1.bf16.msra.mxu0 %v5234_v39  ;;  %v5254_v39 = vld [vmem:[%s8080_s1 + $0x7cc] ss:$16 sps:$4 sm:$0xff]   ;;  %v5319_v51 = vld [vmem:[%s8081_s0 + $0x130] ss:$36 sps:$4 sm:$0xff]   ;;  %v5276_v53 = vld [vmem:[%s8080_s1 + $0x808] ss:$16 sps:$4 sm:$0xff]  }
 0x118   :  { %v2279_v60 = vpop.f32.mrf.mxu0  ;;  %3135 = vmatprep.subr.bf16.mxu0 %v5239_v47  ;;  %v5318_v47 = vld [vmem:[%s8081_s0 + $0x128] ss:$36 sps:$4 sm:$0xff]  }
 0x119   :  { %v2392_v61 = vpop.f32.mrf.mxu1  ;;  %v6561_v0 = vadd.f32 %v2390_v54, %v2278_v58  ;;  %v2280_v1 = vadd.f32 %v2279_v60, %v6429_v27  ;;  %3247 = vmatpush1.bf16.msra.mxu1 %v5258_v3  ;;  %v5320_v60 = vld [vmem:[%s8081_s0 + $0x174] ss:$36 sps:$4 sm:$0xff]   ;;  %v5257_v3 = vld [vmem:[%s8080_s1 + $0x7ac] ss:$16 sps:$4 sm:$0xff]  }
 0x11a   :  { %v2283_v4 = vpop.f32.mrf.mxu0  ;;  %2960 = vmatmul.mubr.bf16.gmra.mxu0 %v5314_v7  ;;  %3248 = vmatprep.subr.bf16.mxu1 %v5269_v11 }
 0x11b   :  { %v2396_v6 = vpop.f32.mrf.mxu1  ;;  %3073 = vmatmul.mubr.bf16.gmra.mxu1 %v5315_v9  ;;  %v6576_v12 = vadd.f32 %v2392_v61, %v2280_v1  ;;  %v2284_v14 = vadd.f32 %v2283_v4, %v6418_v23  ;;  %3136 = vmatpush1.bf16.msra.mxu0 %v5237_v59  ;;  %v5252_v59 = vld [vmem:[%s8080_s1 + $0x7c8] ss:$16 sps:$4 sm:$0xff]   ;;  %v5321_v1 = vld [vmem:[%s8081_s0 + $0x17c] ss:$36 sps:$4 sm:$0xff]  }
 0x11c   :  { %2969 = vmatprep.mubr.bf16.mxu0 %v5316_v17  ;;  %v2285_v18 = vpop.f32.mrf.mxu0  ;;  %3137 = vmatprep.subr.bf16.mxu0 %v5245_v62 }
 0x11d   :  { %v2398_v20 = vpop.f32.mrf.mxu1  ;;  %3082 = vmatprep.mubr.bf16.mxu1 %v5317_v22  ;;  %v6591_v25 = vadd.f32 %v2396_v6, %v2284_v14  ;;  %v2286_v26 = vadd.f32 %v2285_v18, %v6429_v27  ;;  %3249 = vmatpush1.bf16.msra.mxu1 %v5267_v29 }
 0x11e   :  { %v2287_v30 = vpop.f32.mrf.mxu0  ;;  %3250 = vmatprep.subr.bf16.mxu1 %v5278_v44  ;;  %v5325_v44 = vld [vmem:[%s8081_s0 + $0x1c4] ss:$36 sps:$4 sm:$0xff]  }
 0x11f   :  { %v2400_v31 = vpop.f32.mrf.mxu1  ;;  %v6597_v33 = vadd.f32 %v2398_v20, %v2286_v26  ;;  %v2288_v34 = vadd.f32 %v2287_v30, %v6418_v23  ;;  %3138 = vmatpush1.bf16.msra.mxu0 %v5243_v16  ;;  %v5255_v16 = vld [vmem:[%s8080_s1 + $0x7a8] ss:$16 sps:$4 sm:$0xff]   ;;  %v5263_v20 = vld [vmem:[%s8080_s1 + $0x78c] ss:$16 sps:$4 sm:$0xff]   ;;  %v5322_v30 = vld [vmem:[%s8081_s0 + $0x170] ss:$36 sps:$4 sm:$0xff]  }
 0x120   :  { %v2289_v36 = vpop.f32.mrf.mxu0  ;;  %3139 = vmatprep.subr.bf16.mxu0 %v5248_v24 }
 0x121   :  { %v2402_v38 = vpop.f32.mrf.mxu1  ;;  %v6606_v40 = vadd.f32 %v2400_v31, %v2288_v34  ;;  %v2290_v41 = vadd.f32 %v2289_v36, %v6429_v27  ;;  %3251 = vmatpush1.bf16.msra.mxu1 %v5276_v53  ;;  %v5323_v31 = vld [vmem:[%s8081_s0 + $0x178] ss:$36 sps:$4 sm:$0xff]  }
 0x122   :  { %v2293_v45 = vpop.f32.mrf.mxu0  ;;  %2970 = vmatmul.mubr.bf16.gmra.mxu0 %v5318_v47  ;;  %v5261_v36 = vld [vmem:[%s8080_s1 + $0x788] ss:$16 sps:$4 sm:$0xff]  }
 0x123   :  { %v2406_v46 = vpop.f32.mrf.mxu1  ;;  %3083 = vmatmul.mubr.bf16.gmra.mxu1 %v5319_v51  ;;  %v6621_v54 = vadd.f32 %v2402_v38, %v2290_v41  ;;  %v2294_v58 = vadd.f32 %v2293_v45, %v6418_v23  ;;  %3140 = vmatpush2.bf16.msra.mxu0 %v5246_v35  ;;  %v5324_v38 = vld [vmem:[%s8081_s0 + $0x1bc] ss:$36 sps:$4 sm:$0xff]  }
 0x124   :  { %2979 = vmatprep.mubr.bf16.mxu0 %v5320_v60  ;;  %v2295_v61 = vpop.f32.mrf.mxu0  ;;  %3141 = vmatprep.subr.bf16.mxu0 %v5254_v39  ;;  %v5266_v45 = vld [vmem:[%s8080_s1 + $0x76c] ss:$16 sps:$4 sm:$0xff]   ;;  %v5264_v60 = vld [vmem:[%s8080_s1 + $0x768] ss:$16 sps:$4 sm:$0xff]  }
 0x125   :  { %v2408_v62 = vpop.f32.mrf.mxu1  ;;  %3092 = vmatprep.mubr.bf16.mxu1 %v5321_v1  ;;  %v6636_v4 = vadd.f32 %v2406_v46, %v2294_v58  ;;  %v2296_v6 = vadd.f32 %v2295_v61, %v6429_v27  ;;  %v5272_v1 = vld [vmem:[%s8080_s1 + $0x74c] ss:$16 sps:$4 sm:$0xff]  }
 0x126   :  { %v2297_v7 = vpop.f32.mrf.mxu0 }
 0x127   :  { %v2410_v9 = vpop.f32.mrf.mxu1  ;;  %v6639_v11 = vadd.f32 %v2408_v62, %v2296_v6  ;;  %v2298_v14 = vadd.f32 %v2297_v7, %v6418_v23  ;;  %3142 = vmatpush2.bf16.msra.mxu0 %v5252_v59 }
 0x128   :  { %v2299_v17 = vpop.f32.mrf.mxu0  ;;  %3143 = vmatprep.subr.bf16.mxu0 %v5257_v3 }
 0x129   :  { %v2412_v18 = vpop.f32.mrf.mxu1  ;;  %v6648_v22 = vadd.f32 %v2410_v9, %v2298_v14  ;;  %v2300_v24 = vadd.f32 %v2299_v17, %v6429_v27  ;;  %v5326_v14 = vld [vmem:[%s8081_s0 + $0x1b8] ss:$36 sps:$4 sm:$0xff]  }
 0x12a   :  { %v2303_v26 = vpop.f32.mrf.mxu0  ;;  %2980 = vmatmul.mubr.bf16.gmra.mxu0 %v5322_v30  ;;  %v5329_v30 = vld [vmem:[%s8081_s0 + $0x20c] ss:$36 sps:$4 sm:$0xff]  }
 0x12b   :  { %v2416_v29 = vpop.f32.mrf.mxu1  ;;  %3093 = vmatmul.mubr.bf16.gmra.mxu1 %v5323_v31  ;;  %v6657_v34 = vadd.f32 %v2412_v18, %v2300_v24  ;;  %v2304_v35 = vadd.f32 %v2303_v26, %v6418_v23  ;;  %3144 = vmatpush2.bf16.msra.mxu0 %v5255_v16  ;;  %v5327_v16 = vld [vmem:[%s8081_s0 + $0x1c0] ss:$36 sps:$4 sm:$0xff]   ;;  %v5275_v31 = vld [vmem:[%s8080_s1 + $0x72c] ss:$16 sps:$4 sm:$0xff]  }
 0x12c   :  { %2989 = vmatprep.mubr.bf16.mxu0 %v5324_v38  ;;  %v2305_v39 = vpop.f32.mrf.mxu0  ;;  %3145 = vmatprep.subr.bf16.mxu0 %v5263_v20  ;;  %v5270_v20 = vld [vmem:[%s8080_s1 + $0x748] ss:$16 sps:$4 sm:$0xff]  }
 0x12d   :  { %v2418_v41 = vpop.f32.mrf.mxu1  ;;  %3102 = vmatprep.mubr.bf16.mxu1 %v5325_v44  ;;  %v6672_v46 = vadd.f32 %v2416_v29, %v2304_v35  ;;  %v2306_v47 = vadd.f32 %v2305_v39, %v6429_v27  ;;  %v5328_v24 = vld [vmem:[%s8081_s0 + $0x204] ss:$36 sps:$4 sm:$0xff]  }
 0x12e   :  { %v2307_v51 = vpop.f32.mrf.mxu0 }
 0x12f   :  { %v2420_v53 = vpop.f32.mrf.mxu1  ;;  %v6675_v58 = vadd.f32 %v2418_v41, %v2306_v47  ;;  %v2308_v59 = vadd.f32 %v2307_v51, %v6418_v23  ;;  %3146 = vmatpush2.bf16.msra.mxu0 %v5261_v36 }
 0x130   :  { %v2309_v61 = vpop.f32.mrf.mxu0  ;;  %3147 = vmatprep.subr.bf16.mxu0 %v5266_v45  ;;  %v5273_v45 = vld [vmem:[%s8080_s1 + $0x728] ss:$16 sps:$4 sm:$0xff]  }
 0x131   :  { %v2422_v62 = vpop.f32.mrf.mxu1  ;;  %v6684_v3 = vadd.f32 %v2420_v53, %v2308_v59  ;;  %v2310_v6 = vadd.f32 %v2309_v61, %v6429_v27  ;;  %v5281_v53 = vld [vmem:[%s8080_s1 + $0x70c] ss:$16 sps:$4 sm:$0xff]  }
 0x132   :  { %v2313_v7 = vpop.f32.mrf.mxu0  ;;  %2990 = vmatmul.mubr.bf16.gmra.mxu0 %v5326_v14  ;;  %v5279_v14 = vld [vmem:[%s8080_s1 + $0x708] ss:$16 sps:$4 sm:$0xff]  }
 0x133   :  { %v2426_v9 = vpop.f32.mrf.mxu1  ;;  %3103 = vmatmul.mubr.bf16.gmra.mxu1 %v5327_v16  ;;  %v6693_v17 = vadd.f32 %v2422_v62, %v2310_v6  ;;  %v2314_v18 = vadd.f32 %v2313_v7, %v6418_v23  ;;  %3148 = vmatpush2.bf16.msra.mxu0 %v5264_v60  ;;  %v5331_v6 = vld [vmem:[%s8081_s0 + $0x208] ss:$36 sps:$4 sm:$0xff]   ;;  %v5332_v16 = vld [vmem:[%s8081_s0 + $0x1c] ss:$36 sps:$4 sm:$0xff]  }
 0x134   :  { %2999 = vmatprep.mubr.bf16.mxu0 %v5328_v24  ;;  %v2315_v26 = vpop.f32.mrf.mxu0  ;;  %3149 = vmatprep.subr.bf16.mxu0 %v5272_v1  ;;  %v5330_v1 = vld [vmem:[%s8081_s0 + $0x200] ss:$36 sps:$4 sm:$0xff]  }
 0x135   :  { %v2428_v29 = vpop.f32.mrf.mxu1  ;;  %3112 = vmatprep.mubr.bf16.mxu1 %v5329_v30  ;;  %v6708_v35 = vadd.f32 %v2426_v9, %v2314_v18  ;;  %v2316_v36 = vadd.f32 %v2315_v26, %v6429_v27 }
 0x136   :  { %v2317_v38 = vpop.f32.mrf.mxu0 }
 0x137   :  { %v2430_v39 = vpop.f32.mrf.mxu1  ;;  %v6711_v41 = vadd.f32 %v2428_v29, %v2316_v36  ;;  %v2318_v44 = vadd.f32 %v2317_v38, %v6418_v23  ;;  %3150 = vmatpush2.bf16.msra.mxu0 %v5270_v20 }
 0x138   :  { %v2319_v47 = vpop.f32.mrf.mxu0  ;;  %3151 = vmatprep.subr.bf16.mxu0 %v5275_v31 }
 0x139   :  { %v2432_v51 = vpop.f32.mrf.mxu1  ;;  %v6720_v59 = vadd.f32 %v2430_v39, %v2318_v44  ;;  %v2320_v60 = vadd.f32 %v2319_v47, %v6429_v27 }
 0x13a   :  { %v2323_v61 = vpop.f32.mrf.mxu0  ;;  %3000 = vmatmul.mubr.bf16.gmra.mxu0 %v5330_v1 }
 0x13b   :  { %v2436_v62 = vpop.f32.mrf.mxu1  ;;  %3113 = vmatmul.mubr.bf16.gmra.mxu1 %v5331_v6  ;;  %v6729_v7 = vadd.f32 %v2432_v51, %v2320_v60  ;;  %v2324_v9 = vadd.f32 %v2323_v61, %v6418_v23  ;;  %3152 = vmatpush2.bf16.msra.mxu0 %v5273_v45  ;;  %v5334_v61 = vld [vmem:[%s8081_s0 + $0x64] ss:$36 sps:$4 sm:$0xff]  }
 0x13c   :  { %3155 = vmatprep.mubr.bf16.mxu0 %v5332_v16  ;;  %v2325_v18 = vpop.f32.mrf.mxu0  ;;  %3153 = vmatprep.subr.bf16.mxu0 %v5281_v53  ;;  %v5333_v53 = vld [vmem:[%s8081_s0 + $0x18] ss:$36 sps:$4 sm:$0xff]  }
 0x13d   :  { %v2438_v20 = vpop.f32.mrf.mxu1  ;;  %3268 = vmatprep.mubr.bf16.mxu1 %v5349_v49  ;;  %v6739_v24 = vadd.f32 %v2436_v62, %v2324_v9  ;;  %v2326_v26 = vadd.f32 %v2325_v18, %v6429_v27 }
 0x13e   :  { %v2327_v29 = vpop.f32.mrf.mxu0 }
 0x13f   :  { %v2440_v30 = vpop.f32.mrf.mxu1  ;;  %v6742_v31 = vadd.f32 %v2438_v20, %v2326_v26  ;;  %v2328_v36 = vadd.f32 %v2327_v29, %v6418_v23  ;;  %3154 = vmatpush2.bf16.msra.mxu0 %v5279_v14 }
 0x140   :  { %v2329_v38 = vpop.f32.mrf.mxu0 }
 0x141   :  { %v2442_v39 = vpop.f32.mrf.mxu1  ;;  %v6745_v44 = vadd.f32 %v2440_v30, %v2328_v36  ;;  %v2330_v45 = vadd.f32 %v2329_v38, %v6429_v27  ;;  %v5335_v36 = vld [vmem:[%s8081_s0 + $0x60] ss:$36 sps:$4 sm:$0xff]  }
 0x142   :  { %v2479_v47 = vpop.f32.mrf.mxu0  ;;  %3156 = vmatmul.mubr.bf16.vlgmr.msra.gmra.mxu0 %v5333_v53 }
 0x143   :  { %v2592_v51 = vpop.f32.mrf.mxu1  ;;  %3269 = vmatmul.mubr.bf16.vlgmr.msra.gmra.mxu1 %v6113_v52  ;;  %v6752_v60 = vadd.f32 %v2442_v39, %v2330_v45  ;;  %v2480_v23 = vadd.f32 %v2479_v47, %v6456_v42  ;;  %3165 = vmatprep.mubr.bf16.mxu0 %v5334_v61 }
 0x144   :  { %3278 = vmatprep.mubr.bf16.mxu1 %v5349_v49  ;;  %v2481_v27 = vpop.f32.mrf.mxu0 }
 0x145   :  { %v2594_v62 = vpop.f32.mrf.mxu1  ;;  %v6759_v1 = vadd.f32 %v2592_v51, %v2480_v23  ;;  %v2482_v6 = vadd.f32 %v2481_v27, %v6462_v48 }
 0x146   :  { %v2483_v9 = vpop.f32.mrf.mxu0 }
 0x147   :  { %v2596_v14 = vpop.f32.mrf.mxu1  ;;  %v6762_v52 = vadd.f32 %v2594_v62, %v2482_v6  ;;  %v2484_v16 = vadd.f32 %v2483_v9, %v6471_v57  ;;  %v5336_v57 = vld [vmem:[%s8081_s0 + $0xac] ss:$36 sps:$4 sm:$0xff]  }
 0x148   :  { %v2485_v42 = vpop.f32.mrf.mxu0 }
 0x149   :  { %v2598_v18 = vpop.f32.mrf.mxu1  ;;  %v6765_v20 = vadd.f32 %v2596_v14, %v2484_v16  ;;  %v2486_v26 = vadd.f32 %v2485_v42, %v6486_v2  ;;  %v5337_v14 = vld [vmem:[%s8081_s0 + $0xa8] ss:$36 sps:$4 sm:$0xff]  }
 0x14a   :  { %v2489_v29 = vpop.f32.mrf.mxu0  ;;  %3166 = vmatmul.mubr.bf16.gmra.mxu0 %v5335_v36 }
 0x14b   :  { %v2602_v30 = vpop.f32.mrf.mxu1  ;;  %3279 = vmatmul.mubr.bf16.gmra.mxu1 %v6150_v63  ;;  %v6772_v48 = vadd.f32 %v2598_v18, %v2486_v26  ;;  %v2490_v38 = vadd.f32 %v2489_v29, %v6501_v13  ;;  %3175 = vmatprep.mubr.bf16.mxu0 %v5336_v57 }
 0x14c   :  { %3288 = vmatprep.mubr.bf16.mxu1 %v5349_v49  ;;  %v2491_v2 = vpop.f32.mrf.mxu0 }
 0x14d   :  { %v2604_v39 = vpop.f32.mrf.mxu1  ;;  %v6779_v45 = vadd.f32 %v2602_v30, %v2490_v38  ;;  %v2492_v47 = vadd.f32 %v2491_v2, %v6507_v19 }
 0x14e   :  { %v2493_v51 = vpop.f32.mrf.mxu0 }
 0x14f   :  { %v2606_v53 = vpop.f32.mrf.mxu1  ;;  %v6782_v63 = vadd.f32 %v2604_v39, %v2492_v47  ;;  %v2494_v23 = vadd.f32 %v2493_v51, %v6516_v28  ;;  %v5338_v28 = vld [vmem:[%s8081_s0 + $0xf4] ss:$36 sps:$4 sm:$0xff]  }
 0x150   :  { %v2495_v13 = vpop.f32.mrf.mxu0  ;;  %v5339_v51 = vld [vmem:[%s8081_s0 + $0xf0] ss:$36 sps:$4 sm:$0xff]  }
 0x151   :  { %v2608_v61 = vpop.f32.mrf.mxu1  ;;  %v6785_v27 = vadd.f32 %v2606_v53, %v2494_v23  ;;  %v2496_v62 = vadd.f32 %v2495_v13, %v6531_v37 }
 0x152   :  { %v2499_v6 = vpop.f32.mrf.mxu0  ;;  %3176 = vmatmul.mubr.bf16.gmra.mxu0 %v5337_v14 }
 0x153   :  { %v2612_v9 = vpop.f32.mrf.mxu1  ;;  %3289 = vmatmul.mubr.bf16.gmra.mxu1 %v6187_v10  ;;  %v6792_v19 = vadd.f32 %v2608_v61, %v2496_v62  ;;  %v2500_v16 = vadd.f32 %v2499_v6, %v6549_v50  ;;  %3185 = vmatprep.mubr.bf16.mxu0 %v5338_v28 }
 0x154   :  { %3298 = vmatprep.mubr.bf16.mxu1 %v5349_v49  ;;  %v2501_v37 = vpop.f32.mrf.mxu0 }
 0x155   :  { %v2614_v42 = vpop.f32.mrf.mxu1  ;;  %v6799_v18 = vadd.f32 %v2612_v9, %v2500_v16  ;;  %v2502_v26 = vadd.f32 %v2501_v37, %v6552_v55 }
 0x156   :  { %v2503_v29 = vpop.f32.mrf.mxu0 }
 0x157   :  { %v2616_v30 = vpop.f32.mrf.mxu1  ;;  %v6802_v10 = vadd.f32 %v2614_v42, %v2502_v26  ;;  %v2504_v36 = vadd.f32 %v2503_v29, %v6561_v0  ;;  %v5340_v0 = vld [vmem:[%s8081_s0 + $0x13c] ss:$36 sps:$4 sm:$0xff]  }
 0x158   :  { %v2505_v50 = vpop.f32.mrf.mxu0  ;;  %v5341_v26 = vld [vmem:[%s8081_s0 + $0x138] ss:$36 sps:$4 sm:$0xff]  }
 0x159   :  { %v2618_v38 = vpop.f32.mrf.mxu1  ;;  %v6805_v57 = vadd.f32 %v2616_v30, %v2504_v36  ;;  %v2506_v2 = vadd.f32 %v2505_v50, %v6576_v12 }
 0x15a   :  { %v2509_v39 = vpop.f32.mrf.mxu0  ;;  %3186 = vmatmul.mubr.bf16.gmra.mxu0 %v5339_v51 }
 0x15b   :  { %v2622_v47 = vpop.f32.mrf.mxu1  ;;  %3299 = vmatmul.mubr.bf16.gmra.mxu1 %v6224_v21  ;;  %v6812_v55 = vadd.f32 %v2618_v38, %v2506_v2  ;;  %v2510_v53 = vadd.f32 %v2509_v39, %v6591_v25  ;;  %3195 = vmatprep.mubr.bf16.mxu0 %v5340_v0 }
 0x15c   :  { %3308 = vmatprep.mubr.bf16.mxu1 %v5349_v49  ;;  %v2511_v12 = vpop.f32.mrf.mxu0 }
 0x15d   :  { %v2624_v23 = vpop.f32.mrf.mxu1  ;;  %v6819_v13 = vadd.f32 %v2622_v47, %v2510_v53  ;;  %v2512_v61 = vadd.f32 %v2511_v12, %v6597_v33 }
 0x15e   :  { %v2513_v62 = vpop.f32.mrf.mxu0 }
 0x15f   :  { %v2626_v6 = vpop.f32.mrf.mxu1  ;;  %v6822_v21 = vadd.f32 %v2624_v23, %v2512_v61  ;;  %v2514_v9 = vadd.f32 %v2513_v62, %v6606_v40  ;;  %v5342_v40 = vld [vmem:[%s8081_s0 + $0x184] ss:$36 sps:$4 sm:$0xff]  }
 0x160   :  { %v2515_v25 = vpop.f32.mrf.mxu0  ;;  %v5343_v23 = vld [vmem:[%s8081_s0 + $0x180] ss:$36 sps:$4 sm:$0xff]  }
 0x161   :  { %v2628_v14 = vpop.f32.mrf.mxu1  ;;  %v6825_v16 = vadd.f32 %v2626_v6, %v2514_v9  ;;  %v2516_v28 = vadd.f32 %v2515_v25, %v6621_v54 }
 0x162   :  { %v2519_v37 = vpop.f32.mrf.mxu0  ;;  %3196 = vmatmul.mubr.bf16.gmra.mxu0 %v5341_v26 }
 0x163   :  { %v2632_v42 = vpop.f32.mrf.mxu1  ;;  %3309 = vmatmul.mubr.bf16.gmra.mxu1 %v6261_v32  ;;  %v6832_v33 = vadd.f32 %v2628_v14, %v2516_v28  ;;  %v2520_v29 = vadd.f32 %v2519_v37, %v6636_v4  ;;  %3205 = vmatprep.mubr.bf16.mxu0 %v5342_v40 }
 0x164   :  { %3318 = vmatprep.mubr.bf16.mxu1 %v5349_v49  ;;  %v2521_v54 = vpop.f32.mrf.mxu0 }
 0x165   :  { %v2634_v30 = vpop.f32.mrf.mxu1  ;;  %v6839_v36 = vadd.f32 %v2632_v42, %v2520_v29  ;;  %v2522_v50 = vadd.f32 %v2521_v54, %v6639_v11  ;;  %v5345_v54 = vld [vmem:[%s8081_s0 + $0x1c8] ss:$36 sps:$4 sm:$0xff]  }
 0x166   :  { %v2523_v38 = vpop.f32.mrf.mxu0 }
 0x167   :  { %v2636_v2 = vpop.f32.mrf.mxu1  ;;  %v6842_v32 = vadd.f32 %v2634_v30, %v2522_v50  ;;  %v2524_v39 = vadd.f32 %v2523_v38, %v6648_v22  ;;  %v5344_v22 = vld [vmem:[%s8081_s0 + $0x1cc] ss:$36 sps:$4 sm:$0xff]  }
 0x168   :  { %v2525_v4 = vpop.f32.mrf.mxu0 }
 0x169   :  { %v2638_v47 = vpop.f32.mrf.mxu1  ;;  %v6845_v51 = vadd.f32 %v2636_v2, %v2524_v39  ;;  %v2526_v53 = vadd.f32 %v2525_v4, %v6657_v34 }
 0x16a   :  { %v2529_v0 = vpop.f32.mrf.mxu0  ;;  %3206 = vmatmul.mubr.bf16.gmra.mxu0 %v5343_v23 }
 0x16b   :  { %v2642_v12 = vpop.f32.mrf.mxu1  ;;  %3319 = vmatmul.mubr.bf16.gmra.mxu1 %v6298_v43  ;;  %v6852_v11 = vadd.f32 %v2638_v47, %v2526_v53  ;;  %v2530_v61 = vadd.f32 %v2529_v0, %v6672_v46  ;;  %3215 = vmatprep.mubr.bf16.mxu0 %v5344_v22 }
 0x16c   :  { %3328 = vmatprep.mubr.bf16.mxu1 %v5349_v49  ;;  %v2531_v34 = vpop.f32.mrf.mxu0 }
 0x16d   :  { %v2644_v62 = vpop.f32.mrf.mxu1  ;;  %v6859_v6 = vadd.f32 %v2642_v12, %v2530_v61  ;;  %v2532_v9 = vadd.f32 %v2531_v34, %v6675_v58  ;;  %v5347_v61 = vld [vmem:[%s8081_s0 + $0x210] ss:$36 sps:$4 sm:$0xff]  }
 0x16e   :  { %v2533_v25 = vpop.f32.mrf.mxu0 }
 0x16f   :  { %v2646_v14 = vpop.f32.mrf.mxu1  ;;  %v6862_v43 = vadd.f32 %v2644_v62, %v2532_v9  ;;  %v2534_v28 = vadd.f32 %v2533_v25, %v6684_v3  ;;  %v5346_v3 = vld [vmem:[%s8081_s0 + $0x214] ss:$36 sps:$4 sm:$0xff]  }
 0x170   :  { %v2535_v46 = vpop.f32.mrf.mxu0 }
 0x171   :  { %v2648_v37 = vpop.f32.mrf.mxu1  ;;  %v6865_v42 = vadd.f32 %v2646_v14, %v2534_v28  ;;  %v2536_v26 = vadd.f32 %v2535_v46, %v6693_v17 }
 0x172   :  { %v2539_v29 = vpop.f32.mrf.mxu0  ;;  %3216 = vmatmul.mubr.bf16.gmra.mxu0 %v5345_v54 }
 0x173   :  { %v2652_v40 = vpop.f32.mrf.mxu1  ;;  %3329 = vmatmul.mubr.bf16.gmra.mxu1 %v6335_v56  ;;  %v6872_v58 = vadd.f32 %v2648_v37, %v2536_v26  ;;  %v2540_v30 = vadd.f32 %v2539_v29, %v6708_v35  ;;  %3225 = vmatprep.mubr.bf16.mxu0 %v5346_v3 }
 0x174   :  { %3338 = vmatprep.mubr.bf16.mxu1 %v5349_v49  ;;  %v2541_v17 = vpop.f32.mrf.mxu0 }
 0x175   :  { %v2654_v50 = vpop.f32.mrf.mxu1  ;;  %v6879_v38 = vadd.f32 %v2652_v40, %v2540_v30  ;;  %v2542_v2 = vadd.f32 %v2541_v17, %v6711_v41 }
 0x176   :  { %v2543_v39 = vpop.f32.mrf.mxu0 }
 0x177   :  { %v2656_v4 = vpop.f32.mrf.mxu1  ;;  %v6882_v56 = vadd.f32 %v2654_v50, %v2542_v2  ;;  %v2544_v47 = vadd.f32 %v2543_v39, %v6720_v59 }
 0x178   :  { %v2545_v35 = vpop.f32.mrf.mxu0 }
 0x179   :  { %v2658_v53 = vpop.f32.mrf.mxu1  ;;  %v6885_v0 = vadd.f32 %v2656_v4, %v2544_v47  ;;  %v2546_v12 = vadd.f32 %v2545_v35, %v6729_v7 }
 0x17a   :  { %v2549_v23 = vpop.f32.mrf.mxu0  ;;  %3226 = vmatmul.mubr.bf16.gmra.mxu0 %v5347_v61 }
 0x17b   :  { %v2662_v49 = vpop.f32.mrf.mxu1  ;;  %3339 = vmatmul.mubr.bf16.gmra.mxu1 %v6372_v5  ;;  %v6892_v41 = vadd.f32 %v2658_v53, %v2546_v12  ;;  %v2550_v22 = vadd.f32 %v2549_v23, %v6739_v24 }
 0x17c   :  { %v2551_v59 = vpop.f32.mrf.mxu0 }
 0x17d   :  { %v2664_v34 = vpop.f32.mrf.mxu1  ;;  %v6895_v62 = vadd.f32 %v2662_v49, %v2550_v22  ;;  %v2552_v9 = vadd.f32 %v2551_v59, %v6742_v31 }
 0x17e   :  { %v2553_v7 = vpop.f32.mrf.mxu0 }
 0x17f   :  { %v2666_v25 = vpop.f32.mrf.mxu1  ;;  %v6898_v14 = vadd.f32 %v2664_v34, %v2552_v9  ;;  %v2554_v28 = vadd.f32 %v2553_v7, %v6745_v44 }
 0x180   :  { %v2555_v46 = vpop.f32.mrf.mxu0 }
 0x181   :  { %v2668_v37 = vpop.f32.mrf.mxu1  ;;  %v6901_v26 = vadd.f32 %v2666_v25, %v2554_v28  ;;  %v2556_v5 = vadd.f32 %v2555_v46, %v6752_v60 }
 0x182   :  { %v2705_v29 = vpop.f32.mrf.mxu0 }
 0x183   :  { %v6904_v24 = vpop.f32.mrf.mxu1  ;;  %v6906_v40 = vadd.f32 %v2668_v37, %v2556_v5  ;;  %v6909_v54 = vadd.f32 %v2705_v29, %v6759_v1 }
 0x184   :  { %v2707_v31 = vpop.f32.mrf.mxu0 }
 0x185   :  { %8139 = vst [vmem:[#allocation3_spill] sm:$0xff] %v6909_v54  ;;  %v6911_v30 = vpop.f32.mrf.mxu1  ;;  %v6914_v3 = vadd.f32 %v2707_v31, %v6762_v52 }
 0x186   :  { %v2709_v44 = vpop.f32.mrf.mxu0 }
 0x187   :  { %8140 = vst [vmem:[#allocation4_spill] sm:$0xff] %v6914_v3  ;;  %v6916_v17 = vpop.f32.mrf.mxu1  ;;  %v6919_v50 = vadd.f32 %v2709_v44, %v6765_v20 }
 0x188   :  { %v2711_v60 = vpop.f32.mrf.mxu0 }
 0x189   :  { %8141 = vst [vmem:[#allocation5_spill] sm:$0xff] %v6919_v50  ;;  %v6921_v2 = vpop.f32.mrf.mxu1  ;;  %v6924_v39 = vadd.f32 %v2711_v60, %v6772_v48  ;;  %v3372_v46 = vmul.f32 %v6919_v50, %v6919_v50  ;;  %v3349_v29 = vadd.f32 %v6919_v50, %v6909_v54 }
 0x18a   :  { %v2715_v1 = vpop.f32.mrf.mxu0 }
 0x18b   :  { %8142 = vst [vmem:[#allocation6_spill] sm:$0xff] %v6924_v39  ;;  %v6926_v4 = vpop.f32.mrf.mxu1  ;;  %v6929_v47 = vadd.f32 %v2715_v1, %v6779_v45 }
 0x18c   :  { %v2717_v52 = vpop.f32.mrf.mxu0 }
 0x18d   :  { %8143 = vst [vmem:[#allocation7_spill] sm:$0xff] %v6929_v47  ;;  %v6931_v35 = vpop.f32.mrf.mxu1  ;;  %v6934_v53 = vadd.f32 %v2717_v52, %v6782_v63  ;;  %v3350_v1 = vadd.f32 %v3349_v29, %v6929_v47 }
 0x18e   :  { %v2719_v20 = vpop.f32.mrf.mxu0 }
 0x18f   :  { %8144 = vst [vmem:[#allocation8_spill] sm:$0xff] %v6934_v53  ;;  %v6936_v12 = vpop.f32.mrf.mxu1  ;;  %v6939_v23 = vadd.f32 %v2719_v20, %v6785_v27 }
 0x190   :  { %v2721_v48 = vpop.f32.mrf.mxu0 }
 0x191   :  { %8145 = vst [vmem:[#allocation9_spill] sm:$0xff] %v6939_v23  ;;  %v6941_v49 = vpop.f32.mrf.mxu1  ;;  %v6944_v61 = vadd.f32 %v2721_v48, %v6792_v19  ;;  %v3374_v52 = vmul.f32 %v6939_v23, %v6939_v23 }
 0x192   :  { %v2725_v45 = vpop.f32.mrf.mxu0 }
 0x193   :  { %8146 = vst [vmem:[#allocation10_spill] sm:$0xff] %v6944_v61  ;;  %v6946_v22 = vpop.f32.mrf.mxu1  ;;  %v6949_v59 = vadd.f32 %v2725_v45, %v6799_v18 }
 0x194   :  { %v2727_v63 = vpop.f32.mrf.mxu0 }
 0x195   :  { %8147 = vst [vmem:[#allocation11_spill] sm:$0xff] %v6949_v59  ;;  %v6951_v34 = vpop.f32.mrf.mxu1  ;;  %v6954_v9 = vadd.f32 %v2727_v63, %v6802_v10  ;;  %v3371_v10 = vmul.f32 %v6909_v54, %v6909_v54 }
 0x196   :  { %v2729_v27 = vpop.f32.mrf.mxu0 }
 0x197   :  { %8148 = vst [vmem:[#allocation12_spill] sm:$0xff] %v6954_v9  ;;  %v6956_v7 = vpop.f32.mrf.mxu1  ;;  %v6959_v25 = vadd.f32 %v2729_v27, %v6805_v57  ;;  %v3373_v57 = vmul.f32 %v6929_v47, %v6929_v47  ;;  %v3351_v27 = vadd.f32 %v3350_v1, %v6939_v23 }
 0x198   :  { %v2731_v19 = vpop.f32.mrf.mxu0 }
 0x199   :  { %8149 = vst [vmem:[#allocation13_spill] sm:$0xff] %v6959_v25  ;;  %v6961_v28 = vpop.f32.mrf.mxu1  ;;  %v6966_v18 = vadd.f32 %v2731_v19, %v6812_v55  ;;  %v3387_v55 = vadd.f32 %v3372_v46, %v3371_v10  ;;  %v3352_v29 = vadd.f32 %v3351_v27, %v6949_v59 }
 0x19a   :  { %v2735_v37 = vpop.f32.mrf.mxu0 }
 0x19b   :  { %8150 = vst [vmem:[#allocation14_spill] sm:$0xff] %v6966_v18  ;;  %v6968_v5 = vpop.f32.mrf.mxu1  ;;  %v6977_v31 = vadd.f32 %v2735_v37, %v6819_v13  ;;  %v3388_v63 = vadd.f32 %v3387_v55, %v3373_v57  ;;  %v3375_v13 = vmul.f32 %v6949_v59, %v6949_v59  ;;  %v3353_v23 = vadd.f32 %v3352_v29, %v6959_v25 }
 0x19c   :  { %v2737_v44 = vpop.f32.mrf.mxu0 }
 0x19d   :  { %8151 = vst [vmem:[#allocation15_spill] sm:$0xff] %v6977_v31  ;;  %v6979_v60 = vpop.f32.mrf.mxu1  ;;  %v6985_v20 = vadd.f32 %v2737_v44, %v6822_v21  ;;  %v3389_v10 = vadd.f32 %v3388_v63, %v3374_v52  ;;  %v3376_v21 = vmul.f32 %v6959_v25, %v6959_v25  ;;  %v3354_v59 = vadd.f32 %v3353_v23, %v6977_v31 }
 0x19e   :  { %v2739_v48 = vpop.f32.mrf.mxu0 }
 0x19f   :  { %8152 = vst [vmem:[#allocation16_spill] sm:$0xff] %v6985_v20  ;;  %v6987_v45 = vpop.f32.mrf.mxu1  ;;  %v6993_v19 = vadd.f32 %v2739_v48, %v6825_v16  ;;  %v3390_v1 = vadd.f32 %v3389_v10, %v3375_v13  ;;  %v3377_v16 = vmul.f32 %v6977_v31, %v6977_v31 }
 0x1a0   :  { %v2741_v46 = vpop.f32.mrf.mxu0 }
 0x1a1   :  { %8153 = vst [vmem:[#allocation17_spill] sm:$0xff] %v6993_v19  ;;  %v6995_v37 = vpop.f32.mrf.mxu1  ;;  %v7001_v44 = vadd.f32 %v2741_v46, %v6832_v33  ;;  %v3391_v27 = vadd.f32 %v3390_v1, %v3376_v21  ;;  %v3378_v33 = vmul.f32 %v6993_v19, %v6993_v19  ;;  %v3355_v25 = vadd.f32 %v3354_v59, %v6993_v19 }
 0x1a2   :  { %v2745_v57 = vpop.f32.mrf.mxu0 }
 0x1a3   :  { %8154 = vst [vmem:[#allocation18_spill] sm:$0xff] %v7001_v44  ;;  %v7003_v55 = vpop.f32.mrf.mxu1  ;;  %v7009_v48 = vadd.f32 %v2745_v57, %v6839_v36  ;;  %v3392_v29 = vadd.f32 %v3391_v27, %v3377_v16 }
 0x1a4   :  { %v2747_v52 = vpop.f32.mrf.mxu0 }
 0x1a5   :  { %8155 = vst [vmem:[#allocation19_spill] sm:$0xff] %v7009_v48  ;;  %v7011_v63 = vpop.f32.mrf.mxu1  ;;  %v7017_v46 = vadd.f32 %v2747_v52, %v6842_v32  ;;  %v3379_v36 = vmul.f32 %v7009_v48, %v7009_v48  ;;  %v3393_v1 = vadd.f32 %v3392_v29, %v3378_v33  ;;  %v3356_v31 = vadd.f32 %v3355_v25, %v7009_v48 }
 0x1a6   :  { %v2749_v13 = vpop.f32.mrf.mxu0 }
 0x1a7   :  { %8156 = vst [vmem:[#allocation20_spill] sm:$0xff] %v7017_v46  ;;  %v7019_v10 = vpop.f32.mrf.mxu1  ;;  %v7025_v57 = vadd.f32 %v2749_v13, %v6845_v51  ;;  %v3394_v27 = vadd.f32 %v3393_v1, %v3379_v36 }
 0x1a8   :  { %v2751_v21 = vpop.f32.mrf.mxu0 }
 0x1a9   :  { %8157 = vst [vmem:[#allocation21_spill] sm:$0xff] %v7025_v57  ;;  %v7027_v23 = vpop.f32.mrf.mxu1  ;;  %v3380_v32 = vmul.f32 %v7025_v57, %v7025_v57  ;;  %v7033_v52 = vadd.f32 %v2751_v21, %v6852_v11  ;;  %v3357_v19 = vadd.f32 %v3356_v31, %v7025_v57 }
 0x1aa   :  { %v2755_v16 = vpop.f32.mrf.mxu0 }
 0x1ab   :  { %8158 = vst [vmem:[#allocation22_spill] sm:$0xff] %v7033_v52  ;;  %v7035_v59 = vpop.f32.mrf.mxu1  ;;  %v7039_v51 = vadd.f32 %v2755_v16, %v6859_v6  ;;  %v3395_v33 = vadd.f32 %v3394_v27, %v3380_v32 }
 0x1ac   :  { %v2757_v13 = vpop.f32.mrf.mxu0 }
 0x1ad   :  { %8159 = vst [vmem:[#allocation23_spill] sm:$0xff] %v7039_v51  ;;  %v7041_v47 = vpop.f32.mrf.mxu1  ;;  %v3358_v25 = vadd.f32 %v3357_v19, %v7039_v51  ;;  %v3381_v29 = vmul.f32 %v7039_v51, %v7039_v51  ;;  %v7047_v11 = vadd.f32 %v2757_v13, %v6862_v43 }
 0x1ae   :  { %v2759_v21 = vpop.f32.mrf.mxu0 }
 0x1af   :  { %8160 = vst [vmem:[#allocation24_spill] sm:$0xff] %v7047_v11  ;;  %v7049_v48 = vpop.f32.mrf.mxu1  ;;  %v3396_v36 = vadd.f32 %v3395_v33, %v3381_v29  ;;  %v7052_v31 = vadd.f32 %v2759_v21, %v6865_v42 }
 0x1b0   :  { %v2761_v6 = vpop.f32.mrf.mxu0 }
 0x1b1   :  { %8161 = vst [vmem:[#allocation25_spill] sm:$0xff] %v7052_v31  ;;  %v7054_v1 = vpop.f32.mrf.mxu1  ;;  %v3359_v32 = vadd.f32 %v3358_v25, %v7052_v31  ;;  %v3382_v19 = vmul.f32 %v7052_v31, %v7052_v31  ;;  %v7060_v16 = vadd.f32 %v2761_v6, %v6872_v58 }
 0x1b2   :  { %v2765_v43 = vpop.f32.mrf.mxu0 }
 0x1b3   :  { %8162 = vst [vmem:[#allocation26_spill] sm:$0xff] %v7060_v16  ;;  %v7062_v27 = vpop.f32.mrf.mxu1  ;;  %v3397_v13 = vadd.f32 %v3396_v36, %v3382_v19  ;;  %v7065_v33 = vadd.f32 %v2765_v43, %v6879_v38 }
 0x1b4   :  { %v2767_v42 = vpop.f32.mrf.mxu0 }
 0x1b5   :  { %8163 = vst [vmem:[#allocation27_spill] sm:$0xff] %v7065_v33  ;;  %v7067_v29 = vpop.f32.mrf.mxu1  ;;  %v3360_v21 = vadd.f32 %v3359_v32, %v7065_v33  ;;  %v3383_v25 = vmul.f32 %v7065_v33, %v7065_v33  ;;  %v7073_v31 = vadd.f32 %v2767_v42, %v6882_v56  ;;  %v401_v56 = vsub.s32 2, %v6380_v8 }
 0x1b6   :  { %v2769_v58 = vpop.f32.mrf.mxu0 }
 0x1b7   :  { %8164 = vst [vmem:[#allocation28_spill] sm:$0xff] %v7073_v31  ;;  %v7075_v6 = vpop.f32.mrf.mxu1  ;;  %v3398_v51 = vadd.f32 %v3397_v13, %v3383_v25  ;;  %v7078_v36 = vadd.f32 %v2769_v58, %v6885_v0  ;;  %v405_v25 = vsub.s32 3, %v6380_v8 }
 0x1b8   :  { %v2771_v38 = vpop.f32.mrf.mxu0 }
 0x1b9   :  { %8165 = vst [vmem:[#allocation29_spill] sm:$0xff] %v7078_v36  ;;  %v7080_v19 = vpop.f32.mrf.mxu1  ;;  %v3361_v43 = vadd.f32 %v3360_v21, %v7078_v36  ;;  %v3384_v32 = vmul.f32 %v7078_v36, %v7078_v36  ;;  %v7086_v33 = vadd.f32 %v2771_v38, %v6892_v41 }
 0x1ba   :  { %v2775_v42 = vpop.f32.mrf.mxu0 }
 0x1bb   :  { %8166 = vst [vmem:[#allocation30_spill] sm:$0xff] %v7086_v33  ;;  %v7089_v57 = vpop.f32.mrf.mxu1  ;;  %v3399_v13 = vadd.f32 %v3398_v51, %v3384_v32  ;;  %v7092_v0 = vadd.f32 %v2775_v42, %v6895_v62  ;;  %v5348_v51 = vld [vmem:[%s8082_s2] sm:$0xf] }
 0x1bc   :  { %8167 = vst [vmem:[#allocation31_spill] sm:$0xff] %v7089_v57  ;;  %v2777_v58 = vpop.f32.mrf.mxu0  ;;  %v7106_v32 = vrot.slane %v5348_v51, %v401_v56 }
 0x1bd   :  { %8168 = vst [vmem:[#allocation32_spill] sm:$0xff] %v7092_v0  ;;  %v7095_v50 = vpop.f32.mrf.mxu1  ;;  %v3362_v21 = vadd.f32 %v3361_v43, %v7092_v0  ;;  %v3385_v41 = vmul.f32 %v7092_v0, %v7092_v0  ;;  %v7101_v38 = vadd.f32 %v2777_v58, %v6898_v14  ;;  %v7113_v43 = vrot.slane %v5348_v51, %v405_v25 }
 0x1be   :  { %8169 = vst [vmem:[#allocation33_spill] sm:$0xff] %v7095_v50  ;;  %v2779_v62 = vpop.f32.mrf.mxu0 }
 0x1bf   :  { %8170 = vst [vmem:[#allocation34_spill] sm:$0xff] %v7101_v38  ;;  %v7108_v42 = vpop.f32.mrf.mxu1  ;;  %v3400_v8 = vadd.f32 %v3399_v13, %v3385_v41  ;;  %v7111_v36 = vadd.f32 %v2779_v62, %v6901_v26  ;;  %v2819_v13 = vadd.f32 %v6904_v24, %v7106_v32  ;;  %v2821_v25 = vadd.f32 %v6911_v30, %v7113_v43 }
 0x1c0   :  { %8171 = vst [vmem:[#allocation35_spill] sm:$0xff] %v7108_v42  ;;  %v2781_v54 = vpop.f32.mrf.mxu0  ;;  %v2825_v24 = vadd.f32 %v6921_v2, %v7113_v43  ;;  %v2829_v30 = vadd.f32 %v6926_v4, %v7106_v32 }
 0x1c1   :  { %8172 = vst [vmem:[#allocation36_spill] sm:$0xff] %v7111_v36  ;;  %v7115_v0 = vpop.f32.mrf.mxu1  ;;  %v7118_v14 = vadd.f32 %v3362_v21, %v7111_v36  ;;  %v3386_v58 = vmul.f32 %v7111_v36, %v7111_v36  ;;  %v7123_v56 = vadd.f32 %v2781_v54, %v6906_v40 }
 0x1c2   :  { %8173 = vst [vmem:[#allocation37_spill] sm:$0xff] %v7115_v0  ;;  %v2931_v41 = vpop.f32.mrf.mxu0  ;;  %v2823_v0 = vadd.f32 %v6916_v17, %v7106_v32 }
 0x1c3   :  { %8174 = vst [vmem:[#allocation38_spill] sm:$0xff] %v7123_v56  ;;  %v3044_v26 = vpop.f32.mrf.mxu1  ;;  %v7127_v62 = vadd.f32 %v3400_v8, %v3386_v58  ;;  %v2932_v51 = vadd.f32 %v2931_v41, %v2819_v13 }
 0x1c4   :  { %v2933_v15 = vpop.f32.mrf.mxu0 }
 0x1c5   :  { %v3046_v21 = vpop.f32.mrf.mxu1  ;;  %v7133_v36 = vadd.f32 %v3044_v26, %v2932_v51  ;;  %v2934_v40 = vadd.f32 %v2933_v15, %v2821_v25  ;;  %v2831_v15 = vadd.f32 %v6931_v35, %v7113_v43 }
 0x1c6   :  { %v2935_v54 = vpop.f32.mrf.mxu0 }
 0x1c7   :  { %v3048_v42 = vpop.f32.mrf.mxu1  ;;  %v7137_v50 = vadd.f32 %v3046_v21, %v2934_v40  ;;  %v2936_v8 = vadd.f32 %v2935_v54, %v2823_v0  ;;  %v2833_v0 = vadd.f32 %v6936_v12, %v7106_v32 }
 0x1c8   :  { %v2937_v58 = vpop.f32.mrf.mxu0 }
 0x1c9   :  { %v3050_v57 = vpop.f32.mrf.mxu1  ;;  %v7141_v13 = vadd.f32 %v3048_v42, %v2936_v8  ;;  %v2938_v41 = vadd.f32 %v2937_v58, %v2825_v24  ;;  %v2835_v24 = vadd.f32 %v6941_v49, %v7113_v43 }
 0x1ca   :  { %v2941_v17 = vpop.f32.mrf.mxu0 }
 0x1cb   :  { %v3054_v26 = vpop.f32.mrf.mxu1  ;;  %v7145_v25 = vadd.f32 %v3050_v57, %v2938_v41  ;;  %v2942_v51 = vadd.f32 %v2941_v17, %v2829_v30  ;;  %v2839_v30 = vadd.f32 %v6946_v22, %v7106_v32 }
 0x1cc   :  { %v2943_v2 = vpop.f32.mrf.mxu0 }
 0x1cd   :  { %v3056_v21 = vpop.f32.mrf.mxu1  ;;  %v7149_v40 = vadd.f32 %v3054_v26, %v2942_v51  ;;  %v2944_v54 = vadd.f32 %v2943_v2, %v2831_v15  ;;  %v2841_v15 = vadd.f32 %v6951_v34, %v7113_v43 }
 0x1ce   :  { %v2945_v4 = vpop.f32.mrf.mxu0 }
 0x1cf   :  { %v3058_v42 = vpop.f32.mrf.mxu1  ;;  %v2946_v8 = vadd.f32 %v2945_v4, %v2833_v0  ;;  %v7153_v58 = vadd.f32 %v3056_v21, %v2944_v54  ;;  %v2843_v21 = vadd.f32 %v6956_v7, %v7106_v32 }
 0x1d0   :  { %v2947_v35 = vpop.f32.mrf.mxu0 }
 0x1d1   :  { %v3060_v57 = vpop.f32.mrf.mxu1  ;;  %v7157_v41 = vadd.f32 %v3058_v42, %v2946_v8  ;;  %v2948_v17 = vadd.f32 %v2947_v35, %v2835_v24  ;;  %v2845_v24 = vadd.f32 %v6961_v28, %v7113_v43 }
 0x1d2   :  { %v2951_v12 = vpop.f32.mrf.mxu0 }
 0x1d3   :  { %v3064_v26 = vpop.f32.mrf.mxu1  ;;  %v7161_v51 = vadd.f32 %v3060_v57, %v2948_v17  ;;  %v2952_v2 = vadd.f32 %v2951_v12, %v2839_v30  ;;  %v2849_v30 = vadd.f32 %v6968_v5, %v7106_v32 }
 0x1d4   :  { %v2953_v49 = vpop.f32.mrf.mxu0 }
 0x1d5   :  { %v3066_v0 = vpop.f32.mrf.mxu1  ;;  %v7165_v54 = vadd.f32 %v3064_v26, %v2952_v2  ;;  %v2954_v4 = vadd.f32 %v2953_v49, %v2841_v15  ;;  %v2851_v15 = vadd.f32 %v6979_v60, %v7113_v43 }
 0x1d6   :  { %v2955_v22 = vpop.f32.mrf.mxu0 }
 0x1d7   :  { %v3068_v42 = vpop.f32.mrf.mxu1  ;;  %v7169_v8 = vadd.f32 %v3066_v0, %v2954_v4  ;;  %v2956_v35 = vadd.f32 %v2955_v22, %v2843_v21  ;;  %v2853_v21 = vadd.f32 %v6987_v45, %v7106_v32 }
 0x1d8   :  { %v2957_v34 = vpop.f32.mrf.mxu0 }
 0x1d9   :  { %v3070_v57 = vpop.f32.mrf.mxu1  ;;  %v7173_v17 = vadd.f32 %v3068_v42, %v2956_v35  ;;  %v2958_v12 = vadd.f32 %v2957_v34, %v2845_v24  ;;  %v2855_v24 = vadd.f32 %v6995_v37, %v7113_v43 }
 0x1da   :  { %v2961_v7 = vpop.f32.mrf.mxu0 }
 0x1db   :  { %v3074_v26 = vpop.f32.mrf.mxu1  ;;  %v7177_v2 = vadd.f32 %v3070_v57, %v2958_v12  ;;  %v2962_v49 = vadd.f32 %v2961_v7, %v2849_v30  ;;  %v2859_v30 = vadd.f32 %v7003_v55, %v7106_v32 }
 0x1dc   :  { %v2963_v28 = vpop.f32.mrf.mxu0 }
 0x1dd   :  { %v3076_v0 = vpop.f32.mrf.mxu1  ;;  %v7181_v4 = vadd.f32 %v3074_v26, %v2962_v49  ;;  %v2964_v22 = vadd.f32 %v2963_v28, %v2851_v15  ;;  %v2861_v15 = vadd.f32 %v7011_v63, %v7113_v43 }
 0x1de   :  { %v2965_v5 = vpop.f32.mrf.mxu0 }
 0x1df   :  { %v3078_v42 = vpop.f32.mrf.mxu1  ;;  %v7185_v35 = vadd.f32 %v3076_v0, %v2964_v22  ;;  %v2966_v34 = vadd.f32 %v2965_v5, %v2853_v21  ;;  %v2863_v21 = vadd.f32 %v7019_v10, %v7106_v32 }
 0x1e0   :  { %v2967_v60 = vpop.f32.mrf.mxu0 }
 0x1e1   :  { %8175 = vst [vmem:[#allocation39_spill] sm:$0xff] %v7185_v35  ;;  %v3080_v57 = vpop.f32.mrf.mxu1  ;;  %v7189_v12 = vadd.f32 %v3078_v42, %v2966_v34  ;;  %v2968_v7 = vadd.f32 %v2967_v60, %v2855_v24  ;;  %v2865_v24 = vadd.f32 %v7027_v23, %v7113_v43 }
 0x1e2   :  { %v2971_v45 = vpop.f32.mrf.mxu0 }
 0x1e3   :  { %8176 = vst [vmem:[#allocation40_spill] sm:$0xff] %v7189_v12  ;;  %v3084_v26 = vpop.f32.mrf.mxu1  ;;  %v7193_v49 = vadd.f32 %v3080_v57, %v2968_v7  ;;  %v2972_v28 = vadd.f32 %v2971_v45, %v2859_v30  ;;  %v2869_v30 = vadd.f32 %v7035_v59, %v7106_v32 }
 0x1e4   :  { %v2973_v37 = vpop.f32.mrf.mxu0 }
 0x1e5   :  { %8177 = vst [vmem:[#allocation41_spill] sm:$0xff] %v7193_v49  ;;  %v3086_v0 = vpop.f32.mrf.mxu1  ;;  %v7197_v22 = vadd.f32 %v3084_v26, %v2972_v28  ;;  %v2974_v5 = vadd.f32 %v2973_v37, %v2861_v15  ;;  %v2871_v15 = vadd.f32 %v7041_v47, %v7113_v43 }
 0x1e6   :  { %v2975_v55 = vpop.f32.mrf.mxu0 }
 0x1e7   :  { %8178 = vst [vmem:[#allocation42_spill] sm:$0xff] %v7197_v22  ;;  %v3088_v42 = vpop.f32.mrf.mxu1  ;;  %v7201_v34 = vadd.f32 %v3086_v0, %v2974_v5  ;;  %v2976_v60 = vadd.f32 %v2975_v55, %v2863_v21  ;;  %v2873_v21 = vadd.f32 %v7049_v48, %v7106_v32 }
 0x1e8   :  { %v2977_v63 = vpop.f32.mrf.mxu0 }
 0x1e9   :  { %8179 = vst [vmem:[#allocation43_spill] sm:$0xff] %v7201_v34  ;;  %v3090_v57 = vpop.f32.mrf.mxu1  ;;  %v7205_v7 = vadd.f32 %v3088_v42, %v2976_v60  ;;  %v2978_v45 = vadd.f32 %v2977_v63, %v2865_v24  ;;  %v2875_v24 = vadd.f32 %v7054_v1, %v7113_v43  ;;  %v8191_v34 = vld [vmem:[#allocation31_spill] sm:$0xff] }
 0x1ea   :  { %v2981_v10 = vpop.f32.mrf.mxu0  ;;  %v2889_v22 = vadd.f32 %v8191_v34, %v7106_v32 }
 0x1eb   :  { %8180 = vst [vmem:[#allocation44_spill] sm:$0xff] %v7205_v7  ;;  %v3094_v26 = vpop.f32.mrf.mxu1  ;;  %v7209_v28 = vadd.f32 %v3090_v57, %v2978_v45  ;;  %v2982_v37 = vadd.f32 %v2981_v10, %v2869_v30  ;;  %v2879_v30 = vadd.f32 %v7062_v27, %v7106_v32  ;;  %v3409_v27 = vadd.f32 %v6924_v39, %v6914_v3 }
 0x1ec   :  { %v2983_v23 = vpop.f32.mrf.mxu0 }
 0x1ed   :  { %8181 = vst [vmem:[#allocation45_spill] sm:$0xff] %v7209_v28  ;;  %v3096_v0 = vpop.f32.mrf.mxu1  ;;  %v7213_v5 = vadd.f32 %v3094_v26, %v2982_v37  ;;  %v2984_v55 = vadd.f32 %v2983_v23, %v2871_v15  ;;  %v2881_v15 = vadd.f32 %v7067_v29, %v7113_v43  ;;  %v2885_v29 = vadd.f32 %v7080_v19, %v7113_v43 }
 0x1ee   :  { %v2985_v59 = vpop.f32.mrf.mxu0 }
 0x1ef   :  { %8182 = vst [vmem:[#allocation46_spill] sm:$0xff] %v7213_v5  ;;  %v3098_v42 = vpop.f32.mrf.mxu1  ;;  %v7217_v60 = vadd.f32 %v3096_v0, %v2984_v55  ;;  %v2986_v63 = vadd.f32 %v2985_v59, %v2873_v21  ;;  %v2883_v21 = vadd.f32 %v7075_v6, %v7106_v32  ;;  %v3431_v6 = vmul.f32 %v6914_v3, %v6914_v3 }
 0x1f0   :  { %v2987_v47 = vpop.f32.mrf.mxu0 }
 0x1f1   :  { %8183 = vst [vmem:[#allocation47_spill] sm:$0xff] %v7217_v60  ;;  %v3100_v57 = vpop.f32.mrf.mxu1  ;;  %v7221_v45 = vadd.f32 %v3098_v42, %v2986_v63  ;;  %v2988_v10 = vadd.f32 %v2987_v47, %v2875_v24  ;;  %v3432_v63 = vmul.f32 %v6924_v39, %v6924_v39 }
 0x1f2   :  { %v2991_v48 = vpop.f32.mrf.mxu0 }
 0x1f3   :  { %8184 = vst [vmem:[#allocation48_spill] sm:$0xff] %v7221_v45  ;;  %v3104_v26 = vpop.f32.mrf.mxu1  ;;  %v7225_v37 = vadd.f32 %v3100_v57, %v2988_v10  ;;  %v2992_v23 = vadd.f32 %v2991_v48, %v2879_v30  ;;  %v3410_v48 = vadd.f32 %v3409_v27, %v6934_v53  ;;  %v3447_v19 = vadd.f32 %v3432_v63, %v3431_v6 }
 0x1f4   :  { %v2993_v1 = vpop.f32.mrf.mxu0 }
 0x1f5   :  { %8185 = vst [vmem:[#allocation49_spill] sm:$0xff] %v7225_v37  ;;  %v3106_v0 = vpop.f32.mrf.mxu1  ;;  %v7229_v55 = vadd.f32 %v3104_v26, %v2992_v23  ;;  %v2994_v59 = vadd.f32 %v2993_v1, %v2881_v15  ;;  %v3433_v26 = vmul.f32 %v6934_v53, %v6934_v53 }
 0x1f6   :  { %v2995_v42 = vpop.f32.mrf.mxu0 }
 0x1f7   :  { %8186 = vst [vmem:[#allocation50_spill] sm:$0xff] %v7229_v55  ;;  %v3108_v24 = vpop.f32.mrf.mxu1  ;;  %v7237_v47 = vadd.f32 %v3106_v0, %v2994_v59  ;;  %v2996_v57 = vadd.f32 %v2995_v42, %v2883_v21  ;;  %v3411_v0 = vadd.f32 %v3410_v48, %v6944_v61  ;;  %v3434_v21 = vmul.f32 %v6944_v61, %v6944_v61 }
 0x1f8   :  { %v2997_v30 = vpop.f32.mrf.mxu0  ;;  %v3448_v53 = vadd.f32 %v3447_v19, %v3433_v26 }
 0x1f9   :  { %8187 = vst [vmem:[#allocation51_spill] sm:$0xff] %v7237_v47  ;;  %v3110_v10 = vpop.f32.mrf.mxu1  ;;  %v7244_v15 = vadd.f32 %v3108_v24, %v2996_v57  ;;  %v2998_v23 = vadd.f32 %v2997_v30, %v2885_v29  ;;  %v3412_v24 = vadd.f32 %v3411_v0, %v6954_v9  ;;  %v3435_v29 = vmul.f32 %v6954_v9, %v6954_v9 }
 0x1fa   :  { %v7246_v1 = vpop.f32.mrf.mxu0  ;;  %v3449_v6 = vadd.f32 %v3448_v53, %v3434_v21  ;;  %v3437_v0 = vmul.f32 %v6985_v20, %v6985_v20 }
 0x1fb   :  { %8188 = vst [vmem:[#allocation52_spill] sm:$0xff] %v7244_v15  ;;  %v7248_v39 = vpop.f32.mrf.mxu1  ;;  %v7253_v59 = vadd.f32 %v3110_v10, %v2998_v23  ;;  %v3413_v30 = vadd.f32 %v3412_v24, %v6966_v18  ;;  %v3436_v10 = vmul.f32 %v6966_v18, %v6966_v18  ;;  %v3438_v24 = vmul.f32 %v7001_v44, %v7001_v44 }
 0x1fc   :  { %v7255_v42 = vpop.f32.mrf.mxu0  ;;  %v3450_v26 = vadd.f32 %v3449_v6, %v3435_v29 }
 0x1fd   :  { %8189 = vst [vmem:[#allocation53_spill] sm:$0xff] %v7253_v59  ;;  %v7257_v27 = vpop.f32.mrf.mxu1  ;;  %v3414_v19 = vadd.f32 %v3413_v30, %v6985_v20  ;;  %v3439_v30 = vmul.f32 %v7017_v46, %v7017_v46 }
 0x1fe   :  { %v7262_v57 = vpop.f32.mrf.mxu0  ;;  %v3451_v53 = vadd.f32 %v3450_v26, %v3436_v10  ;;  %v3440_v26 = vmul.f32 %v7033_v52, %v7033_v52 }
 0x1ff   :  { %v7264_v63 = vpop.f32.mrf.mxu1  ;;  %v3415_v21 = vadd.f32 %v3414_v19, %v7001_v44 }
 0x200   :  { %v7269_v48 = vpop.f32.mrf.mxu0  ;;  %v3452_v29 = vadd.f32 %v3451_v53, %v3437_v0  ;;  %v3441_v0 = vmul.f32 %v7047_v11, %v7047_v11 }
 0x201   :  { %v7271_v23 = vpop.f32.mrf.mxu1  ;;  %v3416_v6 = vadd.f32 %v3415_v21, %v7017_v46 }
 0x202   :  { %8190 = vst [vmem:[#allocation54_spill] sm:$0xff] %v7271_v23  ;;  %v7276_v9 = vpop.f32.mrf.mxu0  ;;  %v3453_v59 = vadd.f32 %v3452_v29, %v3438_v24  ;;  %v3442_v24 = vmul.f32 %v7060_v16, %v7060_v16 }
 0x203   :  { %v7278_v61 = vpop.f32.mrf.mxu1  ;;  %v3417_v10 = vadd.f32 %v3416_v6, %v7033_v52 }
 0x204   :  { %v7283_v18 = vpop.f32.mrf.mxu0  ;;  %v3454_v15 = vadd.f32 %v3453_v59, %v3439_v30  ;;  %v3443_v59 = vmul.f32 %v7073_v31, %v7073_v31 }
 0x205   :  { %v7285_v3 = vpop.f32.mrf.mxu1  ;;  %v3418_v47 = vadd.f32 %v3417_v10, %v7047_v11 }
 0x206   :  { %v3161_v20 = vpop.f32.mrf.mxu0  ;;  %v3455_v46 = vadd.f32 %v3454_v15, %v3440_v26 }
 0x207   :  { %v3274_v23 = vpop.f32.mrf.mxu1  ;;  %v3419_v55 = vadd.f32 %v3418_v47, %v7060_v16  ;;  %v3444_v47 = vmul.f32 %v7086_v33, %v7086_v33 }
 0x208   :  { %v3163_v19 = vpop.f32.mrf.mxu0  ;;  %v3456_v52 = vadd.f32 %v3455_v46, %v3441_v0 }
 0x209   :  { %v7293_v44 = vpop.f32.mrf.mxu1  ;;  %v3420_v37 = vadd.f32 %v3419_v55, %v7073_v31  ;;  %v3445_v55 = vmul.f32 %v7101_v38, %v7101_v38  ;;  %v3164_v49 = vadd.f32 %v3163_v19, %v7145_v25 }
 0x20a   :  { %v3167_v53 = vpop.f32.mrf.mxu0  ;;  %v3457_v11 = vadd.f32 %v3456_v52, %v3442_v24  ;;  %v3364_v24 = vrot.slane %v7118_v14, 4 }
 0x20b   :  { %v3280_v21 = vpop.f32.mrf.mxu1  ;;  %v3421_v15 = vadd.f32 %v3420_v37, %v7086_v33  ;;  %v3446_v37 = vmul.f32 %v7123_v56, %v7123_v56 }
 0x20c   :  { %v3169_v29 = vpop.f32.mrf.mxu0  ;;  %v3458_v45 = vadd.f32 %v3457_v11, %v3443_v59  ;;  %v3402_v59 = vrot.slane %v7127_v62, 4 }
 0x20d   :  { %v7301_v6 = vpop.f32.mrf.mxu1  ;;  %v3422_v46 = vadd.f32 %v3421_v15, %v7101_v38 }
 0x20e   :  { %v3171_v30 = vpop.f32.mrf.mxu0  ;;  %v3459_v60 = vadd.f32 %v3458_v45, %v3444_v47  ;;  %v7328_v45 = vadd.f32 %v3364_v24, %v7118_v14  ;;  %v3162_v47 = vadd.f32 %v3161_v20, %v7141_v13  ;;  %v7339_v12 = vadd.f32 %v3402_v59, %v7127_v62 }
 0x20f   :  { %v7306_v10 = vpop.f32.mrf.mxu1  ;;  %v3423_v52 = vadd.f32 %v3422_v46, %v7123_v56  ;;  %v3158_v20 = vadd.f32 %v7276_v9, %v7133_v36  ;;  %v3168_v13 = vadd.f32 %v3167_v53, %v7149_v40  ;;  %v3160_v62 = vadd.f32 %v7283_v18, %v7137_v50 }
 0x210   :  { %v3173_v26 = vpop.f32.mrf.mxu0  ;;  %v3460_v11 = vadd.f32 %v3459_v60, %v3445_v55  ;;  %v8192_v60 = vld [vmem:[#allocation33_spill] sm:$0xff]  ;;  %v3366_v25 = vrot.slane %v7328_v45, 2  ;;  %v7356_v59 = vadd.f32 %v3274_v23, %v3162_v47  ;;  %v3170_v9 = vadd.f32 %v3169_v29, %v7153_v58 }
 0x211   :  { %v7311_v16 = vpop.f32.mrf.mxu1  ;;  %v3424_v38 = vrot.slane %v3423_v52, 4  ;;  %v2891_v55 = vadd.f32 %v8192_v60, %v7113_v43  ;;  %v3002_v60 = vadd.f32 %v7246_v1, %v2889_v22  ;;  %v7364_v22 = vadd.f32 %v7293_v44, %v3164_v49 }
 0x212   :  { %v3177_v0 = vpop.f32.mrf.mxu0  ;;  %v3461_v7 = vadd.f32 %v3460_v11, %v3446_v37  ;;  %v8193_v37 = vld [vmem:[#allocation35_spill] sm:$0xff]  ;;  %v3172_v50 = vadd.f32 %v3171_v30, %v7157_v41  ;;  %v3404_v18 = vrot.slane %v7339_v12, 2  ;;  %v7371_v1 = vadd.f32 %v3280_v21, %v3168_v13 }
 0x213   :  { %v7316_v31 = vpop.f32.mrf.mxu1  ;;  %v2893_v14 = vadd.f32 %v8193_v37, %v7106_v32  ;;  %v7348_v34 = vadd.f32 %v3424_v38, %v3423_v52  ;;  %v8194_v32 = vld [vmem:[#allocation37_spill] sm:$0xff]  ;;  %v3004_v38 = vadd.f32 %v7255_v42, %v2891_v55  ;;  %8195 = vst [vmem:[#allocation31_spill] sm:$0xff] %v7364_v22  ;;  %v3174_v58 = vadd.f32 %v3173_v26, %v7161_v51 }
 0x214   :  { %v3179_v33 = vpop.f32.mrf.mxu0  ;;  %v3462_v35 = vrot.slane %v3461_v7, 4  ;;  %v2895_v19 = vadd.f32 %v8194_v32, %v7113_v43  ;;  %v7369_v43 = vadd.f32 %v7278_v61, %v3158_v20  ;;  %v7380_v44 = vadd.f32 %v7248_v39, %v3002_v60 }
 0x215   :  { %v7322_v5 = vpop.f32.mrf.mxu1  ;;  %v3006_v53 = vadd.f32 %v7262_v57, %v2893_v14  ;;  %v3426_v42 = vrot.slane %v7348_v34, 2  ;;  %v7383_v41 = vadd.f32 %v7285_v3, %v3160_v62  ;;  %v3492_v61 = vmul.f32 %v7356_v59, %v7356_v59 }
 0x216   :  { %v3181_v15 = vpop.f32.mrf.mxu0  ;;  %v7377_v57 = vadd.f32 %v3462_v35, %v3461_v7  ;;  %v7388_v49 = vadd.f32 %v7301_v6, %v3170_v9  ;;  %v3178_v51 = vadd.f32 %v3177_v0, %v7165_v54  ;;  %v3180_v21 = vadd.f32 %v3179_v33, %v7169_v8 }
 0x217   :  { %v7325_v28 = vpop.f32.mrf.mxu1  ;;  %8196 = vst [vmem:[#allocation33_spill] sm:$0xff] %v7383_v41  ;;  %v7393_v35 = vadd.f32 %v7257_v27, %v3004_v38  ;;  %v7396_v39 = vadd.f32 %v7264_v63, %v3006_v53  ;;  %v3552_v3 = vmul.f32 %v7364_v22, %v7364_v22  ;;  %v7401_v7 = vadd.f32 %v7306_v10, %v3172_v50  ;;  %v8201_v38 = vld [vmem:[#allocation39_spill] sm:$0xff]  ;;  %v8202_v50 = vld [vmem:[#allocation40_spill] sm:$0xff] }
 0x218   :  { %v3183_v46 = vpop.f32.mrf.mxu0  ;;  %8197 = vst [vmem:[#allocation35_spill] sm:$0xff] %v7388_v49  ;;  %v3491_v6 = vmul.f32 %v7369_v43, %v7369_v43  ;;  %v3493_v33 = vmul.f32 %v7371_v1, %v7371_v1  ;;  %v7408_v54 = vadd.f32 %v7311_v16, %v3174_v58  ;;  %v3182_v8 = vadd.f32 %v3181_v15, %v7173_v17 }
 0x219   :  { %v7331_v56 = vpop.f32.mrf.mxu1  ;;  %v7412_v0 = vadd.f32 %v7269_v48, %v2895_v19  ;;  %v3551_v10 = vmul.f32 %v7383_v41, %v7383_v41  ;;  %v3469_v52 = vadd.f32 %v7356_v59, %v7369_v43  ;;  %v3184_v47 = vadd.f32 %v3183_v46, %v7177_v2 }
 0x21a   :  { %v3187_v24 = vpop.f32.mrf.mxu0  ;;  %8198 = vst [vmem:[#allocation37_spill] sm:$0xff] %v7408_v54  ;;  %v3507_v55 = vadd.f32 %v3492_v61, %v3491_v6  ;;  %v3553_v16 = vmul.f32 %v7388_v49, %v7388_v49  ;;  %v7422_v37 = vadd.f32 %v7316_v31, %v3178_v51  ;;  %v7425_v17 = vadd.f32 %v7322_v5, %v3180_v21 }
 0x21b   :  { %v7346_v11 = vpop.f32.mrf.mxu1  ;;  %v3529_v14 = vadd.f32 %v7364_v22, %v7383_v41  ;;  %v3567_v20 = vadd.f32 %v3552_v3, %v3551_v10  ;;  %v3494_v13 = vmul.f32 %v7401_v7, %v7401_v7  ;;  %v3188_v2 = vadd.f32 %v3187_v24, %v7181_v4 }
 0x21c   :  { %v3189_v36 = vpop.f32.mrf.mxu0  ;;  %8199 = vst [vmem:[#allocation55_spill] sm:$0xff] %v7425_v17  ;;  %v3470_v46 = vadd.f32 %v3469_v52, %v7371_v1  ;;  %v3508_v60 = vadd.f32 %v3507_v55, %v3493_v33  ;;  %v3554_v31 = vmul.f32 %v7408_v54, %v7408_v54  ;;  %v7436_v5 = vadd.f32 %v7325_v28, %v3182_v8 }
 0x21d   :  { %v7359_v40 = vpop.f32.mrf.mxu1  ;;  %v3530_v19 = vadd.f32 %v3529_v14, %v7388_v49  ;;  %v7440_v9 = vadd.f32 %v7331_v56, %v3184_v47  ;;  %v3190_v53 = vadd.f32 %v3189_v36, %v8201_v38  ;;  %v3568_v24 = vadd.f32 %v3567_v20, %v3553_v16  ;;  %v8203_v56 = vld [vmem:[#allocation41_spill] sm:$0xff]  ;;  %v8204_v36 = vld [vmem:[#allocation42_spill] sm:$0xff] }
 0x21e   :  { %v3191_v23 = vpop.f32.mrf.mxu0  ;;  %v3471_v58 = vadd.f32 %v3470_v46, %v7401_v7  ;;  %v3495_v61 = vmul.f32 %v7422_v37, %v7422_v37  ;;  %v3555_v28 = vmul.f32 %v7425_v17, %v7425_v17  ;;  %v3509_v3 = vadd.f32 %v3508_v60, %v3494_v13  ;;  %v8207_v60 = vld [vmem:[#allocation44_spill] sm:$0xff] }
 0x21f   :  { %v7374_v29 = vpop.f32.mrf.mxu1  ;;  %8200 = vst [vmem:[#allocation56_spill] sm:$0xff] %v7440_v9  ;;  %v3192_v4 = vadd.f32 %v3191_v23, %v8202_v50  ;;  %v7450_v6 = vadd.f32 %v7346_v11, %v3188_v2  ;;  %v3531_v23 = vadd.f32 %v3530_v19, %v7408_v54  ;;  %v3569_v10 = vadd.f32 %v3568_v24, %v3554_v31 }
 0x220   :  { %v3193_v30 = vpop.f32.mrf.mxu0  ;;  %v3472_v52 = vadd.f32 %v3471_v58, %v7422_v37  ;;  %v3496_v47 = vmul.f32 %v7436_v5, %v7436_v5  ;;  %v3556_v14 = vmul.f32 %v7440_v9, %v7440_v9  ;;  %v7461_v11 = vadd.f32 %v7359_v40, %v3190_v53  ;;  %v8209_v53 = vld [vmem:[#allocation45_spill] sm:$0xff] }
 0x221   :  { %v3306_v26 = vpop.f32.mrf.mxu1  ;;  %v3194_v33 = vadd.f32 %v3193_v30, %v8203_v56  ;;  %v7464_v30 = vadd.f32 %v7374_v29, %v3192_v4  ;;  %v3510_v13 = vadd.f32 %v3509_v3, %v3495_v61  ;;  %v3532_v2 = vadd.f32 %v3531_v23, %v7425_v17  ;;  %v8210_v61 = vld [vmem:[#allocation46_spill] sm:$0xff] }
 0x222   :  { %v3197_v27 = vpop.f32.mrf.mxu0  ;;  %8205 = vst [vmem:[#allocation39_spill] sm:$0xff] %v7461_v11  ;;  %v3570_v46 = vadd.f32 %v3569_v10, %v3555_v28  ;;  %v3497_v50 = vmul.f32 %v7450_v6, %v7450_v6  ;;  %v3473_v4 = vadd.f32 %v3472_v52, %v7436_v5  ;;  %v8213_v10 = vld [vmem:[#allocation48_spill] sm:$0xff] }
 0x223   :  { %v3310_v63 = vpop.f32.mrf.mxu1  ;;  %v3198_v8 = vadd.f32 %v3197_v27, %v8204_v36  ;;  %v8206_v27 = vld [vmem:[#allocation43_spill] sm:$0xff]  ;;  %v7471_v24 = vadd.f32 %v3306_v26, %v3194_v33  ;;  %v3533_v58 = vadd.f32 %v3532_v2, %v7440_v9  ;;  %v3557_v36 = vmul.f32 %v7461_v11, %v7461_v11 }
 0x224   :  { %v3199_v48 = vpop.f32.mrf.mxu0  ;;  %v3571_v56 = vadd.f32 %v3570_v46, %v3556_v14  ;;  %v3498_v26 = vmul.f32 %v7464_v30, %v7464_v30  ;;  %v8215_v46 = vld [vmem:[#allocation49_spill] sm:$0xff] }
 0x225   :  { %v3312_v15 = vpop.f32.mrf.mxu1  ;;  %v3200_v20 = vadd.f32 %v3199_v48, %v8206_v27  ;;  %8208 = vst [vmem:[#allocation40_spill] sm:$0xff] %v7471_v24  ;;  %v7473_v40 = vadd.f32 %v3310_v63, %v3198_v8  ;;  %v3511_v48 = vadd.f32 %v3510_v13, %v3496_v47  ;;  %v8212_v8 = vld [vmem:[#allocation47_spill] sm:$0xff]  ;;  %v3558_v14 = vmul.f32 %v7471_v24, %v7471_v24 }
 0x226   :  { %v3201_v62 = vpop.f32.mrf.mxu0 }
 0x227   :  { %v3314_v32 = vpop.f32.mrf.mxu1  ;;  %v3202_v31 = vadd.f32 %v3201_v62, %v8207_v60  ;;  %v7483_v63 = vadd.f32 %v3312_v15, %v3200_v20  ;;  %v3512_v27 = vadd.f32 %v3511_v48, %v3497_v50  ;;  %v3499_v13 = vmul.f32 %v7473_v40, %v7473_v40  ;;  %v8216_v48 = vld [vmem:[#allocation50_spill] sm:$0xff] }
 0x228   :  { %v3203_v51 = vpop.f32.mrf.mxu0  ;;  %v3534_v15 = vadd.f32 %v3533_v58, %v7461_v11 }
 0x229   :  { %v3316_v21 = vpop.f32.mrf.mxu1  ;;  %v3204_v29 = vadd.f32 %v3203_v51, %v8209_v53  ;;  %8211 = vst [vmem:[#allocation41_spill] sm:$0xff] %v7483_v63  ;;  %v3474_v51 = vadd.f32 %v3473_v4, %v7450_v6  ;;  %v7486_v33 = vadd.f32 %v3314_v32, %v3202_v31  ;;  %v3572_v53 = vadd.f32 %v3571_v56, %v3557_v36 }
 0x22a   :  { %v3207_v55 = vpop.f32.mrf.mxu0  ;;  %v3513_v50 = vadd.f32 %v3512_v27, %v3498_v26  ;;  %v3559_v4 = vmul.f32 %v7483_v63, %v7483_v63 }
 0x22b   :  { %v3320_v16 = vpop.f32.mrf.mxu1  ;;  %v3208_v28 = vadd.f32 %v3207_v55, %v8210_v61  ;;  %v7494_v2 = vadd.f32 %v3316_v21, %v3204_v29  ;;  %v3475_v32 = vadd.f32 %v3474_v51, %v7464_v30  ;;  %v3535_v21 = vadd.f32 %v3534_v15, %v7471_v24 }
 0x22c   :  { %v3209_v19 = vpop.f32.mrf.mxu0  ;;  %v3500_v29 = vmul.f32 %v7486_v33, %v7486_v33  ;;  %v3573_v51 = vadd.f32 %v3572_v53, %v3558_v14  ;;  %v3514_v36 = vadd.f32 %v3513_v50, %v3499_v13  ;;  %v8220_v13 = vld [vmem:[#allocation52_spill] sm:$0xff] }
 0x22d   :  { %v3322_v38 = vpop.f32.mrf.mxu1  ;;  %v3210_v23 = vadd.f32 %v3209_v19, %v8212_v8  ;;  %8214 = vst [vmem:[#allocation42_spill] sm:$0xff] %v7494_v2  ;;  %v7498_v20 = vadd.f32 %v3320_v16, %v3208_v28  ;;  %v3476_v56 = vadd.f32 %v3475_v32, %v7473_v40  ;;  %v3560_v26 = vmul.f32 %v7494_v2, %v7494_v2 }
 0x22e   :  { %v3211_v3 = vpop.f32.mrf.mxu0  ;;  %v3536_v27 = vadd.f32 %v3535_v21, %v7483_v63  ;;  %v3574_v14 = vadd.f32 %v3573_v51, %v3559_v4 }
 0x22f   :  { %v3324_v62 = vpop.f32.mrf.mxu1  ;;  %v3212_v52 = vadd.f32 %v3211_v3, %v8213_v10  ;;  %v7507_v58 = vadd.f32 %v3322_v38, %v3210_v23  ;;  %v3501_v8 = vmul.f32 %v7498_v20, %v7498_v20  ;;  %v8219_v38 = vld [vmem:[#allocation51_spill] sm:$0xff]  ;;  %v3477_v15 = vadd.f32 %v3476_v56, %v7486_v33 }
 0x230   :  { %v3213_v47 = vpop.f32.mrf.mxu0  ;;  %v3537_v50 = vadd.f32 %v3536_v27, %v7494_v2 }
 0x231   :  { %v3326_v55 = vpop.f32.mrf.mxu1  ;;  %v3214_v60 = vadd.f32 %v3213_v47, %v8215_v46  ;;  %8217 = vst [vmem:[#allocation43_spill] sm:$0xff] %v7507_v58  ;;  %v7509_v16 = vadd.f32 %v3324_v62, %v3212_v52  ;;  %v3515_v46 = vadd.f32 %v3514_v36, %v3500_v29 }
 0x232   :  { %v3217_v31 = vpop.f32.mrf.mxu0 }
 0x233   :  { %v3330_v19 = vpop.f32.mrf.mxu1  ;;  %v3218_v61 = vadd.f32 %v3217_v31, %v8216_v48  ;;  %v7516_v10 = vadd.f32 %v3326_v55, %v3214_v60  ;;  %v3561_v31 = vmul.f32 %v7507_v58, %v7507_v58  ;;  %v3502_v55 = vmul.f32 %v7509_v16, %v7509_v16 }
 0x234   :  { %v3219_v28 = vpop.f32.mrf.mxu0  ;;  %v3478_v48 = vadd.f32 %v3477_v15, %v7498_v20  ;;  %v3516_v29 = vadd.f32 %v3515_v46, %v3501_v8 }
 0x235   :  { %v3332_v3 = vpop.f32.mrf.mxu1  ;;  %8218 = vst [vmem:[#allocation44_spill] sm:$0xff] %v7516_v10  ;;  %v7518_v47 = vadd.f32 %v3330_v19, %v3218_v61  ;;  %v3220_v23 = vadd.f32 %v3219_v28, %v8219_v38  ;;  %v8222_v61 = vld [vmem:[#allocation53_spill] sm:$0xff]  ;;  %v3575_v28 = vadd.f32 %v3574_v14, %v3560_v26  ;;  %v3562_v51 = vmul.f32 %v7516_v10, %v7516_v10 }
 0x236   :  { %v3221_v62 = vpop.f32.mrf.mxu0  ;;  %v3538_v38 = vadd.f32 %v3537_v50, %v7507_v58  ;;  %v3517_v15 = vadd.f32 %v3516_v29, %v3502_v55 }
 0x237   :  { %v3334_v52 = vpop.f32.mrf.mxu1  ;;  %v3222_v32 = vadd.f32 %v3221_v62, %v8220_v13  ;;  %v7528_v60 = vadd.f32 %v3332_v3, %v3220_v23  ;;  %v3503_v56 = vmul.f32 %v7518_v47, %v7518_v47  ;;  %v3479_v23 = vadd.f32 %v3478_v48, %v7509_v16 }
 0x238   :  { %v3223_v19 = vpop.f32.mrf.mxu0  ;;  %v3576_v27 = vadd.f32 %v3575_v28, %v3561_v31 }
 0x239   :  { %8221 = vst [vmem:[#allocation45_spill] sm:$0xff] %v7528_v60  ;;  %v3336_v53 = vpop.f32.mrf.mxu1  ;;  %v7532_v4 = vadd.f32 %v3334_v52, %v3222_v32  ;;  %v3224_v21 = vadd.f32 %v3223_v19, %v8222_v61  ;;  %v3563_v26 = vmul.f32 %v7528_v60, %v7528_v60  ;;  %v8224_v32 = vld [vmem:[#allocation54_spill] sm:$0xff]  ;;  %v3539_v19 = vadd.f32 %v3538_v38, %v7516_v10 }
 0x23a   :  { %v3227_v3 = vpop.f32.mrf.mxu0  ;;  %v3121_v46 = vadd.f32 %v8224_v32, %v7412_v0  ;;  %v3518_v31 = vadd.f32 %v3517_v15, %v3503_v56 }
 0x23b   :  { %v3340_v36 = vpop.f32.mrf.mxu1  ;;  %v7541_v62 = vadd.f32 %v3336_v53, %v3224_v21  ;;  %v3228_v52 = vadd.f32 %v3227_v3, %v7380_v44  ;;  %v3504_v8 = vmul.f32 %v7532_v4, %v7532_v4  ;;  %v3480_v53 = vadd.f32 %v3479_v23, %v7518_v47 }
 0x23c   :  { %v3229_v14 = vpop.f32.mrf.mxu0  ;;  %v3577_v44 = vadd.f32 %v3576_v27, %v3562_v51  ;;  %v3540_v28 = vadd.f32 %v3539_v19, %v7528_v60 }
 0x23d   :  { %8223 = vst [vmem:[#allocation46_spill] sm:$0xff] %v7541_v62  ;;  %v3342_v13 = vpop.f32.mrf.mxu1  ;;  %v7552_v50 = vadd.f32 %v3340_v36, %v3228_v52  ;;  %v3564_v55 = vmul.f32 %v7541_v62, %v7541_v62  ;;  %v3230_v48 = vadd.f32 %v3229_v14, %v7393_v35  ;;  %v3481_v29 = vadd.f32 %v3480_v53, %v7532_v4 }
 0x23e   :  { %v3231_v61 = vpop.f32.mrf.mxu0  ;;  %v3464_v36 = vrot.slane %v7377_v57, 2  ;;  %v3578_v51 = vadd.f32 %v3577_v44, %v3563_v26  ;;  %v3519_v56 = vadd.f32 %v3518_v31, %v3504_v8  ;;  %v3541_v35 = vadd.f32 %v3540_v28, %v7541_v62 }
 0x23f   :  { %8225 = vst [vmem:[#allocation47_spill] sm:$0xff] %v7552_v50  ;;  %v3344_v21 = vpop.f32.mrf.mxu1  ;;  %v3505_v0 = vmul.f32 %v7552_v50, %v7552_v50  ;;  %v3232_v3 = vadd.f32 %v3231_v61, %v7396_v39  ;;  %v7563_v38 = vadd.f32 %v3342_v13, %v3230_v48  ;;  %v3482_v52 = vadd.f32 %v3481_v29, %v7552_v50 }
 0x240   :  { %v3233_v23 = vpop.f32.mrf.mxu0  ;;  %v3427_v14 = vadd.f32 %v3426_v42, %v7348_v34  ;;  %v3579_v32 = vadd.f32 %v3578_v51, %v3564_v55  ;;  %v3465_v34 = vadd.f32 %v3464_v36, %v7377_v57 }
 0x241   :  { %8226 = vst [vmem:[#allocation48_spill] sm:$0xff] %v7563_v38  ;;  %v7567_v27 = vadd.f32 %v3344_v21, %v3232_v3  ;;  %v3234_v15 = vadd.f32 %v3233_v23, %v3121_v46  ;;  %v3520_v39 = vadd.f32 %v3519_v56, %v3505_v0  ;;  %v3565_v26 = vmul.f32 %v7563_v38, %v7563_v38  ;;  %v3346_v8 = vpop.f32.mrf.mxu1 }
 0x242   :  { %v3542_v13 = vadd.f32 %v3541_v35, %v7563_v38  ;;  %v3367_v46 = vadd.f32 %v3366_v25, %v7328_v45  ;;  %v3405_v21 = vadd.f32 %v3404_v18, %v7339_v12  ;;  %v3428_v28 = vrot.slane %v3427_v14, 1 }
 0x243   :  { %8227 = vst [vmem:[#allocation49_spill] sm:$0xff] %v7567_v27  ;;  %v3483_v19 = vadd.f32 %v3482_v52, %v7567_v27  ;;  %v3506_v53 = vmul.f32 %v7567_v27, %v7567_v27  ;;  %v7578_v44 = vadd.f32 %v3346_v8, %v3234_v15  ;;  %v3580_v42 = vadd.f32 %v3579_v32, %v3565_v26 }
 0x244   :  { %v3368_v45 = vrot.slane %v3367_v46, 1  ;;  %v3466_v25 = vrot.slane %v3465_v34, 1  ;;  %v3406_v35 = vrot.slane %v3405_v21, 1  ;;  %v3429_v52 = vadd.f32 %v3428_v28, %v3427_v14 }
 0x245   :  { %8228 = vst [vmem:[#allocation50_spill] sm:$0xff] %v7578_v44  ;;  %v3484_v31 = vrot.slane %v3483_v19, 4  ;;  %v3521_v55 = vadd.f32 %v3520_v39, %v3506_v53  ;;  %v3543_v48 = vadd.f32 %v3542_v13, %v7578_v44  ;;  %v3566_v61 = vmul.f32 %v7578_v44, %v7578_v44 }
 0x246   :  { %v3369_v8 = vadd.f32 %v3368_v45, %v3367_v46  ;;  %v3467_v13 = vadd.f32 %v3466_v25, %v3465_v34 }
 0x247   :  { %v3485_v29 = vadd.f32 %v3484_v31, %v3483_v19  ;;  %v3522_v0 = vrot.slane %v3521_v55, 4  ;;  %v3544_v3 = vrot.slane %v3543_v48, 4  ;;  %v3581_v51 = vadd.f32 %v3580_v42, %v3566_v61 }
 0x248   :  { %v3407_v31 = vadd.f32 %v3406_v35, %v3405_v21  ;;  %v3430_v42 = vadd.f32 %v3429_v52, %v3369_v8 }
 0x249   :  { %v3486_v57 = vrot.slane %v3485_v29, 2  ;;  %v3523_v36 = vadd.f32 %v3522_v0, %v3521_v55  ;;  %v3545_v56 = vadd.f32 %v3544_v3, %v3543_v48  ;;  %v3582_v23 = vrot.slane %v3581_v51, 4 }
 0x24a   :  { %v3468_v48 = vadd.f32 %v3467_v13, %v3407_v31  ;;  %v8231_v13 = vld [vmem:[#allocation5_spill] sm:$0xff] }
 0x24b   :  { %v3487_v15 = vadd.f32 %v3486_v57, %v3485_v29  ;;  %v3524_v32 = vrot.slane %v3523_v36, 2  ;;  %v3546_v39 = vrot.slane %v3545_v56, 2  ;;  %v3583_v26 = vadd.f32 %v3582_v23, %v3581_v51  ;;  %v3594_v23 = vld [vmem:[%s8083_s3] sm:$0x1] }
 0x24d   :  { %v3488_v12 = vrot.slane %v3487_v15, 1  ;;  %v3525_v18 = vadd.f32 %v3524_v32, %v3523_v36  ;;  %v3547_v19 = vadd.f32 %v3546_v39, %v3545_v56  ;;  %v3584_v53 = vrot.slane %v3583_v26, 2 }
 0x24f   :  { %v3489_v61 = vadd.f32 %v3488_v12, %v3487_v15  ;;  %v3526_v44 = vrot.slane %v3525_v18, 1  ;;  %v3548_v38 = vrot.slane %v3547_v19, 1  ;;  %v3585_v55 = vadd.f32 %v3584_v53, %v3583_v26  ;;  %v8229_v15 = vld [vmem:[#allocation2_spill] sm:$0xff]  ;;  %v8230_v26 = vld [vmem:[#allocation3_spill] sm:$0xff]  ;;  %v8233_v53 = vld [vmem:[#allocation9_spill] sm:$0xff] }
 0x251   :  { %v3490_v0 = vadd.f32 %v3489_v61, %v3430_v42  ;;  %v3527_v3 = vadd.f32 %v3526_v44, %v3525_v18  ;;  %v3549_v14 = vadd.f32 %v3548_v38, %v3547_v19  ;;  %v3586_v28 = vrot.slane %v3585_v55, 1  ;;  %v3598_v38 = vld [vmem:[%s8084_s4] sm:$0x1]  ;;  %v8232_v18 = vld [vmem:[#allocation7_spill] sm:$0xff] }
 0x252   :  { %v8234_v42 = vld [vmem:[#allocation11_spill] sm:$0xff] }
 0x253   :  { %v3528_v29 = vadd.f32 %v3527_v3, %v3468_v48  ;;  %v3550_v57 = vadd.f32 %v3549_v14, %v3490_v0  ;;  %v3587_v51 = vadd.f32 %v3586_v28, %v3585_v55  ;;  %v8235_v55 = vld [vmem:[#allocation13_spill] sm:$0xff]  ;;  %v8236_v0 = vld [vmem:[#allocation15_spill] sm:$0xff] }
 0x254   :  { %v8237_v14 = vld [vmem:[#allocation17_spill] sm:$0xff] }
 0x255   :  { %v3588_v46 = vadd.f32 %v3587_v51, %v3528_v29  ;;  %v3589_v34 = vmul.f32 0.001953125, %v3550_v57  ;;  %v8238_v29 = vld [vmem:[#allocation19_spill] sm:$0xff]  ;;  %v8239_v51 = vld [vmem:[#allocation21_spill] sm:$0xff] }
 0x257   :  { %v3590_v45 = vmul.f32 0.001953125, %v3588_v46  ;;  %v3591_v25 = vmul.f32 %v3589_v34, %v3589_v34 }
 0x259   :  { %v3592_v36 = vsub.f32 %v3590_v45, %v3591_v25  ;;  %v8241_v25 = vld [vmem:[#allocation25_spill] sm:$0xff] }
 0x25b   :  { %v3593_v56 = vmax.f32 %v3592_v36, 0.0 }
 0x25d   :  { %v3595_v21 = vadd.f32 1e-05, %v3593_v56  ;;  %v8242_v56 = vld [vmem:[#allocation27_spill] sm:$0xff] }
 0x25f   :  { %5282 = vrsqrt.f32 %v3595_v21 }
 0x26c   :  { %v5283_v35 = vpop.eup %5282 }
 0x26d   :  { %v3597_v52 = vmul.f32 %v5283_v35, %v3594_v23  ;;  %v8243_v23 = vld [vmem:[#allocation29_spill] sm:$0xff] }
 0x26f   :  { %v3599_v44 = vmul.f32 %v3597_v52, %v3589_v34  ;;  %v7597_v32 = vrot.slane %v3597_v52, %v8229_v15  ;;  %v8240_v34 = vld [vmem:[#allocation23_spill] sm:$0xff]  ;;  %v8244_v52 = vld [vmem:[#allocation32_spill] sm:$0xff] }
 0x271   :  { %v3600_v39 = vsub.f32 %v3598_v38, %v3599_v44  ;;  %v3607_v8 = vmul.f32 %v7597_v32, %v8230_v26  ;;  %v3608_v12 = vmul.f32 %v7597_v32, %v8231_v13  ;;  %v3609_v19 = vmul.f32 %v7597_v32, %v8232_v18  ;;  %v8245_v44 = vld [vmem:[#allocation36_spill] sm:$0xff] }
 0x272   :  { %v3610_v31 = vmul.f32 %v7597_v32, %v8233_v53  ;;  %v3611_v61 = vmul.f32 %v7597_v32, %v8234_v42  ;;  %v3612_v48 = vmul.f32 %v7597_v32, %v8235_v55  ;;  %v3613_v3 = vmul.f32 %v7597_v32, %v8236_v0  ;;  %v8246_v18 = vld [vmem:[#allocation4_spill] sm:$0xff]  ;;  %v8247_v42 = vld [vmem:[#allocation6_spill] sm:$0xff] }
 0x273   :  { %v3614_v28 = vmul.f32 %v7597_v32, %v8237_v14  ;;  %v3615_v57 = vmul.f32 %v7597_v32, %v8238_v29  ;;  %v3616_v46 = vmul.f32 %v7597_v32, %v8239_v51  ;;  %v3617_v45 = vmul.f32 %v7597_v32, %v8240_v34  ;;  %v8248_v0 = vld [vmem:[#allocation8_spill] sm:$0xff]  ;;  %v8249_v29 = vld [vmem:[#allocation10_spill] sm:$0xff] }
 0x274   :  { %v3618_v36 = vmul.f32 %v7597_v32, %v8241_v25  ;;  %v3619_v21 = vmul.f32 %v7597_v32, %v8242_v56  ;;  %v3620_v35 = vmul.f32 %v7597_v32, %v8243_v23  ;;  %v3621_v38 = vmul.f32 %v7597_v32, %v8244_v52  ;;  %v8250_v34 = vld [vmem:[#allocation12_spill] sm:$0xff] }
 0x275   :  { %v3622_v26 = vmul.f32 %v7597_v32, %v8245_v44  ;;  %v7632_v13 = vrot.slane %v3600_v39, %v8229_v15  ;;  %v7636_v53 = vmul.f32 %v7597_v32, %v8246_v18  ;;  %v7640_v55 = vmul.f32 %v7597_v32, %v8247_v42  ;;  %v8251_v39 = vld [vmem:[#allocation14_spill] sm:$0xff] }
 0x276   :  { %v7644_v14 = vmul.f32 %v7597_v32, %v8248_v0  ;;  %v7648_v51 = vmul.f32 %v7597_v32, %v8249_v29  ;;  %v7652_v15 = vmul.f32 %v7597_v32, %v8250_v34  ;;  %v7656_v25 = vmul.f32 %v7597_v32, %v8251_v39 }
 0x277   :  { %v3629_v56 = vadd.f32 %v7632_v13, %v3607_v8  ;;  %v3630_v23 = vadd.f32 %v7632_v13, %v3608_v12  ;;  %v3631_v52 = vadd.f32 %v7632_v13, %v3609_v19  ;;  %v3632_v44 = vadd.f32 %v7632_v13, %v3610_v31 }
 0x278   :  { %v3633_v18 = vadd.f32 %v7632_v13, %v3611_v61  ;;  %v3634_v42 = vadd.f32 %v7632_v13, %v3612_v48  ;;  %v3635_v0 = vadd.f32 %v7632_v13, %v3613_v3  ;;  %v3636_v29 = vadd.f32 %v7632_v13, %v3614_v28 }
 0x279   :  { %v3637_v34 = vadd.f32 %v7632_v13, %v3615_v57  ;;  %v3638_v39 = vadd.f32 %v7632_v13, %v3616_v46  ;;  %v3639_v8 = vadd.f32 %v7632_v13, %v3617_v45  ;;  %v3640_v12 = vadd.f32 %v7632_v13, %v3618_v36  ;;  %v8252_v46 = vld [vmem:[#allocation16_spill] sm:$0xff] }
 0x27a   :  { %v3641_v19 = vadd.f32 %v7632_v13, %v3619_v21  ;;  %v3642_v31 = vadd.f32 %v7632_v13, %v3620_v35  ;;  %v3643_v61 = vadd.f32 %v7632_v13, %v3621_v38  ;;  %v3644_v48 = vadd.f32 %v7632_v13, %v3622_v26  ;;  %v8253_v38 = vld [vmem:[#allocation18_spill] sm:$0xff] }
 0x27b   :  { %vm3645_vm0 = vcmp.gt.f32.partialorder %v3629_v56, 0.0  ;;  %vm3646_vm1 = vcmp.gt.f32.partialorder %v3630_v23, 0.0  ;;  %vm3647_vm2 = vcmp.gt.f32.partialorder %v3631_v52, 0.0  ;;  %vm3648_vm3 = vcmp.gt.f32.partialorder %v3632_v44, 0.0 }
 0x27c   :  { %vm3649_vm4 = vcmp.gt.f32.partialorder %v3633_v18, 0.0  ;;  %vm3650_vm5 = vcmp.gt.f32.partialorder %v3634_v42, 0.0  ;;  %vm3651_vm6 = vcmp.gt.f32.partialorder %v3635_v0, 0.0  ;;  %vm3652_vm7 = vcmp.gt.f32.partialorder %v3636_v29, 0.0 }
 0x27d   :  { %vm3653_vm8 = vcmp.gt.f32.partialorder %v3637_v34, 0.0  ;;  %vm3654_vm9 = vcmp.gt.f32.partialorder %v3638_v39, 0.0  ;;  %vm3655_vm10 = vcmp.gt.f32.partialorder %v3639_v8, 0.0  ;;  %vm3656_vm11 = vcmp.gt.f32.partialorder %v3640_v12, 0.0 }
 0x27e   :  { %vm3657_vm12 = vcmp.gt.f32.partialorder %v3641_v19, 0.0  ;;  %vm3658_vm13 = vcmp.gt.f32.partialorder %v3642_v31, 0.0  ;;  %vm3659_vm14 = vcmp.gt.f32.partialorder %v3643_v61, 0.0  ;;  %vm3660_vm15 = vcmp.gt.f32.partialorder %v3644_v48, 0.0 }
 0x27f   :  { %v3661_v3 = vmul.f32 0.1, %v3629_v56  ;;  %v3662_v28 = vmul.f32 0.1, %v3630_v23  ;;  %v3663_v57 = vmul.f32 0.1, %v3631_v52  ;;  %v7676_v45 = vmul.f32 %v7597_v32, %v8252_v46 }
 0x280   :  { %v3664_v36 = vmul.f32 0.1, %v3632_v44  ;;  %v3665_v21 = vmul.f32 0.1, %v3633_v18  ;;  %v3666_v35 = vmul.f32 0.1, %v3634_v42  ;;  %v7680_v26 = vmul.f32 %v7597_v32, %v8253_v38 }
 0x281   :  { %v3667_v62 = vmul.f32 0.1, %v3635_v0  ;;  %v3668_v60 = vmul.f32 0.1, %v3636_v29  ;;  %v3669_v10 = vmul.f32 0.1, %v3637_v34  ;;  %v3677_v58 = vsel %vm3645_vm0, %v3629_v56, %v3661_v3 }
 0x282   :  { %v3670_v2 = vmul.f32 0.1, %v3638_v39  ;;  %v3671_v63 = vmul.f32 0.1, %v3639_v8  ;;  %v3672_v24 = vmul.f32 0.1, %v3640_v12  ;;  %v3678_v11 = vsel %vm3646_vm1, %v3630_v23, %v3662_v28 }
 0x283   :  { %v3673_v9 = vmul.f32 0.1, %v3641_v19  ;;  %v3674_v46 = vmul.f32 0.1, %v3642_v31  ;;  %v3675_v17 = vmul.f32 0.1, %v3643_v61  ;;  %v3679_v54 = vsel %vm3647_vm2, %v3631_v52, %v3663_v57 }
 0x284   :  { %v3676_v49 = vmul.f32 0.1, %v3644_v48  ;;  %v3680_v22 = vsel %vm3648_vm3, %v3632_v44, %v3664_v36  ;;  %v3681_v38 = vsel %vm3649_vm4, %v3633_v18, %v3665_v21  ;;  %v3682_v41 = vsel %vm3650_vm5, %v3634_v42, %v3666_v35  ;;  %v8260_v21 = vld [vmem:[#allocation34_spill] sm:$0xff] }
 0x285   :  { %v3683_v27 = vsel %vm3651_vm6, %v3635_v0, %v3667_v62  ;;  %v3684_v56 = vsel %vm3652_vm7, %v3636_v29, %v3668_v60  ;;  %v3685_v3 = vsel %vm3653_vm8, %v3637_v34, %v3669_v10  ;;  %v3686_v23 = vsel %vm3654_vm9, %v3638_v39, %v3670_v2 }
 0x286   :  { %v3687_v28 = vsel %vm3655_vm10, %v3639_v8, %v3671_v63  ;;  %v3688_v50 = vsel %vm3656_vm11, %v3640_v12, %v3672_v24  ;;  %v3689_v52 = vsel %vm3657_vm12, %v3641_v19, %v3673_v9  ;;  %v3690_v44 = vsel %vm3658_vm13, %v3642_v31, %v3674_v46  ;;  %v8257_v12 = vld [vmem:[#allocation26_spill] sm:$0xff]  ;;  %v8258_v31 = vld [vmem:[#allocation28_spill] sm:$0xff] }
 0x287   :  { %v3691_v18 = vsel %vm3659_vm14, %v3643_v61, %v3675_v17  ;;  %v3692_v42 = vsel %vm3660_vm15, %v3644_v48, %v3676_v49  ;;  %v4681_v57 = vpack.c.bf16 %v3677_v58, %v3677_v58  ;;  %v4682_v62 = vpack.c.bf16 %v3678_v11, %v3678_v11  ;;  %v8255_v58 = vld [vmem:[#allocation22_spill] sm:$0xff] }
 0x288   :  { %v4683_v0 = vpack.c.bf16 %v3679_v54, %v3679_v54  ;;  %v4684_v60 = vpack.c.bf16 %v3680_v22, %v3680_v22  ;;  %v4685_v29 = vpack.c.bf16 %v3681_v38, %v3681_v38  ;;  %v4686_v10 = vpack.c.bf16 %v3682_v41, %v3682_v41  ;;  %v8254_v54 = vld [vmem:[#allocation20_spill] sm:$0xff]  ;;  %v8259_v48 = vld [vmem:[#allocation30_spill] sm:$0xff] }
 0x289   :  { %v4687_v34 = vpack.c.bf16 %v3683_v27, %v3683_v27  ;;  %v4688_v2 = vpack.c.bf16 %v3684_v56, %v3684_v56  ;;  %v4689_v39 = vpack.c.bf16 %v3685_v3, %v3685_v3  ;;  %v4690_v63 = vpack.c.bf16 %v3686_v23, %v3686_v23  ;;  %3757 = vst [vmem:[%s8085_s5] sm:$0xf] %v4681_v57  ;;  %v8256_v27 = vld [vmem:[#allocation24_spill] sm:$0xff]  ;;  %v8261_v46 = vld [vmem:[#allocation38_spill] sm:$0xff] }
 0x28a   :  { %3758 = vst [vmem:[%s8085_s5 + $0x10] sm:$0xf] %v4682_v62  ;;  %v4691_v17 = vpack.c.bf16 %v3687_v28, %v3687_v28  ;;  %v4692_v49 = vpack.c.bf16 %v3688_v50, %v3688_v50  ;;  %v4693_v9 = vpack.c.bf16 %v3689_v52, %v3689_v52  ;;  %v4694_v11 = vpack.c.bf16 %v3690_v44, %v3690_v44 }
 0x28b   :  { %3759 = vst [vmem:[%s8085_s5 + $0x20] sm:$0xf] %v4683_v0  ;;  %3760 = vst [vmem:[%s8085_s5 + $0x30] sm:$0xf] %v4684_v60  ;;  %v4695_v22 = vpack.c.bf16 %v3691_v18, %v3691_v18  ;;  %v4696_v41 = vpack.c.bf16 %v3692_v42, %v3692_v42  ;;  %v3781_v24 = vmul.f32 %v7597_v32, %v8254_v54 }
 0x28c   :  { %3761 = vst [vmem:[%s8085_s5 + $0x40] sm:$0xf] %v4685_v29  ;;  %3762 = vst [vmem:[%s8085_s5 + $0x50] sm:$0xf] %v4686_v10  ;;  %v3782_v50 = vmul.f32 %v7597_v32, %v8255_v58  ;;  %v3783_v8 = vmul.f32 %v7597_v32, %v8256_v27  ;;  %v3784_v19 = vmul.f32 %v7597_v32, %v8257_v12 }
 0x28d   :  { %3763 = vst [vmem:[%s8085_s5 + $0x60] sm:$0xf] %v4687_v34  ;;  %3764 = vst [vmem:[%s8085_s5 + $0x70] sm:$0xf] %v4688_v2  ;;  %v3785_v61 = vmul.f32 %v7597_v32, %v8258_v31  ;;  %v3786_v36 = vmul.f32 %v7597_v32, %v8259_v48  ;;  %v3787_v35 = vmul.f32 %v7597_v32, %v8260_v21 }
 0x28e   :  { %3765 = vst [vmem:[%s8085_s5 + $0x80] sm:$0xf] %v4689_v39  ;;  %3766 = vst [vmem:[%s8085_s5 + $0x90] sm:$0xf] %v4690_v63  ;;  %v3788_v38 = vmul.f32 %v7597_v32, %v8261_v46  ;;  %v3789_v56 = vadd.f32 %v7636_v53, %v7632_v13  ;;  %v3790_v3 = vadd.f32 %v7640_v55, %v7632_v13 }
 0x28f   :  { %3767 = vst [vmem:[%s8085_s5 + $0xa0] sm:$0xf] %v4691_v17  ;;  %3768 = vst [vmem:[%s8085_s5 + $0xb0] sm:$0xf] %v4692_v49  ;;  %v3791_v23 = vadd.f32 %v7644_v14, %v7632_v13  ;;  %v3792_v28 = vadd.f32 %v7648_v51, %v7632_v13  ;;  %v3793_v52 = vadd.f32 %v7652_v15, %v7632_v13 }
 0x290   :  { %3769 = vst [vmem:[%s8085_s5 + $0xc0] sm:$0xf] %v4693_v9  ;;  %3770 = vst [vmem:[%s8085_s5 + $0xd0] sm:$0xf] %v4694_v11  ;;  %v3794_v44 = vadd.f32 %v7656_v25, %v7632_v13  ;;  %v3795_v18 = vadd.f32 %v7676_v45, %v7632_v13  ;;  %v3796_v53 = vadd.f32 %v7680_v26, %v7632_v13  ;;  %vm3805_vm0 = vcmp.gt.f32.partialorder %v3789_v56, 0.0 }
 0x291   :  { %3771 = vst [vmem:[%s8085_s5 + $0xe0] sm:$0xf] %v4695_v22  ;;  %3772 = vst [vmem:[%s8085_s5 + $0xf0] sm:$0xf] %v4696_v41  ;;  %v3797_v55 = vadd.f32 %v3781_v24, %v7632_v13  ;;  %v3798_v42 = vadd.f32 %v3782_v50, %v7632_v13  ;;  %v3799_v14 = vadd.f32 %v3783_v8, %v7632_v13  ;;  %vm3806_vm1 = vcmp.gt.f32.partialorder %v3790_v3, 0.0 }
 0x292   :  { %v3800_v51 = vadd.f32 %v3784_v19, %v7632_v13  ;;  %v3801_v57 = vadd.f32 %v3785_v61, %v7632_v13  ;;  %v3802_v15 = vadd.f32 %v3786_v36, %v7632_v13  ;;  %v3803_v25 = vadd.f32 %v3787_v35, %v7632_v13 }
 0x293   :  { %v3804_v62 = vadd.f32 %v3788_v38, %v7632_v13  ;;  %vm3807_vm2 = vcmp.gt.f32.partialorder %v3791_v23, 0.0  ;;  %vm3808_vm3 = vcmp.gt.f32.partialorder %v3792_v28, 0.0  ;;  %vm3809_vm4 = vcmp.gt.f32.partialorder %v3793_v52, 0.0 }
 0x294   :  { %vm3810_vm5 = vcmp.gt.f32.partialorder %v3794_v44, 0.0  ;;  %vm3811_vm6 = vcmp.gt.f32.partialorder %v3795_v18, 0.0  ;;  %vm3812_vm7 = vcmp.gt.f32.partialorder %v3796_v53, 0.0  ;;  %vm3813_vm8 = vcmp.gt.f32.partialorder %v3797_v55, 0.0 }
 0x295   :  { %vm3814_vm9 = vcmp.gt.f32.partialorder %v3798_v42, 0.0  ;;  %vm3815_vm10 = vcmp.gt.f32.partialorder %v3799_v14, 0.0  ;;  %vm3816_vm11 = vcmp.gt.f32.partialorder %v3800_v51, 0.0  ;;  %vm3817_vm12 = vcmp.gt.f32.partialorder %v3801_v57, 0.0 }
 0x296   :  { %vm3818_vm13 = vcmp.gt.f32.partialorder %v3802_v15, 0.0  ;;  %vm3819_vm14 = vcmp.gt.f32.partialorder %v3803_v25, 0.0  ;;  %vm3820_vm15 = vcmp.gt.f32.partialorder %v3804_v62, 0.0  ;;  %v3821_v45 = vmul.f32 0.1, %v3789_v56 }
 0x297   :  { %v3822_v26 = vmul.f32 0.1, %v3790_v3  ;;  %v3823_v0 = vmul.f32 0.1, %v3791_v23  ;;  %v3824_v60 = vmul.f32 0.1, %v3792_v28  ;;  %v7788_v10 = vmul.f32 %v7597_v32, %v7369_v43 }
 0x298   :  { %v3825_v29 = vmul.f32 0.1, %v3793_v52  ;;  %v3826_v34 = vmul.f32 0.1, %v3794_v44  ;;  %v3827_v2 = vmul.f32 0.1, %v3795_v18  ;;  %v3837_v63 = vsel %vm3805_vm0, %v3789_v56, %v3821_v45 }
 0x299   :  { %v3828_v39 = vmul.f32 0.1, %v3796_v53  ;;  %v3829_v17 = vmul.f32 0.1, %v3797_v55  ;;  %v3830_v49 = vmul.f32 0.1, %v3798_v42  ;;  %v3838_v11 = vsel %vm3806_vm1, %v3790_v3, %v3822_v26 }
 0x29a   :  { %v3831_v9 = vmul.f32 0.1, %v3799_v14  ;;  %v3832_v22 = vmul.f32 0.1, %v3800_v51  ;;  %v3833_v41 = vmul.f32 0.1, %v3801_v57  ;;  %v3839_v24 = vsel %vm3807_vm2, %v3791_v23, %v3823_v0 }
 0x29b   :  { %v3834_v54 = vmul.f32 0.1, %v3802_v15  ;;  %v3835_v58 = vmul.f32 0.1, %v3803_v25  ;;  %v3836_v50 = vmul.f32 0.1, %v3804_v62  ;;  %v3840_v43 = vsel %vm3808_vm3, %v3792_v28, %v3824_v60 }
 0x29c   :  { %v3841_v27 = vsel %vm3809_vm4, %v3793_v52, %v3825_v29  ;;  %v3842_v8 = vsel %vm3810_vm5, %v3794_v44, %v3826_v34  ;;  %v3843_v12 = vsel %vm3811_vm6, %v3795_v18, %v3827_v2  ;;  %v3844_v19 = vsel %vm3812_vm7, %v3796_v53, %v3828_v39  ;;  %v8262_v39 = vld [vmem:[#allocation47_spill] sm:$0xff] }
 0x29d   :  { %v3845_v31 = vsel %vm3813_vm8, %v3797_v55, %v3829_v17  ;;  %v3846_v61 = vsel %vm3814_vm9, %v3798_v42, %v3830_v49  ;;  %v3847_v48 = vsel %vm3815_vm10, %v3799_v14, %v3831_v9  ;;  %v3848_v36 = vsel %vm3816_vm11, %v3800_v51, %v3832_v22 }
 0x29e   :  { %v3849_v21 = vsel %vm3817_vm12, %v3801_v57, %v3833_v41  ;;  %v3850_v35 = vsel %vm3818_vm13, %v3802_v15, %v3834_v54  ;;  %v3851_v46 = vsel %vm3819_vm14, %v3803_v25, %v3835_v58  ;;  %v3852_v38 = vsel %vm3820_vm15, %v3804_v62, %v3836_v50 }
 0x29f   :  { %v4697_v56 = vpack.c.bf16 %v3837_v63, %v3837_v63  ;;  %v4698_v3 = vpack.c.bf16 %v3838_v11, %v3838_v11  ;;  %v4699_v23 = vpack.c.bf16 %v3839_v24, %v3839_v24  ;;  %v4700_v28 = vpack.c.bf16 %v3840_v43, %v3840_v43  ;;  %v8263_v63 = vld [vmem:[#allocation49_spill] sm:$0xff] }
 0x2a0   :  { %v4701_v52 = vpack.c.bf16 %v3841_v27, %v3841_v27  ;;  %v4702_v44 = vpack.c.bf16 %v3842_v8, %v3842_v8  ;;  %v4703_v18 = vpack.c.bf16 %v3843_v12, %v3843_v12  ;;  %v4704_v53 = vpack.c.bf16 %v3844_v19, %v3844_v19 }
 0x2a1   :  { %v4705_v55 = vpack.c.bf16 %v3845_v31, %v3845_v31  ;;  %3917 = vst [vmem:[%s8085_s5 + $0x4] sm:$0xf] %v4697_v56  ;;  %v4706_v42 = vpack.c.bf16 %v3846_v61, %v3846_v61  ;;  %v4707_v14 = vpack.c.bf16 %v3847_v48, %v3847_v48  ;;  %v4708_v51 = vpack.c.bf16 %v3848_v36, %v3848_v36  ;;  %v8264_v31 = vld [vmem:[#allocation33_spill] sm:$0xff] }
 0x2a2   :  { %v4709_v57 = vpack.c.bf16 %v3849_v21, %v3849_v21  ;;  %3918 = vst [vmem:[%s8085_s5 + $0x14] sm:$0xf] %v4698_v3  ;;  %3919 = vst [vmem:[%s8085_s5 + $0x24] sm:$0xf] %v4699_v23  ;;  %v4710_v15 = vpack.c.bf16 %v3850_v35, %v3850_v35  ;;  %v4711_v25 = vpack.c.bf16 %v3851_v46, %v3851_v46 }
 0x2a3   :  { %3920 = vst [vmem:[%s8085_s5 + $0x34] sm:$0xf] %v4700_v28  ;;  %3921 = vst [vmem:[%s8085_s5 + $0x44] sm:$0xf] %v4701_v52  ;;  %v4712_v62 = vpack.c.bf16 %v3852_v38, %v3852_v38  ;;  %v3934_v45 = vmul.f32 %v7597_v32, %v7356_v59  ;;  %v3935_v26 = vmul.f32 %v7597_v32, %v7371_v1 }
 0x2a4   :  { %3922 = vst [vmem:[%s8085_s5 + $0x54] sm:$0xf] %v4702_v44  ;;  %3923 = vst [vmem:[%s8085_s5 + $0x64] sm:$0xf] %v4703_v18  ;;  %v3936_v59 = vmul.f32 %v7597_v32, %v7401_v7  ;;  %v3937_v0 = vmul.f32 %v7597_v32, %v7422_v37  ;;  %v3938_v60 = vmul.f32 %v7597_v32, %v7436_v5 }
 0x2a5   :  { %3924 = vst [vmem:[%s8085_s5 + $0x74] sm:$0xf] %v4704_v53  ;;  %3925 = vst [vmem:[%s8085_s5 + $0x84] sm:$0xf] %v4705_v55  ;;  %v3939_v1 = vmul.f32 %v7597_v32, %v7450_v6  ;;  %v3940_v7 = vmul.f32 %v7597_v32, %v7464_v30  ;;  %v3941_v37 = vmul.f32 %v7597_v32, %v7473_v40 }
 0x2a6   :  { %3926 = vst [vmem:[%s8085_s5 + $0x94] sm:$0xf] %v4706_v42  ;;  %3927 = vst [vmem:[%s8085_s5 + $0xa4] sm:$0xf] %v4707_v14  ;;  %v3942_v5 = vmul.f32 %v7597_v32, %v7486_v33  ;;  %v3943_v29 = vmul.f32 %v7597_v32, %v7498_v20  ;;  %v3944_v34 = vmul.f32 %v7597_v32, %v7509_v16 }
 0x2a7   :  { %3928 = vst [vmem:[%s8085_s5 + $0xb4] sm:$0xf] %v4708_v51  ;;  %3929 = vst [vmem:[%s8085_s5 + $0xc4] sm:$0xf] %v4709_v57  ;;  %v3945_v2 = vmul.f32 %v7597_v32, %v7518_v47  ;;  %v3946_v6 = vmul.f32 %v7597_v32, %v7532_v4  ;;  %v3947_v30 = vmul.f32 %v7597_v32, %v8262_v39 }
 0x2a8   :  { %3930 = vst [vmem:[%s8085_s5 + $0xd4] sm:$0xf] %v4710_v15  ;;  %3931 = vst [vmem:[%s8085_s5 + $0xe4] sm:$0xf] %v4711_v25  ;;  %v3948_v40 = vmul.f32 %v7597_v32, %v8263_v63  ;;  %v3949_v33 = vadd.f32 %v7788_v10, %v7632_v13  ;;  %v3950_v20 = vadd.f32 %v3934_v45, %v7632_v13 }
 0x2a9   :  { %3932 = vst [vmem:[%s8085_s5 + $0xf4] sm:$0xf] %v4712_v62  ;;  %v3951_v17 = vadd.f32 %v3935_v26, %v7632_v13  ;;  %v3952_v16 = vadd.f32 %v3936_v59, %v7632_v13  ;;  %v3953_v47 = vadd.f32 %v3937_v0, %v7632_v13  ;;  %v3954_v49 = vadd.f32 %v3938_v60, %v7632_v13 }
 0x2aa   :  { %v3955_v4 = vadd.f32 %v3939_v1, %v7632_v13  ;;  %v3956_v9 = vadd.f32 %v3940_v7, %v7632_v13  ;;  %v3957_v11 = vadd.f32 %v3941_v37, %v7632_v13  ;;  %v3958_v22 = vadd.f32 %v3942_v5, %v7632_v13 }
 0x2ab   :  { %v3959_v10 = vadd.f32 %v3943_v29, %v7632_v13  ;;  %v3960_v41 = vadd.f32 %v3944_v34, %v7632_v13  ;;  %v3961_v54 = vadd.f32 %v3945_v2, %v7632_v13  ;;  %v3962_v24 = vadd.f32 %v3946_v6, %v7632_v13 }
 0x2ac   :  { %v3963_v58 = vadd.f32 %v3947_v30, %v7632_v13  ;;  %v3964_v50 = vadd.f32 %v3948_v40, %v7632_v13  ;;  %vm3965_vm0 = vcmp.gt.f32.partialorder %v3949_v33, 0.0  ;;  %vm3966_vm1 = vcmp.gt.f32.partialorder %v3950_v20, 0.0 }
 0x2ad   :  { %vm3967_vm2 = vcmp.gt.f32.partialorder %v3951_v17, 0.0  ;;  %vm3968_vm3 = vcmp.gt.f32.partialorder %v3952_v16, 0.0  ;;  %vm3969_vm4 = vcmp.gt.f32.partialorder %v3953_v47, 0.0  ;;  %vm3970_vm5 = vcmp.gt.f32.partialorder %v3954_v49, 0.0 }
 0x2ae   :  { %vm3971_vm6 = vcmp.gt.f32.partialorder %v3955_v4, 0.0  ;;  %vm3972_vm7 = vcmp.gt.f32.partialorder %v3956_v9, 0.0  ;;  %vm3973_vm8 = vcmp.gt.f32.partialorder %v3957_v11, 0.0  ;;  %vm3974_vm9 = vcmp.gt.f32.partialorder %v3958_v22, 0.0 }
 0x2af   :  { %vm3975_vm10 = vcmp.gt.f32.partialorder %v3959_v10, 0.0  ;;  %vm3976_vm11 = vcmp.gt.f32.partialorder %v3960_v41, 0.0  ;;  %vm3977_vm12 = vcmp.gt.f32.partialorder %v3961_v54, 0.0  ;;  %vm3978_vm13 = vcmp.gt.f32.partialorder %v3962_v24, 0.0 }
 0x2b0   :  { %vm3979_vm14 = vcmp.gt.f32.partialorder %v3963_v58, 0.0  ;;  %vm3980_vm15 = vcmp.gt.f32.partialorder %v3964_v50, 0.0  ;;  %v3981_v43 = vmul.f32 0.1, %v3949_v33  ;;  %v3982_v27 = vmul.f32 0.1, %v3950_v20 }
 0x2b1   :  { %v3983_v8 = vmul.f32 0.1, %v3951_v17  ;;  %v3984_v12 = vmul.f32 0.1, %v3952_v16  ;;  %v3985_v19 = vmul.f32 0.1, %v3953_v47  ;;  %v7903_v61 = vmul.f32 %v7597_v32, %v8264_v31 }
 0x2b2   :  { %v3986_v48 = vmul.f32 0.1, %v3954_v49  ;;  %v3987_v36 = vmul.f32 0.1, %v3955_v4  ;;  %v3988_v21 = vmul.f32 0.1, %v3956_v9  ;;  %v3997_v35 = vsel %vm3965_vm0, %v3949_v33, %v3981_v43 }
 0x2b3   :  { %v3989_v46 = vmul.f32 0.1, %v3957_v11  ;;  %v3990_v38 = vmul.f32 0.1, %v3958_v22  ;;  %v3991_v56 = vmul.f32 0.1, %v3959_v10  ;;  %v3998_v3 = vsel %vm3966_vm1, %v3950_v20, %v3982_v27 }
 0x2b4   :  { %v3992_v23 = vmul.f32 0.1, %v3960_v41  ;;  %v3993_v28 = vmul.f32 0.1, %v3961_v54  ;;  %v3994_v52 = vmul.f32 0.1, %v3962_v24  ;;  %v3999_v44 = vsel %vm3967_vm2, %v3951_v17, %v3983_v8 }
 0x2b5   :  { %v3995_v18 = vmul.f32 0.1, %v3963_v58  ;;  %v3996_v53 = vmul.f32 0.1, %v3964_v50  ;;  %v4000_v55 = vsel %vm3968_vm3, %v3952_v16, %v3984_v12  ;;  %v4001_v42 = vsel %vm3969_vm4, %v3953_v47, %v3985_v19  ;;  %v8265_v47 = vld [vmem:[#allocation31_spill] sm:$0xff]  ;;  %v8271_v43 = vld [vmem:[#allocation40_spill] sm:$0xff] }
 0x2b6   :  { %v4002_v14 = vsel %vm3970_vm5, %v3954_v49, %v3986_v48  ;;  %v4003_v51 = vsel %vm3971_vm6, %v3955_v4, %v3987_v36  ;;  %v4004_v57 = vsel %vm3972_vm7, %v3956_v9, %v3988_v21  ;;  %v4005_v15 = vsel %vm3973_vm8, %v3957_v11, %v3989_v46  ;;  %v8266_v4 = vld [vmem:[#allocation35_spill] sm:$0xff]  ;;  %v8267_v11 = vld [vmem:[#allocation37_spill] sm:$0xff]  ;;  %v8273_v19 = vld [vmem:[#allocation42_spill] sm:$0xff] }
 0x2b7   :  { %v4006_v25 = vsel %vm3974_vm9, %v3958_v22, %v3990_v38  ;;  %v4007_v62 = vsel %vm3975_vm10, %v3959_v10, %v3991_v56  ;;  %v4008_v45 = vsel %vm3976_vm11, %v3960_v41, %v3992_v23  ;;  %v4009_v26 = vsel %vm3977_vm12, %v3961_v54, %v3993_v28  ;;  %v8268_v10 = vld [vmem:[#allocation55_spill] sm:$0xff]  ;;  %v8269_v54 = vld [vmem:[#allocation56_spill] sm:$0xff]  ;;  %v8272_v8 = vld [vmem:[#allocation41_spill] sm:$0xff] }
 0x2b8   :  { %v4010_v59 = vsel %vm3978_vm13, %v3962_v24, %v3994_v52  ;;  %v4011_v0 = vsel %vm3979_vm14, %v3963_v58, %v3995_v18  ;;  %v4012_v60 = vsel %vm3980_vm15, %v3964_v50, %v3996_v53  ;;  %v4713_v1 = vpack.c.bf16 %v3997_v35, %v3997_v35  ;;  %v8270_v58 = vld [vmem:[#allocation39_spill] sm:$0xff]  ;;  %v8275_v21 = vld [vmem:[#allocation44_spill] sm:$0xff]  ;;  %v8276_v46 = vld [vmem:[#allocation45_spill] sm:$0xff] }
 0x2b9   :  { %v4714_v7 = vpack.c.bf16 %v3998_v3, %v3998_v3  ;;  %v4715_v37 = vpack.c.bf16 %v3999_v44, %v3999_v44  ;;  %v4716_v5 = vpack.c.bf16 %v4000_v55, %v4000_v55  ;;  %v4717_v29 = vpack.c.bf16 %v4001_v42, %v4001_v42  ;;  %v8274_v48 = vld [vmem:[#allocation43_spill] sm:$0xff]  ;;  %v8277_v56 = vld [vmem:[#allocation46_spill] sm:$0xff]  ;;  %v8278_v23 = vld [vmem:[#allocation48_spill] sm:$0xff] }
 0x2ba   :  { %v4718_v34 = vpack.c.bf16 %v4002_v14, %v4002_v14  ;;  %v4719_v2 = vpack.c.bf16 %v4003_v51, %v4003_v51  ;;  %v4720_v6 = vpack.c.bf16 %v4004_v57, %v4004_v57  ;;  %v4721_v39 = vpack.c.bf16 %v4005_v15, %v4005_v15  ;;  %4077 = vst [vmem:[%s8085_s5 + $0x8] sm:$0xf] %v4713_v1  ;;  %v8279_v52 = vld [vmem:[#allocation50_spill] sm:$0xff] }
 0x2bb   :  { %v4722_v30 = vpack.c.bf16 %v4006_v25, %v4006_v25  ;;  %v4723_v63 = vpack.c.bf16 %v4007_v62, %v4007_v62  ;;  %v4724_v40 = vpack.c.bf16 %v4008_v45, %v4008_v45  ;;  %v4725_v33 = vpack.c.bf16 %v4009_v26, %v4009_v26  ;;  %4078 = vst [vmem:[%s8085_s5 + $0x18] sm:$0xf] %v4714_v7 }
 0x2bc   :  { %4079 = vst [vmem:[%s8085_s5 + $0x28] sm:$0xf] %v4715_v37  ;;  %4080 = vst [vmem:[%s8085_s5 + $0x38] sm:$0xf] %v4716_v5  ;;  %v4726_v20 = vpack.c.bf16 %v4010_v59, %v4010_v59  ;;  %v4727_v17 = vpack.c.bf16 %v4011_v0, %v4011_v0  ;;  %v4728_v16 = vpack.c.bf16 %v4012_v60, %v4012_v60 }
 0x2bd   :  { %4081 = vst [vmem:[%s8085_s5 + $0x48] sm:$0xf] %v4717_v29  ;;  %4082 = vst [vmem:[%s8085_s5 + $0x58] sm:$0xf] %v4718_v34  ;;  %v4094_v49 = vmul.f32 %v7597_v32, %v8265_v47  ;;  %v4095_v9 = vmul.f32 %v7597_v32, %v8266_v4  ;;  %v4096_v22 = vmul.f32 %v7597_v32, %v8267_v11 }
 0x2be   :  { %4083 = vst [vmem:[%s8085_s5 + $0x68] sm:$0xf] %v4719_v2  ;;  %4084 = vst [vmem:[%s8085_s5 + $0x78] sm:$0xf] %v4720_v6  ;;  %v4097_v41 = vmul.f32 %v7597_v32, %v8268_v10  ;;  %v4098_v24 = vmul.f32 %v7597_v32, %v8269_v54  ;;  %v4099_v50 = vmul.f32 %v7597_v32, %v8270_v58 }
 0x2bf   :  { %4085 = vst [vmem:[%s8085_s5 + $0x88] sm:$0xf] %v4721_v39  ;;  %4086 = vst [vmem:[%s8085_s5 + $0x98] sm:$0xf] %v4722_v30  ;;  %v4100_v27 = vmul.f32 %v7597_v32, %v8271_v43  ;;  %v4101_v12 = vmul.f32 %v7597_v32, %v8272_v8  ;;  %v4102_v31 = vmul.f32 %v7597_v32, %v8273_v19 }
 0x2c0   :  { %4087 = vst [vmem:[%s8085_s5 + $0xa8] sm:$0xf] %v4723_v63  ;;  %4088 = vst [vmem:[%s8085_s5 + $0xb8] sm:$0xf] %v4724_v40  ;;  %v4103_v36 = vmul.f32 %v7597_v32, %v8274_v48  ;;  %v4104_v35 = vmul.f32 %v7597_v32, %v8275_v21  ;;  %v4105_v38 = vmul.f32 %v7597_v32, %v8276_v46 }
 0x2c1   :  { %4089 = vst [vmem:[%s8085_s5 + $0xc8] sm:$0xf] %v4725_v33  ;;  %4090 = vst [vmem:[%s8085_s5 + $0xd8] sm:$0xf] %v4726_v20  ;;  %v4106_v3 = vmul.f32 %v7597_v32, %v8277_v56  ;;  %v4107_v28 = vmul.f32 %v7597_v32, %v8278_v23  ;;  %v4108_v44 = vmul.f32 %v7597_v32, %v8279_v52 }
 0x2c2   :  { %4091 = vst [vmem:[%s8085_s5 + $0xe8] sm:$0xf] %v4727_v17  ;;  %4092 = vst [vmem:[%s8085_s5 + $0xf8] sm:$0xf] %v4728_v16  ;;  %v4109_v18 = vadd.f32 %v7903_v61, %v7632_v13  ;;  %v4110_v53 = vadd.f32 %v4094_v49, %v7632_v13  ;;  %v4111_v55 = vadd.f32 %v4095_v9, %v7632_v13 }
 0x2c3   :  { %v4112_v42 = vadd.f32 %v4096_v22, %v7632_v13  ;;  %v4113_v14 = vadd.f32 %v4097_v41, %v7632_v13  ;;  %v4114_v51 = vadd.f32 %v4098_v24, %v7632_v13  ;;  %v4115_v57 = vadd.f32 %v4099_v50, %v7632_v13 }
 0x2c4   :  { %v4116_v15 = vadd.f32 %v4100_v27, %v7632_v13  ;;  %v4117_v25 = vadd.f32 %v4101_v12, %v7632_v13  ;;  %v4118_v32 = vadd.f32 %v4102_v31, %v7632_v13  ;;  %v4119_v61 = vadd.f32 %v4103_v36, %v7632_v13 }
 0x2c5   :  { %v4120_v62 = vadd.f32 %v4104_v35, %v7632_v13  ;;  %v4121_v45 = vadd.f32 %v4105_v38, %v7632_v13  ;;  %v4122_v26 = vadd.f32 %v4106_v3, %v7632_v13  ;;  %v4123_v59 = vadd.f32 %v4107_v28, %v7632_v13 }
 0x2c6   :  { %v4124_v0 = vadd.f32 %v4108_v44, %v7632_v13  ;;  %vm4125_vm0 = vcmp.gt.f32.partialorder %v4109_v18, 0.0  ;;  %vm4126_vm1 = vcmp.gt.f32.partialorder %v4110_v53, 0.0  ;;  %vm4127_vm2 = vcmp.gt.f32.partialorder %v4111_v55, 0.0 }
 0x2c7   :  { %vm4128_vm3 = vcmp.gt.f32.partialorder %v4112_v42, 0.0  ;;  %vm4129_vm4 = vcmp.gt.f32.partialorder %v4113_v14, 0.0  ;;  %vm4130_vm5 = vcmp.gt.f32.partialorder %v4114_v51, 0.0  ;;  %vm4131_vm6 = vcmp.gt.f32.partialorder %v4115_v57, 0.0 }
 0x2c8   :  { %vm4132_vm7 = vcmp.gt.f32.partialorder %v4116_v15, 0.0  ;;  %vm4133_vm8 = vcmp.gt.f32.partialorder %v4117_v25, 0.0  ;;  %vm4134_vm9 = vcmp.gt.f32.partialorder %v4118_v32, 0.0  ;;  %vm4135_vm10 = vcmp.gt.f32.partialorder %v4119_v61, 0.0 }
 0x2c9   :  { %vm4136_vm11 = vcmp.gt.f32.partialorder %v4120_v62, 0.0  ;;  %vm4137_vm12 = vcmp.gt.f32.partialorder %v4121_v45, 0.0  ;;  %vm4138_vm13 = vcmp.gt.f32.partialorder %v4122_v26, 0.0  ;;  %vm4139_vm14 = vcmp.gt.f32.partialorder %v4123_v59, 0.0 }
 0x2ca   :  { %vm4140_vm15 = vcmp.gt.f32.partialorder %v4124_v0, 0.0  ;;  %v4141_v60 = vmul.f32 0.1, %v4109_v18  ;;  %v4142_v1 = vmul.f32 0.1, %v4110_v53 }
 0x2cb   :  { %v4143_v7 = vmul.f32 0.1, %v4111_v55  ;;  %v4144_v13 = vmul.f32 0.1, %v4112_v42  ;;  %v4145_v37 = vmul.f32 0.1, %v4113_v14 }
 0x2cc   :  { %v4146_v5 = vmul.f32 0.1, %v4114_v51  ;;  %v4147_v29 = vmul.f32 0.1, %v4115_v57  ;;  %v4148_v34 = vmul.f32 0.1, %v4116_v15  ;;  %v4157_v2 = vsel %vm4125_vm0, %v4109_v18, %v4141_v60 }
 0x2cd   :  { %v4149_v6 = vmul.f32 0.1, %v4117_v25  ;;  %v4150_v39 = vmul.f32 0.1, %v4118_v32  ;;  %v4151_v30 = vmul.f32 0.1, %v4119_v61  ;;  %v4158_v63 = vsel %vm4126_vm1, %v4110_v53, %v4142_v1 }
 0x2ce   :  { %v4152_v40 = vmul.f32 0.1, %v4120_v62  ;;  %v4153_v33 = vmul.f32 0.1, %v4121_v45  ;;  %v4154_v20 = vmul.f32 0.1, %v4122_v26  ;;  %v4159_v17 = vsel %vm4127_vm2, %v4111_v55, %v4143_v7 }
 0x2cf   :  { %v4155_v16 = vmul.f32 0.1, %v4123_v59  ;;  %v4156_v47 = vmul.f32 0.1, %v4124_v0  ;;  %v4160_v49 = vsel %vm4128_vm3, %v4112_v42, %v4144_v13  ;;  %v4161_v4 = vsel %vm4129_vm4, %v4113_v14, %v4145_v37 }
 0x2d0   :  { %v4162_v9 = vsel %vm4130_vm5, %v4114_v51, %v4146_v5  ;;  %v4163_v11 = vsel %vm4131_vm6, %v4115_v57, %v4147_v29  ;;  %v4164_v22 = vsel %vm4132_vm7, %v4116_v15, %v4148_v34  ;;  %v4165_v10 = vsel %vm4133_vm8, %v4117_v25, %v4149_v6 }
 0x2d1   :  { %v4166_v41 = vsel %vm4134_vm9, %v4118_v32, %v4150_v39  ;;  %v4167_v54 = vsel %vm4135_vm10, %v4119_v61, %v4151_v30  ;;  %v4168_v24 = vsel %vm4136_vm11, %v4120_v62, %v4152_v40  ;;  %v4169_v58 = vsel %vm4137_vm12, %v4121_v45, %v4153_v33 }
 0x2d2   :  { %v4170_v50 = vsel %vm4138_vm13, %v4122_v26, %v4154_v20  ;;  %v4171_v43 = vsel %vm4139_vm14, %v4123_v59, %v4155_v16  ;;  %v4172_v27 = vsel %vm4140_vm15, %v4124_v0, %v4156_v47  ;;  %v4729_v8 = vpack.c.bf16 %v4157_v2, %v4157_v2 }
 0x2d3   :  { %v4730_v12 = vpack.c.bf16 %v4158_v63, %v4158_v63  ;;  %v4731_v19 = vpack.c.bf16 %v4159_v17, %v4159_v17  ;;  %v4732_v31 = vpack.c.bf16 %v4160_v49, %v4160_v49  ;;  %v4733_v48 = vpack.c.bf16 %v4161_v4, %v4161_v4 }
 0x2d4   :  { %v4734_v36 = vpack.c.bf16 %v4162_v9, %v4162_v9  ;;  %v4735_v21 = vpack.c.bf16 %v4163_v11, %v4163_v11  ;;  %v4736_v35 = vpack.c.bf16 %v4164_v22, %v4164_v22  ;;  %v4737_v46 = vpack.c.bf16 %v4165_v10, %v4165_v10  ;;  %4237 = vst [vmem:[%s8085_s5 + $0xc] sm:$0xf] %v4729_v8 }
 0x2d5   :  { %v4738_v38 = vpack.c.bf16 %v4166_v41, %v4166_v41  ;;  %v4739_v56 = vpack.c.bf16 %v4167_v54, %v4167_v54  ;;  %v4740_v3 = vpack.c.bf16 %v4168_v24, %v4168_v24  ;;  %v4741_v23 = vpack.c.bf16 %v4169_v58, %v4169_v58  ;;  %4238 = vst [vmem:[%s8085_s5 + $0x1c] sm:$0xf] %v4730_v12 }
 0x2d6   :  { %4239 = vst [vmem:[%s8085_s5 + $0x2c] sm:$0xf] %v4731_v19  ;;  %4240 = vst [vmem:[%s8085_s5 + $0x3c] sm:$0xf] %v4732_v31  ;;  %v4742_v28 = vpack.c.bf16 %v4170_v50, %v4170_v50  ;;  %v4743_v52 = vpack.c.bf16 %v4171_v43, %v4171_v43  ;;  %v4744_v44 = vpack.c.bf16 %v4172_v27, %v4172_v27 }
 0x2d7   :  { %4241 = vst [vmem:[%s8085_s5 + $0x4c] sm:$0xf] %v4733_v48  ;;  %4242 = vst [vmem:[%s8085_s5 + $0x5c] sm:$0xf] %v4734_v36 }
 0x2d8   :  { %4243 = vst [vmem:[%s8085_s5 + $0x6c] sm:$0xf] %v4735_v21  ;;  %4244 = vst [vmem:[%s8085_s5 + $0x7c] sm:$0xf] %v4736_v35 }
 0x2d9   :  { %4245 = vst [vmem:[%s8085_s5 + $0x8c] sm:$0xf] %v4737_v46  ;;  %4246 = vst [vmem:[%s8085_s5 + $0x9c] sm:$0xf] %v4738_v38 }
 0x2da   :  { %4247 = vst [vmem:[%s8085_s5 + $0xac] sm:$0xf] %v4739_v56  ;;  %4248 = vst [vmem:[%s8085_s5 + $0xbc] sm:$0xf] %v4740_v3 }
 0x2db   :  { %4249 = vst [vmem:[%s8085_s5 + $0xcc] sm:$0xf] %v4741_v23  ;;  %4250 = vst [vmem:[%s8085_s5 + $0xdc] sm:$0xf] %v4742_v28 }
 0x2dc   :  { %4251 = vst [vmem:[%s8085_s5 + $0xec] sm:$0xf] %v4743_v52  ;;  %4252 = vst [vmem:[%s8085_s5 + $0xfc] sm:$0xf] %v4744_v44 }

</bundles_post_ra>
